<compile_context>
chip_gen: v6e
topology: v6e:2x2x1
jax: 0.10.0
libtpu: 0.0.40
codegen_flags: <defaults>
</compile_context>

<pallas_src>
import jax
import jax.numpy as jnp
from jax.experimental import pallas as pl
from jax.experimental.pallas import tpu as pltpu

_VMEM_SPEC = pl.BlockSpec(memory_space=pltpu.MemorySpace.VMEM)


# ---------------------------------------------------------------------------
# Fused Conv3x3(stride1, pad1) + bias + ReLU + MaxPool2d(2) kernel
# (one grid step = one batch sample; grid axis is "parallel")
# ---------------------------------------------------------------------------
def _conv_relu_pool_kernel(x_ref, w_ref, b_ref, o_ref, xpad_ref):
    # x_ref   : (1, H, W, Cin)        f32   one sample (NHWC)
    # w_ref   : (3, 3, Cin, Cout)     bf16  HWIO conv weight
    # b_ref   : (1, Cout)             f32   conv bias
    # o_ref   : (1, H//2, W//2, Cout) f32   pooled output
    # xpad_ref: (1, H+2, W+2, Cin)    f32   zero-halo scratch (in-kernel padding)
    _, H, W, Cin = x_ref.shape
    Cout = o_ref.shape[-1]

    # In-kernel zero padding: no jnp.pad / extra HBM copy.
    xpad_ref[...] = jnp.zeros(xpad_ref.shape, xpad_ref.dtype)
    xpad_ref[:, 1:H + 1, 1:W + 1, :] = x_ref[...]
    xpad = xpad_ref[...]

    # 3x3 conv: 9 shifted-window taps, bf16 MXU dots, f32 accumulation.
    w = w_ref[...]
    acc = jnp.zeros((H * W, Cout), jnp.float32)
    for kh in range(3):
        for kw in range(3):
            patch = xpad[:, kh:kh + H, kw:kw + W, :].reshape(H * W, Cin)
            acc = acc + jnp.dot(patch.astype(jnp.bfloat16), w[kh, kw],
                                preferred_element_type=jnp.float32)

    # bias + ReLU (f32 elementwise)
    acc = jnp.maximum(acc + b_ref[...], 0.0)

    # MaxPool2d(2), fused as the epilogue.
    # H-direction: split H on a major (non-tiled) axis -> free reshape, then max.
    act = acc.reshape(1, H // 2, 2, W, Cout)
    ph = jnp.maximum(act[:, :, 0], act[:, :, 1])          # (1, H//2, W, Cout)
    # W-direction: max of adjacent sublane pairs, written straight to the output.
    for j in range(W // 2):
        o_ref[:, :, j:j + 1, :] = jnp.maximum(ph[:, :, 2 * j:2 * j + 1, :],
                                              ph[:, :, 2 * j + 1:2 * j + 2, :])


def conv_relu_pool(x_nhwc, w_hwio_bf16, b):
    N, H, W, Cin = x_nhwc.shape
    Cout = w_hwio_bf16.shape[-1]
    Hp, Wp = H // 2, W // 2
    return pl.pallas_call(
        _conv_relu_pool_kernel,
        out_shape=jax.ShapeDtypeStruct((N, Hp, Wp, Cout), jnp.float32),
        grid_spec=pltpu.PrefetchScalarGridSpec(
            num_scalar_prefetch=0,
            grid=(N,),
            in_specs=[
                pl.BlockSpec((1, H, W, Cin), lambda n: (n, 0, 0, 0)),
                pl.BlockSpec((3, 3, Cin, Cout), lambda n: (0, 0, 0, 0)),
                pl.BlockSpec((1, Cout), lambda n: (0, 0)),
            ],
            out_specs=pl.BlockSpec((1, Hp, Wp, Cout), lambda n: (n, 0, 0, 0)),
            scratch_shapes=[pltpu.VMEM((1, H + 2, W + 2, Cin), jnp.float32)],
        ),
        compiler_params=pltpu.CompilerParams(
            dimension_semantics=("parallel",)),
    )(x_nhwc, w_hwio_bf16, b.reshape(1, -1))


# ---------------------------------------------------------------------------
# Linear(2560, 10) kernel
# ---------------------------------------------------------------------------
def _linear_kernel(x_ref, w_ref, b_ref, o_ref):
    o_ref[...] = jnp.dot(x_ref[...].astype(jnp.bfloat16), w_ref[...],
                         preferred_element_type=jnp.float32) + b_ref[...]


def linear(x, w_bf16, b):
    N = x.shape[0]
    return pl.pallas_call(
        _linear_kernel,
        out_shape=jax.ShapeDtypeStruct((N, w_bf16.shape[-1]), jnp.float32),
        in_specs=[_VMEM_SPEC] * 3,
        out_specs=_VMEM_SPEC,
    )(x, w_bf16, b.reshape(1, -1))


# ---------------------------------------------------------------------------
# Parameters (generated in PyTorch layouts, converted once to kernel layouts)
# ---------------------------------------------------------------------------
def init_params(key):
    k1, k2, k3 = jax.random.split(key, 3)
    # PyTorch-native layouts.
    w_conv_oihw = 0.1 * jax.random.normal(k1, (10, 3, 3, 3), jnp.float32)
    b_conv = 0.01 * jax.random.normal(k2, (10,), jnp.float32)
    w_fc_oi = 0.02 * jax.random.normal(k3, (10, 2560), jnp.float32)  # in-idx = c*256 + h*16 + w
    b_fc = jnp.zeros((10,), jnp.float32)

    # Kernel layouts: HWIO conv weight; FC rows permuted from PyTorch's (c,h,w)
    # flatten order to the kernels' NHWC (h,w,c) flatten order.
    w_conv = jnp.transpose(w_conv_oihw, (2, 3, 1, 0)).astype(jnp.bfloat16)       # (3,3,3,10)
    w_fc = jnp.transpose(w_fc_oi.reshape(10, 10, 16, 16), (2, 3, 1, 0))          # (h,w,c,out)
    w_fc = w_fc.reshape(2560, 10).astype(jnp.bfloat16)
    return {"w_conv": w_conv, "b_conv": b_conv, "w_fc": w_fc, "b_fc": b_fc}


# ---------------------------------------------------------------------------
# Full forward pass (matches CNN.forward)
# ---------------------------------------------------------------------------
def cnn_forward(x_nchw, params):
    x = jnp.transpose(x_nchw, (0, 2, 3, 1)).astype(jnp.float32)       # NCHW -> NHWC once
    pooled = conv_relu_pool(x, params["w_conv"], params["b_conv"])    # (N, 16, 16, 10)
    # TODO(synk): the view(-1, 2560) flatten stays as one tiny XLA reshape between the
    # two pallas_calls; a lane-merging reshape is not reliably lowerable inside Mosaic.
    feat = pooled.reshape(pooled.shape[0], -1)                        # (N, 2560) NHWC order
    return linear(feat, params["w_fc"], params["b_fc"])               # (N, 10)


if __name__ == "__main__":
    key = jax.random.PRNGKey(0)
    kx, kp = jax.random.split(key)
    # Architecture requires 3x32x32 inputs (2560 = 10 * 16 * 16); small batch of 2.
    x = jax.random.normal(kx, (2, 3, 32, 32), jnp.float32)
    params = init_params(kp)

    logits = jax.block_until_ready(jax.jit(cnn_forward)(x, params))

    assert logits.shape == (2, 10), logits.shape
    assert bool(jnp.all(jnp.isfinite(logits)))
    print("KERNEL_OK")
</pallas_src>

<mosaic_0001>
module attributes {stable_mosaic.version = 11 : i64} {
  func.func @_conv_relu_pool_kernel(%arg0: i32, %arg1: memref<1x32x32x3xf32, #tpu.memory_space<vmem>>, %arg2: memref<3x3x3x10xbf16, #tpu.memory_space<vmem>>, %arg3: memref<1x10xf32, #tpu.memory_space<vmem>>, %arg4: memref<1x16x16x10xf32, #tpu.memory_space<vmem>>, %arg5: memref<1x34x34x3xf32, #tpu.memory_space<vmem>>) attributes {dimension_semantics = [#tpu.dimension_semantics<parallel>], iteration_bounds = array<i64: 2>, scalar_prefetch = 0 : i64, scratch_operands = 1 : i64, tpu.core_type = #tpu.core_type<tc>, window_params = [{transform_indices = @transform_0, window_bounds = array<i64: 1, 32, 32, 3>}, {pipeline_mode = #tpu.pipeline_mode<synchronous>, transform_indices = @transform_1, window_bounds = array<i64: 3, 3, 3, 10>}, {pipeline_mode = #tpu.pipeline_mode<synchronous>, transform_indices = @transform_2, window_bounds = array<i64: 1, 10>}, {transform_indices = @transform_3, window_bounds = array<i64: 1, 16, 16, 10>}]} {
    %cst = arith.constant 0.000000e+00 : f32
    %0 = vector.broadcast %cst : f32 to vector<1x34x34x3xf32>
    %c0 = arith.constant 0 : index
    %c0_0 = arith.constant 0 : index
    %c0_1 = arith.constant 0 : index
    %c0_2 = arith.constant 0 : index
    %1 = vector.load %arg5[%c0, %c0_0, %c0_1, %c0_2] : memref<1x34x34x3xf32, #tpu.memory_space<vmem>>, vector<1x34x34x3xf32>
    tpu.vector_store %arg5[%c0, %c0_0, %c0_1, %c0_2], %0 {strides = array<i32>} : memref<1x34x34x3xf32, #tpu.memory_space<vmem>>, vector<1x34x34x3xf32>,
    %c0_3 = arith.constant 0 : index
    %c0_4 = arith.constant 0 : index
    %c0_5 = arith.constant 0 : index
    %c0_6 = arith.constant 0 : index
    %2 = vector.load %arg1[%c0_3, %c0_4, %c0_5, %c0_6] : memref<1x32x32x3xf32, #tpu.memory_space<vmem>>, vector<1x32x32x3xf32>
    %c0_7 = arith.constant 0 : index
    %c1 = arith.constant 1 : index
    %c1_8 = arith.constant 1 : index
    %c0_9 = arith.constant 0 : index
    %3 = vector.load %arg5[%c0_7, %c1, %c1_8, %c0_9] : memref<1x34x34x3xf32, #tpu.memory_space<vmem>>, vector<1x32x32x3xf32>
    tpu.vector_store %arg5[%c0_7, %c1, %c1_8, %c0_9], %2 {strides = array<i32>} : memref<1x34x34x3xf32, #tpu.memory_space<vmem>>, vector<1x32x32x3xf32>,
    %c0_10 = arith.constant 0 : index
    %c0_11 = arith.constant 0 : index
    %c0_12 = arith.constant 0 : index
    %c0_13 = arith.constant 0 : index
    %4 = vector.load %arg5[%c0_10, %c0_11, %c0_12, %c0_13] : memref<1x34x34x3xf32, #tpu.memory_space<vmem>>, vector<1x34x34x3xf32>
    %c0_14 = arith.constant 0 : index
    %c0_15 = arith.constant 0 : index
    %c0_16 = arith.constant 0 : index
    %c0_17 = arith.constant 0 : index
    %5 = vector.load %arg2[%c0_14, %c0_15, %c0_16, %c0_17] : memref<3x3x3x10xbf16, #tpu.memory_space<vmem>>, vector<3x3x3x10xbf16>
    %cst_18 = arith.constant 0.000000e+00 : f32
    %6 = vector.broadcast %cst_18 : f32 to vector<1024x10xf32>
    %7 = vector.extract_strided_slice %4 {offsets = [0, 0, 0, 0], sizes = [1, 32, 32, 3], strides = [1, 1, 1, 1]} : vector<1x34x34x3xf32> to vector<1x32x32x3xf32>
    %8 = vector.shape_cast %7 : vector<1x32x32x3xf32> to vector<1024x3xf32>
    %9 = arith.truncf %8 : vector<1024x3xf32> to vector<1024x3xbf16>
    %10 = vector.extract_strided_slice %5 {offsets = [0, 0, 0, 0], sizes = [1, 1, 3, 10], strides = [1, 1, 1, 1]} : vector<3x3x3x10xbf16> to vector<1x1x3x10xbf16>
    %11 = vector.shape_cast %10 : vector<1x1x3x10xbf16> to vector<3x10xbf16>
    %cst_19 = arith.constant dense<0.000000e+00> : vector<1024x10xf32>
    %12 = tpu.matmul %9, %11, %cst_19 {dimension_numbers = #tpu.dot_dimension_numbers<[1], [0], [0], [1], [0, 0, 1, 1], [], []>} : vector<1024x3xbf16>, vector<3x10xbf16>, vector<1024x10xf32> -> vector<1024x10xf32>
    %13 = arith.addf %6, %12 : vector<1024x10xf32>
    %14 = vector.extract_strided_slice %4 {offsets = [0, 0, 1, 0], sizes = [1, 32, 32, 3], strides = [1, 1, 1, 1]} : vector<1x34x34x3xf32> to vector<1x32x32x3xf32>
    %15 = vector.shape_cast %14 : vector<1x32x32x3xf32> to vector<1024x3xf32>
    %16 = arith.truncf %15 : vector<1024x3xf32> to vector<1024x3xbf16>
    %17 = vector.extract_strided_slice %5 {offsets = [0, 1, 0, 0], sizes = [1, 1, 3, 10], strides = [1, 1, 1, 1]} : vector<3x3x3x10xbf16> to vector<1x1x3x10xbf16>
    %18 = vector.shape_cast %17 : vector<1x1x3x10xbf16> to vector<3x10xbf16>
    %cst_20 = arith.constant dense<0.000000e+00> : vector<1024x10xf32>
    %19 = tpu.matmul %16, %18, %cst_20 {dimension_numbers = #tpu.dot_dimension_numbers<[1], [0], [0], [1], [0, 0, 1, 1], [], []>} : vector<1024x3xbf16>, vector<3x10xbf16>, vector<1024x10xf32> -> vector<1024x10xf32>
    %20 = arith.addf %13, %19 : vector<1024x10xf32>
    %21 = vector.extract_strided_slice %4 {offsets = [0, 0, 2, 0], sizes = [1, 32, 32, 3], strides = [1, 1, 1, 1]} : vector<1x34x34x3xf32> to vector<1x32x32x3xf32>
    %22 = vector.shape_cast %21 : vector<1x32x32x3xf32> to vector<1024x3xf32>
    %23 = arith.truncf %22 : vector<1024x3xf32> to vector<1024x3xbf16>
    %24 = vector.extract_strided_slice %5 {offsets = [0, 2, 0, 0], sizes = [1, 1, 3, 10], strides = [1, 1, 1, 1]} : vector<3x3x3x10xbf16> to vector<1x1x3x10xbf16>
    %25 = vector.shape_cast %24 : vector<1x1x3x10xbf16> to vector<3x10xbf16>
    %cst_21 = arith.constant dense<0.000000e+00> : vector<1024x10xf32>
    %26 = tpu.matmul %23, %25, %cst_21 {dimension_numbers = #tpu.dot_dimension_numbers<[1], [0], [0], [1], [0, 0, 1, 1], [], []>} : vector<1024x3xbf16>, vector<3x10xbf16>, vector<1024x10xf32> -> vector<1024x10xf32>
    %27 = arith.addf %20, %26 : vector<1024x10xf32>
    %28 = vector.extract_strided_slice %4 {offsets = [0, 1, 0, 0], sizes = [1, 32, 32, 3], strides = [1, 1, 1, 1]} : vector<1x34x34x3xf32> to vector<1x32x32x3xf32>
    %29 = vector.shape_cast %28 : vector<1x32x32x3xf32> to vector<1024x3xf32>
    %30 = arith.truncf %29 : vector<1024x3xf32> to vector<1024x3xbf16>
    %31 = vector.extract_strided_slice %5 {offsets = [1, 0, 0, 0], sizes = [1, 1, 3, 10], strides = [1, 1, 1, 1]} : vector<3x3x3x10xbf16> to vector<1x1x3x10xbf16>
    %32 = vector.shape_cast %31 : vector<1x1x3x10xbf16> to vector<3x10xbf16>
    %cst_22 = arith.constant dense<0.000000e+00> : vector<1024x10xf32>
    %33 = tpu.matmul %30, %32, %cst_22 {dimension_numbers = #tpu.dot_dimension_numbers<[1], [0], [0], [1], [0, 0, 1, 1], [], []>} : vector<1024x3xbf16>, vector<3x10xbf16>, vector<1024x10xf32> -> vector<1024x10xf32>
    %34 = arith.addf %27, %33 : vector<1024x10xf32>
    %35 = vector.extract_strided_slice %4 {offsets = [0, 1, 1, 0], sizes = [1, 32, 32, 3], strides = [1, 1, 1, 1]} : vector<1x34x34x3xf32> to vector<1x32x32x3xf32>
    %36 = vector.shape_cast %35 : vector<1x32x32x3xf32> to vector<1024x3xf32>
    %37 = arith.truncf %36 : vector<1024x3xf32> to vector<1024x3xbf16>
    %38 = vector.extract_strided_slice %5 {offsets = [1, 1, 0, 0], sizes = [1, 1, 3, 10], strides = [1, 1, 1, 1]} : vector<3x3x3x10xbf16> to vector<1x1x3x10xbf16>
    %39 = vector.shape_cast %38 : vector<1x1x3x10xbf16> to vector<3x10xbf16>
    %cst_23 = arith.constant dense<0.000000e+00> : vector<1024x10xf32>
    %40 = tpu.matmul %37, %39, %cst_23 {dimension_numbers = #tpu.dot_dimension_numbers<[1], [0], [0], [1], [0, 0, 1, 1], [], []>} : vector<1024x3xbf16>, vector<3x10xbf16>, vector<1024x10xf32> -> vector<1024x10xf32>
    %41 = arith.addf %34, %40 : vector<1024x10xf32>
    %42 = vector.extract_strided_slice %4 {offsets = [0, 1, 2, 0], sizes = [1, 32, 32, 3], strides = [1, 1, 1, 1]} : vector<1x34x34x3xf32> to vector<1x32x32x3xf32>
    %43 = vector.shape_cast %42 : vector<1x32x32x3xf32> to vector<1024x3xf32>
    %44 = arith.truncf %43 : vector<1024x3xf32> to vector<1024x3xbf16>
    %45 = vector.extract_strided_slice %5 {offsets = [1, 2, 0, 0], sizes = [1, 1, 3, 10], strides = [1, 1, 1, 1]} : vector<3x3x3x10xbf16> to vector<1x1x3x10xbf16>
    %46 = vector.shape_cast %45 : vector<1x1x3x10xbf16> to vector<3x10xbf16>
    %cst_24 = arith.constant dense<0.000000e+00> : vector<1024x10xf32>
    %47 = tpu.matmul %44, %46, %cst_24 {dimension_numbers = #tpu.dot_dimension_numbers<[1], [0], [0], [1], [0, 0, 1, 1], [], []>} : vector<1024x3xbf16>, vector<3x10xbf16>, vector<1024x10xf32> -> vector<1024x10xf32>
    %48 = arith.addf %41, %47 : vector<1024x10xf32>
    %49 = vector.extract_strided_slice %4 {offsets = [0, 2, 0, 0], sizes = [1, 32, 32, 3], strides = [1, 1, 1, 1]} : vector<1x34x34x3xf32> to vector<1x32x32x3xf32>
    %50 = vector.shape_cast %49 : vector<1x32x32x3xf32> to vector<1024x3xf32>
    %51 = arith.truncf %50 : vector<1024x3xf32> to vector<1024x3xbf16>
    %52 = vector.extract_strided_slice %5 {offsets = [2, 0, 0, 0], sizes = [1, 1, 3, 10], strides = [1, 1, 1, 1]} : vector<3x3x3x10xbf16> to vector<1x1x3x10xbf16>
    %53 = vector.shape_cast %52 : vector<1x1x3x10xbf16> to vector<3x10xbf16>
    %cst_25 = arith.constant dense<0.000000e+00> : vector<1024x10xf32>
    %54 = tpu.matmul %51, %53, %cst_25 {dimension_numbers = #tpu.dot_dimension_numbers<[1], [0], [0], [1], [0, 0, 1, 1], [], []>} : vector<1024x3xbf16>, vector<3x10xbf16>, vector<1024x10xf32> -> vector<1024x10xf32>
    %55 = arith.addf %48, %54 : vector<1024x10xf32>
    %56 = vector.extract_strided_slice %4 {offsets = [0, 2, 1, 0], sizes = [1, 32, 32, 3], strides = [1, 1, 1, 1]} : vector<1x34x34x3xf32> to vector<1x32x32x3xf32>
    %57 = vector.shape_cast %56 : vector<1x32x32x3xf32> to vector<1024x3xf32>
    %58 = arith.truncf %57 : vector<1024x3xf32> to vector<1024x3xbf16>
    %59 = vector.extract_strided_slice %5 {offsets = [2, 1, 0, 0], sizes = [1, 1, 3, 10], strides = [1, 1, 1, 1]} : vector<3x3x3x10xbf16> to vector<1x1x3x10xbf16>
    %60 = vector.shape_cast %59 : vector<1x1x3x10xbf16> to vector<3x10xbf16>
    %cst_26 = arith.constant dense<0.000000e+00> : vector<1024x10xf32>
    %61 = tpu.matmul %58, %60, %cst_26 {dimension_numbers = #tpu.dot_dimension_numbers<[1], [0], [0], [1], [0, 0, 1, 1], [], []>} : vector<1024x3xbf16>, vector<3x10xbf16>, vector<1024x10xf32> -> vector<1024x10xf32>
    %62 = arith.addf %55, %61 : vector<1024x10xf32>
    %63 = vector.extract_strided_slice %4 {offsets = [0, 2, 2, 0], sizes = [1, 32, 32, 3], strides = [1, 1, 1, 1]} : vector<1x34x34x3xf32> to vector<1x32x32x3xf32>
    %64 = vector.shape_cast %63 : vector<1x32x32x3xf32> to vector<1024x3xf32>
    %65 = arith.truncf %64 : vector<1024x3xf32> to vector<1024x3xbf16>
    %66 = vector.extract_strided_slice %5 {offsets = [2, 2, 0, 0], sizes = [1, 1, 3, 10], strides = [1, 1, 1, 1]} : vector<3x3x3x10xbf16> to vector<1x1x3x10xbf16>
    %67 = vector.shape_cast %66 : vector<1x1x3x10xbf16> to vector<3x10xbf16>
    %cst_27 = arith.constant dense<0.000000e+00> : vector<1024x10xf32>
    %68 = tpu.matmul %65, %67, %cst_27 {dimension_numbers = #tpu.dot_dimension_numbers<[1], [0], [0], [1], [0, 0, 1, 1], [], []>} : vector<1024x3xbf16>, vector<3x10xbf16>, vector<1024x10xf32> -> vector<1024x10xf32>
    %69 = arith.addf %62, %68 : vector<1024x10xf32>
    %c0_28 = arith.constant 0 : index
    %c0_29 = arith.constant 0 : index
    %70 = vector.load %arg3[%c0_28, %c0_29] : memref<1x10xf32, #tpu.memory_space<vmem>>, vector<1x10xf32>
    %71 = vector.broadcast %70 : vector<1x10xf32> to vector<1024x10xf32>
    %72 = arith.addf %69, %71 : vector<1024x10xf32>
    %cst_30 = arith.constant 0.000000e+00 : f32
    %73 = vector.broadcast %cst_30 : f32 to vector<1024x10xf32>
    %74 = arith.maximumf %72, %73 : vector<1024x10xf32>
    %75 = vector.shape_cast %74 : vector<1024x10xf32> to vector<1x16x2x32x10xf32>
    %76 = vector.extract_strided_slice %75 {offsets = [0, 0, 0, 0, 0], sizes = [1, 16, 1, 32, 10], strides = [1, 1, 1, 1, 1]} : vector<1x16x2x32x10xf32> to vector<1x16x1x32x10xf32>
    %77 = vector.shape_cast %76 : vector<1x16x1x32x10xf32> to vector<1x16x32x10xf32>
    %78 = vector.extract_strided_slice %75 {offsets = [0, 0, 1, 0, 0], sizes = [1, 16, 1, 32, 10], strides = [1, 1, 1, 1, 1]} : vector<1x16x2x32x10xf32> to vector<1x16x1x32x10xf32>
    %79 = vector.shape_cast %78 : vector<1x16x1x32x10xf32> to vector<1x16x32x10xf32>
    %80 = arith.maximumf %77, %79 : vector<1x16x32x10xf32>
    %81 = vector.extract_strided_slice %80 {offsets = [0, 0, 0, 0], sizes = [1, 16, 1, 10], strides = [1, 1, 1, 1]} : vector<1x16x32x10xf32> to vector<1x16x1x10xf32>
    %82 = vector.extract_strided_slice %80 {offsets = [0, 0, 1, 0], sizes = [1, 16, 1, 10], strides = [1, 1, 1, 1]} : vector<1x16x32x10xf32> to vector<1x16x1x10xf32>
    %83 = arith.maximumf %81, %82 : vector<1x16x1x10xf32>
    %c0_31 = arith.constant 0 : index
    %c0_32 = arith.constant 0 : index
    %c0_33 = arith.constant 0 : index
    %c0_34 = arith.constant 0 : index
    %84 = vector.load %arg4[%c0_31, %c0_32, %c0_33, %c0_34] : memref<1x16x16x10xf32, #tpu.memory_space<vmem>>, vector<1x16x1x10xf32>
    tpu.vector_store %arg4[%c0_31, %c0_32, %c0_33, %c0_34], %83 {strides = array<i32>} : memref<1x16x16x10xf32, #tpu.memory_space<vmem>>, vector<1x16x1x10xf32>,
    %85 = vector.extract_strided_slice %80 {offsets = [0, 0, 2, 0], sizes = [1, 16, 1, 10], strides = [1, 1, 1, 1]} : vector<1x16x32x10xf32> to vector<1x16x1x10xf32>
    %86 = vector.extract_strided_slice %80 {offsets = [0, 0, 3, 0], sizes = [1, 16, 1, 10], strides = [1, 1, 1, 1]} : vector<1x16x32x10xf32> to vector<1x16x1x10xf32>
    %87 = arith.maximumf %85, %86 : vector<1x16x1x10xf32>
    %c0_35 = arith.constant 0 : index
    %c0_36 = arith.constant 0 : index
    %c1_37 = arith.constant 1 : index
    %c0_38 = arith.constant 0 : index
    %88 = vector.load %arg4[%c0_35, %c0_36, %c1_37, %c0_38] : memref<1x16x16x10xf32, #tpu.memory_space<vmem>>, vector<1x16x1x10xf32>
    tpu.vector_store %arg4[%c0_35, %c0_36, %c1_37, %c0_38], %87 {strides = array<i32>} : memref<1x16x16x10xf32, #tpu.memory_space<vmem>>, vector<1x16x1x10xf32>,
    %89 = vector.extract_strided_slice %80 {offsets = [0, 0, 4, 0], sizes = [1, 16, 1, 10], strides = [1, 1, 1, 1]} : vector<1x16x32x10xf32> to vector<1x16x1x10xf32>
    %90 = vector.extract_strided_slice %80 {offsets = [0, 0, 5, 0], sizes = [1, 16, 1, 10], strides = [1, 1, 1, 1]} : vector<1x16x32x10xf32> to vector<1x16x1x10xf32>
    %91 = arith.maximumf %89, %90 : vector<1x16x1x10xf32>
    %c0_39 = arith.constant 0 : index
    %c0_40 = arith.constant 0 : index
    %c2 = arith.constant 2 : index
    %c0_41 = arith.constant 0 : index
    %92 = vector.load %arg4[%c0_39, %c0_40, %c2, %c0_41] : memref<1x16x16x10xf32, #tpu.memory_space<vmem>>, vector<1x16x1x10xf32>
    tpu.vector_store %arg4[%c0_39, %c0_40, %c2, %c0_41], %91 {strides = array<i32>} : memref<1x16x16x10xf32, #tpu.memory_space<vmem>>, vector<1x16x1x10xf32>,
    %93 = vector.extract_strided_slice %80 {offsets = [0, 0, 6, 0], sizes = [1, 16, 1, 10], strides = [1, 1, 1, 1]} : vector<1x16x32x10xf32> to vector<1x16x1x10xf32>
    %94 = vector.extract_strided_slice %80 {offsets = [0, 0, 7, 0], sizes = [1, 16, 1, 10], strides = [1, 1, 1, 1]} : vector<1x16x32x10xf32> to vector<1x16x1x10xf32>
    %95 = arith.maximumf %93, %94 : vector<1x16x1x10xf32>
    %c0_42 = arith.constant 0 : index
    %c0_43 = arith.constant 0 : index
    %c3 = arith.constant 3 : index
    %c0_44 = arith.constant 0 : index
    %96 = vector.load %arg4[%c0_42, %c0_43, %c3, %c0_44] : memref<1x16x16x10xf32, #tpu.memory_space<vmem>>, vector<1x16x1x10xf32>
    tpu.vector_store %arg4[%c0_42, %c0_43, %c3, %c0_44], %95 {strides = array<i32>} : memref<1x16x16x10xf32, #tpu.memory_space<vmem>>, vector<1x16x1x10xf32>,
    %97 = vector.extract_strided_slice %80 {offsets = [0, 0, 8, 0], sizes = [1, 16, 1, 10], strides = [1, 1, 1, 1]} : vector<1x16x32x10xf32> to vector<1x16x1x10xf32>
    %98 = vector.extract_strided_slice %80 {offsets = [0, 0, 9, 0], sizes = [1, 16, 1, 10], strides = [1, 1, 1, 1]} : vector<1x16x32x10xf32> to vector<1x16x1x10xf32>
    %99 = arith.maximumf %97, %98 : vector<1x16x1x10xf32>
    %c0_45 = arith.constant 0 : index
    %c0_46 = arith.constant 0 : index
    %c4 = arith.constant 4 : index
    %c0_47 = arith.constant 0 : index
    %100 = vector.load %arg4[%c0_45, %c0_46, %c4, %c0_47] : memref<1x16x16x10xf32, #tpu.memory_space<vmem>>, vector<1x16x1x10xf32>
    tpu.vector_store %arg4[%c0_45, %c0_46, %c4, %c0_47], %99 {strides = array<i32>} : memref<1x16x16x10xf32, #tpu.memory_space<vmem>>, vector<1x16x1x10xf32>,
    %101 = vector.extract_strided_slice %80 {offsets = [0, 0, 10, 0], sizes = [1, 16, 1, 10], strides = [1, 1, 1, 1]} : vector<1x16x32x10xf32> to vector<1x16x1x10xf32>
    %102 = vector.extract_strided_slice %80 {offsets = [0, 0, 11, 0], sizes = [1, 16, 1, 10], strides = [1, 1, 1, 1]} : vector<1x16x32x10xf32> to vector<1x16x1x10xf32>
    %103 = arith.maximumf %101, %102 : vector<1x16x1x10xf32>
    %c0_48 = arith.constant 0 : index
    %c0_49 = arith.constant 0 : index
    %c5 = arith.constant 5 : index
    %c0_50 = arith.constant 0 : index
    %104 = vector.load %arg4[%c0_48, %c0_49, %c5, %c0_50] : memref<1x16x16x10xf32, #tpu.memory_space<vmem>>, vector<1x16x1x10xf32>
    tpu.vector_store %arg4[%c0_48, %c0_49, %c5, %c0_50], %103 {strides = array<i32>} : memref<1x16x16x10xf32, #tpu.memory_space<vmem>>, vector<1x16x1x10xf32>,
    %105 = vector.extract_strided_slice %80 {offsets = [0, 0, 12, 0], sizes = [1, 16, 1, 10], strides = [1, 1, 1, 1]} : vector<1x16x32x10xf32> to vector<1x16x1x10xf32>
    %106 = vector.extract_strided_slice %80 {offsets = [0, 0, 13, 0], sizes = [1, 16, 1, 10], strides = [1, 1, 1, 1]} : vector<1x16x32x10xf32> to vector<1x16x1x10xf32>
    %107 = arith.maximumf %105, %106 : vector<1x16x1x10xf32>
    %c0_51 = arith.constant 0 : index
    %c0_52 = arith.constant 0 : index
    %c6 = arith.constant 6 : index
    %c0_53 = arith.constant 0 : index
    %108 = vector.load %arg4[%c0_51, %c0_52, %c6, %c0_53] : memref<1x16x16x10xf32, #tpu.memory_space<vmem>>, vector<1x16x1x10xf32>
    tpu.vector_store %arg4[%c0_51, %c0_52, %c6, %c0_53], %107 {strides = array<i32>} : memref<1x16x16x10xf32, #tpu.memory_space<vmem>>, vector<1x16x1x10xf32>,
    %109 = vector.extract_strided_slice %80 {offsets = [0, 0, 14, 0], sizes = [1, 16, 1, 10], strides = [1, 1, 1, 1]} : vector<1x16x32x10xf32> to vector<1x16x1x10xf32>
    %110 = vector.extract_strided_slice %80 {offsets = [0, 0, 15, 0], sizes = [1, 16, 1, 10], strides = [1, 1, 1, 1]} : vector<1x16x32x10xf32> to vector<1x16x1x10xf32>
    %111 = arith.maximumf %109, %110 : vector<1x16x1x10xf32>
    %c0_54 = arith.constant 0 : index
    %c0_55 = arith.constant 0 : index
    %c7 = arith.constant 7 : index
    %c0_56 = arith.constant 0 : index
    %112 = vector.load %arg4[%c0_54, %c0_55, %c7, %c0_56] : memref<1x16x16x10xf32, #tpu.memory_space<vmem>>, vector<1x16x1x10xf32>
    tpu.vector_store %arg4[%c0_54, %c0_55, %c7, %c0_56], %111 {strides = array<i32>} : memref<1x16x16x10xf32, #tpu.memory_space<vmem>>, vector<1x16x1x10xf32>,
    %113 = vector.extract_strided_slice %80 {offsets = [0, 0, 16, 0], sizes = [1, 16, 1, 10], strides = [1, 1, 1, 1]} : vector<1x16x32x10xf32> to vector<1x16x1x10xf32>
    %114 = vector.extract_strided_slice %80 {offsets = [0, 0, 17, 0], sizes = [1, 16, 1, 10], strides = [1, 1, 1, 1]} : vector<1x16x32x10xf32> to vector<1x16x1x10xf32>
    %115 = arith.maximumf %113, %114 : vector<1x16x1x10xf32>
    %c0_57 = arith.constant 0 : index
    %c0_58 = arith.constant 0 : index
    %c8 = arith.constant 8 : index
    %c0_59 = arith.constant 0 : index
    %116 = vector.load %arg4[%c0_57, %c0_58, %c8, %c0_59] : memref<1x16x16x10xf32, #tpu.memory_space<vmem>>, vector<1x16x1x10xf32>
    tpu.vector_store %arg4[%c0_57, %c0_58, %c8, %c0_59], %115 {strides = array<i32>} : memref<1x16x16x10xf32, #tpu.memory_space<vmem>>, vector<1x16x1x10xf32>,
    %117 = vector.extract_strided_slice %80 {offsets = [0, 0, 18, 0], sizes = [1, 16, 1, 10], strides = [1, 1, 1, 1]} : vector<1x16x32x10xf32> to vector<1x16x1x10xf32>
    %118 = vector.extract_strided_slice %80 {offsets = [0, 0, 19, 0], sizes = [1, 16, 1, 10], strides = [1, 1, 1, 1]} : vector<1x16x32x10xf32> to vector<1x16x1x10xf32>
    %119 = arith.maximumf %117, %118 : vector<1x16x1x10xf32>
    %c0_60 = arith.constant 0 : index
    %c0_61 = arith.constant 0 : index
    %c9 = arith.constant 9 : index
    %c0_62 = arith.constant 0 : index
    %120 = vector.load %arg4[%c0_60, %c0_61, %c9, %c0_62] : memref<1x16x16x10xf32, #tpu.memory_space<vmem>>, vector<1x16x1x10xf32>
    tpu.vector_store %arg4[%c0_60, %c0_61, %c9, %c0_62], %119 {strides = array<i32>} : memref<1x16x16x10xf32, #tpu.memory_space<vmem>>, vector<1x16x1x10xf32>,
    %121 = vector.extract_strided_slice %80 {offsets = [0, 0, 20, 0], sizes = [1, 16, 1, 10], strides = [1, 1, 1, 1]} : vector<1x16x32x10xf32> to vector<1x16x1x10xf32>
    %122 = vector.extract_strided_slice %80 {offsets = [0, 0, 21, 0], sizes = [1, 16, 1, 10], strides = [1, 1, 1, 1]} : vector<1x16x32x10xf32> to vector<1x16x1x10xf32>
    %123 = arith.maximumf %121, %122 : vector<1x16x1x10xf32>
    %c0_63 = arith.constant 0 : index
    %c0_64 = arith.constant 0 : index
    %c10 = arith.constant 10 : index
    %c0_65 = arith.constant 0 : index
    %124 = vector.load %arg4[%c0_63, %c0_64, %c10, %c0_65] : memref<1x16x16x10xf32, #tpu.memory_space<vmem>>, vector<1x16x1x10xf32>
    tpu.vector_store %arg4[%c0_63, %c0_64, %c10, %c0_65], %123 {strides = array<i32>} : memref<1x16x16x10xf32, #tpu.memory_space<vmem>>, vector<1x16x1x10xf32>,
    %125 = vector.extract_strided_slice %80 {offsets = [0, 0, 22, 0], sizes = [1, 16, 1, 10], strides = [1, 1, 1, 1]} : vector<1x16x32x10xf32> to vector<1x16x1x10xf32>
    %126 = vector.extract_strided_slice %80 {offsets = [0, 0, 23, 0], sizes = [1, 16, 1, 10], strides = [1, 1, 1, 1]} : vector<1x16x32x10xf32> to vector<1x16x1x10xf32>
    %127 = arith.maximumf %125, %126 : vector<1x16x1x10xf32>
    %c0_66 = arith.constant 0 : index
    %c0_67 = arith.constant 0 : index
    %c11 = arith.constant 11 : index
    %c0_68 = arith.constant 0 : index
    %128 = vector.load %arg4[%c0_66, %c0_67, %c11, %c0_68] : memref<1x16x16x10xf32, #tpu.memory_space<vmem>>, vector<1x16x1x10xf32>
    tpu.vector_store %arg4[%c0_66, %c0_67, %c11, %c0_68], %127 {strides = array<i32>} : memref<1x16x16x10xf32, #tpu.memory_space<vmem>>, vector<1x16x1x10xf32>,
    %129 = vector.extract_strided_slice %80 {offsets = [0, 0, 24, 0], sizes = [1, 16, 1, 10], strides = [1, 1, 1, 1]} : vector<1x16x32x10xf32> to vector<1x16x1x10xf32>
    %130 = vector.extract_strided_slice %80 {offsets = [0, 0, 25, 0], sizes = [1, 16, 1, 10], strides = [1, 1, 1, 1]} : vector<1x16x32x10xf32> to vector<1x16x1x10xf32>
    %131 = arith.maximumf %129, %130 : vector<1x16x1x10xf32>
    %c0_69 = arith.constant 0 : index
    %c0_70 = arith.constant 0 : index
    %c12 = arith.constant 12 : index
    %c0_71 = arith.constant 0 : index
    %132 = vector.load %arg4[%c0_69, %c0_70, %c12, %c0_71] : memref<1x16x16x10xf32, #tpu.memory_space<vmem>>, vector<1x16x1x10xf32>
    tpu.vector_store %arg4[%c0_69, %c0_70, %c12, %c0_71], %131 {strides = array<i32>} : memref<1x16x16x10xf32, #tpu.memory_space<vmem>>, vector<1x16x1x10xf32>,
    %133 = vector.extract_strided_slice %80 {offsets = [0, 0, 26, 0], sizes = [1, 16, 1, 10], strides = [1, 1, 1, 1]} : vector<1x16x32x10xf32> to vector<1x16x1x10xf32>
    %134 = vector.extract_strided_slice %80 {offsets = [0, 0, 27, 0], sizes = [1, 16, 1, 10], strides = [1, 1, 1, 1]} : vector<1x16x32x10xf32> to vector<1x16x1x10xf32>
    %135 = arith.maximumf %133, %134 : vector<1x16x1x10xf32>
    %c0_72 = arith.constant 0 : index
    %c0_73 = arith.constant 0 : index
    %c13 = arith.constant 13 : index
    %c0_74 = arith.constant 0 : index
    %136 = vector.load %arg4[%c0_72, %c0_73, %c13, %c0_74] : memref<1x16x16x10xf32, #tpu.memory_space<vmem>>, vector<1x16x1x10xf32>
    tpu.vector_store %arg4[%c0_72, %c0_73, %c13, %c0_74], %135 {strides = array<i32>} : memref<1x16x16x10xf32, #tpu.memory_space<vmem>>, vector<1x16x1x10xf32>,
    %137 = vector.extract_strided_slice %80 {offsets = [0, 0, 28, 0], sizes = [1, 16, 1, 10], strides = [1, 1, 1, 1]} : vector<1x16x32x10xf32> to vector<1x16x1x10xf32>
    %138 = vector.extract_strided_slice %80 {offsets = [0, 0, 29, 0], sizes = [1, 16, 1, 10], strides = [1, 1, 1, 1]} : vector<1x16x32x10xf32> to vector<1x16x1x10xf32>
    %139 = arith.maximumf %137, %138 : vector<1x16x1x10xf32>
    %c0_75 = arith.constant 0 : index
    %c0_76 = arith.constant 0 : index
    %c14 = arith.constant 14 : index
    %c0_77 = arith.constant 0 : index
    %140 = vector.load %arg4[%c0_75, %c0_76, %c14, %c0_77] : memref<1x16x16x10xf32, #tpu.memory_space<vmem>>, vector<1x16x1x10xf32>
    tpu.vector_store %arg4[%c0_75, %c0_76, %c14, %c0_77], %139 {strides = array<i32>} : memref<1x16x16x10xf32, #tpu.memory_space<vmem>>, vector<1x16x1x10xf32>,
    %141 = vector.extract_strided_slice %80 {offsets = [0, 0, 30, 0], sizes = [1, 16, 1, 10], strides = [1, 1, 1, 1]} : vector<1x16x32x10xf32> to vector<1x16x1x10xf32>
    %142 = vector.extract_strided_slice %80 {offsets = [0, 0, 31, 0], sizes = [1, 16, 1, 10], strides = [1, 1, 1, 1]} : vector<1x16x32x10xf32> to vector<1x16x1x10xf32>
    %143 = arith.maximumf %141, %142 : vector<1x16x1x10xf32>
    %c0_78 = arith.constant 0 : index
    %c0_79 = arith.constant 0 : index
    %c15 = arith.constant 15 : index
    %c0_80 = arith.constant 0 : index
    %144 = vector.load %arg4[%c0_78, %c0_79, %c15, %c0_80] : memref<1x16x16x10xf32, #tpu.memory_space<vmem>>, vector<1x16x1x10xf32>
    tpu.vector_store %arg4[%c0_78, %c0_79, %c15, %c0_80], %143 {strides = array<i32>} : memref<1x16x16x10xf32, #tpu.memory_space<vmem>>, vector<1x16x1x10xf32>,
    return
  }
  func.func @transform_0(%arg0: i32) -> (i32, i32, i32, i32) {
    %c0_i32 = arith.constant 0 : i32
    %c0_i32_0 = arith.constant 0 : i32
    %c0_i32_1 = arith.constant 0 : i32
    %c0_i32_2 = arith.constant 0 : i32
    return %arg0, %c0_i32, %c0_i32_0, %c0_i32_1 : i32, i32, i32, i32
  }
  func.func @transform_1(%arg0: i32) -> (i32, i32, i32, i32) {
    %c0_i32 = arith.constant 0 : i32
    %c0_i32_0 = arith.constant 0 : i32
    %c0_i32_1 = arith.constant 0 : i32
    %c0_i32_2 = arith.constant 0 : i32
    %c0_i32_3 = arith.constant 0 : i32
    return %c0_i32, %c0_i32_0, %c0_i32_1, %c0_i32_2 : i32, i32, i32, i32
  }
  func.func @transform_2(%arg0: i32) -> (i32, i32) {
    %c0_i32 = arith.constant 0 : i32
    %c0_i32_0 = arith.constant 0 : i32
    %c0_i32_1 = arith.constant 0 : i32
    return %c0_i32, %c0_i32_0 : i32, i32
  }
  func.func @transform_3(%arg0: i32) -> (i32, i32, i32, i32) {
    %c0_i32 = arith.constant 0 : i32
    %c0_i32_0 = arith.constant 0 : i32
    %c0_i32_1 = arith.constant 0 : i32
    %c0_i32_2 = arith.constant 0 : i32
    return %arg0, %c0_i32, %c0_i32_0, %c0_i32_1 : i32, i32, i32, i32
  }
}

module attributes {stable_mosaic.version = 11 : i64} {
  func.func @_linear_kernel(%arg0: memref<2x2560xf32, #tpu.memory_space<vmem>>, %arg1: memref<2560x10xbf16, #tpu.memory_space<vmem>>, %arg2: memref<1x10xf32, #tpu.memory_space<vmem>>, %arg3: memref<2x10xf32, #tpu.memory_space<vmem>>) attributes {dimension_semantics = [], scalar_prefetch = 0 : i64, scratch_operands = 0 : i64, tpu.core_type = #tpu.core_type<tc>} {
    %c0 = arith.constant 0 : index
    %c0_0 = arith.constant 0 : index
    %0 = vector.load %arg0[%c0, %c0_0] : memref<2x2560xf32, #tpu.memory_space<vmem>>, vector<2x2560xf32>
    %1 = arith.truncf %0 : vector<2x2560xf32> to vector<2x2560xbf16>
    %c0_1 = arith.constant 0 : index
    %c0_2 = arith.constant 0 : index
    %2 = vector.load %arg1[%c0_1, %c0_2] : memref<2560x10xbf16, #tpu.memory_space<vmem>>, vector<2560x10xbf16>
    %cst = arith.constant dense<0.000000e+00> : vector<2x10xf32>
    %3 = tpu.matmul %1, %2, %cst {dimension_numbers = #tpu.dot_dimension_numbers<[1], [0], [0], [1], [0, 0, 1, 1], [], []>} : vector<2x2560xbf16>, vector<2560x10xbf16>, vector<2x10xf32> -> vector<2x10xf32>
    %c0_3 = arith.constant 0 : index
    %c0_4 = arith.constant 0 : index
    %4 = vector.load %arg2[%c0_3, %c0_4] : memref<1x10xf32, #tpu.memory_space<vmem>>, vector<1x10xf32>
    %5 = vector.broadcast %4 : vector<1x10xf32> to vector<2x10xf32>
    %6 = arith.addf %3, %5 : vector<2x10xf32>
    %c0_5 = arith.constant 0 : index
    %c0_6 = arith.constant 0 : index
    %7 = vector.load %arg3[%c0_5, %c0_6] : memref<2x10xf32, #tpu.memory_space<vmem>>, vector<2x10xf32>
    tpu.vector_store %arg3[%c0_5, %c0_6], %6 {strides = array<i32>} : memref<2x10xf32, #tpu.memory_space<vmem>>, vector<2x10xf32>,
    return
  }
}

</mosaic_0001>

<bundles_post_ra>
// kernel: cnn_forward.3
= control target key start
LH: loop header
LB: loop body
LE: loop exit
PB: predicated region body
PF: predicated region fallthrough
CT: control target
= control target key end

     0   :  { %v30_v28 = vlaneseq  ;;  %v2424_v36 = vmov 1983009808   ;;  %s2959_s0 = inlined_call_operand.vmem [shape: f32[2,2560], index: 0, kind: input, shape index: {}]   ;;  %s2960_s1 = inlined_call_operand.vmem [shape: bf16[2560,10], index: 1, kind: input, shape index: {}]   ;;  %s2961_s2 = inlined_call_operand.vmem [shape: f32[1,10], index: 2, kind: input, shape index: {}]   ;;  %s2962_s3 = inlined_call_operand.hbm [shape: f32[2,10], index: 3, kind: output, shape index: {}]  }
   0x1   :  { %v2237_v0 = vld [vmem:[%s2960_s1 + $0x78] sm:$0xff]   ;;  %v2241_v4 = vld [vmem:[%s2960_s1 + $0x70] sm:$0xff]   ;;  %v2245_v8 = vld [vmem:[%s2960_s1 + $0x68] sm:$0xff]   ;;  %v28_v37 = vunpack.c.l.s4 %v2424_v36 }
   0x2   :  { %v2238_v1 = vld [vmem:[%s2960_s1 + $0xf8] sm:$0xff]   ;;  %2015 = vmatprep.subr.bf16.mxu0 %v2237_v0  ;;  %v2242_v5 = vld [vmem:[%s2960_s1 + $0xf0] sm:$0xff]   ;;  %v2246_v9 = vld [vmem:[%s2960_s1 + $0xe8] sm:$0xff]   ;;  %v31_v33 = vshrl.u32 %v30_v28, 7 }
   0x3   :  { %v2239_v2 = vld [vmem:[%s2960_s1 + $0x38] sm:$0xff]   ;;  %2037 = vmatprep.subr.bf16.mxu1 %v2238_v1  ;;  %v2243_v6 = vld [vmem:[%s2960_s1 + $0x30] sm:$0xff]   ;;  %v2247_v10 = vld [vmem:[%s2960_s1 + $0x28] sm:$0xff]   ;;  %v29_v39 = vunpack.c.0.s8 %v28_v37 }
   0x4   :  { %v2240_v3 = vld [vmem:[%s2960_s1 + $0xb8] sm:$0xff]   ;;  %2016 = vmatpush3.bf16.msra.mxu0 %v2239_v2  ;;  %v2244_v7 = vld [vmem:[%s2960_s1 + $0xb0] sm:$0xff]   ;;  %v2248_v11 = vld [vmem:[%s2960_s1 + $0xa8] sm:$0xff]  }
   0x5   :  { %2038 = vmatpush3.bf16.msra.mxu1 %v2240_v3  ;;  %2017 = vmatprep.subr.bf16.mxu0 %v2241_v4  ;;  %v2249_v12 = vld [vmem:[%s2960_s1 + $0x60] sm:$0xff]   ;;  %v2253_v16 = vld [vmem:[%s2960_s1 + $0x58] sm:$0xff]   ;;  %v2257_v20 = vld [vmem:[%s2960_s1 + $0x50] sm:$0xff]   ;;  %v2551_v41 = vsub.s32 %v29_v39, %v31_v33 }
   0x6   :  { %2039 = vmatprep.subr.bf16.mxu1 %v2242_v5  ;;  %v2250_v13 = vld [vmem:[%s2960_s1 + $0xe0] sm:$0xff]   ;;  %v2254_v17 = vld [vmem:[%s2960_s1 + $0xd8] sm:$0xff]   ;;  %v2258_v21 = vld [vmem:[%s2960_s1 + $0xd0] sm:$0xff]  }
   0x7   :  { %v2251_v14 = vld [vmem:[%s2960_s1 + $0x20] sm:$0xff]   ;;  %v2255_v18 = vld [vmem:[%s2960_s1 + $0x18] sm:$0xff]   ;;  %v2259_v22 = vld [vmem:[%s2960_s1 + $0x10] sm:$0xff]  }
   0x8   :  { %2018 = vmatpush3.bf16.msra.mxu0 %v2243_v6  ;;  %v2252_v15 = vld [vmem:[%s2960_s1 + $0xa0] sm:$0xff]   ;;  %v2256_v19 = vld [vmem:[%s2960_s1 + $0x98] sm:$0xff]   ;;  %v2260_v23 = vld [vmem:[%s2960_s1 + $0x90] sm:$0xff]  }
   0x9   :  { %2040 = vmatpush3.bf16.msra.mxu1 %v2244_v7  ;;  %2019 = vmatprep.subr.bf16.mxu0 %v2245_v8  ;;  %v2261_v24 = vld [vmem:[%s2960_s1 + $0x48] sm:$0xff]   ;;  %v2265_v29 = vld [vmem:[%s2960_s1 + $0x40] sm:$0xff]   ;;  %v2270_v35 = vld [vmem:[%s2960_s1 + $0x178] sm:$0xff]  }
   0xa   :  { %2041 = vmatprep.subr.bf16.mxu1 %v2246_v9  ;;  %v2262_v25 = vld [vmem:[%s2960_s1 + $0xc8] sm:$0xff]   ;;  %v2266_v30 = vld [vmem:[%s2960_s1 + $0xc0] sm:$0xff]   ;;  %v2271_v38 = vld [vmem:[%s2960_s1 + $0x1f8] sm:$0xff]  }
   0xb   :  { %v2263_v26 = vld [vmem:[%s2960_s1 + $0x8] sm:$0xff]   ;;  %v2267_v31 = vld [vmem:[%s2960_s1] sm:$0xff]   ;;  %v2272_v46 = vld [vmem:[%s2960_s1 + $0x138] sm:$0xff]  }
   0xc   :  { %2020 = vmatpush3.bf16.msra.mxu0 %v2247_v10  ;;  %v2264_v27 = vld [vmem:[%s2960_s1 + $0x88] sm:$0xff]   ;;  %v2268_v32 = vld [vmem:[%s2960_s1 + $0x80] sm:$0xff]   ;;  %v2273_v49 = vld [vmem:[%s2960_s1 + $0x1b8] sm:$0xff]  }
   0xd   :  { %2042 = vmatpush3.bf16.msra.mxu1 %v2248_v11  ;;  %2021 = vmatprep.subr.bf16.mxu0 %v2249_v12  ;;  %v16_v34 = vld [vmem:[%s2959_s0] sm:$0xff]  ;;  %v2274_v52 = vld [vmem:[%s2960_s1 + $0x170] sm:$0xff]   ;;  %v2278_v56 = vld [vmem:[%s2960_s1 + $0x168] sm:$0xff]  }
   0xe   :  { %2043 = vmatprep.subr.bf16.mxu1 %v2250_v13  ;;  %v26_v40 = vcombine.high %v16_v34, %v16_v34  ;;  %v33_v42 = vrot.slane %v16_v34, %v2551_v41  ;;  %v2275_v53 = vld [vmem:[%s2960_s1 + $0x1f0] sm:$0xff]   ;;  %v2279_v57 = vld [vmem:[%s2960_s1 + $0x1e8] sm:$0xff]   ;;  %v2282_v60 = vld [vmem:[%s2960_s1 + $0x160] sm:$0xff]  }
   0xf   :  { %v2276_v54 = vld [vmem:[%s2960_s1 + $0x130] sm:$0xff]   ;;  %v2280_v58 = vld [vmem:[%s2960_s1 + $0x128] sm:$0xff]   ;;  %v2283_v61 = vld [vmem:[%s2960_s1 + $0x1e0] sm:$0xff]  }
  0x10   :  { %2022 = vmatpush3.bf16.msra.mxu0 %v2251_v14  ;;  %v40_v43 = vrot.slane %v26_v40, %v2551_v41  ;;  %v41_v44 = vcombine.high %v33_v42, %v33_v42  ;;  %v131_v47 = vpack.c.bf16 %v33_v42, %v33_v42  ;;  %v2277_v55 = vld [vmem:[%s2960_s1 + $0x1b0] sm:$0xff]   ;;  %v2281_v59 = vld [vmem:[%s2960_s1 + $0x1a8] sm:$0xff]   ;;  %v2284_v62 = vld [vmem:[%s2960_s1 + $0x120] sm:$0xff]  }
  0x11   :  { %2044 = vmatpush3.bf16.msra.mxu1 %v2252_v15  ;;  %2023 = vmatprep.subr.bf16.mxu0 %v2253_v16  ;;  %v2285_v63 = vld [vmem:[%s2960_s1 + $0x1a0] sm:$0xff]   ;;  %v2286_v0 = vld [vmem:[%s2960_s1 + $0x158] sm:$0xff]   ;;  %v2290_v4 = vld [vmem:[%s2960_s1 + $0x150] sm:$0xff]  }
  0x12   :  { %2045 = vmatprep.subr.bf16.mxu1 %v2254_v17  ;;  %v42_v45 = vcombine.high %v40_v43, %v40_v43  ;;  %v133_v48 = vpack.c.bf16 %v40_v43, %v40_v43  ;;  %v132_v50 = vpack.c.bf16 %v41_v44, %v41_v44  ;;  %v2287_v1 = vld [vmem:[%s2960_s1 + $0x1d8] sm:$0xff]   ;;  %v2291_v5 = vld [vmem:[%s2960_s1 + $0x1d0] sm:$0xff]   ;;  %v2294_v8 = vld [vmem:[%s2960_s1 + $0x148] sm:$0xff]  }
  0x13   :  { %v2288_v2 = vld [vmem:[%s2960_s1 + $0x118] sm:$0xff]   ;;  %v2292_v6 = vld [vmem:[%s2960_s1 + $0x110] sm:$0xff]   ;;  %v2295_v9 = vld [vmem:[%s2960_s1 + $0x1c8] sm:$0xff]  }
  0x14   :  { %2024 = vmatpush3.bf16.msra.mxu0 %v2255_v18  ;;  %v134_v51 = vpack.c.bf16 %v42_v45, %v42_v45  ;;  %1470 = vmatprep.mubr.bf16.mxu0 %v132_v50  ;;  %v2289_v3 = vld [vmem:[%s2960_s1 + $0x198] sm:$0xff]   ;;  %v2293_v7 = vld [vmem:[%s2960_s1 + $0x190] sm:$0xff]   ;;  %v17_v10 = vld [vmem:[%s2959_s0 + $0x8] sm:$0xff] }
  0x15   :  { %2046 = vmatpush3.bf16.msra.mxu1 %v2256_v19  ;;  %2025 = vmatprep.subr.bf16.mxu0 %v2257_v20  ;;  %v2296_v11 = vld [vmem:[%s2960_s1 + $0x108] sm:$0xff]   ;;  %v50_v12 = vrot.slane %v17_v10, %v2551_v41  ;;  %v43_v13 = vcombine.high %v17_v10, %v17_v10  ;;  %v2298_v15 = vld [vmem:[%s2960_s1 + $0x140] sm:$0xff]   ;;  %v2310_v33 = vld [vmem:[%s2960_s1 + $0x2b0] sm:$0xff]  }
  0x16   :  { %2047 = vmatprep.subr.bf16.mxu1 %v2258_v21  ;;  %1510 = vmatprep.mubr.bf16.mxu1 %v134_v51  ;;  %v2297_v14 = vld [vmem:[%s2960_s1 + $0x188] sm:$0xff]   ;;  %v2299_v18 = vld [vmem:[%s2960_s1 + $0x1c0] sm:$0xff]   ;;  %v2319_v43 = vld [vmem:[%s2960_s1 + $0x258] sm:$0xff]  }
  0x17   :  { %v58_v16 = vcombine.high %v50_v12, %v50_v12  ;;  %v57_v17 = vrot.slane %v43_v13, %v2551_v41  ;;  %v2300_v19 = vld [vmem:[%s2960_s1 + $0x100] sm:$0xff]   ;;  %v2311_v34 = vld [vmem:[%s2960_s1 + $0x268] sm:$0xff]   ;;  %v2320_v44 = vld [vmem:[%s2960_s1 + $0x2d8] sm:$0xff]  }
  0x18   :  { %2026 = vmatpush3.bf16.msra.mxu0 %v2259_v22  ;;  %v2301_v22 = vld [vmem:[%s2960_s1 + $0x180] sm:$0xff]   ;;  %v2313_v36 = vld [vmem:[%s2960_s1 + $0x228] sm:$0xff]   ;;  %v2321_v45 = vld [vmem:[%s2960_s1 + $0x218] sm:$0xff]  }
  0x19   :  { %2048 = vmatpush3.bf16.msra.mxu1 %v2260_v23  ;;  %2027 = vmatprep.subr.bf16.mxu0 %v2261_v24  ;;  %v136_v20 = vpack.c.bf16 %v58_v16, %v58_v16  ;;  %v59_v21 = vcombine.high %v57_v17, %v57_v17  ;;  %v2303_v24 = vld [vmem:[%s2960_s1 + $0x278] sm:$0xff]   ;;  %v137_v28 = vpack.c.bf16 %v57_v17, %v57_v17  ;;  %v2314_v37 = vld [vmem:[%s2960_s1 + $0x2a8] sm:$0xff]   ;;  %v2316_v39 = vld [vmem:[%s2960_s1 + $0x2e0] sm:$0xff]  }
  0x1a   :  { %2049 = vmatprep.subr.bf16.mxu1 %v2262_v25  ;;  %v2304_v25 = vld [vmem:[%s2960_s1 + $0x2f8] sm:$0xff]   ;;  %v2317_v40 = vld [vmem:[%s2960_s1 + $0x220] sm:$0xff]   ;;  %v2326_v50 = vld [vmem:[%s2960_s1 + $0x290] sm:$0xff]  }
  0x1b   :  { %v138_v23 = vpack.c.bf16 %v59_v21, %v59_v21  ;;  %v2318_v42 = vld [vmem:[%s2960_s1 + $0x2a0] sm:$0xff]   ;;  %v2327_v51 = vld [vmem:[%s2960_s1 + $0x248] sm:$0xff]   ;;  %v2341_v10 = vld [vmem:[%s2960_s1 + $0x3f0] sm:$0xff]  }
  0x1c   :  { %2028 = vmatpush3.bf16.msra.mxu0 %v2263_v26  ;;  %v2305_v26 = vld [vmem:[%s2960_s1 + $0x238] sm:$0xff]   ;;  %v2344_v13 = vld [vmem:[%s2960_s1 + $0x368] sm:$0xff]   ;;  %v2348_v17 = vld [vmem:[%s2960_s1 + $0x360] sm:$0xff]  }
  0x1d   :  { %2050 = vmatpush3.bf16.msra.mxu1 %v2264_v27  ;;  %2029 = vmatprep.subr.bf16.mxu0 %v2265_v29  ;;  %v135_v27 = vpack.c.bf16 %v50_v12, %v50_v12  ;;  %v2306_v29 = vld [vmem:[%s2960_s1 + $0x2b8] sm:$0xff]   ;;  %v2343_v12 = vld [vmem:[%s2960_s1 + $0x3b0] sm:$0xff]   ;;  %v2347_v16 = vld [vmem:[%s2960_s1 + $0x3a8] sm:$0xff]  }
  0x1e   :  { %2051 = vmatprep.subr.bf16.mxu1 %v2266_v30  ;;  %v2307_v30 = vld [vmem:[%s2960_s1 + $0x270] sm:$0xff]   ;;  %v2352_v21 = vld [vmem:[%s2960_s1 + $0x358] sm:$0xff]  }
  0x20   :  { %2030 = vmatpush3.bf16.msra.mxu0 %v2267_v31  ;;  %v2308_v31 = vld [vmem:[%s2960_s1 + $0x2f0] sm:$0xff]  }
  0x21   :  { %2052 = vmatpush3.bf16.msra.mxu1 %v2268_v32  ;;  %2059 = vmatprep.subr.bf16.mxu0 %v2270_v35  ;;  %v2309_v32 = vld [vmem:[%s2960_s1 + $0x230] sm:$0xff]   ;;  %v2312_v35 = vld [vmem:[%s2960_s1 + $0x2e8] sm:$0xff]  }
  0x22   :  { %2081 = vmatprep.subr.bf16.mxu1 %v2271_v38  ;;  %v2315_v38 = vld [vmem:[%s2960_s1 + $0x260] sm:$0xff]  }
  0x23   :  { %1471 = vmatmul.mubr.bf16.vlgmr.msra.gmra.mxu0 %v131_v47  ;;  %v2323_v47 = vld [vmem:[%s2960_s1 + $0x250] sm:$0xff]  }
  0x24   :  { %1511 = vmatmul.mubr.bf16.vlgmr.msra.gmra.mxu1 %v133_v48  ;;  %2060 = vmatpush3.bf16.msra.mxu0 %v2272_v46  ;;  %v2322_v46 = vld [vmem:[%s2960_s1 + $0x298] sm:$0xff]   ;;  %v2324_v48 = vld [vmem:[%s2960_s1 + $0x2d0] sm:$0xff]  }
  0x25   :  { %2082 = vmatpush3.bf16.msra.mxu1 %v2273_v49  ;;  %2061 = vmatprep.subr.bf16.mxu0 %v2274_v52  ;;  %v2325_v49 = vld [vmem:[%s2960_s1 + $0x210] sm:$0xff]   ;;  %v2328_v52 = vld [vmem:[%s2960_s1 + $0x2c8] sm:$0xff]  }
  0x26   :  { %2083 = vmatprep.subr.bf16.mxu1 %v2275_v53  ;;  %1550 = vmatprep.mubr.bf16.mxu0 %v136_v20  ;;  %v18_v53 = vld [vmem:[%s2959_s0 + $0x10] sm:$0xff]  ;;  %v2351_v20 = vld [vmem:[%s2960_s1 + $0x3a0] sm:$0xff]  }
  0x27   :  { %1590 = vmatprep.mubr.bf16.mxu1 %v138_v23  ;;  %v2354_v23 = vld [vmem:[%s2960_s1 + $0x318] sm:$0xff]  }
  0x28   :  { %2062 = vmatpush3.bf16.msra.mxu0 %v2276_v54  ;;  %v2329_v54 = vld [vmem:[%s2960_s1 + $0x208] sm:$0xff]  }
  0x29   :  { %2084 = vmatpush3.bf16.msra.mxu1 %v2277_v55  ;;  %2063 = vmatprep.subr.bf16.mxu0 %v2278_v56  ;;  %v67_v55 = vrot.slane %v18_v53, %v2551_v41  ;;  %v60_v56 = vcombine.high %v18_v53, %v18_v53  ;;  %v2374_v53 = vld [vmem:[%s2960_s1 + $0x4f0] sm:$0xff]  }
  0x2a   :  { %2085 = vmatprep.subr.bf16.mxu1 %v2279_v57  ;;  %v2330_v57 = vld [vmem:[%s2960_s1 + $0x288] sm:$0xff]  }
  0x2c   :  { %2064 = vmatpush3.bf16.msra.mxu0 %v2280_v58  ;;  %v2331_v58 = vld [vmem:[%s2960_s1 + $0x240] sm:$0xff]  }
  0x2d   :  { %2086 = vmatpush3.bf16.msra.mxu1 %v2281_v59  ;;  %2065 = vmatprep.subr.bf16.mxu0 %v2282_v60  ;;  %v75_v59 = vcombine.high %v67_v55, %v67_v55  ;;  %v74_v60 = vrot.slane %v60_v56, %v2551_v41  ;;  %v2377_v56 = vld [vmem:[%s2960_s1 + $0x468] sm:$0xff]  }
  0x2e   :  { %2087 = vmatprep.subr.bf16.mxu1 %v2283_v61  ;;  %v2332_v61 = vld [vmem:[%s2960_s1 + $0x2c0] sm:$0xff]  }
  0x30   :  { %2066 = vmatpush3.bf16.msra.mxu0 %v2284_v62  ;;  %v2333_v62 = vld [vmem:[%s2960_s1 + $0x200] sm:$0xff]  }
  0x31   :  { %2088 = vmatpush3.bf16.msra.mxu1 %v2285_v63  ;;  %2067 = vmatprep.subr.bf16.mxu0 %v2286_v0  ;;  %v140_v63 = vpack.c.bf16 %v75_v59, %v75_v59  ;;  %v76_v0 = vcombine.high %v74_v60, %v74_v60  ;;  %v2380_v59 = vld [vmem:[%s2960_s1 + $0x4a8] sm:$0xff]  }
  0x32   :  { %2089 = vmatprep.subr.bf16.mxu1 %v2287_v1  ;;  %v2334_v1 = vld [vmem:[%s2960_s1 + $0x280] sm:$0xff]  }
  0x34   :  { %2068 = vmatpush3.bf16.msra.mxu0 %v2288_v2  ;;  %v142_v2 = vpack.c.bf16 %v76_v0, %v76_v0  ;;  %v2385_v0 = vld [vmem:[%s2960_s1 + $0x458] sm:$0xff]  }
  0x35   :  { %2090 = vmatpush3.bf16.msra.mxu1 %v2289_v3  ;;  %2069 = vmatprep.subr.bf16.mxu0 %v2290_v4  ;;  %v2336_v3 = vld [vmem:[%s2960_s1 + $0x378] sm:$0xff]  }
  0x36   :  { %2091 = vmatprep.subr.bf16.mxu1 %v2291_v5  ;;  %v2337_v4 = vld [vmem:[%s2960_s1 + $0x3f8] sm:$0xff]  }
  0x37   :  { %v2338_v5 = vld [vmem:[%s2960_s1 + $0x338] sm:$0xff]  }
  0x38   :  { %2070 = vmatpush3.bf16.msra.mxu0 %v2292_v6  ;;  %v139_v6 = vpack.c.bf16 %v67_v55, %v67_v55  ;;  %v2376_v55 = vld [vmem:[%s2960_s1 + $0x4b0] sm:$0xff]  }
  0x39   :  { %2092 = vmatpush3.bf16.msra.mxu1 %v2293_v7  ;;  %2071 = vmatprep.subr.bf16.mxu0 %v2294_v8  ;;  %v141_v7 = vpack.c.bf16 %v74_v60, %v74_v60  ;;  %v2339_v8 = vld [vmem:[%s2960_s1 + $0x3b8] sm:$0xff]   ;;  %v2381_v60 = vld [vmem:[%s2960_s1 + $0x460] sm:$0xff]  }
  0x3a   :  { %2093 = vmatprep.subr.bf16.mxu1 %v2295_v9  ;;  %v2340_v9 = vld [vmem:[%s2960_s1 + $0x370] sm:$0xff]  }
  0x3c   :  { %2072 = vmatpush3.bf16.msra.mxu0 %v2296_v11  ;;  %v2342_v11 = vld [vmem:[%s2960_s1 + $0x330] sm:$0xff]  }
  0x3d   :  { %2094 = vmatpush3.bf16.msra.mxu1 %v2297_v14  ;;  %2073 = vmatprep.subr.bf16.mxu0 %v2298_v15  ;;  %v2345_v14 = vld [vmem:[%s2960_s1 + $0x3e8] sm:$0xff]  }
  0x3e   :  { %2095 = vmatprep.subr.bf16.mxu1 %v2299_v18  ;;  %v2346_v15 = vld [vmem:[%s2960_s1 + $0x328] sm:$0xff]   ;;  %v2349_v18 = vld [vmem:[%s2960_s1 + $0x3e0] sm:$0xff]  }
  0x40   :  { %2074 = vmatpush3.bf16.msra.mxu0 %v2300_v19  ;;  %v2350_v19 = vld [vmem:[%s2960_s1 + $0x320] sm:$0xff]  }
  0x41   :  { %2096 = vmatpush3.bf16.msra.mxu1 %v2301_v22  ;;  %2103 = vmatprep.subr.bf16.mxu0 %v2303_v24  ;;  %v2353_v22 = vld [vmem:[%s2960_s1 + $0x3d8] sm:$0xff]  }
  0x42   :  { %2125 = vmatprep.subr.bf16.mxu1 %v2304_v25  ;;  %v2355_v24 = vld [vmem:[%s2960_s1 + $0x398] sm:$0xff]   ;;  %v2356_v25 = vld [vmem:[%s2960_s1 + $0x350] sm:$0xff]  }
  0x43   :  { %1551 = vmatmul.mubr.bf16.vlgmr.msra.gmra.mxu0 %v135_v27  ;;  %v2358_v27 = vld [vmem:[%s2960_s1 + $0x310] sm:$0xff]  }
  0x44   :  { %1591 = vmatmul.mubr.bf16.vlgmr.msra.gmra.mxu1 %v137_v28  ;;  %2104 = vmatpush3.bf16.msra.mxu0 %v2305_v26  ;;  %v2357_v26 = vld [vmem:[%s2960_s1 + $0x3d0] sm:$0xff]  }
  0x45   :  { %2126 = vmatpush3.bf16.msra.mxu1 %v2306_v29  ;;  %2105 = vmatprep.subr.bf16.mxu0 %v2307_v30  ;;  %v2359_v28 = vld [vmem:[%s2960_s1 + $0x390] sm:$0xff]   ;;  %v2360_v29 = vld [vmem:[%s2960_s1 + $0x348] sm:$0xff]  }
  0x46   :  { %2127 = vmatprep.subr.bf16.mxu1 %v2308_v31  ;;  %1630 = vmatprep.mubr.bf16.mxu0 %v140_v63  ;;  %v2361_v30 = vld [vmem:[%s2960_s1 + $0x3c8] sm:$0xff]   ;;  %v2384_v63 = vld [vmem:[%s2960_s1 + $0x4a0] sm:$0xff]  }
  0x47   :  { %1670 = vmatprep.mubr.bf16.mxu1 %v142_v2  ;;  %v2362_v31 = vld [vmem:[%s2960_s1 + $0x308] sm:$0xff]   ;;  %v2387_v2 = vld [vmem:[%s2960_s1 + $0x418] sm:$0xff]  }
  0x48   :  { %2106 = vmatpush3.bf16.msra.mxu0 %v2309_v32  ;;  %v19_v32 = vld [vmem:[%s2959_s0 + $0x18] sm:$0xff] }
  0x49   :  { %2128 = vmatpush3.bf16.msra.mxu1 %v2310_v33  ;;  %2107 = vmatprep.subr.bf16.mxu0 %v2311_v34  ;;  %v2363_v33 = vld [vmem:[%s2960_s1 + $0x388] sm:$0xff]   ;;  %v84_v34 = vrot.slane %v19_v32, %v2551_v41 }
  0x4a   :  { %2129 = vmatprep.subr.bf16.mxu1 %v2312_v35  ;;  %v77_v35 = vcombine.high %v19_v32, %v19_v32 }
  0x4c   :  { %2108 = vmatpush3.bf16.msra.mxu0 %v2313_v36  ;;  %v2364_v36 = vld [vmem:[%s2960_s1 + $0x340] sm:$0xff]  }
  0x4d   :  { %2130 = vmatpush3.bf16.msra.mxu1 %v2314_v37  ;;  %2109 = vmatprep.subr.bf16.mxu0 %v2315_v38  ;;  %v2365_v37 = vld [vmem:[%s2960_s1 + $0x3c0] sm:$0xff]   ;;  %v92_v38 = vcombine.high %v84_v34, %v84_v34 }
  0x4e   :  { %2131 = vmatprep.subr.bf16.mxu1 %v2316_v39  ;;  %v91_v39 = vrot.slane %v77_v35, %v2551_v41 }
  0x50   :  { %2110 = vmatpush3.bf16.msra.mxu0 %v2317_v40  ;;  %v2366_v40 = vld [vmem:[%s2960_s1 + $0x300] sm:$0xff]  }
  0x51   :  { %2132 = vmatpush3.bf16.msra.mxu1 %v2318_v42  ;;  %2111 = vmatprep.subr.bf16.mxu0 %v2319_v43  ;;  %v2367_v42 = vld [vmem:[%s2960_s1 + $0x380] sm:$0xff]   ;;  %v144_v43 = vpack.c.bf16 %v92_v38, %v92_v38 }
  0x52   :  { %2133 = vmatprep.subr.bf16.mxu1 %v2320_v44  ;;  %v93_v44 = vcombine.high %v91_v39, %v91_v39 }
  0x54   :  { %2112 = vmatpush3.bf16.msra.mxu0 %v2321_v45  ;;  %v2369_v45 = vld [vmem:[%s2960_s1 + $0x478] sm:$0xff]  }
  0x55   :  { %2134 = vmatpush3.bf16.msra.mxu1 %v2322_v46  ;;  %2113 = vmatprep.subr.bf16.mxu0 %v2323_v47  ;;  %v146_v46 = vpack.c.bf16 %v93_v44, %v93_v44  ;;  %v2370_v47 = vld [vmem:[%s2960_s1 + $0x4f8] sm:$0xff]  }
  0x56   :  { %2135 = vmatprep.subr.bf16.mxu1 %v2324_v48  ;;  %v2371_v48 = vld [vmem:[%s2960_s1 + $0x438] sm:$0xff]  }
  0x58   :  { %2114 = vmatpush3.bf16.msra.mxu0 %v2325_v49  ;;  %v143_v49 = vpack.c.bf16 %v84_v34, %v84_v34 }
  0x59   :  { %2136 = vmatpush3.bf16.msra.mxu1 %v2326_v50  ;;  %2115 = vmatprep.subr.bf16.mxu0 %v2327_v51  ;;  %v145_v50 = vpack.c.bf16 %v91_v39, %v91_v39  ;;  %v2372_v51 = vld [vmem:[%s2960_s1 + $0x4b8] sm:$0xff]  }
  0x5a   :  { %2137 = vmatprep.subr.bf16.mxu1 %v2328_v52  ;;  %v2373_v52 = vld [vmem:[%s2960_s1 + $0x470] sm:$0xff]  }
  0x5c   :  { %2116 = vmatpush3.bf16.msra.mxu0 %v2329_v54  ;;  %v2375_v54 = vld [vmem:[%s2960_s1 + $0x430] sm:$0xff]  }
  0x5d   :  { %2138 = vmatpush3.bf16.msra.mxu1 %v2330_v57  ;;  %2117 = vmatprep.subr.bf16.mxu0 %v2331_v58  ;;  %v2378_v57 = vld [vmem:[%s2960_s1 + $0x4e8] sm:$0xff]  }
  0x5e   :  { %2139 = vmatprep.subr.bf16.mxu1 %v2332_v61  ;;  %v2379_v58 = vld [vmem:[%s2960_s1 + $0x428] sm:$0xff]   ;;  %v2382_v61 = vld [vmem:[%s2960_s1 + $0x4e0] sm:$0xff]  }
  0x60   :  { %2118 = vmatpush3.bf16.msra.mxu0 %v2333_v62  ;;  %v2383_v62 = vld [vmem:[%s2960_s1 + $0x420] sm:$0xff]  }
  0x61   :  { %2140 = vmatpush3.bf16.msra.mxu1 %v2334_v1  ;;  %2147 = vmatprep.subr.bf16.mxu0 %v2336_v3  ;;  %v2386_v1 = vld [vmem:[%s2960_s1 + $0x4d8] sm:$0xff]  }
  0x62   :  { %2169 = vmatprep.subr.bf16.mxu1 %v2337_v4  ;;  %v2388_v3 = vld [vmem:[%s2960_s1 + $0x498] sm:$0xff]   ;;  %v2389_v4 = vld [vmem:[%s2960_s1 + $0x450] sm:$0xff]  }
  0x63   :  { %1631 = vmatmul.mubr.bf16.vlgmr.msra.gmra.mxu0 %v139_v6  ;;  %v2391_v6 = vld [vmem:[%s2960_s1 + $0x410] sm:$0xff]  }
  0x64   :  { %1671 = vmatmul.mubr.bf16.vlgmr.msra.gmra.mxu1 %v141_v7  ;;  %2148 = vmatpush3.bf16.msra.mxu0 %v2338_v5  ;;  %v2390_v5 = vld [vmem:[%s2960_s1 + $0x4d0] sm:$0xff]  }
  0x65   :  { %2170 = vmatpush3.bf16.msra.mxu1 %v2339_v8  ;;  %2149 = vmatprep.subr.bf16.mxu0 %v2340_v9  ;;  %v2392_v7 = vld [vmem:[%s2960_s1 + $0x490] sm:$0xff]   ;;  %v2393_v8 = vld [vmem:[%s2960_s1 + $0x448] sm:$0xff]  }
  0x66   :  { %2171 = vmatprep.subr.bf16.mxu1 %v2341_v10  ;;  %1710 = vmatprep.mubr.bf16.mxu0 %v144_v43  ;;  %v2394_v9 = vld [vmem:[%s2960_s1 + $0x4c8] sm:$0xff]   ;;  %v20_v10 = vld [vmem:[%s2959_s0 + $0x20] sm:$0xff] }
  0x67   :  { %1750 = vmatprep.mubr.bf16.mxu1 %v146_v46 }
  0x68   :  { %2150 = vmatpush3.bf16.msra.mxu0 %v2342_v11  ;;  %v101_v11 = vrot.slane %v20_v10, %v2551_v41 }
  0x69   :  { %2172 = vmatpush3.bf16.msra.mxu1 %v2343_v12  ;;  %2151 = vmatprep.subr.bf16.mxu0 %v2344_v13  ;;  %v94_v12 = vcombine.high %v20_v10, %v20_v10 }
  0x6a   :  { %2173 = vmatprep.subr.bf16.mxu1 %v2345_v14 }
  0x6c   :  { %2152 = vmatpush3.bf16.msra.mxu0 %v2346_v15 }
  0x6d   :  { %2174 = vmatpush3.bf16.msra.mxu1 %v2347_v16  ;;  %2153 = vmatprep.subr.bf16.mxu0 %v2348_v17 }
  0x6e   :  { %2175 = vmatprep.subr.bf16.mxu1 %v2349_v18 }
  0x70   :  { %2154 = vmatpush3.bf16.msra.mxu0 %v2350_v19 }
  0x71   :  { %2176 = vmatpush3.bf16.msra.mxu1 %v2351_v20  ;;  %2155 = vmatprep.subr.bf16.mxu0 %v2352_v21 }
  0x72   :  { %2177 = vmatprep.subr.bf16.mxu1 %v2353_v22 }
  0x74   :  { %2156 = vmatpush3.bf16.msra.mxu0 %v2354_v23 }
  0x75   :  { %2178 = vmatpush3.bf16.msra.mxu1 %v2355_v24  ;;  %2157 = vmatprep.subr.bf16.mxu0 %v2356_v25 }
  0x76   :  { %2179 = vmatprep.subr.bf16.mxu1 %v2357_v26 }
  0x78   :  { %2158 = vmatpush3.bf16.msra.mxu0 %v2358_v27 }
  0x79   :  { %2180 = vmatpush3.bf16.msra.mxu1 %v2359_v28  ;;  %2159 = vmatprep.subr.bf16.mxu0 %v2360_v29 }
  0x7a   :  { %2181 = vmatprep.subr.bf16.mxu1 %v2361_v30 }
  0x7c   :  { %2160 = vmatpush3.bf16.msra.mxu0 %v2362_v31 }
  0x7d   :  { %2182 = vmatpush3.bf16.msra.mxu1 %v2363_v33  ;;  %2161 = vmatprep.subr.bf16.mxu0 %v2364_v36 }
  0x7e   :  { %2183 = vmatprep.subr.bf16.mxu1 %v2365_v37 }
  0x80   :  { %2162 = vmatpush3.bf16.msra.mxu0 %v2366_v40 }
  0x81   :  { %2184 = vmatpush3.bf16.msra.mxu1 %v2367_v42  ;;  %2191 = vmatprep.subr.bf16.mxu0 %v2369_v45 }
  0x82   :  { %2213 = vmatprep.subr.bf16.mxu1 %v2370_v47 }
  0x83   :  { %1711 = vmatmul.mubr.bf16.vlgmr.msra.gmra.mxu0 %v143_v49 }
  0x84   :  { %1751 = vmatmul.mubr.bf16.vlgmr.msra.gmra.mxu1 %v145_v50  ;;  %2192 = vmatpush3.bf16.msra.mxu0 %v2371_v48 }
  0x85   :  { %2214 = vmatpush3.bf16.msra.mxu1 %v2372_v51  ;;  %2193 = vmatprep.subr.bf16.mxu0 %v2373_v52 }
  0x86   :  { %2215 = vmatprep.subr.bf16.mxu1 %v2374_v53 }
  0x88   :  { %2194 = vmatpush3.bf16.msra.mxu0 %v2375_v54 }
  0x89   :  { %2216 = vmatpush3.bf16.msra.mxu1 %v2376_v55  ;;  %2195 = vmatprep.subr.bf16.mxu0 %v2377_v56 }
  0x8a   :  { %2217 = vmatprep.subr.bf16.mxu1 %v2378_v57 }
  0x8c   :  { %2196 = vmatpush3.bf16.msra.mxu0 %v2379_v58 }
  0x8d   :  { %2218 = vmatpush3.bf16.msra.mxu1 %v2380_v59  ;;  %2197 = vmatprep.subr.bf16.mxu0 %v2381_v60 }
  0x8e   :  { %2219 = vmatprep.subr.bf16.mxu1 %v2382_v61 }
  0x90   :  { %2198 = vmatpush3.bf16.msra.mxu0 %v2383_v62 }
  0x91   :  { %2220 = vmatpush3.bf16.msra.mxu1 %v2384_v63  ;;  %2199 = vmatprep.subr.bf16.mxu0 %v2385_v0 }
  0x92   :  { %2221 = vmatprep.subr.bf16.mxu1 %v2386_v1 }
  0x94   :  { %2200 = vmatpush3.bf16.msra.mxu0 %v2387_v2 }
  0x95   :  { %2222 = vmatpush3.bf16.msra.mxu1 %v2388_v3  ;;  %2201 = vmatprep.subr.bf16.mxu0 %v2389_v4 }
  0x96   :  { %2223 = vmatprep.subr.bf16.mxu1 %v2390_v5 }
  0x97   :  { %8 = vsyncpa [#allocation3], 0  ;;  %v2395_v13 = vld [vmem:[%s2960_s1 + $0x408] sm:$0xff]   ;;  %v2397_v15 = vld [vmem:[%s2960_s1 + $0x440] sm:$0xff]   ;;  %v109_v17 = vcombine.high %v101_v11, %v101_v11  ;;  %v108_v18 = vrot.slane %v94_v12, %v2551_v41  ;;  %v147_v24 = vpack.c.bf16 %v101_v11, %v101_v11  ;;  %vm1838_vm0 = vcmask 74752  }
  0x98   :  { %2202 = vmatpush3.bf16.msra.mxu0 %v2391_v6  ;;  %v2396_v14 = vld [vmem:[%s2960_s1 + $0x488] sm:$0xff]   ;;  %v2398_v16 = vld [vmem:[%s2960_s1 + $0x4c0] sm:$0xff]  }
  0x99   :  { %2224 = vmatpush3.bf16.msra.mxu1 %v2392_v7  ;;  %2203 = vmatprep.subr.bf16.mxu0 %v2393_v8  ;;  %v148_v19 = vpack.c.bf16 %v109_v17, %v109_v17  ;;  %v110_v20 = vcombine.high %v108_v18, %v108_v18  ;;  %v2399_v21 = vld [vmem:[%s2960_s1 + $0x400] sm:$0xff]   ;;  %v149_v25 = vpack.c.bf16 %v108_v18, %v108_v18 }
  0x9a   :  { %2225 = vmatprep.subr.bf16.mxu1 %v2394_v9  ;;  %v2400_v22 = vld [vmem:[%s2960_s1 + $0x480] sm:$0xff]   ;;  %s2425_s1 = smov [#allocation2]  }
  0x9b   :  { %v150_v23 = vpack.c.bf16 %v110_v20, %v110_v20  ;;  %1790 = vmatprep.mubr.bf16.mxu0 %v148_v19  ;;  %v1854_v27 = vld [vmem:[%s2961_s2] ss:$0 sm:$0xff]  ;;  %s1846_s2 = sshll.u32 %s2425_s1, 4  ;;  %s1847_s2 = int_to_ptr.vmem [resolvable:$true] %s1846_s2 }
  0x9c   :  { %2204 = vmatpush3.bf16.msra.mxu0 %v2395_v13  ;;  %s2402_s19 = scalar_lea.vmem %s1847_s2, 32  ;;  %p2407_p1 = scmp.lt.s32.totalorder %s1847_s2, %s1847_s2 }
  0x9d   :  { %2226 = vmatpush3.bf16.msra.mxu1 %v2396_v14  ;;  %2205 = vmatprep.subr.bf16.mxu0 %v2397_v15  ;;  %p2403_p0 = scmp.ne.s32.totalorder %s1847_s2, %s2402_s19  ;;  %p2408_p2 = scmp.lt.s32.totalorder %s2402_s19, %s2402_s19 }
  0x9e   :  { %2227 = vmatprep.subr.bf16.mxu1 %v2398_v16  ;;  %1830 = vmatprep.mubr.bf16.mxu1 %v150_v23 }
  0x9f   :  { %p2409_p3 = por %p2408_p2, %p2407_p1 }
  0xa0   :  { %2206 = vmatpush3.bf16.msra.mxu0 %v2399_v21 }
  0xa1   :  { %2228 = vmatpush3.bf16.msra.mxu1 %v2400_v22  ;;  %p2410_p4 = pnand %p2409_p3, %p2403_p0 }
  0xa3   :  { %1791 = vmatmul.mubr.bf16.vlgmr.msra.gmra.mxu0 %v147_v24 }
  0xa4   :  { %1831 = vmatmul.mubr.bf16.vlgmr.msra.gmra.mxu1 %v149_v25 }
  0xe3   :  { %v2031_v41 = vpop.f32.mrf.mxu0 }
  0xe4   :  { %v2053_v26 = vpop.f32.mrf.mxu1 }
  0xe5   :  { %v2032_v28 = vpop.f32.mrf.mxu0 }
  0xe6   :  { %v2054_v29 = vpop.f32.mrf.mxu1  ;;  %v2033_v30 = vadd.f32 %v2032_v28, %v2031_v41 }
  0xe7   :  { %v2055_v31 = vadd.f32 %v2054_v29, %v2053_v26  ;;  %v2034_v32 = vpop.f32.mrf.mxu0 }
  0xe8   :  { %v2056_v33 = vpop.f32.mrf.mxu1  ;;  %v1473_v34 = vadd.f32 %v2033_v30, %v1854_v27 }
  0xe9   :  { %v2035_v35 = vpop.f32.mrf.mxu0 }
  0xea   :  { %v2057_v36 = vpop.f32.mrf.mxu1  ;;  %v1513_v37 = vadd.f32 %v2055_v31, %v1473_v34 }
 0x103   :  { %v2075_v38 = vpop.f32.mrf.mxu0 }
 0x104   :  { %v2097_v39 = vpop.f32.mrf.mxu1 }
 0x105   :  { %v2076_v40 = vpop.f32.mrf.mxu0 }
 0x106   :  { %v2098_v42 = vpop.f32.mrf.mxu1  ;;  %v2077_v43 = vadd.f32 %v2076_v40, %v2075_v38 }
 0x107   :  { %v2099_v44 = vadd.f32 %v2098_v42, %v2097_v39  ;;  %v2078_v45 = vpop.f32.mrf.mxu0 }
 0x108   :  { %v2100_v46 = vpop.f32.mrf.mxu1  ;;  %v1553_v47 = vadd.f32 %v2077_v43, %v1513_v37 }
 0x109   :  { %v2079_v48 = vpop.f32.mrf.mxu0 }
 0x10a   :  { %v2101_v49 = vpop.f32.mrf.mxu1  ;;  %v1593_v50 = vadd.f32 %v2099_v44, %v1553_v47 }
 0x123   :  { %v2119_v51 = vpop.f32.mrf.mxu0 }
 0x124   :  { %v2141_v52 = vpop.f32.mrf.mxu1 }
 0x125   :  { %v2120_v53 = vpop.f32.mrf.mxu0 }
 0x126   :  { %v2142_v54 = vpop.f32.mrf.mxu1  ;;  %v2121_v3 = vadd.f32 %v2120_v53, %v2119_v51 }
 0x127   :  { %v2122_v55 = vpop.f32.mrf.mxu0  ;;  %v2143_v5 = vadd.f32 %v2142_v54, %v2141_v52 }
 0x128   :  { %v2144_v56 = vpop.f32.mrf.mxu1  ;;  %v1633_v4 = vadd.f32 %v2121_v3, %v1593_v50 }
 0x129   :  { %v2123_v57 = vpop.f32.mrf.mxu0 }
 0x12a   :  { %v2145_v58 = vpop.f32.mrf.mxu1  ;;  %v1673_v7 = vadd.f32 %v2143_v5, %v1633_v4 }
 0x143   :  { %v2163_v59 = vpop.f32.mrf.mxu0 }
 0x144   :  { %v2185_v60 = vpop.f32.mrf.mxu1 }
 0x145   :  { %v2164_v61 = vpop.f32.mrf.mxu0 }
 0x146   :  { %v2186_v62 = vpop.f32.mrf.mxu1  ;;  %v2165_v6 = vadd.f32 %v2164_v61, %v2163_v59 }
 0x147   :  { %v2166_v63 = vpop.f32.mrf.mxu0  ;;  %v2187_v9 = vadd.f32 %v2186_v62, %v2185_v60 }
 0x148   :  { %v2188_v0 = vpop.f32.mrf.mxu1  ;;  %v1713_v8 = vadd.f32 %v2165_v6, %v1673_v7 }
 0x149   :  { %v2167_v1 = vpop.f32.mrf.mxu0 }
 0x14a   :  { %v2189_v2 = vpop.f32.mrf.mxu1  ;;  %v1753_v14 = vadd.f32 %v2187_v9, %v1713_v8 }
 0x163   :  { %v2207_v10 = vpop.f32.mrf.mxu0 }
 0x164   :  { %v2229_v11 = vpop.f32.mrf.mxu1 }
 0x165   :  { %v2208_v12 = vpop.f32.mrf.mxu0 }
 0x166   :  { %v2230_v13 = vpop.f32.mrf.mxu1  ;;  %v2209_v15 = vadd.f32 %v2208_v12, %v2207_v10 }
 0x167   :  { %v2210_v16 = vpop.f32.mrf.mxu0  ;;  %v2231_v19 = vadd.f32 %v2230_v13, %v2229_v11 }
 0x168   :  { %v2232_v17 = vpop.f32.mrf.mxu1  ;;  %v1793_v18 = vadd.f32 %v2209_v15, %v1753_v14 }
 0x169   :  { %v2211_v20 = vpop.f32.mrf.mxu0 }
 0x16a   :  { %v2233_v21 = vpop.f32.mrf.mxu1  ;;  %v1833_v22 = vadd.f32 %v2231_v19, %v1793_v18 }
 0x16c   :  { %1839 = vst.msk [vmem:[#allocation2] sm:$0x3] %vm1838_vm0, %v1833_v22 }
 0x16d   :  { %2413 = shalt.err (!%p2410_p4)
}
 0x16e   :  { %1849 = dma.vmem_to_hbm [thread:$0]  %s1847_s2, 32, %s2962_s3, [#allocation3]  }
 0x16f   :  { %2422 = dma.done.wait [#allocation3], 32  }
 0x170   :  { %2423 = vsyncadd [#allocation3], 4294967264 }
 0x171   :  { %1853 = vsyncpa [#allocation3], 1 }

// kernel: cnn_forward.2
= control target key start
LH: loop header
LB: loop body
LE: loop exit
PB: predicated region body
PF: predicated region fallthrough
CT: control target
= control target key end

     0   :  { %s11889_s12 = smov 0   ;;  %s17138_s0 = inlined_call_operand.vmem [shape: f32[2,32,32,3], index: 0, kind: input, shape index: {}]   ;;  %s17139_s1 = inlined_call_operand.vmem [shape: bf16[3,3,3,10], index: 1, kind: input, shape index: {}]   ;;  %s17140_s2 = inlined_call_operand.vmem [shape: f32[1,10], index: 2, kind: input, shape index: {}]   ;;  %s17141_s3 = inlined_call_operand.vmem [shape: f32[2,16,16,10], index: 3, kind: output, shape index: {}]  }
   0x1 LB: > { %s9382_s13 = sadd.s32 4294967295, %s11865_s12   ;;  %p9386_p0 = scmp.ge.s32.totalorder %s11865_s12, 1  ;;  %s11865_s12 = sphi %s11889_s12, %s13_s12  }
   0x2   : > { %p137_p1 = scmp.lt.s32.totalorder %s11865_s12, 3 }
   0x4   : > { %p138_p2 = pnand %p9386_p0, %p137_p1 }
   0x6   : > { %141 = sbr.rel (%p138_p2) target bundleno = 1486 (0x5ce), region = 32 }
   0xb   : > { %v11900_v0 = vld [vmem:[%s17139_s1 + $0x2] sm:$0x3]  ;;  %vm1677_vm0 = vcmask 1040384   ;;  %vm1678_vm1 = vcmask 1041408   ;;  %vm172_vm2 = vcmask 23552   ;;  %v11867_v1 = vmov 65535  }
   0xc   : > { %v1679_v2 = vsel %vm1677_vm0, 4294967295, %v11867_v1  ;;  %p11904_p3 = scmp.lt.s32.totalorder %s9382_s13, 1  ;;  %v11868_v4 = vmov 0.0   ;;  %vm177_vm3 = vcmask 17408   ;;  %v771_v5 = vld [vmem:[%s17139_s1] sm:$0x3] }
   0xd   : > { %v11908_v3 = vsel %vm1678_vm1, %v1679_v2, 0  ;;  %173 = vst.msk [vmem:[#allocation2] sm:$0xff] %vm172_vm2, %v11868_v4  ;;  %174 = vst.msk [vmem:[#allocation2 + $0x8] sm:$0xff] %vm172_vm2, %v11868_v4  ;;  %v773_v6 = vld [vmem:[%s17139_s1 + $0x4] sm:$0x3]  ;;  %vm1004_vm4 = vcmask 1046528  }
   0xe   : > { %17507 = vst [vmem:[#allocation3_spill] sm:$0xff] %v11908_v3  ;;  %175 = vst.msk [vmem:[#allocation2 + $0x10] sm:$0xff] %vm172_vm2, %v11868_v4  ;;  %v1682_v7 = vand.u32 %v11908_v3, %v11900_v0  ;;  %s18869_s13 = smov (!%p11904_p3, %s9382_s13), 1  ;;  %v12265_v8 = vand.u32 %v11908_v3, %v771_v5  ;;  %v12268_v9 = vand.u32 %v11908_v3, %v773_v6  ;;  %vm2969_vm5 = vcmask 1045504  }
   0xf   : > { %176 = vst.msk [vmem:[#allocation2 + $0x18] sm:$0xff] %vm172_vm2, %v11868_v4  ;;  %179 = vst.msk [vmem:[#allocation2 + $0x28] sm:$0xff] %vm172_vm2, %v11868_v4  ;;  %s9970_s21 = sshll.u32 %s18869_s13, 10  ;;  %s9971_s14 = sshll.u32 %s18869_s13, 8  ;;  %vm8875_vm6 = vcmask 73728   ;;  %vm8892_vm7 = vcmask 75778  }
  0x10   : > { %180 = vst.msk [vmem:[#allocation2 + $0x30] sm:$0xff] %vm172_vm2, %v11868_v4  ;;  %181 = vst.msk [vmem:[#allocation2 + $0x38] sm:$0xff] %vm172_vm2, %v11868_v4  ;;  %10557 = vmatprep.subr.bf16.mxu0 %v1682_v7  ;;  %11727 = vmatprep.subr.bf16.mxu1 %v1682_v7  ;;  %s12274_s24 = scalar_lea.vmem %s17138_s0, %s9970_s21  ;;  %s16317_s16 = scalar_lea.vmem %s17141_s3, %s9971_s14  ;;  %vm8909_vm8 = vcmask 77828   ;;  %vm8926_vm9 = vcmask 79878  }
  0x11   : > { %182 = vst.msk [vmem:[#allocation2 + $0x40] sm:$0xff] %vm172_vm2, %v11868_v4  ;;  %184 = vst.msk [vmem:[#allocation2 + $0x50] sm:$0xff] %vm172_vm2, %v11868_v4  ;;  %10558 = vmatpush3.bf16.msra.mxu0 %v1682_v7  ;;  %11728 = vmatpush3.bf16.msra.mxu1 %v1682_v7  ;;  %v404_v10 = vld [vmem:[%s12274_s24 + $0x1e0] sm:$0xff]  ;;  %v405_v11 = vld [vmem:[%s12274_s24 + $0x1e8] sm:$0xff] }
  0x12   : > { %185 = vst.msk [vmem:[#allocation2 + $0x58] sm:$0xff] %vm172_vm2, %v11868_v4  ;;  %186 = vst.msk [vmem:[#allocation2 + $0x60] sm:$0xff] %vm172_vm2, %v11868_v4  ;;  %v406_v12 = vld [vmem:[%s12274_s24 + $0x1f0] sm:$0xff]  ;;  %10687 = vmatprep.subr.bf16.mxu1 %v12265_v8  ;;  %10817 = vmatprep.subr.bf16.mxu0 %v12268_v9  ;;  %v407_v13 = vld [vmem:[%s12274_s24 + $0x1f8] sm:$0xff] }
  0x13   : > { %187 = vst.msk [vmem:[#allocation2 + $0x68] sm:$0xff] %vm172_vm2, %v11868_v4  ;;  %189 = vst.msk [vmem:[#allocation2 + $0x78] sm:$0xff] %vm172_vm2, %v11868_v4  ;;  %v344_v14 = vld [vmem:[%s12274_s24] sm:$0xff]  ;;  %v345_v15 = vld [vmem:[%s12274_s24 + $0x8] sm:$0xff] }
  0x14   : > { %190 = vst.msk [vmem:[#allocation2 + $0x80] sm:$0xff] %vm172_vm2, %v11868_v4  ;;  %191 = vst.msk [vmem:[#allocation2 + $0x88] sm:$0xff] %vm172_vm2, %v11868_v4  ;;  %v12287_v16 = vld [vmem:[#allocation2] sm:$0xff]  ;;  %v12289_v17 = vld [vmem:[#allocation2 + $0x8] sm:$0xff] }
  0x15   : > { %192 = vst.msk [vmem:[#allocation2 + $0x90] sm:$0xff] %vm172_vm2, %v11868_v4  ;;  %194 = vst.msk [vmem:[#allocation2 + $0xa0] sm:$0xff] %vm172_vm2, %v11868_v4  ;;  %v12291_v18 = vld [vmem:[#allocation2 + $0x10] sm:$0xff]  ;;  %v1005_v20 = vrot.slane %v12287_v16, 1  ;;  %v1006_v21 = vrot.slane %v12289_v17, 1  ;;  %v2970_v23 = vrot.slane %v12287_v16, 2 }
  0x16   : > { %195 = vst.msk [vmem:[#allocation2 + $0xa8] sm:$0xff] %vm172_vm2, %v11868_v4  ;;  %196 = vst.msk [vmem:[#allocation2 + $0xb0] sm:$0xff] %vm172_vm2, %v11868_v4  ;;  %v12296_v19 = vld [vmem:[#allocation2 + $0x18] sm:$0xff]  ;;  %v1008_v22 = vrot.slane %v12291_v18, 1  ;;  %v346_v24 = vld [vmem:[%s12274_s24 + $0x10] sm:$0xff]  ;;  %v2971_v26 = vrot.slane %v12289_v17, 2 }
  0x17   : > { %197 = vst.msk [vmem:[#allocation2 + $0xb8] sm:$0xff] %vm172_vm2, %v11868_v4  ;;  %199 = vst.msk [vmem:[#allocation2 + $0xc8] sm:$0xff] %vm172_vm2, %v11868_v4  ;;  %v2973_v27 = vrot.slane %v12291_v18, 2  ;;  %v2975_v28 = vrot.slane %v12296_v19, 2  ;;  %v347_v30 = vld [vmem:[%s12274_s24 + $0x18] sm:$0xff]  ;;  %v1007_v31 = vsel %vm1004_vm4, %v1005_v20, %v1006_v21  ;;  %v1010_v33 = vrot.slane %v12296_v19, 1 }
  0x18   : > { %200 = vst.msk [vmem:[#allocation2 + $0xd0] sm:$0xff] %vm172_vm2, %v11868_v4  ;;  %201 = vst.msk [vmem:[#allocation2 + $0xd8] sm:$0xff] %vm172_vm2, %v11868_v4  ;;  %v1009_v32 = vsel %vm1004_vm4, %v1006_v21, %v1008_v22  ;;  %v408_v35 = vld [vmem:[%s12274_s24 + $0x200] sm:$0xff]  ;;  %v409_v36 = vld [vmem:[%s12274_s24 + $0x208] sm:$0xff]  ;;  %v12335_v49 = vsel %vm2969_vm5, %v2970_v23, %v2971_v26 }
  0x19   : > { %202 = vst.msk [vmem:[#allocation2 + $0xe0] sm:$0xff] %vm172_vm2, %v11868_v4  ;;  %204 = vst.msk [vmem:[#allocation2 + $0xf0] sm:$0xff] %vm172_vm2, %v11868_v4  ;;  %v410_v37 = vld [vmem:[%s12274_s24 + $0x210] sm:$0xff]  ;;  %v1421_v38 = vpack.c.bf16 %v1009_v32, %v1007_v31  ;;  %v12318_v39 = vsel %vm2969_vm5, %v2973_v27, %v2975_v28  ;;  %v411_v41 = vld [vmem:[%s12274_s24 + $0x218] sm:$0xff]  ;;  %v1011_v44 = vsel %vm1004_vm4, %v1008_v22, %v1010_v33 }
  0x1a   : > { %205 = vst.msk [vmem:[#allocation2 + $0xf8] sm:$0xff] %vm172_vm2, %v11868_v4  ;;  %206 = vst.msk [vmem:[#allocation2 + $0x100] sm:$0xff] %vm172_vm2, %v11868_v4  ;;  %v348_v42 = vld [vmem:[%s12274_s24 + $0x20] sm:$0xff]  ;;  %v349_v43 = vld [vmem:[%s12274_s24 + $0x28] sm:$0xff]  ;;  %v12338_v50 = vsel %vm2969_vm5, %v2971_v26, %v2973_v27 }
  0x1b   : > { %207 = vst.msk [vmem:[#allocation2 + $0x108] sm:$0xff] %vm172_vm2, %v11868_v4  ;;  %209 = vst.msk [vmem:[#allocation2 + $0x118] sm:$0xff] %vm172_vm2, %v11868_v4  ;;  %v350_v46 = vld [vmem:[%s12274_s24 + $0x30] sm:$0xff]  ;;  %v351_v47 = vld [vmem:[%s12274_s24 + $0x38] sm:$0xff]  ;;  %10559 = vmatprep.mubr.msk.bf16.mxu0 %vm172_vm2, %v1421_v38 }
  0x1c   : > { %210 = vst.msk [vmem:[#allocation2 + $0x120] sm:$0xff] %vm172_vm2, %v11868_v4  ;;  %211 = vst.msk [vmem:[#allocation2 + $0x128] sm:$0xff] %vm172_vm2, %v11868_v4  ;;  %v412_v48 = vld [vmem:[%s12274_s24 + $0x220] sm:$0xff] }
  0x1d   : > { %212 = vst.msk [vmem:[#allocation2 + $0x130] sm:$0xff] %vm172_vm2, %v11868_v4  ;;  %214 = vst.msk [vmem:[#allocation2 + $0x140] sm:$0xff] %vm172_vm2, %v11868_v4 }
  0x1e   : > { %215 = vst.msk [vmem:[#allocation2 + $0x148] sm:$0xff] %vm172_vm2, %v11868_v4  ;;  %216 = vst.msk [vmem:[#allocation2 + $0x150] sm:$0xff] %vm172_vm2, %v11868_v4 }
  0x1f   : > { %217 = vst.msk [vmem:[#allocation2 + $0x158] sm:$0xff] %vm172_vm2, %v11868_v4  ;;  %219 = vst.msk [vmem:[#allocation2 + $0x168] sm:$0xff] %vm172_vm2, %v11868_v4 }
  0x20   : > { %220 = vst.msk [vmem:[#allocation2 + $0x170] sm:$0xff] %vm172_vm2, %v11868_v4  ;;  %221 = vst.msk [vmem:[#allocation2 + $0x178] sm:$0xff] %vm172_vm2, %v11868_v4 }
  0x21   : > { %222 = vst.msk [vmem:[#allocation2 + $0x180] sm:$0xff] %vm172_vm2, %v11868_v4  ;;  %224 = vst.msk [vmem:[#allocation2 + $0x190] sm:$0xff] %vm172_vm2, %v11868_v4 }
  0x22   : > { %225 = vst.msk [vmem:[#allocation2 + $0x198] sm:$0xff] %vm172_vm2, %v11868_v4  ;;  %226 = vst.msk [vmem:[#allocation2 + $0x1a0] sm:$0xff] %vm172_vm2, %v11868_v4 }
  0x23   : > { %227 = vst.msk [vmem:[#allocation2 + $0x1a8] sm:$0xff] %vm172_vm2, %v11868_v4  ;;  %229 = vst.msk [vmem:[#allocation2 + $0x1b8] sm:$0xff] %vm172_vm2, %v11868_v4 }
  0x24   : > { %230 = vst.msk [vmem:[#allocation2 + $0x1c0] sm:$0xff] %vm172_vm2, %v11868_v4  ;;  %231 = vst.msk [vmem:[#allocation2 + $0x1c8] sm:$0xff] %vm172_vm2, %v11868_v4 }
  0x25   : > { %232 = vst.msk [vmem:[#allocation2 + $0x1d0] sm:$0xff] %vm172_vm2, %v11868_v4  ;;  %234 = vst.msk [vmem:[#allocation2 + $0x1e0] sm:$0xff] %vm172_vm2, %v11868_v4 }
  0x26   : > { %235 = vst.msk [vmem:[#allocation2 + $0x1e8] sm:$0xff] %vm172_vm2, %v11868_v4  ;;  %236 = vst.msk [vmem:[#allocation2 + $0x1f0] sm:$0xff] %vm172_vm2, %v11868_v4 }
  0x27   : > { %237 = vst.msk [vmem:[#allocation2 + $0x1f8] sm:$0xff] %vm172_vm2, %v11868_v4  ;;  %239 = vst.msk [vmem:[#allocation2 + $0x208] sm:$0xff] %vm172_vm2, %v11868_v4 }
  0x28   : > { %240 = vst.msk [vmem:[#allocation2 + $0x210] sm:$0xff] %vm172_vm2, %v11868_v4  ;;  %241 = vst.msk [vmem:[#allocation2 + $0x218] sm:$0xff] %vm172_vm2, %v11868_v4 }
  0x29   : > { %242 = vst.msk [vmem:[#allocation2 + $0x220] sm:$0xff] %vm172_vm2, %v11868_v4  ;;  %244 = vst.msk [vmem:[#allocation2 + $0x230] sm:$0xff] %vm172_vm2, %v11868_v4 }
  0x2a   : > { %245 = vst.msk [vmem:[#allocation2 + $0x238] sm:$0xff] %vm172_vm2, %v11868_v4  ;;  %246 = vst.msk [vmem:[#allocation2 + $0x240] sm:$0xff] %vm172_vm2, %v11868_v4 }
  0x2b   : > { %247 = vst.msk [vmem:[#allocation2 + $0x248] sm:$0xff] %vm172_vm2, %v11868_v4  ;;  %249 = vst.msk [vmem:[#allocation2 + $0x258] sm:$0xff] %vm172_vm2, %v11868_v4 }
  0x2c   : > { %250 = vst.msk [vmem:[#allocation2 + $0x260] sm:$0xff] %vm172_vm2, %v11868_v4  ;;  %251 = vst.msk [vmem:[#allocation2 + $0x268] sm:$0xff] %vm172_vm2, %v11868_v4 }
  0x2d   : > { %252 = vst.msk [vmem:[#allocation2 + $0x270] sm:$0xff] %vm172_vm2, %v11868_v4  ;;  %254 = vst.msk [vmem:[#allocation2 + $0x280] sm:$0xff] %vm172_vm2, %v11868_v4 }
  0x2e   : > { %255 = vst.msk [vmem:[#allocation2 + $0x288] sm:$0xff] %vm172_vm2, %v11868_v4  ;;  %256 = vst.msk [vmem:[#allocation2 + $0x290] sm:$0xff] %vm172_vm2, %v11868_v4 }
  0x2f   : > { %257 = vst.msk [vmem:[#allocation2 + $0x298] sm:$0xff] %vm172_vm2, %v11868_v4  ;;  %259 = vst.msk [vmem:[#allocation2 + $0x2a8] sm:$0xff] %vm172_vm2, %v11868_v4 }
  0x30   : > { %260 = vst.msk [vmem:[#allocation2 + $0x2b0] sm:$0xff] %vm172_vm2, %v11868_v4  ;;  %261 = vst.msk [vmem:[#allocation2 + $0x2b8] sm:$0xff] %vm172_vm2, %v11868_v4 }
  0x31   : > { %262 = vst.msk [vmem:[#allocation2 + $0x2c0] sm:$0xff] %vm172_vm2, %v11868_v4  ;;  %264 = vst.msk [vmem:[#allocation2 + $0x2d0] sm:$0xff] %vm172_vm2, %v11868_v4 }
  0x32   : > { %265 = vst.msk [vmem:[#allocation2 + $0x2d8] sm:$0xff] %vm172_vm2, %v11868_v4  ;;  %266 = vst.msk [vmem:[#allocation2 + $0x2e0] sm:$0xff] %vm172_vm2, %v11868_v4 }
  0x33   : > { %267 = vst.msk [vmem:[#allocation2 + $0x2e8] sm:$0xff] %vm172_vm2, %v11868_v4  ;;  %269 = vst.msk [vmem:[#allocation2 + $0x2f8] sm:$0xff] %vm172_vm2, %v11868_v4 }
  0x34   : > { %270 = vst.msk [vmem:[#allocation2 + $0x300] sm:$0xff] %vm172_vm2, %v11868_v4  ;;  %271 = vst.msk [vmem:[#allocation2 + $0x308] sm:$0xff] %vm172_vm2, %v11868_v4 }
  0x35   : > { %272 = vst.msk [vmem:[#allocation2 + $0x310] sm:$0xff] %vm172_vm2, %v11868_v4  ;;  %274 = vst.msk [vmem:[#allocation2 + $0x320] sm:$0xff] %vm172_vm2, %v11868_v4 }
  0x36   : > { %275 = vst.msk [vmem:[#allocation2 + $0x328] sm:$0xff] %vm172_vm2, %v11868_v4  ;;  %276 = vst.msk [vmem:[#allocation2 + $0x330] sm:$0xff] %vm172_vm2, %v11868_v4 }
  0x37   : > { %277 = vst.msk [vmem:[#allocation2 + $0x338] sm:$0xff] %vm172_vm2, %v11868_v4  ;;  %279 = vst.msk [vmem:[#allocation2 + $0x348] sm:$0xff] %vm172_vm2, %v11868_v4 }
  0x38   : > { %280 = vst.msk [vmem:[#allocation2 + $0x350] sm:$0xff] %vm172_vm2, %v11868_v4  ;;  %281 = vst.msk [vmem:[#allocation2 + $0x358] sm:$0xff] %vm172_vm2, %v11868_v4 }
  0x39   : > { %282 = vst.msk [vmem:[#allocation2 + $0x360] sm:$0xff] %vm172_vm2, %v11868_v4  ;;  %284 = vst.msk [vmem:[#allocation2 + $0x370] sm:$0xff] %vm172_vm2, %v11868_v4 }
  0x3a   : > { %285 = vst.msk [vmem:[#allocation2 + $0x378] sm:$0xff] %vm172_vm2, %v11868_v4  ;;  %286 = vst.msk [vmem:[#allocation2 + $0x380] sm:$0xff] %vm172_vm2, %v11868_v4 }
  0x3b   : > { %287 = vst.msk [vmem:[#allocation2 + $0x388] sm:$0xff] %vm172_vm2, %v11868_v4  ;;  %289 = vst.msk [vmem:[#allocation2 + $0x398] sm:$0xff] %vm172_vm2, %v11868_v4 }
  0x3c   : > { %290 = vst.msk [vmem:[#allocation2 + $0x3a0] sm:$0xff] %vm172_vm2, %v11868_v4  ;;  %291 = vst.msk [vmem:[#allocation2 + $0x3a8] sm:$0xff] %vm172_vm2, %v11868_v4 }
  0x3d   : > { %292 = vst.msk [vmem:[#allocation2 + $0x3b0] sm:$0xff] %vm172_vm2, %v11868_v4  ;;  %294 = vst.msk [vmem:[#allocation2 + $0x3c0] sm:$0xff] %vm172_vm2, %v11868_v4 }
  0x3e   : > { %295 = vst.msk [vmem:[#allocation2 + $0x3c8] sm:$0xff] %vm172_vm2, %v11868_v4  ;;  %296 = vst.msk [vmem:[#allocation2 + $0x3d0] sm:$0xff] %vm172_vm2, %v11868_v4 }
  0x3f   : > { %297 = vst.msk [vmem:[#allocation2 + $0x3d8] sm:$0xff] %vm172_vm2, %v11868_v4  ;;  %299 = vst.msk [vmem:[#allocation2 + $0x3e8] sm:$0xff] %vm172_vm2, %v11868_v4 }
  0x40   : > { %300 = vst.msk [vmem:[#allocation2 + $0x3f0] sm:$0xff] %vm172_vm2, %v11868_v4  ;;  %301 = vst.msk [vmem:[#allocation2 + $0x3f8] sm:$0xff] %vm172_vm2, %v11868_v4 }
  0x41   : > { %302 = vst.msk [vmem:[#allocation2 + $0x400] sm:$0xff] %vm172_vm2, %v11868_v4  ;;  %304 = vst.msk [vmem:[#allocation2 + $0x410] sm:$0xff] %vm172_vm2, %v11868_v4 }
  0x42   : > { %305 = vst.msk [vmem:[#allocation2 + $0x418] sm:$0xff] %vm172_vm2, %v11868_v4  ;;  %306 = vst.msk [vmem:[#allocation2 + $0x420] sm:$0xff] %vm172_vm2, %v11868_v4 }
  0x43   : > { %307 = vst.msk [vmem:[#allocation2 + $0x428] sm:$0xff] %vm172_vm2, %v11868_v4  ;;  %309 = vst.msk [vmem:[#allocation2 + $0x438] sm:$0xff] %vm172_vm2, %v11868_v4 }
  0x44   : > { %310 = vst.msk [vmem:[#allocation2 + $0x440] sm:$0xff] %vm172_vm2, %v11868_v4  ;;  %311 = vst.msk [vmem:[#allocation2 + $0x448] sm:$0xff] %vm172_vm2, %v11868_v4 }
  0x45   : > { %312 = vst.msk [vmem:[#allocation2 + $0x450] sm:$0xff] %vm172_vm2, %v11868_v4  ;;  %314 = vst.msk [vmem:[#allocation2 + $0x460] sm:$0xff] %vm172_vm2, %v11868_v4 }
  0x46   : > { %315 = vst.msk [vmem:[#allocation2 + $0x468] sm:$0xff] %vm172_vm2, %v11868_v4  ;;  %316 = vst.msk [vmem:[#allocation2 + $0x470] sm:$0xff] %vm172_vm2, %v11868_v4 }
  0x47   : > { %317 = vst.msk [vmem:[#allocation2 + $0x478] sm:$0xff] %vm172_vm2, %v11868_v4  ;;  %319 = vst.msk [vmem:[#allocation2 + $0x488] sm:$0xff] %vm172_vm2, %v11868_v4 }
  0x48   : > { %320 = vst.msk [vmem:[#allocation2 + $0x490] sm:$0xff] %vm172_vm2, %v11868_v4  ;;  %321 = vst.msk [vmem:[#allocation2 + $0x498] sm:$0xff] %vm172_vm2, %v11868_v4 }
  0x49   : > { %322 = vst.msk [vmem:[#allocation2 + $0x4a0] sm:$0xff] %vm172_vm2, %v11868_v4  ;;  %324 = vst.msk [vmem:[#allocation2 + $0x4b0] sm:$0xff] %vm172_vm2, %v11868_v4 }
  0x4a   : > { %325 = vst.msk [vmem:[#allocation2 + $0x4b8] sm:$0xff] %vm172_vm2, %v11868_v4  ;;  %326 = vst.msk [vmem:[#allocation2 + $0x4c0] sm:$0xff] %vm172_vm2, %v11868_v4 }
  0x4b   : > { %327 = vst.msk [vmem:[#allocation2 + $0x4c8] sm:$0xff] %vm172_vm2, %v11868_v4  ;;  %329 = vst.msk [vmem:[#allocation2 + $0x4d8] sm:$0xff] %vm172_vm2, %v11868_v4 }
  0x4c   : > { %330 = vst.msk [vmem:[#allocation2 + $0x4e0] sm:$0xff] %vm172_vm2, %v11868_v4  ;;  %331 = vst.msk [vmem:[#allocation2 + $0x4e8] sm:$0xff] %vm172_vm2, %v11868_v4 }
  0x4d   : > { %332 = vst.msk [vmem:[#allocation2 + $0x4f0] sm:$0xff] %vm172_vm2, %v11868_v4  ;;  %334 = vst.msk [vmem:[#allocation2 + $0x500] sm:$0xff] %vm172_vm2, %v11868_v4 }
  0x4e   : > { %335 = vst.msk [vmem:[#allocation2 + $0x508] sm:$0xff] %vm172_vm2, %v11868_v4  ;;  %336 = vst.msk [vmem:[#allocation2 + $0x510] sm:$0xff] %vm172_vm2, %v11868_v4 }
  0x4f   : > { %337 = vst.msk [vmem:[#allocation2 + $0x518] sm:$0xff] %vm172_vm2, %v11868_v4  ;;  %339 = vst.msk [vmem:[#allocation2 + $0x528] sm:$0xff] %vm172_vm2, %v11868_v4 }
  0x50   : > { %340 = vst.msk [vmem:[#allocation2 + $0x530] sm:$0xff] %vm172_vm2, %v11868_v4  ;;  %341 = vst.msk [vmem:[#allocation2 + $0x538] sm:$0xff] %vm172_vm2, %v11868_v4 }
  0x51   : > { %342 = vst.msk [vmem:[#allocation2 + $0x540] sm:$0xff] %vm172_vm2, %v11868_v4  ;;  %533 = vst.msk [vmem:[#allocation2 + $0x281] sm:$0xff] %vm172_vm2, %v404_v10 }
  0x52   : > { %178 = vst.msk [vmem:[#allocation2 + $0x20] sm:$0x3] %vm177_vm3, %v11868_v4  ;;  %183 = vst.msk [vmem:[#allocation2 + $0x48] sm:$0x3] %vm177_vm3, %v11868_v4 }
  0x53   : > { %188 = vst.msk [vmem:[#allocation2 + $0x70] sm:$0x3] %vm177_vm3, %v11868_v4  ;;  %193 = vst.msk [vmem:[#allocation2 + $0x98] sm:$0x3] %vm177_vm3, %v11868_v4 }
  0x54   : > { %198 = vst.msk [vmem:[#allocation2 + $0xc0] sm:$0x3] %vm177_vm3, %v11868_v4  ;;  %203 = vst.msk [vmem:[#allocation2 + $0xe8] sm:$0x3] %vm177_vm3, %v11868_v4 }
  0x55   : > { %208 = vst.msk [vmem:[#allocation2 + $0x110] sm:$0x3] %vm177_vm3, %v11868_v4  ;;  %213 = vst.msk [vmem:[#allocation2 + $0x138] sm:$0x3] %vm177_vm3, %v11868_v4 }
  0x56   : > { %218 = vst.msk [vmem:[#allocation2 + $0x160] sm:$0x3] %vm177_vm3, %v11868_v4  ;;  %223 = vst.msk [vmem:[#allocation2 + $0x188] sm:$0x3] %vm177_vm3, %v11868_v4 }
  0x57   : > { %228 = vst.msk [vmem:[#allocation2 + $0x1b0] sm:$0x3] %vm177_vm3, %v11868_v4  ;;  %233 = vst.msk [vmem:[#allocation2 + $0x1d8] sm:$0x3] %vm177_vm3, %v11868_v4 }
  0x58   : > { %238 = vst.msk [vmem:[#allocation2 + $0x200] sm:$0x3] %vm177_vm3, %v11868_v4  ;;  %243 = vst.msk [vmem:[#allocation2 + $0x228] sm:$0x3] %vm177_vm3, %v11868_v4  ;;  %v681_v52 = vld [vmem:[#allocation2 + $0x280] sm:$0xff] }
  0x59   : > { %248 = vst.msk [vmem:[#allocation2 + $0x250] sm:$0x3] %vm177_vm3, %v11868_v4  ;;  %253 = vst.msk [vmem:[#allocation2 + $0x278] sm:$0x3] %vm177_vm3, %v11868_v4  ;;  %v605_v29 = vld [vmem:[#allocation2 + $0x20] sm:$0x3] }
  0x5a   : > { %258 = vst.msk [vmem:[#allocation2 + $0x2a0] sm:$0x3] %vm177_vm3, %v11868_v4  ;;  %263 = vst.msk [vmem:[#allocation2 + $0x2c8] sm:$0x3] %vm177_vm3, %v11868_v4  ;;  %v1012_v34 = vrot.slane %v605_v29, 1  ;;  %v2977_v40 = vrot.slane %v605_v29, 2 }
  0x5b   : > { %268 = vst.msk [vmem:[#allocation2 + $0x2f0] sm:$0x3] %vm177_vm3, %v11868_v4  ;;  %273 = vst.msk [vmem:[#allocation2 + $0x318] sm:$0x3] %vm177_vm3, %v11868_v4  ;;  %v1149_v57 = vrot.slane %v681_v52, 1 }
  0x5c   : > { %278 = vst.msk [vmem:[#allocation2 + $0x340] sm:$0x3] %vm177_vm3, %v11868_v4  ;;  %283 = vst.msk [vmem:[#allocation2 + $0x368] sm:$0x3] %vm177_vm3, %v11868_v4  ;;  %v1013_v45 = vsel %vm1004_vm4, %v1010_v33, %v1012_v34  ;;  %v12347_v56 = vsel %vm2969_vm5, %v2975_v28, %v2977_v40 }
  0x5d   : > { %288 = vst.msk [vmem:[#allocation2 + $0x390] sm:$0x3] %vm177_vm3, %v11868_v4  ;;  %293 = vst.msk [vmem:[#allocation2 + $0x3b8] sm:$0x3] %vm177_vm3, %v11868_v4  ;;  %v1422_v51 = vpack.c.bf16 %v1013_v45, %v1011_v44 }
  0x5e   : > { %298 = vst.msk [vmem:[#allocation2 + $0x3e0] sm:$0x3] %vm177_vm3, %v11868_v4  ;;  %303 = vst.msk [vmem:[#allocation2 + $0x408] sm:$0x3] %vm177_vm3, %v11868_v4 }
  0x5f   : > { %308 = vst.msk [vmem:[#allocation2 + $0x430] sm:$0x3] %vm177_vm3, %v11868_v4  ;;  %313 = vst.msk [vmem:[#allocation2 + $0x458] sm:$0x3] %vm177_vm3, %v11868_v4  ;;  %10560 = vmatmul.mubr.msk.bf16.vlgmr.msra.gmra.mxu0 %vm172_vm2, %v1422_v51 }
  0x60   : > { %318 = vst.msk [vmem:[#allocation2 + $0x480] sm:$0x3] %vm177_vm3, %v11868_v4  ;;  %323 = vst.msk [vmem:[#allocation2 + $0x4a8] sm:$0x3] %vm177_vm3, %v11868_v4  ;;  %10818 = vmatpush3.bf16.msra.mxu0 %v12268_v9 }
  0x61   : > { %328 = vst.msk [vmem:[#allocation2 + $0x4d0] sm:$0x3] %vm177_vm3, %v11868_v4  ;;  %333 = vst.msk [vmem:[#allocation2 + $0x4f8] sm:$0x3] %vm177_vm3, %v11868_v4 }
  0x62   : > { %338 = vst.msk [vmem:[#allocation2 + $0x520] sm:$0x3] %vm177_vm3, %v11868_v4  ;;  %343 = vst.msk [vmem:[#allocation2 + $0x548] sm:$0x3] %vm177_vm3, %v11868_v4  ;;  %v413_v4 = vld [vmem:[%s12274_s24 + $0x228] sm:$0xff] }
  0x63   : > { %534 = vst.msk [vmem:[#allocation2 + $0x289] sm:$0xff] %vm172_vm2, %v405_v11  ;;  %535 = vst.msk [vmem:[#allocation2 + $0x291] sm:$0xff] %vm172_vm2, %v406_v12 }
  0x64   : > { %17508 = vst [vmem:[#allocation4_spill] sm:$0xff] %v12291_v18  ;;  %536 = vst.msk [vmem:[#allocation2 + $0x299] sm:$0xff] %vm172_vm2, %v407_v13  ;;  %v414_v13 = vld [vmem:[%s12274_s24 + $0x230] sm:$0xff] }
  0x65   : > { %473 = vst.msk [vmem:[#allocation2 + $0x29] sm:$0xff] %vm172_vm2, %v344_v14  ;;  %474 = vst.msk [vmem:[#allocation2 + $0x31] sm:$0xff] %vm172_vm2, %v345_v15  ;;  %v415_v14 = vld [vmem:[%s12274_s24 + $0x238] sm:$0xff] }
  0x66   : > { %17509 = vst [vmem:[#allocation5_spill] sm:$0xff] %v12296_v19  ;;  %475 = vst.msk [vmem:[#allocation2 + $0x39] sm:$0xff] %vm172_vm2, %v346_v24  ;;  %v352_v24 = vld [vmem:[%s12274_s24 + $0x40] sm:$0xff] }
  0x67   : > { %476 = vst.msk [vmem:[#allocation2 + $0x41] sm:$0xff] %vm172_vm2, %v347_v30  ;;  %537 = vst.msk [vmem:[#allocation2 + $0x2a9] sm:$0xff] %vm172_vm2, %v408_v35 }
  0x68   : > { %538 = vst.msk [vmem:[#allocation2 + $0x2b1] sm:$0xff] %vm172_vm2, %v409_v36  ;;  %539 = vst.msk [vmem:[#allocation2 + $0x2b9] sm:$0xff] %vm172_vm2, %v410_v37 }
  0x69   : > { %540 = vst.msk [vmem:[#allocation2 + $0x2c1] sm:$0xff] %vm172_vm2, %v411_v41  ;;  %477 = vst.msk [vmem:[#allocation2 + $0x51] sm:$0xff] %vm172_vm2, %v348_v42 }
  0x6a   : > { %478 = vst.msk [vmem:[#allocation2 + $0x59] sm:$0xff] %vm172_vm2, %v349_v43  ;;  %v682_v53 = vld [vmem:[#allocation2 + $0x288] sm:$0xff]  ;;  %v683_v54 = vld [vmem:[#allocation2 + $0x290] sm:$0xff]  ;;  %479 = vst.msk [vmem:[#allocation2 + $0x61] sm:$0xff] %vm172_vm2, %v350_v46 }
  0x6b   : > { %480 = vst.msk [vmem:[#allocation2 + $0x69] sm:$0xff] %vm172_vm2, %v351_v47  ;;  %541 = vst.msk [vmem:[#allocation2 + $0x2d1] sm:$0xff] %vm172_vm2, %v412_v48  ;;  %v1150_v58 = vrot.slane %v682_v53, 1  ;;  %v1152_v59 = vrot.slane %v683_v54, 1  ;;  %v684_v60 = vld [vmem:[#allocation2 + $0x298] sm:$0xff] }
  0x6c   : > { %v685_v61 = vld [vmem:[#allocation2 + $0x2a0] sm:$0x3]  ;;  %v1154_v63 = vrot.slane %v684_v60, 1  ;;  %v12352_v1 = vld [vmem:[#allocation2 + $0x28] sm:$0xff]  ;;  %v12354_v2 = vld [vmem:[#allocation2 + $0x30] sm:$0xff]  ;;  %542 = vst.msk [vmem:[#allocation2 + $0x2d9] sm:$0xff] %vm172_vm2, %v413_v4 }
  0x6d   : > { %v1156_v0 = vrot.slane %v685_v61, 1  ;;  %v1151_v6 = vsel %vm1004_vm4, %v1149_v57, %v1150_v58  ;;  %v1153_v7 = vsel %vm1004_vm4, %v1150_v58, %v1152_v59  ;;  %v12362_v10 = vld [vmem:[#allocation2 + $0x38] sm:$0xff]  ;;  %v1014_v11 = vrot.slane %v12352_v1, 1  ;;  %543 = vst.msk [vmem:[#allocation2 + $0x2e1] sm:$0xff] %vm172_vm2, %v414_v13  ;;  %544 = vst.msk [vmem:[#allocation2 + $0x2e9] sm:$0xff] %vm172_vm2, %v415_v14  ;;  %v353_v60 = vld [vmem:[%s12274_s24 + $0x48] sm:$0xff] }
  0x6e   : > { %v1015_v12 = vrot.slane %v12354_v2, 1  ;;  %v12369_v15 = vpack.c.bf16 %v1153_v7, %v1151_v6  ;;  %v1155_v20 = vsel %vm1004_vm4, %v1152_v59, %v1154_v63  ;;  %v1017_v22 = vrot.slane %v12362_v10, 1  ;;  %v12374_v23 = vld [vmem:[#allocation2 + $0x40] sm:$0xff]  ;;  %v12376_v9 = vld [vmem:[#allocation2 + $0x48] sm:$0x3]  ;;  %481 = vst.msk [vmem:[#allocation2 + $0x79] sm:$0xff] %vm172_vm2, %v352_v24 }
  0x6f   : > { %v1157_v21 = vsel %vm1004_vm4, %v1154_v63, %v1156_v0  ;;  %v1019_v28 = vrot.slane %v12374_v23, 1  ;;  %v1021_v29 = vrot.slane %v12376_v9, 1  ;;  %v686_v30 = vld [vmem:[#allocation2 + $0x2a8] sm:$0xff]  ;;  %v687_v31 = vld [vmem:[#allocation2 + $0x2b0] sm:$0xff]  ;;  %v688_v32 = vld [vmem:[#allocation2 + $0x2b8] sm:$0xff]  ;;  %482 = vst.msk [vmem:[#allocation2 + $0x81] sm:$0xff] %vm172_vm2, %v353_v60 }
  0x70   : > { %17510 = vst [vmem:[#allocation6_spill] sm:$0xff] %v12369_v15  ;;  %v12381_v26 = vpack.c.bf16 %v1157_v21, %v1155_v20  ;;  %v1016_v27 = vsel %vm1004_vm4, %v1014_v11, %v1015_v12  ;;  %10623 = vmatprep.mubr.msk.bf16.mxu1 %vm172_vm2, %v12369_v15  ;;  %v1018_v33 = vsel %vm1004_vm4, %v1015_v12, %v1017_v22  ;;  %v1158_v34 = vrot.slane %v686_v30, 1  ;;  %v689_v37 = vld [vmem:[#allocation2 + $0x2c0] sm:$0xff]  ;;  %v690_v38 = vld [vmem:[#allocation2 + $0x2c8] sm:$0x3]  ;;  %v12396_v44 = vld [vmem:[#allocation2 + $0x50] sm:$0xff] }
  0x71   : > { %v1159_v35 = vrot.slane %v687_v31, 1  ;;  %v1161_v36 = vrot.slane %v688_v32, 1  ;;  %v12392_v40 = vpack.c.bf16 %v1018_v33, %v1016_v27  ;;  %v1020_v41 = vsel %vm1004_vm4, %v1017_v22, %v1019_v28  ;;  %v12398_v45 = vld [vmem:[#allocation2 + $0x58] sm:$0xff]  ;;  %v12400_v46 = vld [vmem:[#allocation2 + $0x60] sm:$0xff]  ;;  %v354_v61 = vld [vmem:[%s12274_s24 + $0x50] sm:$0xff] }
  0x72   : > { %17511 = vst [vmem:[#allocation7_spill] sm:$0xff] %v12381_v26  ;;  %10624 = vmatmul.mubr.msk.bf16.vlgmr.msra.gmra.mxu1 %vm172_vm2, %v12381_v26  ;;  %v1022_v42 = vsel %vm1004_vm4, %v1019_v28, %v1021_v29  ;;  %v1163_v43 = vrot.slane %v689_v37, 1  ;;  %v1165_v52 = vrot.slane %v690_v38, 1  ;;  %v12407_v53 = vld [vmem:[#allocation2 + $0x68] sm:$0xff]  ;;  %v12409_v54 = vld [vmem:[#allocation2 + $0x70] sm:$0x3] }
  0x73   : > { %17512 = vst [vmem:[#allocation8_spill] sm:$0xff] %v12392_v40  ;;  %10688 = vmatpush3.bf16.msra.mxu1 %v12265_v8  ;;  %v12403_v47 = vpack.c.bf16 %v1022_v42, %v1020_v41  ;;  %v1160_v48 = vsel %vm1004_vm4, %v1158_v34, %v1159_v35  ;;  %v1162_v51 = vsel %vm1004_vm4, %v1159_v35, %v1161_v36  ;;  %v691_v57 = vld [vmem:[#allocation2 + $0x2d0] sm:$0xff]  ;;  %v1023_v59 = vrot.slane %v12396_v44, 1  ;;  %v355_v63 = vld [vmem:[%s12274_s24 + $0x58] sm:$0xff]  ;;  %v416_v12 = vld [vmem:[%s12274_s24 + $0x240] sm:$0xff] }
  0x74   : > { %10563 = vmatprep.mubr.msk.bf16.mxu0 %vm172_vm2, %v12392_v40  ;;  %v12413_v58 = vpack.c.bf16 %v1162_v51, %v1160_v48  ;;  %v1164_v8 = vsel %vm1004_vm4, %v1161_v36, %v1163_v43  ;;  %v1166_v0 = vsel %vm1004_vm4, %v1163_v43, %v1165_v52  ;;  %v1024_v4 = vrot.slane %v12398_v45, 1  ;;  %v692_v11 = vld [vmem:[#allocation2 + $0x2d8] sm:$0xff]  ;;  %483 = vst.msk [vmem:[#allocation2 + $0x89] sm:$0xff] %vm172_vm2, %v354_v61  ;;  %v417_v13 = vld [vmem:[%s12274_s24 + $0x248] sm:$0xff]  ;;  %v693_v21 = vld [vmem:[#allocation2 + $0x2e0] sm:$0xff] }
  0x75   : > { %17513 = vst [vmem:[#allocation9_spill] sm:$0xff] %v12403_v47  ;;  %10564 = vmatmul.mubr.msk.bf16.gmra.mxu0 %vm172_vm2, %v12403_v47  ;;  %v1026_v6 = vrot.slane %v12400_v46, 1  ;;  %v1028_v7 = vrot.slane %v12407_v53, 1  ;;  %484 = vst.msk [vmem:[#allocation2 + $0x91] sm:$0xff] %vm172_vm2, %v355_v63  ;;  %v12433_v14 = vpack.c.bf16 %v1166_v0, %v1164_v8  ;;  %v1030_v20 = vrot.slane %v12409_v54, 1  ;;  %v694_v27 = vld [vmem:[#allocation2 + $0x2e8] sm:$0xff] }
  0x76   : > { %17514 = vst [vmem:[#allocation10_spill] sm:$0xff] %v12413_v58  ;;  %10627 = vmatprep.mubr.msk.bf16.mxu1 %vm172_vm2, %v12413_v58  ;;  %v1167_v22 = vrot.slane %v691_v57, 1  ;;  %v1168_v24 = vrot.slane %v692_v11, 1  ;;  %v418_v28 = vld [vmem:[%s12274_s24 + $0x250] sm:$0xff]  ;;  %545 = vst.msk [vmem:[#allocation2 + $0x2f9] sm:$0xff] %vm172_vm2, %v416_v12  ;;  %v1025_v29 = vsel %vm1004_vm4, %v1023_v59, %v1024_v4  ;;  %v1170_v32 = vrot.slane %v693_v21, 1 }
  0x77   : > { %17515 = vst [vmem:[#allocation11_spill] sm:$0xff] %v12433_v14  ;;  %546 = vst.msk [vmem:[#allocation2 + $0x301] sm:$0xff] %vm172_vm2, %v417_v13  ;;  %v1027_v30 = vsel %vm1004_vm4, %v1024_v4, %v1026_v6  ;;  %v1029_v31 = vsel %vm1004_vm4, %v1026_v6, %v1028_v7  ;;  %v695_v33 = vld [vmem:[#allocation2 + $0x2f0] sm:$0x3]  ;;  %v12442_v34 = vld [vmem:[#allocation2 + $0x78] sm:$0xff]  ;;  %v1031_v37 = vsel %vm1004_vm4, %v1028_v7, %v1030_v20  ;;  %v1172_v41 = vrot.slane %v694_v27, 1 }
  0x78   : > { %547 = vst.msk [vmem:[#allocation2 + $0x309] sm:$0xff] %vm172_vm2, %v418_v28  ;;  %v419_v35 = vld [vmem:[%s12274_s24 + $0x258] sm:$0xff]  ;;  %v12446_v36 = vpack.c.bf16 %v1027_v30, %v1025_v29  ;;  %v1169_v38 = vsel %vm1004_vm4, %v1167_v22, %v1168_v24  ;;  %v356_v42 = vld [vmem:[%s12274_s24 + $0x60] sm:$0xff]  ;;  %v357_v43 = vld [vmem:[%s12274_s24 + $0x68] sm:$0xff]  ;;  %v12454_v51 = vpack.c.bf16 %v1031_v37, %v1029_v31  ;;  %v1171_v52 = vsel %vm1004_vm4, %v1168_v24, %v1170_v32 }
  0x79   : > { %548 = vst.msk [vmem:[#allocation2 + $0x311] sm:$0xff] %vm172_vm2, %v419_v35  ;;  %v358_v48 = vld [vmem:[%s12274_s24 + $0x70] sm:$0xff]  ;;  %v1174_v57 = vrot.slane %v695_v33, 1  ;;  %485 = vst.msk [vmem:[#allocation2 + $0xa1] sm:$0xff] %vm172_vm2, %v356_v42  ;;  %v359_v8 = vld [vmem:[%s12274_s24 + $0x78] sm:$0xff]  ;;  %v12467_v61 = vpack.c.bf16 %v1171_v52, %v1169_v38  ;;  %v1173_v63 = vsel %vm1004_vm4, %v1170_v32, %v1172_v41  ;;  %v1032_v0 = vrot.slane %v12442_v34, 1 }
  0x7a   : > { %17516 = vst [vmem:[#allocation12_spill] sm:$0xff] %v12446_v36  ;;  %17517 = vst [vmem:[#allocation13_spill] sm:$0xff] %v12454_v51  ;;  %v420_v59 = vld [vmem:[%s12274_s24 + $0x260] sm:$0xff]  ;;  %v421_v60 = vld [vmem:[%s12274_s24 + $0x268] sm:$0xff]  ;;  %10628 = vmatmul.mubr.msk.bf16.gmra.mxu1 %vm172_vm2, %v12433_v14  ;;  %10567 = vmatprep.mubr.msk.bf16.mxu0 %vm172_vm2, %v12446_v36  ;;  %v2979_v11 = vrot.slane %v12352_v1, 2  ;;  %v2980_v22 = vrot.slane %v12354_v2, 2  ;;  %v12497_v32 = vpack.c.bf16 %v12354_v2, %v12352_v1 }
  0x7b   : > { %486 = vst.msk [vmem:[#allocation2 + $0xa9] sm:$0xff] %vm172_vm2, %v357_v43  ;;  %487 = vst.msk [vmem:[#allocation2 + $0xb1] sm:$0xff] %vm172_vm2, %v358_v48  ;;  %v422_v4 = vld [vmem:[%s12274_s24 + $0x270] sm:$0xff]  ;;  %v423_v6 = vld [vmem:[%s12274_s24 + $0x278] sm:$0xff]  ;;  %v1175_v12 = vsel %vm1004_vm4, %v1172_v41, %v1174_v57  ;;  %v2982_v24 = vrot.slane %v12362_v10, 2  ;;  %v2984_v27 = vrot.slane %v12374_v23, 2  ;;  %10631 = vmatprep.mubr.msk.bf16.mxu1 %vm172_vm2, %v12467_v61  ;;  %v12501_v33 = vpack.c.bf16 %v12374_v23, %v12362_v10 }
  0x7c   : > { %17518 = vst [vmem:[#allocation14_spill] sm:$0xff] %v12467_v61  ;;  %488 = vst.msk [vmem:[#allocation2 + $0xb9] sm:$0xff] %vm172_vm2, %v359_v8  ;;  %v360_v7 = vld [vmem:[%s12274_s24 + $0x80] sm:$0xff]  ;;  %v361_v13 = vld [vmem:[%s12274_s24 + $0x88] sm:$0xff]  ;;  %v12490_v28 = vpack.c.bf16 %v1175_v12, %v1173_v63  ;;  %v12506_v42 = vsel %vm2969_vm5, %v2979_v11, %v2980_v22 }
  0x7d   : > { %549 = vst.msk [vmem:[#allocation2 + $0x321] sm:$0xff] %vm172_vm2, %v420_v59  ;;  %550 = vst.msk [vmem:[#allocation2 + $0x329] sm:$0xff] %vm172_vm2, %v421_v60  ;;  %v362_v20 = vld [vmem:[%s12274_s24 + $0x90] sm:$0xff]  ;;  %v363_v21 = vld [vmem:[%s12274_s24 + $0x98] sm:$0xff]  ;;  %10568 = vmatmul.mubr.msk.bf16.gmra.mxu0 %vm172_vm2, %v12454_v51  ;;  %v12510_v10 = vsel %vm2969_vm5, %v2980_v22, %v2982_v24  ;;  %v12515_v57 = vsel %vm2969_vm5, %v2982_v24, %v2984_v27 }
  0x7e   : > { %551 = vst.msk [vmem:[#allocation2 + $0x331] sm:$0xff] %vm172_vm2, %v422_v4  ;;  %552 = vst.msk [vmem:[#allocation2 + $0x339] sm:$0xff] %vm172_vm2, %v423_v6  ;;  %v617_v29 = vld [vmem:[#allocation2 + $0x80] sm:$0xff]  ;;  %v618_v30 = vld [vmem:[#allocation2 + $0x88] sm:$0xff] }
  0x7f   : > { %489 = vst.msk [vmem:[#allocation2 + $0xc9] sm:$0xff] %vm172_vm2, %v360_v7  ;;  %17519 = vst [vmem:[#allocation15_spill] sm:$0xff] %v12490_v28  ;;  %v619_v31 = vld [vmem:[#allocation2 + $0x90] sm:$0xff]  ;;  %v1033_v34 = vrot.slane %v617_v29, 1  ;;  %v1035_v35 = vrot.slane %v618_v30, 1  ;;  %v696_v41 = vld [vmem:[#allocation2 + $0x2f8] sm:$0xff] }
  0x80   : > { %490 = vst.msk [vmem:[#allocation2 + $0xd1] sm:$0xff] %vm172_vm2, %v361_v13  ;;  %491 = vst.msk [vmem:[#allocation2 + $0xd9] sm:$0xff] %vm172_vm2, %v362_v20  ;;  %v620_v37 = vld [vmem:[#allocation2 + $0x98] sm:$0x3]  ;;  %v1037_v38 = vrot.slane %v619_v31, 1  ;;  %v697_v48 = vld [vmem:[#allocation2 + $0x300] sm:$0xff] }
  0x81   : > { %492 = vst.msk [vmem:[#allocation2 + $0xe1] sm:$0xff] %vm172_vm2, %v363_v21  ;;  %17520 = vst [vmem:[#allocation16_spill] sm:$0xff] %v12497_v32  ;;  %v1039_v43 = vrot.slane %v620_v37, 1  ;;  %v698_v1 = vld [vmem:[#allocation2 + $0x308] sm:$0xff]  ;;  %v1176_v2 = vrot.slane %v696_v41, 1  ;;  %v424_v52 = vld [vmem:[%s12274_s24 + $0x280] sm:$0xff]  ;;  %v1034_v8 = vsel %vm1004_vm4, %v1032_v0, %v1033_v34  ;;  %v1036_v59 = vsel %vm1004_vm4, %v1033_v34, %v1035_v35 }
  0x82   : > { %17521 = vst [vmem:[#allocation17_spill] sm:$0xff] %v12501_v33  ;;  %v1038_v60 = vsel %vm1004_vm4, %v1035_v35, %v1037_v38  ;;  %v1177_v63 = vrot.slane %v697_v48, 1  ;;  %v699_v4 = vld [vmem:[#allocation2 + $0x310] sm:$0xff]  ;;  %v700_v6 = vld [vmem:[#allocation2 + $0x318] sm:$0x3]  ;;  %v425_v7 = vld [vmem:[%s12274_s24 + $0x288] sm:$0xff]  ;;  %v12522_v11 = vpack.c.bf16 %v1036_v59, %v1034_v8  ;;  %10632 = vmatmul.mubr.msk.bf16.gmra.mxu1 %vm172_vm2, %v12490_v28 }
  0x83   : > { %553 = vst.msk [vmem:[#allocation2 + $0x349] sm:$0xff] %vm172_vm2, %v424_v52  ;;  %v1040_v12 = vsel %vm1004_vm4, %v1037_v38, %v1039_v43  ;;  %v1179_v13 = vrot.slane %v698_v1, 1  ;;  %v1181_v20 = vrot.slane %v699_v4, 1  ;;  %v621_v21 = vld [vmem:[#allocation2 + $0xa0] sm:$0xff]  ;;  %v622_v22 = vld [vmem:[#allocation2 + $0xa8] sm:$0xff]  ;;  %v623_v24 = vld [vmem:[#allocation2 + $0xb0] sm:$0xff] }
  0x84   : > { %17522 = vst [vmem:[#allocation18_spill] sm:$0xff] %v12522_v11  ;;  %554 = vst.msk [vmem:[#allocation2 + $0x351] sm:$0xff] %vm172_vm2, %v425_v7  ;;  %v12526_v0 = vpack.c.bf16 %v1040_v12, %v1038_v60  ;;  %v1178_v29 = vsel %vm1004_vm4, %v1176_v2, %v1177_v63  ;;  %v1183_v30 = vrot.slane %v700_v6, 1  ;;  %v624_v31 = vld [vmem:[#allocation2 + $0xb8] sm:$0xff]  ;;  %v625_v34 = vld [vmem:[#allocation2 + $0xc0] sm:$0x3]  ;;  %10571 = vmatprep.mubr.msk.bf16.mxu0 %vm172_vm2, %v12522_v11 }
  0x85   : > { %v701_v35 = vld [vmem:[#allocation2 + $0x320] sm:$0xff]  ;;  %v1180_v37 = vsel %vm1004_vm4, %v1177_v63, %v1179_v13  ;;  %v1182_v38 = vsel %vm1004_vm4, %v1179_v13, %v1181_v20  ;;  %v1041_v41 = vrot.slane %v621_v21, 1  ;;  %v1042_v43 = vrot.slane %v622_v22, 1  ;;  %v702_v48 = vld [vmem:[#allocation2 + $0x328] sm:$0xff]  ;;  %v703_v1 = vld [vmem:[#allocation2 + $0x330] sm:$0xff] }
  0x86   : > { %17523 = vst [vmem:[#allocation19_spill] sm:$0xff] %v12526_v0  ;;  %v12535_v52 = vpack.c.bf16 %v1180_v37, %v1178_v29  ;;  %v1184_v2 = vsel %vm1004_vm4, %v1181_v20, %v1183_v30  ;;  %v1044_v8 = vrot.slane %v623_v24, 1  ;;  %v1046_v59 = vrot.slane %v624_v31, 1  ;;  %v704_v60 = vld [vmem:[#allocation2 + $0x338] sm:$0xff]  ;;  %v705_v4 = vld [vmem:[#allocation2 + $0x340] sm:$0x3]  ;;  %10572 = vmatmul.mubr.msk.bf16.gmra.mxu0 %vm172_vm2, %v12526_v0 }
  0x87   : > { %v12538_v6 = vld [vmem:[#allocation2 + $0xc8] sm:$0xff]  ;;  %v12540_v7 = vpack.c.bf16 %v1184_v2, %v1182_v38  ;;  %v1043_v63 = vsel %vm1004_vm4, %v1041_v41, %v1042_v43  ;;  %v1048_v12 = vrot.slane %v625_v34, 1  ;;  %v1185_v13 = vrot.slane %v701_v35, 1  ;;  %v12543_v21 = vld [vmem:[#allocation2 + $0xd0] sm:$0xff]  ;;  %v12545_v22 = vld [vmem:[#allocation2 + $0xd8] sm:$0xff] }
  0x88   : > { %17524 = vst [vmem:[#allocation20_spill] sm:$0xff] %v12535_v52  ;;  %v12547_v20 = vld [vmem:[#allocation2 + $0xe0] sm:$0xff]  ;;  %10635 = vmatprep.mubr.msk.bf16.mxu1 %vm172_vm2, %v12535_v52  ;;  %v1045_v24 = vsel %vm1004_vm4, %v1042_v43, %v1044_v8  ;;  %v1047_v29 = vsel %vm1004_vm4, %v1044_v8, %v1046_v59  ;;  %v1186_v30 = vrot.slane %v702_v48, 1  ;;  %v1188_v31 = vrot.slane %v703_v1, 1  ;;  %v12555_v34 = vld [vmem:[#allocation2 + $0xe8] sm:$0x3] }
  0x89   : > { %17525 = vst [vmem:[#allocation21_spill] sm:$0xff] %v12540_v7  ;;  %v426_v35 = vld [vmem:[%s12274_s24 + $0x290] sm:$0xff]  ;;  %v427_v37 = vld [vmem:[%s12274_s24 + $0x298] sm:$0xff]  ;;  %v364_v38 = vld [vmem:[%s12274_s24 + $0xa0] sm:$0xff]  ;;  %v12560_v41 = vpack.c.bf16 %v1045_v24, %v1043_v63  ;;  %v1049_v2 = vsel %vm1004_vm4, %v1046_v59, %v1048_v12  ;;  %v1190_v25 = vrot.slane %v704_v60, 1  ;;  %v1192_v62 = vrot.slane %v705_v4, 1 }
  0x8a   : > { %555 = vst.msk [vmem:[#allocation2 + $0x359] sm:$0xff] %vm172_vm2, %v426_v35  ;;  %v12564_v43 = vld [vmem:[#allocation2 + $0x348] sm:$0xff]  ;;  %556 = vst.msk [vmem:[#allocation2 + $0x361] sm:$0xff] %vm172_vm2, %v427_v37  ;;  %v366_v1 = vld [vmem:[%s12274_s24 + $0xb0] sm:$0xff]  ;;  %v1187_v8 = vsel %vm1004_vm4, %v1185_v13, %v1186_v30  ;;  %v1189_v63 = vsel %vm1004_vm4, %v1186_v30, %v1188_v31  ;;  %v2986_v12 = vrot.slane %v12376_v9, 2  ;;  %v12581_v24 = vpack.c.bf16 %v1049_v2, %v1047_v29 }
  0x8b   : > { %17526 = vst [vmem:[#allocation22_spill] sm:$0xff] %v12560_v41  ;;  %v365_v48 = vld [vmem:[%s12274_s24 + $0xa8] sm:$0xff]  ;;  %493 = vst.msk [vmem:[#allocation2 + $0xf1] sm:$0xff] %vm172_vm2, %v364_v38  ;;  %v12572_v59 = vld [vmem:[#allocation2 + $0x350] sm:$0xff]  ;;  %10575 = vmatprep.mubr.msk.bf16.mxu0 %vm172_vm2, %v12560_v41  ;;  %v12583_v13 = vpack.c.bf16 %v1189_v63, %v1187_v8  ;;  %v1191_v30 = vsel %vm1004_vm4, %v1188_v31, %v1190_v25  ;;  %v1050_v35 = vrot.slane %v12538_v6, 1  ;;  %v1051_v29 = vrot.slane %v12543_v21, 1 }
  0x8c   : > { %494 = vst.msk [vmem:[#allocation2 + $0xf9] sm:$0xff] %vm172_vm2, %v365_v48  ;;  %495 = vst.msk [vmem:[#allocation2 + $0x101] sm:$0xff] %vm172_vm2, %v366_v1  ;;  %v367_v60 = vld [vmem:[%s12274_s24 + $0xb8] sm:$0xff]  ;;  %v428_v4 = vld [vmem:[%s12274_s24 + $0x2a0] sm:$0xff]  ;;  %v1193_v48 = vsel %vm1004_vm4, %v1190_v25, %v1192_v62  ;;  %v1053_v2 = vrot.slane %v12545_v22, 1  ;;  %v1055_v31 = vrot.slane %v12547_v20, 1  ;;  %10636 = vmatmul.mubr.msk.bf16.gmra.mxu1 %vm172_vm2, %v12540_v7 }
  0x8d   : > { %17527 = vst [vmem:[#allocation23_spill] sm:$0xff] %v12581_v24  ;;  %17528 = vst [vmem:[#allocation24_spill] sm:$0xff] %v12583_v13  ;;  %v429_v37 = vld [vmem:[%s12274_s24 + $0x2a8] sm:$0xff]  ;;  %v430_v38 = vld [vmem:[%s12274_s24 + $0x2b0] sm:$0xff]  ;;  %v1057_v25 = vrot.slane %v12555_v34, 1  ;;  %v1194_v62 = vrot.slane %v12564_v43, 1  ;;  %10639 = vmatprep.mubr.msk.bf16.mxu1 %vm172_vm2, %v12583_v13  ;;  %v1052_v34 = vsel %vm1004_vm4, %v1050_v35, %v1051_v29 }
  0x8e   : > { %496 = vst.msk [vmem:[#allocation2 + $0x109] sm:$0xff] %vm172_vm2, %v367_v60  ;;  %557 = vst.msk [vmem:[#allocation2 + $0x371] sm:$0xff] %vm172_vm2, %v428_v4  ;;  %v431_v9 = vld [vmem:[%s12274_s24 + $0x2b8] sm:$0xff]  ;;  %v368_v6 = vld [vmem:[%s12274_s24 + $0xc0] sm:$0xff]  ;;  %v1195_v21 = vrot.slane %v12572_v59, 1  ;;  %v12615_v60 = vpack.c.bf16 %v12510_v10, %v12506_v42  ;;  %v1054_v43 = vsel %vm1004_vm4, %v1051_v29, %v1053_v2  ;;  %v2987_v10 = vsel %vm2969_vm5, %v2984_v27, %v2986_v12 }
  0x8f   : > { %558 = vst.msk [vmem:[#allocation2 + $0x379] sm:$0xff] %vm172_vm2, %v429_v37  ;;  %559 = vst.msk [vmem:[#allocation2 + $0x381] sm:$0xff] %vm172_vm2, %v430_v38  ;;  %v369_v1 = vld [vmem:[%s12274_s24 + $0xc8] sm:$0xff]  ;;  %v370_v8 = vld [vmem:[%s12274_s24 + $0xd0] sm:$0xff]  ;;  %v12630_v37 = vpack.c.bf16 %v1193_v48, %v1191_v30  ;;  %v12632_v38 = vpack.c.bf16 %v1054_v43, %v1052_v34  ;;  %v1056_v35 = vsel %vm1004_vm4, %v1053_v2, %v1055_v31  ;;  %10576 = vmatmul.mubr.msk.bf16.gmra.mxu0 %vm172_vm2, %v12581_v24 }
  0x90   : > { %560 = vst.msk [vmem:[#allocation2 + $0x389] sm:$0xff] %vm172_vm2, %v431_v9  ;;  %497 = vst.msk [vmem:[#allocation2 + $0x119] sm:$0xff] %vm172_vm2, %v368_v6  ;;  %v371_v22 = vld [vmem:[%s12274_s24 + $0xd8] sm:$0xff]  ;;  %v432_v20 = vld [vmem:[%s12274_s24 + $0x2c0] sm:$0xff]  ;;  %v1058_v23 = vsel %vm1004_vm4, %v1055_v31, %v1057_v25  ;;  %v2988_v48 = vrot.slane %v12396_v44, 2  ;;  %v17142_v2 = vrot.slane %v12398_v45, 2  ;;  %v1196_v31 = vsel %vm1004_vm4, %v1194_v62, %v1195_v21 }
  0x91   : > { %498 = vst.msk [vmem:[#allocation2 + $0x121] sm:$0xff] %vm172_vm2, %v369_v1  ;;  %499 = vst.msk [vmem:[#allocation2 + $0x129] sm:$0xff] %vm172_vm2, %v370_v8  ;;  %v433_v63 = vld [vmem:[%s12274_s24 + $0x2c8] sm:$0xff]  ;;  %v434_v59 = vld [vmem:[%s12274_s24 + $0x2d0] sm:$0xff]  ;;  %v12642_v1 = vpack.c.bf16 %v2987_v10, %v12515_v57  ;;  %v12654_v57 = vpack.c.bf16 %v12398_v45, %v12396_v44  ;;  %10579 = vmatprep.mubr.msk.bf16.mxu0 %vm172_vm2, %v12632_v38  ;;  %v12666_v10 = vpack.c.bf16 %v12407_v53, %v12400_v46 }
  0x92   : > { %17529 = vst [vmem:[#allocation25_spill] sm:$0xff] %v12615_v60  ;;  %500 = vst.msk [vmem:[#allocation2 + $0x131] sm:$0xff] %vm172_vm2, %v371_v22  ;;  %v435_v4 = vld [vmem:[%s12274_s24 + $0x2d8] sm:$0xff]  ;;  %v372_v42 = vld [vmem:[%s12274_s24 + $0xe0] sm:$0xff]  ;;  %v12662_v44 = vsel %vm2969_vm5, %v2988_v48, %v17142_v2  ;;  %v12668_v62 = vpack.c.bf16 %v1058_v23, %v1056_v35 }
  0x93   : > { %561 = vst.msk [vmem:[#allocation2 + $0x399] sm:$0xff] %vm172_vm2, %v432_v20  ;;  %562 = vst.msk [vmem:[#allocation2 + $0x3a1] sm:$0xff] %vm172_vm2, %v433_v63  ;;  %v373_v9 = vld [vmem:[%s12274_s24 + $0xe8] sm:$0xff]  ;;  %v374_v29 = vld [vmem:[%s12274_s24 + $0xf0] sm:$0xff] }
  0x94   : > { %17530 = vst [vmem:[#allocation26_spill] sm:$0xff] %v12630_v37  ;;  %17531 = vst [vmem:[#allocation27_spill] sm:$0xff] %v12632_v38  ;;  %v375_v6 = vld [vmem:[%s12274_s24 + $0xf8] sm:$0xff]  ;;  %v709_v12 = vld [vmem:[#allocation2 + $0x360] sm:$0xff]  ;;  %10640 = vmatmul.mubr.msk.bf16.gmra.mxu1 %vm172_vm2, %v12630_v37 }
  0x95   : > { %563 = vst.msk [vmem:[#allocation2 + $0x3a9] sm:$0xff] %vm172_vm2, %v434_v59  ;;  %564 = vst.msk [vmem:[#allocation2 + $0x3b1] sm:$0xff] %vm172_vm2, %v435_v4  ;;  %v708_v27 = vld [vmem:[#allocation2 + $0x358] sm:$0xff]  ;;  %v710_v30 = vld [vmem:[#allocation2 + $0x368] sm:$0x3]  ;;  %v1199_v25 = vrot.slane %v709_v12, 1 }
  0x96   : > { %501 = vst.msk [vmem:[#allocation2 + $0x141] sm:$0xff] %vm172_vm2, %v372_v42  ;;  %17532 = vst [vmem:[#allocation28_spill] sm:$0xff] %v12642_v1  ;;  %v1197_v8 = vrot.slane %v708_v27, 1  ;;  %v1201_v22 = vrot.slane %v710_v30, 1  ;;  %v631_v20 = vld [vmem:[#allocation2 + $0xf0] sm:$0xff]  ;;  %v632_v63 = vld [vmem:[#allocation2 + $0xf8] sm:$0xff] }
  0x97   : > { %502 = vst.msk [vmem:[#allocation2 + $0x149] sm:$0xff] %vm172_vm2, %v373_v9  ;;  %503 = vst.msk [vmem:[#allocation2 + $0x151] sm:$0xff] %vm172_vm2, %v374_v29  ;;  %v633_v34 = vld [vmem:[#allocation2 + $0x100] sm:$0xff]  ;;  %v1059_v43 = vrot.slane %v631_v20, 1  ;;  %v1060_v59 = vrot.slane %v632_v63, 1  ;;  %v634_v4 = vld [vmem:[#allocation2 + $0x108] sm:$0xff]  ;;  %10580 = vmatmul.mubr.msk.bf16.gmra.mxu0 %vm172_vm2, %v12668_v62 }
  0x98   : > { %504 = vst.msk [vmem:[#allocation2 + $0x159] sm:$0xff] %vm172_vm2, %v375_v6  ;;  %17533 = vst [vmem:[#allocation29_spill] sm:$0xff] %v12654_v57  ;;  %v635_v42 = vld [vmem:[#allocation2 + $0x110] sm:$0x3]  ;;  %v1198_v9 = vsel %vm1004_vm4, %v1195_v21, %v1197_v8  ;;  %v1200_v29 = vsel %vm1004_vm4, %v1197_v8, %v1199_v25  ;;  %v1062_v6 = vrot.slane %v633_v34, 1  ;;  %v712_v12 = vld [vmem:[#allocation2 + $0x378] sm:$0xff]  ;;  %v1202_v63 = vsel %vm1004_vm4, %v1199_v25, %v1201_v22 }
  0x99   : > { %17534 = vst [vmem:[#allocation30_spill] sm:$0xff] %v12666_v10  ;;  %17535 = vst [vmem:[#allocation31_spill] sm:$0xff] %v12668_v62  ;;  %v711_v27 = vld [vmem:[#allocation2 + $0x370] sm:$0xff]  ;;  %v713_v30 = vld [vmem:[#allocation2 + $0x380] sm:$0xff]  ;;  %v12672_v20 = vpack.c.bf16 %v1198_v9, %v1196_v31  ;;  %v1061_v48 = vsel %vm1004_vm4, %v1059_v43, %v1060_v59  ;;  %v1064_v5 = vrot.slane %v634_v4, 1  ;;  %v1066_v23 = vrot.slane %v635_v42, 1 }
  0x9a   : > { %v1063_v35 = vsel %vm1004_vm4, %v1060_v59, %v1062_v6  ;;  %v1203_v21 = vrot.slane %v711_v27, 1  ;;  %v1204_v55 = vrot.slane %v712_v12, 1  ;;  %v714_v8 = vld [vmem:[#allocation2 + $0x388] sm:$0xff]  ;;  %v636_v34 = vld [vmem:[#allocation2 + $0x118] sm:$0xff]  ;;  %v1206_v9 = vrot.slane %v713_v30, 1  ;;  %v637_v22 = vld [vmem:[#allocation2 + $0x120] sm:$0xff] }
  0x9b   : > { %17536 = vst [vmem:[#allocation32_spill] sm:$0xff] %v12672_v20  ;;  %10643 = vmatprep.mubr.msk.bf16.mxu1 %vm172_vm2, %v12672_v20  ;;  %v12681_v31 = vpack.c.bf16 %v1063_v35, %v1061_v48  ;;  %v715_v25 = vld [vmem:[#allocation2 + $0x390] sm:$0x3]  ;;  %v12683_v43 = vld [vmem:[#allocation2 + $0x128] sm:$0xff]  ;;  %v12685_v4 = vpack.c.bf16 %v1202_v63, %v1200_v29  ;;  %v12688_v59 = vld [vmem:[#allocation2 + $0x398] sm:$0xff]  ;;  %v1065_v42 = vsel %vm1004_vm4, %v1062_v6, %v1064_v5  ;;  %v1208_v12 = vrot.slane %v714_v8, 1 }
  0x9c   : > { %v1205_v2 = vsel %vm1004_vm4, %v1203_v21, %v1204_v55  ;;  %v1207_v27 = vsel %vm1004_vm4, %v1204_v55, %v1206_v9  ;;  %v1068_v30 = vrot.slane %v636_v34, 1  ;;  %v12694_v48 = vld [vmem:[#allocation2 + $0x138] sm:$0x3]  ;;  %v717_v29 = vld [vmem:[#allocation2 + $0x3a0] sm:$0xff]  ;;  %v12696_v63 = vld [vmem:[#allocation2 + $0x3a8] sm:$0xff]  ;;  %v1067_v35 = vsel %vm1004_vm4, %v1064_v5, %v1066_v23 }
  0x9d   : > { %17537 = vst [vmem:[#allocation33_spill] sm:$0xff] %v12681_v31  ;;  %17538 = vst [vmem:[#allocation34_spill] sm:$0xff] %v12685_v4  ;;  %10583 = vmatprep.mubr.msk.bf16.mxu0 %vm172_vm2, %v12681_v31  ;;  %v1210_v21 = vrot.slane %v715_v25, 1  ;;  %v1069_v20 = vrot.slane %v637_v22, 1  ;;  %v17157_v6 = vrot.slane %v12683_v43, 1  ;;  %v12702_v55 = vld [vmem:[#allocation2 + $0x130] sm:$0xff]  ;;  %v12707_v37 = vpack.c.bf16 %v1207_v27, %v1205_v2  ;;  %10644 = vmatmul.mubr.msk.bf16.gmra.mxu1 %vm172_vm2, %v12685_v4 }
  0x9e   : > { %v12704_v8 = vld [vmem:[#allocation2 + $0x140] sm:$0xff]  ;;  %v1212_v13 = vrot.slane %v12688_v59, 1  ;;  %v12710_v7 = vld [vmem:[#allocation2 + $0x148] sm:$0xff]  ;;  %v12712_v52 = vld [vmem:[#allocation2 + $0x150] sm:$0xff]  ;;  %v1213_v27 = vrot.slane %v717_v29, 1 }
  0x9f   : > { %v436_v34 = vld [vmem:[%s12274_s24 + $0x2e0] sm:$0xff]  ;;  %17539 = vst [vmem:[#allocation35_spill] sm:$0xff] %v12707_v37  ;;  %v437_v5 = vld [vmem:[%s12274_s24 + $0x2e8] sm:$0xff]  ;;  %v438_v23 = vld [vmem:[%s12274_s24 + $0x2f0] sm:$0xff]  ;;  %v1070_v22 = vsel %vm1004_vm4, %v1068_v30, %v1069_v20  ;;  %v1072_v2 = vsel %vm1004_vm4, %v1069_v20, %v17157_v6  ;;  %v12729_v30 = vpack.c.bf16 %v1067_v35, %v1065_v42  ;;  %v1209_v20 = vsel %vm1004_vm4, %v1206_v9, %v1208_v12 }
  0xa0   : > { %565 = vst.msk [vmem:[#allocation2 + $0x3c1] sm:$0xff] %vm172_vm2, %v436_v34  ;;  %v439_v25 = vld [vmem:[%s12274_s24 + $0x2f8] sm:$0xff]  ;;  %566 = vst.msk [vmem:[#allocation2 + $0x3c9] sm:$0xff] %vm172_vm2, %v437_v5  ;;  %v376_v34 = vld [vmem:[%s12274_s24 + $0x100] sm:$0xff]  ;;  %v1211_v9 = vsel %vm1004_vm4, %v1208_v12, %v1210_v21  ;;  %v12745_v42 = vpack.c.bf16 %v1072_v2, %v1070_v22  ;;  %v1073_v35 = vrot.slane %v12702_v55, 1  ;;  %10647 = vmatprep.mubr.msk.bf16.mxu1 %vm172_vm2, %v12707_v37  ;;  %v1077_v12 = vrot.slane %v12704_v8, 1 }
  0xa1   : > { %567 = vst.msk [vmem:[#allocation2 + $0x3d1] sm:$0xff] %vm172_vm2, %v438_v23  ;;  %568 = vst.msk [vmem:[#allocation2 + $0x3d9] sm:$0xff] %vm172_vm2, %v439_v25  ;;  %v377_v28 = vld [vmem:[%s12274_s24 + $0x108] sm:$0xff]  ;;  %v378_v61 = vld [vmem:[%s12274_s24 + $0x110] sm:$0xff]  ;;  %v1214_v22 = vsel %vm1004_vm4, %v1212_v13, %v1213_v27  ;;  %v17542_v2 = vrot.slane %v12696_v63, 1  ;;  %v1078_v8 = vrot.slane %v12710_v7, 1  ;;  %10584 = vmatmul.mubr.msk.bf16.gmra.mxu0 %vm172_vm2, %v12729_v30 }
  0xa2   : > { %17540 = vst [vmem:[#allocation36_spill] sm:$0xff] %v12729_v30  ;;  %v12732_v6 = vld [vmem:[#allocation2 + $0x3b0] sm:$0xff]  ;;  %v12734_v29 = vld [vmem:[#allocation2 + $0x3b8] sm:$0x3]  ;;  %505 = vst.msk [vmem:[#allocation2 + $0x169] sm:$0xff] %vm172_vm2, %v376_v34  ;;  %v1075_v34 = vrot.slane %v12694_v48, 1  ;;  %10587 = vmatprep.mubr.msk.bf16.mxu0 %vm172_vm2, %v12745_v42 }
  0xa3   : > { %506 = vst.msk [vmem:[#allocation2 + $0x171] sm:$0xff] %vm172_vm2, %v377_v28  ;;  %507 = vst.msk [vmem:[#allocation2 + $0x179] sm:$0xff] %vm172_vm2, %v378_v61  ;;  %v379_v5 = vld [vmem:[%s12274_s24 + $0x118] sm:$0xff]  ;;  %v440_v23 = vld [vmem:[%s12274_s24 + $0x300] sm:$0xff] }
  0xa4   : > { %v441_v25 = vld [vmem:[%s12274_s24 + $0x308] sm:$0xff]  ;;  %17541 = vst [vmem:[#allocation37_spill] sm:$0xff] %v12745_v42  ;;  %508 = vst.msk [vmem:[#allocation2 + $0x181] sm:$0xff] %vm172_vm2, %v379_v5  ;;  %v442_v61 = vld [vmem:[%s12274_s24 + $0x310] sm:$0xff]  ;;  %v1216_v5 = vsel %vm1004_vm4, %v1213_v27, %v17542_v2  ;;  %v1217_v2 = vrot.slane %v12732_v6, 1 }
  0xa5   : > { %569 = vst.msk [vmem:[#allocation2 + $0x3e9] sm:$0xff] %vm172_vm2, %v440_v23  ;;  %570 = vst.msk [vmem:[#allocation2 + $0x3f1] sm:$0xff] %vm172_vm2, %v441_v25  ;;  %v443_v28 = vld [vmem:[%s12274_s24 + $0x318] sm:$0xff]  ;;  %v380_v59 = vld [vmem:[%s12274_s24 + $0x120] sm:$0xff]  ;;  %v12800_v23 = vpack.c.bf16 %v1216_v5, %v1214_v22 }
  0xa6   : > { %571 = vst.msk [vmem:[#allocation2 + $0x3f9] sm:$0xff] %vm172_vm2, %v442_v61  ;;  %572 = vst.msk [vmem:[#allocation2 + $0x401] sm:$0xff] %vm172_vm2, %v443_v28  ;;  %v381_v48 = vld [vmem:[%s12274_s24 + $0x128] sm:$0xff]  ;;  %v382_v21 = vld [vmem:[%s12274_s24 + $0x130] sm:$0xff]  ;;  %v12778_v61 = vpack.c.bf16 %v1211_v9, %v1209_v20  ;;  %v17544_v20 = vrot.slane %v12683_v43, 1  ;;  %v1079_v43 = vsel %vm1004_vm4, %v1077_v12, %v1078_v8 }
  0xa7   : > { %509 = vst.msk [vmem:[#allocation2 + $0x191] sm:$0xff] %vm172_vm2, %v380_v59  ;;  %v383_v55 = vld [vmem:[%s12274_s24 + $0x138] sm:$0xff]  ;;  %510 = vst.msk [vmem:[#allocation2 + $0x199] sm:$0xff] %vm172_vm2, %v381_v48  ;;  %v444_v59 = vld [vmem:[%s12274_s24 + $0x320] sm:$0xff] }
  0xa8   : > { %511 = vst.msk [vmem:[#allocation2 + $0x1a1] sm:$0xff] %vm172_vm2, %v382_v21  ;;  %512 = vst.msk [vmem:[#allocation2 + $0x1a9] sm:$0xff] %vm172_vm2, %v383_v55  ;;  %v445_v25 = vld [vmem:[%s12274_s24 + $0x328] sm:$0xff]  ;;  %v446_v13 = vld [vmem:[%s12274_s24 + $0x330] sm:$0xff]  ;;  %v1074_v9 = vsel %vm1004_vm4, %v17544_v20, %v1073_v35  ;;  %v1076_v55 = vsel %vm1004_vm4, %v1073_v35, %v1075_v34  ;;  %v17546_v20 = vrot.slane %v12712_v52, 1  ;;  %10648 = vmatmul.mubr.msk.bf16.gmra.mxu1 %vm172_vm2, %v12778_v61 }
  0xa9   : > { %17543 = vst [vmem:[#allocation38_spill] sm:$0xff] %v12778_v61  ;;  %v644_v27 = vld [vmem:[#allocation2 + $0x158] sm:$0xff]  ;;  %573 = vst.msk [vmem:[#allocation2 + $0x411] sm:$0xff] %vm172_vm2, %v444_v59  ;;  %v384_v28 = vld [vmem:[%s12274_s24 + $0x140] sm:$0xff]  ;;  %v1219_v59 = vrot.slane %v12734_v29, 1  ;;  %v12815_v4 = vpack.c.bf16 %v1076_v55, %v1074_v9  ;;  %10651 = vmatprep.mubr.msk.bf16.mxu1 %vm172_vm2, %v12800_v23 }
  0xaa   : > { %574 = vst.msk [vmem:[#allocation2 + $0x419] sm:$0xff] %vm172_vm2, %v445_v25  ;;  %575 = vst.msk [vmem:[#allocation2 + $0x421] sm:$0xff] %vm172_vm2, %v446_v13  ;;  %v447_v7 = vld [vmem:[%s12274_s24 + $0x338] sm:$0xff]  ;;  %v385_v48 = vld [vmem:[%s12274_s24 + $0x148] sm:$0xff]  ;;  %v1081_v35 = vsel %vm1004_vm4, %v1078_v8, %v17546_v20 }
  0xab   : > { %v721_v25 = vld [vmem:[#allocation2 + $0x3c0] sm:$0xff]  ;;  %576 = vst.msk [vmem:[#allocation2 + $0x429] sm:$0xff] %vm172_vm2, %v447_v7  ;;  %v386_v13 = vld [vmem:[%s12274_s24 + $0x150] sm:$0xff]  ;;  %513 = vst.msk [vmem:[#allocation2 + $0x1b9] sm:$0xff] %vm172_vm2, %v384_v28  ;;  %v17547_v7 = vrot.slane %v12400_v46, 2  ;;  %v17548_v28 = vrot.slane %v12398_v45, 2  ;;  %v1220_v55 = vsel %vm1004_vm4, %v1217_v2, %v1219_v59  ;;  %10588 = vmatmul.mubr.msk.bf16.gmra.mxu0 %vm172_vm2, %v12815_v4 }
  0xac   : > { %514 = vst.msk [vmem:[#allocation2 + $0x1c1] sm:$0xff] %vm172_vm2, %v385_v48  ;;  %v387_v21 = vld [vmem:[%s12274_s24 + $0x158] sm:$0xff]  ;;  %17545 = vst [vmem:[#allocation39_spill] sm:$0xff] %v12800_v23  ;;  %v645_v6 = vld [vmem:[#allocation2 + $0x160] sm:$0x3]  ;;  %v1221_v5 = vrot.slane %v721_v25, 1  ;;  %v12829_v25 = vpack.c.bf16 %v1081_v35, %v1079_v43 }
  0xad   : > { %v722_v34 = vld [vmem:[#allocation2 + $0x3c8] sm:$0xff]  ;;  %v723_v29 = vld [vmem:[#allocation2 + $0x3d0] sm:$0xff]  ;;  %515 = vst.msk [vmem:[#allocation2 + $0x1c9] sm:$0xff] %vm172_vm2, %v386_v13  ;;  %516 = vst.msk [vmem:[#allocation2 + $0x1d1] sm:$0xff] %vm172_vm2, %v387_v21  ;;  %v2992_v22 = vsel %vm2969_vm5, %v17548_v28, %v17547_v7  ;;  %v17551_v45 = vrot.slane %v12696_v63, 1  ;;  %v17554_v59 = vrot.slane %v12712_v52, 1 }
  0xae   : > { %v1222_v48 = vrot.slane %v722_v34, 1  ;;  %v1224_v12 = vrot.slane %v723_v29, 1  ;;  %v12813_v37 = vld [vmem:[#allocation2 + $0x168] sm:$0xff]  ;;  %17549 = vst [vmem:[#allocation40_spill] sm:$0xff] %v12815_v4  ;;  %v12817_v8 = vld [vmem:[#allocation2 + $0x170] sm:$0xff]  ;;  %v12819_v20 = vld [vmem:[#allocation2 + $0x178] sm:$0xff]  ;;  %v12822_v13 = vpack.c.bf16 %v2992_v22, %v12662_v44  ;;  %10591 = vmatprep.mubr.msk.bf16.mxu0 %vm172_vm2, %v12829_v25 }
  0xaf   : > { %v1218_v21 = vsel %vm1004_vm4, %v17551_v45, %v1217_v2  ;;  %17552 = vst [vmem:[#allocation42_spill] sm:$0xff] %v12829_v25  ;;  %v1082_v34 = vrot.slane %v644_v27, 1  ;;  %v1084_v29 = vrot.slane %v645_v6, 1  ;;  %v724_v9 = vld [vmem:[#allocation2 + $0x3d8] sm:$0xff]  ;;  %v725_v7 = vld [vmem:[#allocation2 + $0x3e0] sm:$0x3] }
  0xb0   : > { %17550 = vst [vmem:[#allocation41_spill] sm:$0xff] %v12822_v13  ;;  %v1086_v44 = vrot.slane %v12813_v37, 1  ;;  %v1087_v28 = vrot.slane %v12817_v8, 1  ;;  %v1223_v63 = vsel %vm1004_vm4, %v1221_v5, %v1222_v48  ;;  %v1225_v43 = vsel %vm1004_vm4, %v1222_v48, %v1224_v12  ;;  %v726_v35 = vld [vmem:[#allocation2 + $0x3e8] sm:$0xff]  ;;  %v727_v6 = vld [vmem:[#allocation2 + $0x3f0] sm:$0xff]  ;;  %v12841_v45 = vld [vmem:[#allocation2 + $0x3f8] sm:$0xff] }
  0xb1   : > { %v1226_v27 = vrot.slane %v724_v9, 1  ;;  %v12843_v2 = vpack.c.bf16 %v1220_v55, %v1218_v21  ;;  %v1083_v22 = vsel %vm1004_vm4, %v17554_v59, %v1082_v34  ;;  %v1085_v5 = vsel %vm1004_vm4, %v1082_v34, %v1084_v29  ;;  %v12857_v61 = vld [vmem:[#allocation2 + $0x180] sm:$0xff]  ;;  %v12859_v14 = vld [vmem:[#allocation2 + $0x188] sm:$0x3]  ;;  %v12862_v29 = vld [vmem:[#allocation2 + $0x190] sm:$0xff] }
  0xb2   : > { %v1228_v48 = vrot.slane %v725_v7, 1  ;;  %v12851_v23 = vpack.c.bf16 %v1225_v43, %v1223_v63  ;;  %v1088_v9 = vsel %vm1004_vm4, %v1086_v44, %v1087_v28  ;;  %v17556_v21 = vrot.slane %v12819_v20, 1  ;;  %v12864_v7 = vld [vmem:[#allocation2 + $0x198] sm:$0xff]  ;;  %v12866_v63 = vld [vmem:[#allocation2 + $0x1a0] sm:$0xff]  ;;  %v449_v58 = vld [vmem:[%s12274_s24 + $0x348] sm:$0xff] }
  0xb3   : > { %17553 = vst [vmem:[#allocation43_spill] sm:$0xff] %v12843_v2  ;;  %v1230_v52 = vrot.slane %v726_v35, 1  ;;  %v1231_v59 = vrot.slane %v727_v6, 1  ;;  %v12868_v43 = vpack.c.bf16 %v1085_v5, %v1083_v22  ;;  %v1227_v44 = vsel %vm1004_vm4, %v1224_v12, %v1226_v27  ;;  %v450_v35 = vld [vmem:[%s12274_s24 + $0x350] sm:$0xff]  ;;  %10652 = vmatmul.mubr.msk.bf16.gmra.mxu1 %vm172_vm2, %v12843_v2  ;;  %v12884_v5 = vld [vmem:[#allocation2 + $0x408] sm:$0x3] }
  0xb4   : > { %17555 = vst [vmem:[#allocation44_spill] sm:$0xff] %v12851_v23  ;;  %v1090_v55 = vsel %vm1004_vm4, %v1087_v28, %v17556_v21  ;;  %v12871_v28 = vld [vmem:[#allocation2 + $0x400] sm:$0xff]  ;;  %v1229_v34 = vsel %vm1004_vm4, %v1226_v27, %v1228_v48  ;;  %v1091_v22 = vrot.slane %v12857_v61, 1  ;;  %v1093_v12 = vrot.slane %v12859_v14, 1  ;;  %578 = vst.msk [vmem:[#allocation2 + $0x441] sm:$0xff] %vm172_vm2, %v449_v58  ;;  %v451_v6 = vld [vmem:[%s12274_s24 + $0x358] sm:$0xff]  ;;  %10655 = vmatprep.mubr.msk.bf16.mxu1 %vm172_vm2, %v12851_v23 }
  0xb5   : > { %17557 = vst [vmem:[#allocation45_spill] sm:$0xff] %v12868_v43  ;;  %v448_v21 = vld [vmem:[%s12274_s24 + $0x340] sm:$0xff]  ;;  %v12880_v26 = vpack.c.bf16 %v1090_v55, %v1088_v9  ;;  %579 = vst.msk [vmem:[#allocation2 + $0x449] sm:$0xff] %vm172_vm2, %v450_v35  ;;  %v1095_v27 = vrot.slane %v12862_v29, 1  ;;  %v1096_v48 = vrot.slane %v12864_v7, 1  ;;  %v12896_v55 = vld [vmem:[#allocation2 + $0x410] sm:$0xff]  ;;  %v1232_v25 = vsel %vm1004_vm4, %v1230_v52, %v1231_v59  ;;  %10592 = vmatmul.mubr.msk.bf16.gmra.mxu0 %vm172_vm2, %v12868_v43 }
  0xb6   : > { %577 = vst.msk [vmem:[#allocation2 + $0x439] sm:$0xff] %vm172_vm2, %v448_v21  ;;  %v388_v2 = vld [vmem:[%s12274_s24 + $0x160] sm:$0xff]  ;;  %v12898_v21 = vld [vmem:[#allocation2 + $0x418] sm:$0xff]  ;;  %580 = vst.msk [vmem:[#allocation2 + $0x451] sm:$0xff] %vm172_vm2, %v451_v6  ;;  %v17559_v4 = vrot.slane %v12841_v45, 1  ;;  %v12920_v52 = vpack.c.bf16 %v1229_v34, %v1227_v44  ;;  %v1094_v44 = vsel %vm1004_vm4, %v1091_v22, %v1093_v12 }
  0xb7   : > { %17558 = vst [vmem:[#allocation46_spill] sm:$0xff] %v12880_v26  ;;  %v12900_v58 = vld [vmem:[#allocation2 + $0x420] sm:$0xff]  ;;  %v389_v35 = vld [vmem:[%s12274_s24 + $0x168] sm:$0xff]  ;;  %v390_v15 = vld [vmem:[%s12274_s24 + $0x170] sm:$0xff]  ;;  %10595 = vmatprep.mubr.msk.bf16.mxu0 %vm172_vm2, %v12880_v26  ;;  %v1097_v12 = vsel %vm1004_vm4, %v1095_v27, %v1096_v48  ;;  %v1239_v27 = vrot.slane %v12896_v55, 1  ;;  %v1240_v38 = vrot.slane %v12898_v21, 1 }
  0xb8   : > { %517 = vst.msk [vmem:[#allocation2 + $0x1e1] sm:$0xff] %vm172_vm2, %v388_v2  ;;  %v391_v23 = vld [vmem:[%s12274_s24 + $0x178] sm:$0xff]  ;;  %v1234_v9 = vsel %vm1004_vm4, %v1231_v59, %v17559_v4  ;;  %518 = vst.msk [vmem:[#allocation2 + $0x1e9] sm:$0xff] %vm172_vm2, %v389_v35  ;;  %v452_v6 = vld [vmem:[%s12274_s24 + $0x360] sm:$0xff]  ;;  %v2995_v2 = vrot.slane %v12409_v54, 2  ;;  %v17561_v59 = vrot.slane %v12819_v20, 1 }
  0xb9   : > { %519 = vst.msk [vmem:[#allocation2 + $0x1f1] sm:$0xff] %vm172_vm2, %v390_v15  ;;  %520 = vst.msk [vmem:[#allocation2 + $0x1f9] sm:$0xff] %vm172_vm2, %v391_v23  ;;  %v453_v42 = vld [vmem:[%s12274_s24 + $0x368] sm:$0xff]  ;;  %v454_v30 = vld [vmem:[%s12274_s24 + $0x370] sm:$0xff]  ;;  %v1235_v35 = vrot.slane %v12871_v28, 1  ;;  %v12951_v28 = vpack.c.bf16 %v1234_v9, %v1232_v25  ;;  %v17565_v25 = vrot.slane %v12400_v46, 2 }
  0xba   : > { %17560 = vst [vmem:[#allocation47_spill] sm:$0xff] %v12920_v52  ;;  %v12922_v31 = vld [vmem:[#allocation2 + $0x1a8] sm:$0xff]  ;;  %v12924_v4 = vld [vmem:[#allocation2 + $0x1b0] sm:$0x3]  ;;  %581 = vst.msk [vmem:[#allocation2 + $0x461] sm:$0xff] %vm172_vm2, %v452_v6  ;;  %v1092_v34 = vsel %vm1004_vm4, %v17561_v59, %v1091_v22  ;;  %v1242_v24 = vrot.slane %v12900_v58, 1 }
  0xbb   : > { %582 = vst.msk [vmem:[#allocation2 + $0x469] sm:$0xff] %vm172_vm2, %v453_v42  ;;  %583 = vst.msk [vmem:[#allocation2 + $0x471] sm:$0xff] %vm172_vm2, %v454_v30  ;;  %v455_v15 = vld [vmem:[%s12274_s24 + $0x378] sm:$0xff]  ;;  %v392_v23 = vld [vmem:[%s12274_s24 + $0x180] sm:$0xff]  ;;  %v1237_v42 = vrot.slane %v12884_v5, 1  ;;  %v17563_v5 = vrot.slane %v12866_v63, 1  ;;  %10656 = vmatmul.mubr.msk.bf16.gmra.mxu1 %vm172_vm2, %v12920_v52 }
  0xbc   : > { %v393_v54 = vld [vmem:[%s12274_s24 + $0x188] sm:$0xff]  ;;  %v12940_v30 = vld [vmem:[#allocation2 + $0x1b8] sm:$0xff]  ;;  %v12942_v6 = vld [vmem:[#allocation2 + $0x1c0] sm:$0xff]  ;;  %584 = vst.msk [vmem:[#allocation2 + $0x479] sm:$0xff] %vm172_vm2, %v455_v15  ;;  %v1100_v58 = vrot.slane %v12922_v31, 1  ;;  %10659 = vmatprep.mubr.msk.bf16.mxu1 %vm172_vm2, %v12951_v28 }
  0xbd   : > { %v12944_v43 = vld [vmem:[#allocation2 + $0x1c8] sm:$0xff]  ;;  %v394_v26 = vld [vmem:[%s12274_s24 + $0x190] sm:$0xff]  ;;  %521 = vst.msk [vmem:[#allocation2 + $0x209] sm:$0xff] %vm172_vm2, %v392_v23  ;;  %522 = vst.msk [vmem:[#allocation2 + $0x211] sm:$0xff] %vm172_vm2, %v393_v54  ;;  %v1099_v59 = vsel %vm1004_vm4, %v1096_v48, %v17563_v5  ;;  %v17564_v54 = vrot.slane %v12407_v53, 2 }
  0xbe   : > { %v395_v22 = vld [vmem:[%s12274_s24 + $0x198] sm:$0xff]  ;;  %17562 = vst [vmem:[#allocation48_spill] sm:$0xff] %v12951_v28  ;;  %523 = vst.msk [vmem:[#allocation2 + $0x219] sm:$0xff] %vm172_vm2, %v394_v26  ;;  %v456_v15 = vld [vmem:[%s12274_s24 + $0x380] sm:$0xff]  ;;  %v12991_v53 = vpack.c.bf16 %v1099_v59, %v1097_v12  ;;  %v1243_v12 = vsel %vm1004_vm4, %v1240_v38, %v1242_v24 }
  0xbf   : > { %524 = vst.msk [vmem:[#allocation2 + $0x221] sm:$0xff] %vm172_vm2, %v395_v22  ;;  %v457_v23 = vld [vmem:[%s12274_s24 + $0x388] sm:$0xff]  ;;  %v458_v62 = vld [vmem:[%s12274_s24 + $0x390] sm:$0xff]  ;;  %v2994_v9 = vsel %vm2969_vm5, %v17565_v25, %v17564_v54  ;;  %585 = vst.msk [vmem:[#allocation2 + $0x489] sm:$0xff] %vm172_vm2, %v456_v15  ;;  %v17566_v5 = vmov %v17564_v54  ;;  %v12979_v54 = vpack.c.bf16 %v1094_v44, %v1092_v34  ;;  %v1238_v34 = vsel %vm1004_vm4, %v1235_v35, %v1237_v42 }
  0xc0   : > { %586 = vst.msk [vmem:[#allocation2 + $0x491] sm:$0xff] %vm172_vm2, %v457_v23  ;;  %587 = vst.msk [vmem:[#allocation2 + $0x499] sm:$0xff] %vm172_vm2, %v458_v62  ;;  %v459_v26 = vld [vmem:[%s12274_s24 + $0x398] sm:$0xff]  ;;  %v396_v48 = vld [vmem:[%s12274_s24 + $0x1a0] sm:$0xff]  ;;  %v2996_v46 = vsel %vm2969_vm5, %v17566_v5, %v2995_v2  ;;  %v17569_v62 = vrot.slane %v12841_v45, 1  ;;  %v1102_v2 = vrot.slane %v12924_v4, 1  ;;  %v1241_v25 = vsel %vm1004_vm4, %v1239_v27, %v1240_v38 }
  0xc1   : > { %v397_v22 = vld [vmem:[%s12274_s24 + $0x1a8] sm:$0xff]  ;;  %17567 = vst [vmem:[#allocation49_spill] sm:$0xff] %v12979_v54  ;;  %588 = vst.msk [vmem:[#allocation2 + $0x4a1] sm:$0xff] %vm172_vm2, %v459_v26  ;;  %v12984_v55 = vpack.c.bf16 %v2996_v46, %v2994_v9  ;;  %v1104_v15 = vrot.slane %v12940_v30, 1  ;;  %v1105_v23 = vrot.slane %v12942_v6, 1  ;;  %v17204_v45 = vrot.slane %v12944_v43, 1  ;;  %10596 = vmatmul.mubr.msk.bf16.gmra.mxu0 %vm172_vm2, %v12979_v54 }
  0xc2   : > { %525 = vst.msk [vmem:[#allocation2 + $0x231] sm:$0xff] %vm172_vm2, %v396_v48  ;;  %526 = vst.msk [vmem:[#allocation2 + $0x239] sm:$0xff] %vm172_vm2, %v397_v22  ;;  %v1236_v21 = vsel %vm1004_vm4, %v17569_v62, %v1235_v35  ;;  %v734_v44 = vld [vmem:[#allocation2 + $0x428] sm:$0xff]  ;;  %v735_v59 = vld [vmem:[#allocation2 + $0x430] sm:$0x3]  ;;  %10599 = vmatprep.mubr.msk.bf16.mxu0 %vm172_vm2, %v12991_v53  ;;  %v17572_v42 = vrot.slane %v12866_v63, 1  ;;  %v1103_v38 = vsel %vm1004_vm4, %v1100_v58, %v1102_v2 }
  0xc3   : > { %17568 = vst [vmem:[#allocation50_spill] sm:$0xff] %v12984_v55  ;;  %17570 = vst [vmem:[#allocation51_spill] sm:$0xff] %v12991_v53  ;;  %v736_v9 = vld [vmem:[#allocation2 + $0x438] sm:$0xff]  ;;  %v737_v26 = vld [vmem:[#allocation2 + $0x440] sm:$0xff]  ;;  %v13007_v35 = vpack.c.bf16 %v1238_v34, %v1236_v21  ;;  %v1244_v27 = vrot.slane %v734_v44, 1  ;;  %v13015_v5 = vpack.c.bf16 %v1243_v12, %v1241_v25  ;;  %v1246_v46 = vrot.slane %v735_v59, 1 }
  0xc4   : > { %v13005_v48 = vld [vmem:[#allocation2 + $0x448] sm:$0xff]  ;;  %v1101_v22 = vsel %vm1004_vm4, %v17572_v42, %v1100_v58  ;;  %v1106_v62 = vsel %vm1004_vm4, %v1104_v15, %v1105_v23  ;;  %v1108_v21 = vsel %vm1004_vm4, %v1105_v23, %v17204_v45  ;;  %v13021_v34 = vld [vmem:[#allocation2 + $0x1d0] sm:$0xff]  ;;  %v13023_v28 = vld [vmem:[#allocation2 + $0x1d8] sm:$0x3]  ;;  %v1248_v52 = vrot.slane %v736_v9, 1 }
  0xc5   : > { %17571 = vst [vmem:[#allocation52_spill] sm:$0xff] %v13007_v35  ;;  %17573 = vst [vmem:[#allocation53_spill] sm:$0xff] %v13015_v5  ;;  %v1249_v42 = vrot.slane %v737_v26, 1  ;;  %v13026_v58 = vld [vmem:[#allocation2 + $0x1e0] sm:$0xff]  ;;  %v13028_v2 = vld [vmem:[#allocation2 + $0x1e8] sm:$0xff]  ;;  %v13032_v15 = vpack.c.bf16 %v1103_v38, %v1101_v22  ;;  %10660 = vmatmul.mubr.msk.bf16.gmra.mxu1 %vm172_vm2, %v13007_v35  ;;  %v1245_v23 = vsel %vm1004_vm4, %v1242_v24, %v1244_v27  ;;  %v1109_v59 = vrot.slane %v13021_v34, 1 }
  0xc6   : > { %v13030_v44 = vld [vmem:[#allocation2 + $0x1f0] sm:$0xff]  ;;  %v13038_v12 = vpack.c.bf16 %v1108_v21, %v1106_v62  ;;  %v1111_v9 = vrot.slane %v13023_v28, 1  ;;  %v13044_v45 = vld [vmem:[#allocation2 + $0x458] sm:$0x3]  ;;  %10663 = vmatprep.mubr.msk.bf16.mxu1 %vm172_vm2, %v13015_v5  ;;  %v1247_v24 = vsel %vm1004_vm4, %v1244_v27, %v1246_v46  ;;  %v1113_v38 = vrot.slane %v13026_v58, 1  ;;  %v13054_v53 = vld [vmem:[#allocation2 + $0x460] sm:$0xff] }
  0xc7   : > { %17574 = vst [vmem:[#allocation54_spill] sm:$0xff] %v13032_v15  ;;  %v398_v25 = vld [vmem:[%s12274_s24 + $0x1b0] sm:$0xff]  ;;  %v399_v22 = vld [vmem:[%s12274_s24 + $0x1b8] sm:$0xff]  ;;  %v1114_v62 = vrot.slane %v13028_v2, 1  ;;  %v13056_v35 = vld [vmem:[#allocation2 + $0x468] sm:$0xff]  ;;  %v1250_v54 = vsel %vm1004_vm4, %v1248_v52, %v1249_v42  ;;  %v17576_v41 = vrot.slane %v13005_v48, 1 }
  0xc8   : > { %17575 = vst [vmem:[#allocation55_spill] sm:$0xff] %v13038_v12  ;;  %v13042_v26 = vld [vmem:[#allocation2 + $0x450] sm:$0xff]  ;;  %527 = vst.msk [vmem:[#allocation2 + $0x241] sm:$0xff] %vm172_vm2, %v398_v25  ;;  %v460_v5 = vld [vmem:[%s12274_s24 + $0x3a0] sm:$0xff]  ;;  %v17580_v36 = vrot.slane %v13030_v44, 1  ;;  %v17586_v47 = vrot.slane %v13030_v44, 1 }
  0xc9   : > { %v13058_v25 = vld [vmem:[#allocation2 + $0x470] sm:$0xff]  ;;  %528 = vst.msk [vmem:[#allocation2 + $0x249] sm:$0xff] %vm172_vm2, %v399_v22  ;;  %v461_v27 = vld [vmem:[%s12274_s24 + $0x3a8] sm:$0xff]  ;;  %v1252_v21 = vsel %vm1004_vm4, %v1249_v42, %v17576_v41  ;;  %589 = vst.msk [vmem:[#allocation2 + $0x4b1] sm:$0xff] %vm172_vm2, %v460_v5  ;;  %10600 = vmatmul.mubr.msk.bf16.gmra.mxu0 %vm172_vm2, %v13032_v15  ;;  %v1253_v52 = vrot.slane %v13042_v26, 1  ;;  %v17578_v26 = vrot.slane %v12944_v43, 1  ;;  %v1112_v15 = vsel %vm1004_vm4, %v1109_v59, %v1111_v9 }
  0xca   : > { %v462_v46 = vld [vmem:[%s12274_s24 + $0x3b0] sm:$0xff]  ;;  %590 = vst.msk [vmem:[#allocation2 + $0x4b9] sm:$0xff] %vm172_vm2, %v461_v27  ;;  %v463_v0 = vld [vmem:[%s12274_s24 + $0x3b8] sm:$0xff]  ;;  %v400_v22 = vld [vmem:[%s12274_s24 + $0x1c0] sm:$0xff]  ;;  %v13085_v27 = vpack.c.bf16 %v1247_v24, %v1245_v23  ;;  %10603 = vmatprep.mubr.msk.bf16.mxu0 %vm172_vm2, %v13038_v12  ;;  %v13100_v24 = vpack.c.bf16 %v1252_v21, %v1250_v54  ;;  %v1115_v12 = vsel %vm1004_vm4, %v1113_v38, %v1114_v62  ;;  %v1257_v9 = vrot.slane %v13054_v53, 1 }
  0xcb   : > { %591 = vst.msk [vmem:[#allocation2 + $0x4c1] sm:$0xff] %vm172_vm2, %v462_v46  ;;  %v401_v11 = vld [vmem:[%s12274_s24 + $0x1c8] sm:$0xff]  ;;  %v13077_v51 = vld [vmem:[#allocation2 + $0x1f8] sm:$0xff]  ;;  %592 = vst.msk [vmem:[#allocation2 + $0x4c9] sm:$0xff] %vm172_vm2, %v463_v0  ;;  %v1110_v46 = vsel %vm1004_vm4, %v17578_v26, %v1109_v59  ;;  %v1255_v0 = vrot.slane %v13044_v45, 1  ;;  %v1117_v26 = vsel %vm1004_vm4, %v1114_v62, %v17580_v36  ;;  %v1258_v36 = vrot.slane %v13056_v35, 1 }
  0xcc   : > { %v402_v41 = vld [vmem:[%s12274_s24 + $0x1d0] sm:$0xff]  ;;  %529 = vst.msk [vmem:[#allocation2 + $0x259] sm:$0xff] %vm172_vm2, %v400_v22  ;;  %530 = vst.msk [vmem:[#allocation2 + $0x261] sm:$0xff] %vm172_vm2, %v401_v11  ;;  %v403_v5 = vld [vmem:[%s12274_s24 + $0x1d8] sm:$0xff]  ;;  %v1260_v38 = vrot.slane %v13058_v25, 1  ;;  %v13136_v53 = vpack.c.bf16 %v1117_v26, %v1115_v12  ;;  %v1118_v35 = vrot.slane %v13077_v51, 1 }
  0xcd   : > { %v464_v42 = vld [vmem:[%s12274_s24 + $0x3c0] sm:$0xff]  ;;  %17577 = vst [vmem:[#allocation56_spill] sm:$0xff] %v13085_v27  ;;  %531 = vst.msk [vmem:[#allocation2 + $0x269] sm:$0xff] %vm172_vm2, %v402_v41  ;;  %v465_v11 = vld [vmem:[%s12274_s24 + $0x3c8] sm:$0xff]  ;;  %10664 = vmatmul.mubr.msk.bf16.gmra.mxu1 %vm172_vm2, %v13085_v27  ;;  %v1259_v26 = vsel %vm1004_vm4, %v1257_v9, %v1258_v36 }
  0xce   : > { %532 = vst.msk [vmem:[#allocation2 + $0x271] sm:$0xff] %vm172_vm2, %v403_v5  ;;  %v466_v22 = vld [vmem:[%s12274_s24 + $0x3d0] sm:$0xff]  ;;  %593 = vst.msk [vmem:[#allocation2 + $0x4d9] sm:$0xff] %vm172_vm2, %v464_v42  ;;  %v467_v23 = vld [vmem:[%s12274_s24 + $0x3d8] sm:$0xff]  ;;  %v13126_v5 = vpack.c.bf16 %v1112_v15, %v1110_v46  ;;  %v17582_v42 = vrot.slane %v13005_v48, 1  ;;  %10667 = vmatprep.mubr.msk.bf16.mxu1 %vm172_vm2, %v13100_v24  ;;  %v1256_v48 = vsel %vm1004_vm4, %v1253_v52, %v1255_v0 }
  0xcf   : > { %17579 = vst [vmem:[#allocation57_spill] sm:$0xff] %v13100_v24  ;;  %v13106_v59 = vld [vmem:[#allocation2 + $0x200] sm:$0x3]  ;;  %594 = vst.msk [vmem:[#allocation2 + $0x4e1] sm:$0xff] %vm172_vm2, %v465_v11  ;;  %v774_v45 = vld [vmem:[%s17139_s1 + $0x6] sm:$0x3]  ;;  %v1119_v9 = vsel %vm1004_vm4, %v17586_v47, %v1118_v35 }
  0xd0   : > { %595 = vst.msk [vmem:[#allocation2 + $0x4e9] sm:$0xff] %vm172_vm2, %v466_v22  ;;  %596 = vst.msk [vmem:[#allocation2 + $0x4f1] sm:$0xff] %vm172_vm2, %v467_v23  ;;  %v775_v54 = vld [vmem:[%s17139_s1 + $0x8] sm:$0x3]  ;;  %v13122_v21 = vld [vmem:[#allocation2 + $0x210] sm:$0xff]  ;;  %v1254_v11 = vsel %vm1004_vm4, %v17582_v42, %v1253_v52  ;;  %v13132_v22 = vand.u32 %v11908_v3, %v774_v45  ;;  %v1120_v25 = vrot.slane %v13106_v59, 1  ;;  %v1261_v42 = vsel %vm1004_vm4, %v1258_v36, %v1260_v38 }
  0xd1   : > { %v13120_v62 = vld [vmem:[#allocation2 + $0x208] sm:$0xff]  ;;  %v13124_v41 = vld [vmem:[#allocation2 + $0x218] sm:$0xff]  ;;  %17581 = vst [vmem:[#allocation58_spill] sm:$0xff] %v13126_v5  ;;  %17584 = vst [vmem:[#allocation60_spill] sm:$0xff] %v13136_v53  ;;  %v13141_v23 = vand.u32 %v11908_v3, %v775_v54  ;;  %v1123_v45 = vrot.slane %v13122_v21, 1  ;;  %10604 = vmatmul.mubr.msk.bf16.gmra.mxu0 %vm172_vm2, %v13126_v5  ;;  %v13155_v27 = vpack.c.bf16 %v1256_v48, %v1254_v11 }
  0xd2   : > { %17583 = vst [vmem:[#allocation59_spill] sm:$0xff] %v13132_v22  ;;  %v744_v15 = vld [vmem:[#allocation2 + $0x478] sm:$0xff]  ;;  %v1122_v46 = vrot.slane %v13120_v62, 1  ;;  %v1125_v12 = vrot.slane %v13124_v41, 1  ;;  %10947 = vmatprep.subr.bf16.mxu1 %v13132_v22  ;;  %v745_v54 = vld [vmem:[#allocation2 + $0x480] sm:$0x3]  ;;  %10607 = vmatprep.mubr.msk.bf16.mxu0 %vm172_vm2, %v13136_v53  ;;  %v1121_v36 = vsel %vm1004_vm4, %v1118_v35, %v1120_v25  ;;  %v13163_v3 = vpack.c.bf16 %v1261_v42, %v1259_v26 }
  0xd3   : > { %11077 = vmatprep.subr.bf16.mxu0 %v13141_v23  ;;  %v746_v52 = vld [vmem:[#allocation2 + $0x488] sm:$0xff]  ;;  %v747_v0 = vld [vmem:[#allocation2 + $0x490] sm:$0xff]  ;;  %v748_v24 = vld [vmem:[#allocation2 + $0x498] sm:$0xff]  ;;  %17585 = vst [vmem:[#allocation61_spill] sm:$0xff] %v13155_v27  ;;  %v1262_v40 = vrot.slane %v744_v15, 1  ;;  %v1264_v10 = vrot.slane %v745_v54, 1  ;;  %v13177_v25 = vpack.c.bf16 %v1121_v36, %v1119_v9 }
  0xd4   : > { %17587 = vst [vmem:[#allocation62_spill] sm:$0xff] %v13163_v3  ;;  %v1124_v5 = vsel %vm1004_vm4, %v1122_v46, %v1123_v45  ;;  %v1126_v55 = vsel %vm1004_vm4, %v1123_v45, %v1125_v12  ;;  %v13167_v57 = vld [vmem:[#allocation2 + $0x220] sm:$0xff]  ;;  %v13169_v11 = vld [vmem:[#allocation2 + $0x228] sm:$0x3]  ;;  %v1266_v48 = vrot.slane %v746_v52, 1  ;;  %v1267_v53 = vrot.slane %v747_v0, 1 }
  0xd5   : > { %v1269_v33 = vrot.slane %v748_v24, 1  ;;  %v13171_v13 = vld [vmem:[#allocation2 + $0x230] sm:$0xff]  ;;  %v13173_v47 = vld [vmem:[#allocation2 + $0x238] sm:$0xff]  ;;  %v13175_v35 = vld [vmem:[#allocation2 + $0x240] sm:$0xff]  ;;  %17590 = vst [vmem:[#allocation65_spill] sm:$0xff] %v13177_v25  ;;  %10668 = vmatmul.mubr.msk.bf16.gmra.mxu1 %vm172_vm2, %v13155_v27  ;;  %v1263_v15 = vsel %vm1004_vm4, %v1260_v38, %v1262_v40  ;;  %v13182_v46 = vpack.c.bf16 %v1126_v55, %v1124_v5  ;;  %v1127_v45 = vrot.slane %v13167_v57, 1 }
  0xd6   : > { %17588 = vst [vmem:[#allocation63_spill] sm:$0xff] %v13173_v47  ;;  %17589 = vst [vmem:[#allocation64_spill] sm:$0xff] %v13175_v35  ;;  %v1129_v26 = vrot.slane %v13169_v11, 1  ;;  %10671 = vmatprep.mubr.msk.bf16.mxu1 %vm172_vm2, %v13163_v3  ;;  %v1265_v24 = vsel %vm1004_vm4, %v1262_v40, %v1264_v10  ;;  %v749_v42 = vld [vmem:[#allocation2 + $0x4a0] sm:$0xff]  ;;  %v1131_v54 = vrot.slane %v13171_v13, 1  ;;  %v1132_v52 = vrot.slane %v13173_v47, 1 }
  0xd7   : > { %17591 = vst [vmem:[#allocation66_spill] sm:$0xff] %v13182_v46  ;;  %v1134_v0 = vrot.slane %v13175_v35, 1  ;;  %v1268_v38 = vsel %vm1004_vm4, %v1266_v48, %v1267_v53  ;;  %v1270_v55 = vsel %vm1004_vm4, %v1267_v53, %v1269_v33  ;;  %v750_v5 = vld [vmem:[#allocation2 + $0x4a8] sm:$0x3]  ;;  %v751_v9 = vld [vmem:[#allocation2 + $0x4b0] sm:$0xff]  ;;  %v752_v36 = vld [vmem:[#allocation2 + $0x4b8] sm:$0xff]  ;;  %v13196_v27 = vpack.c.bf16 %v1265_v24, %v1263_v15 }
  0xd8   : > { %v753_v3 = vld [vmem:[#allocation2 + $0x4c0] sm:$0xff]  ;;  %v1128_v40 = vsel %vm1004_vm4, %v1125_v12, %v1127_v45  ;;  %v1130_v10 = vsel %vm1004_vm4, %v1127_v45, %v1129_v26  ;;  %v1271_v1 = vrot.slane %v749_v42, 1  ;;  %v13202_v48 = vpack.c.bf16 %v1270_v55, %v1268_v38  ;;  %v13206_v22 = vld [vmem:[#allocation2 + $0x248] sm:$0xff]  ;;  %v13208_v18 = vld [vmem:[#allocation2 + $0x250] sm:$0x3] }
  0xd9   : > { %10608 = vmatmul.mubr.msk.bf16.gmra.mxu0 %vm172_vm2, %v13177_v25  ;;  %17592 = vst [vmem:[#allocation67_spill] sm:$0xff] %v13196_v27  ;;  %v1273_v53 = vrot.slane %v750_v5, 1  ;;  %v1133_v32 = vsel %vm1004_vm4, %v1131_v54, %v1132_v52  ;;  %v1135_v25 = vsel %vm1004_vm4, %v1132_v52, %v1134_v0  ;;  %17594 = vst [vmem:[#allocation69_spill] sm:$0xff] %v13206_v22  ;;  %v1275_v15 = vrot.slane %v751_v9, 1  ;;  %v13212_v12 = vld [vmem:[#allocation2 + $0x260] sm:$0xff]  ;;  %v13214_v45 = vld [vmem:[#allocation2 + $0x268] sm:$0xff] }
  0xda   : > { %10611 = vmatprep.mubr.msk.bf16.mxu0 %vm172_vm2, %v13182_v46  ;;  %17593 = vst [vmem:[#allocation68_spill] sm:$0xff] %v13202_v48  ;;  %v1276_v24 = vrot.slane %v752_v36, 1  ;;  %v1278_v19 = vrot.slane %v753_v3, 1  ;;  %v13210_v46 = vld [vmem:[#allocation2 + $0x258] sm:$0xff]  ;;  %17596 = vst [vmem:[#allocation71_spill] sm:$0xff] %v13212_v12  ;;  %v13216_v26 = vpack.c.bf16 %v1130_v10, %v1128_v40  ;;  %v1272_v42 = vsel %vm1004_vm4, %v1269_v33, %v1271_v1  ;;  %v754_v55 = vld [vmem:[#allocation2 + $0x4c8] sm:$0xff] }
  0xdb   : > { %17595 = vst [vmem:[#allocation70_spill] sm:$0xff] %v13210_v46  ;;  %17597 = vst [vmem:[#allocation72_spill] sm:$0xff] %v13214_v45  ;;  %v13221_v54 = vpack.c.bf16 %v1135_v25, %v1133_v32  ;;  %v1136_v52 = vrot.slane %v13206_v22, 1  ;;  %v1138_v38 = vrot.slane %v13208_v18, 1  ;;  %v1274_v3 = vsel %vm1004_vm4, %v1271_v1, %v1273_v53  ;;  %v755_v25 = vld [vmem:[#allocation2 + $0x4d0] sm:$0x3] }
  0xdc   : > { %17598 = vst [vmem:[#allocation73_spill] sm:$0xff] %v13216_v26  ;;  %v1140_v5 = vrot.slane %v13210_v46, 1  ;;  %v1141_v9 = vrot.slane %v13212_v12, 1  ;;  %v1143_v36 = vrot.slane %v13214_v45, 1  ;;  %v1277_v33 = vsel %vm1004_vm4, %v1275_v15, %v1276_v24  ;;  %v756_v40 = vld [vmem:[#allocation2 + $0x4d8] sm:$0xff]  ;;  %v757_v10 = vld [vmem:[#allocation2 + $0x4e0] sm:$0xff] }
  0xdd   : > { %10672 = vmatmul.mubr.msk.bf16.gmra.mxu1 %vm172_vm2, %v13196_v27  ;;  %17599 = vst [vmem:[#allocation74_spill] sm:$0xff] %v13221_v54  ;;  %v1279_v32 = vsel %vm1004_vm4, %v1276_v24, %v1278_v19  ;;  %v13235_v27 = vpack.c.bf16 %v1274_v3, %v1272_v42  ;;  %v1137_v1 = vsel %vm1004_vm4, %v1134_v0, %v1136_v52  ;;  %v1280_v45 = vrot.slane %v754_v55, 1  ;;  %v13241_v15 = vld [vmem:[#allocation2 + $0x270] sm:$0xff]  ;;  %v13243_v24 = vld [vmem:[#allocation2 + $0x278] sm:$0x3] }
  0xde   : > { %10675 = vmatprep.mubr.msk.bf16.mxu1 %vm172_vm2, %v13202_v48  ;;  %v758_v48 = vld [vmem:[#allocation2 + $0x4e8] sm:$0xff]  ;;  %v1139_v53 = vsel %vm1004_vm4, %v1136_v52, %v1138_v38  ;;  %v13245_v12 = vpack.c.bf16 %v1279_v32, %v1277_v33  ;;  %v1142_v46 = vsel %vm1004_vm4, %v1140_v5, %v1141_v9  ;;  %v1144_v42 = vsel %vm1004_vm4, %v1141_v9, %v1143_v36  ;;  %v760_v47 = vld [vmem:[#allocation2 + $0x4f8] sm:$0x3] }
  0xdf   : > { %17600 = vst [vmem:[#allocation75_spill] sm:$0xff] %v13235_v27  ;;  %v1284_v3 = vrot.slane %v756_v40, 1  ;;  %v1285_v22 = vrot.slane %v757_v10, 1  ;;  %v1287_v35 = vrot.slane %v758_v48, 1  ;;  %v13249_v0 = vpack.c.bf16 %v1139_v53, %v1137_v1 }
  0xe0   : > { %17601 = vst [vmem:[#allocation76_spill] sm:$0xff] %v13245_v12  ;;  %v1145_v52 = vrot.slane %v13241_v15, 1  ;;  %v1147_v38 = vrot.slane %v13243_v24, 1  ;;  %v13255_v55 = vpack.c.bf16 %v1144_v42, %v1142_v46  ;;  %v1281_v5 = vsel %vm1004_vm4, %v1278_v19, %v1280_v45 }
  0xe1   : > { %10612 = vmatmul.mubr.msk.bf16.gmra.mxu0 %vm172_vm2, %v13216_v26  ;;  %v1282_v26 = vrot.slane %v755_v25, 1  ;;  %17602 = vst [vmem:[#allocation77_spill] sm:$0xff] %v13249_v0  ;;  %v1291_v33 = vrot.slane %v760_v47, 1  ;;  %v1286_v32 = vsel %vm1004_vm4, %v1284_v3, %v1285_v22  ;;  %v1288_v25 = vsel %vm1004_vm4, %v1285_v22, %v1287_v35  ;;  %v13283_v3 = vld [vmem:[#allocation2 + $0x78] sm:$0xff] }
  0xe2   : > { %10615 = vmatprep.mubr.msk.bf16.mxu0 %vm172_vm2, %v13221_v54  ;;  %v759_v54 = vld [vmem:[#allocation2 + $0x4f0] sm:$0xff]  ;;  %17603 = vst [vmem:[#allocation78_spill] sm:$0xff] %v13255_v55  ;;  %v1146_v40 = vsel %vm1004_vm4, %v1143_v36, %v1145_v52  ;;  %v1148_v46 = vsel %vm1004_vm4, %v1145_v52, %v1147_v38  ;;  %v3085_v10 = vrot.slane %v13106_v59, 2  ;;  %v3094_v1 = vrot.slane %v13169_v11, 2  ;;  %v13286_v38 = vld [vmem:[#allocation2 + $0x80] sm:$0xff] }
  0xe3   : > { %v1283_v48 = vsel %vm1004_vm4, %v1280_v45, %v1282_v26  ;;  %v1289_v9 = vrot.slane %v759_v54, 1  ;;  %v3103_v47 = vrot.slane %v13208_v18, 2  ;;  %v13274_v45 = vpack.c.bf16 %v1288_v25, %v1286_v32 }
  0xe4   : > { %v13269_v19 = vpack.c.bf16 %v1283_v48, %v1281_v5  ;;  %v13278_v54 = vpack.c.bf16 %v1148_v46, %v1146_v40  ;;  %v3112_v36 = vrot.slane %v13243_v24, 2  ;;  %v3051_v53 = vrot.slane %v12813_v37, 2  ;;  %v13295_v37 = vld [vmem:[#allocation2 + $0x88] sm:$0xff] }
  0xe5   : > { %10676 = vmatmul.mubr.msk.bf16.gmra.mxu1 %vm172_vm2, %v13235_v27  ;;  %17605 = vst [vmem:[#allocation80_spill] sm:$0xff] %v13274_v45  ;;  %v1290_v22 = vsel %vm1004_vm4, %v1287_v35, %v1289_v9  ;;  %v1292_v26 = vsel %vm1004_vm4, %v1289_v9, %v1291_v33  ;;  %v3052_v42 = vrot.slane %v12817_v8, 2  ;;  %v2997_v52 = vrot.slane %v13283_v3, 2 }
  0xe6   : > { %10679 = vmatprep.mubr.msk.bf16.mxu1 %vm172_vm2, %v13245_v12  ;;  %17604 = vst [vmem:[#allocation79_spill] sm:$0xff] %v13269_v19  ;;  %17606 = vst [vmem:[#allocation81_spill] sm:$0xff] %v13278_v54  ;;  %v2998_v5 = vrot.slane %v13286_v38, 2  ;;  %v3054_v35 = vrot.slane %v12819_v20, 2  ;;  %v3056_v48 = vrot.slane %v12857_v61, 2  ;;  %v13293_v9 = vpack.c.bf16 %v1292_v26, %v1290_v22 }
  0xe7   : > { %v3053_v33 = vsel %vm2969_vm5, %v3051_v53, %v3052_v42  ;;  %v3058_v32 = vrot.slane %v12859_v14, 2  ;;  %v13306_v46 = vpack.c.bf16 %v12857_v61, %v12819_v20  ;;  %v3060_v22 = vrot.slane %v12862_v29, 2 }
  0xe8   : > { %17607 = vst [vmem:[#allocation82_spill] sm:$0xff] %v13293_v9  ;;  %v3055_v25 = vsel %vm2969_vm5, %v3052_v42, %v3054_v35  ;;  %v3057_v40 = vsel %vm2969_vm5, %v3054_v35, %v3056_v48  ;;  %v3061_v53 = vrot.slane %v12864_v7, 2  ;;  %v3063_v14 = vrot.slane %v12866_v63, 2 }
  0xe9   : > { %10616 = vmatmul.mubr.msk.bf16.gmra.mxu0 %vm172_vm2, %v13249_v0  ;;  %17608 = vst [vmem:[#allocation83_spill] sm:$0xff] %v13306_v46  ;;  %v13309_v26 = vpack.c.bf16 %v3055_v25, %v3053_v33  ;;  %v3059_v8 = vsel %vm2969_vm5, %v3056_v48, %v3058_v32  ;;  %v3065_v35 = vrot.slane %v12922_v31, 2  ;;  %v3067_v61 = vrot.slane %v12924_v4, 2 }
  0xea   : > { %10619 = vmatprep.mubr.msk.bf16.mxu0 %vm172_vm2, %v13255_v55  ;;  %v13316_v42 = vpack.c.bf16 %v3059_v8, %v3057_v40  ;;  %v13322_v20 = vpack.c.bf16 %v12864_v7, %v12862_v29  ;;  %v17612_v48 = vpack.c.bf16 %v12338_v50, %v12335_v49  ;;  %v3062_v33 = vsel %vm2969_vm5, %v3060_v22, %v3061_v53 }
  0xeb   : > { %17609 = vst [vmem:[#allocation84_spill] sm:$0xff] %v13309_v26  ;;  %v3064_v32 = vsel %vm2969_vm5, %v3061_v53, %v3063_v14  ;;  %v13332_v8 = vpack.c.bf16 %v12922_v31, %v12866_v63  ;;  %v3069_v25 = vrot.slane %v12940_v30, 2  ;;  %v3066_v29 = vsel %vm2969_vm5, %v3063_v14, %v3065_v35 }
  0xec   : > { %17610 = vst [vmem:[#allocation85_spill] sm:$0xff] %v13316_v42  ;;  %17611 = vst [vmem:[#allocation86_spill] sm:$0xff] %v13322_v20  ;;  %v13335_v4 = vpack.c.bf16 %v3064_v32, %v3062_v33  ;;  %v3068_v7 = vsel %vm2969_vm5, %v3065_v35, %v3067_v61  ;;  %v3070_v49 = vrot.slane %v12942_v6, 2  ;;  %v3072_v40 = vrot.slane %v12944_v43, 2 }
  0xed   : > { %10680 = vmatmul.mubr.msk.bf16.gmra.mxu1 %vm172_vm2, %v13269_v19  ;;  %17613 = vst [vmem:[#allocation87_spill] sm:$0xff] %v13332_v8  ;;  %v13340_v50 = vpack.c.bf16 %v3068_v7, %v3066_v29  ;;  %v3074_v22 = vrot.slane %v13021_v34, 2  ;;  %v3076_v53 = vrot.slane %v13023_v28, 2  ;;  %v13348_v63 = vpack.c.bf16 %v12942_v6, %v12940_v30 }
  0xee   : > { %10683 = vmatprep.mubr.msk.bf16.mxu1 %vm172_vm2, %v13274_v45  ;;  %17614 = vst [vmem:[#allocation88_spill] sm:$0xff] %v13335_v4  ;;  %v3071_v31 = vsel %vm2969_vm5, %v3069_v25, %v3070_v49  ;;  %v13352_v14 = vpack.c.bf16 %v13021_v34, %v12944_v43  ;;  %v3078_v35 = vrot.slane %v13026_v58, 2  ;;  %v3073_v61 = vsel %vm2969_vm5, %v3070_v49, %v3072_v40 }
  0xef   : > { %17615 = vst [vmem:[#allocation89_spill] sm:$0xff] %v13340_v50  ;;  %17616 = vst [vmem:[#allocation90_spill] sm:$0xff] %v13348_v63  ;;  %v3077_v28 = vsel %vm2969_vm5, %v3074_v22, %v3076_v53  ;;  %v3079_v33 = vrot.slane %v13028_v2, 2  ;;  %v17618_v30 = vpack.c.bf16 %v12289_v17, %v12287_v16  ;;  %v13365_v43 = vpack.c.bf16 %v3073_v61, %v3071_v31  ;;  %v17628_v61 = vld [vmem:[#allocation63_spill] sm:$0xff] }
  0xf0   : > { %17617 = vst [vmem:[#allocation91_spill] sm:$0xff] %v13352_v14  ;;  %v3081_v34 = vrot.slane %v13030_v44, 2  ;;  %v3083_v32 = vrot.slane %v13077_v51, 2  ;;  %v13374_v29 = vpack.c.bf16 %v13028_v2, %v13026_v58  ;;  %v13378_v7 = vpack.c.bf16 %v13077_v51, %v13030_v44 }
  0xf1   : > { %10620 = vmatmul.mubr.msk.bf16.gmra.mxu0 %vm172_vm2, %v13278_v54  ;;  %17619 = vst [vmem:[#allocation92_spill] sm:$0xff] %v13365_v43  ;;  %v3080_v25 = vsel %vm2969_vm5, %v3078_v35, %v3079_v33  ;;  %v3087_v16 = vrot.slane %v13120_v62, 2  ;;  %v17623_v17 = vpack.c.bf16 %v12347_v56, %v12318_v39  ;;  %v3088_v2 = vrot.slane %v13122_v21, 2 }
  0xf2   : > { %10819 = vmatprep.mubr.msk.bf16.mxu0 %vm172_vm2, %v17612_v48  ;;  %v3075_v48 = vsel %vm2969_vm5, %v3072_v40, %v3074_v22  ;;  %17621 = vst [vmem:[#allocation94_spill] sm:$0xff] %v13374_v29  ;;  %17622 = vst [vmem:[#allocation95_spill] sm:$0xff] %v13378_v7  ;;  %v3082_v49 = vsel %vm2969_vm5, %v3079_v33, %v3081_v34  ;;  %v3084_v40 = vsel %vm2969_vm5, %v3081_v34, %v3083_v32  ;;  %v17634_v34 = vld [vmem:[#allocation4_spill] sm:$0xff] }
  0xf3   : > { %v13367_v6 = vpack.c.bf16 %v3077_v28, %v3075_v48  ;;  %v3086_v58 = vsel %vm2969_vm5, %v3083_v32, %v3085_v10  ;;  %v13394_v51 = vpack.c.bf16 %v3082_v49, %v3080_v25  ;;  %v3090_v56 = vrot.slane %v13124_v41, 2  ;;  %v17639_v49 = vld [vmem:[#allocation59_spill] sm:$0xff] }
  0xf4   : > { %v13396_v39 = vpack.c.bf16 %v3086_v58, %v3084_v40  ;;  %v3092_v44 = vrot.slane %v13167_v57, 2  ;;  %v3089_v22 = vsel %vm2969_vm5, %v3087_v16, %v3088_v2  ;;  %v13403_v59 = vpack.c.bf16 %v13122_v21, %v13120_v62  ;;  %v17631_v21 = vld [vmem:[#allocation64_spill] sm:$0xff]  ;;  %v17638_v16 = vld [vmem:[#allocation70_spill] sm:$0xff] }
  0xf5   : > { %10684 = vmatmul.mubr.msk.bf16.gmra.mxu1 %vm172_vm2, %v13293_v9  ;;  %17620 = vst [vmem:[#allocation93_spill] sm:$0xff] %v13367_v6  ;;  %17624 = vst [vmem:[#allocation96_spill] sm:$0xff] %v13394_v51  ;;  %v3096_v10 = vrot.slane %v13171_v13, 2  ;;  %v3091_v53 = vsel %vm2969_vm5, %v3088_v2, %v3090_v56  ;;  %v3097_v48 = vrot.slane %v17628_v61, 2  ;;  %v3099_v33 = vrot.slane %v17631_v21, 2  ;;  %v17640_v40 = vld [vmem:[#allocation16_spill] sm:$0xff] }
  0xf6   : > { %10689 = vmatprep.mubr.msk.bf16.mxu1 %vm172_vm2, %v17618_v30  ;;  %17625 = vst [vmem:[#allocation97_spill] sm:$0xff] %v13396_v39  ;;  %17626 = vst [vmem:[#allocation98_spill] sm:$0xff] %v13403_v59  ;;  %v3093_v31 = vsel %vm2969_vm5, %v3090_v56, %v3092_v44  ;;  %v3095_v35 = vsel %vm2969_vm5, %v3092_v44, %v3094_v1  ;;  %v13416_v28 = vpack.c.bf16 %v3091_v53, %v3089_v22  ;;  %v17633_v30 = vld [vmem:[#allocation5_spill] sm:$0xff]  ;;  %v17641_v56 = vld [vmem:[#allocation71_spill] sm:$0xff] }
  0xf7   : > { %v13418_v62 = vpack.c.bf16 %v3095_v35, %v3093_v31  ;;  %v17635_v32 = vpack.c.bf16 %v17633_v30, %v17634_v34  ;;  %v3098_v25 = vsel %vm2969_vm5, %v3096_v10, %v3097_v48  ;;  %v13429_v11 = vpack.c.bf16 %v17628_v61, %v13171_v13  ;;  %v17644_v53 = vld [vmem:[#allocation72_spill] sm:$0xff] }
  0xf8   : > { %17629 = vst [vmem:[#allocation63_spill] sm:$0xff] %v13416_v28  ;;  %v3100_v58 = vsel %vm2969_vm5, %v3097_v48, %v3099_v33  ;;  %v3106_v44 = vrot.slane %v17641_v56, 2  ;;  %v3108_v31 = vrot.slane %v17644_v53, 2  ;;  %v3110_v35 = vrot.slane %v13241_v15, 2  ;;  %v17645_v61 = vld [vmem:[#allocation28_spill] sm:$0xff] }
  0xf9   : > { %10820 = vmatmul.mubr.msk.bf16.vlgmr.msra.gmra.mxu0 %vm172_vm2, %v17623_v17  ;;  %17630 = vst [vmem:[#allocation100_spill] sm:$0xff] %v13418_v62  ;;  %17636 = vst [vmem:[#allocation64_spill] sm:$0xff] %v13429_v11  ;;  %v3105_v17 = vrot.slane %v17638_v16, 2  ;;  %v13445_v22 = vpack.c.bf16 %v3100_v58, %v3098_v25  ;;  %v13456_v18 = vpack.c.bf16 %v17641_v56, %v17638_v16  ;;  %v17652_v16 = vld [vmem:[#allocation17_spill] sm:$0xff]  ;;  %v11745_v56 = vld [vmem:[#allocation2 + $0xa8] sm:$0xff] }
  0xfa   : > { %11078 = vmatpush3.bf16.msra.mxu0 %v13141_v23  ;;  %10823 = vmatprep.mubr.msk.bf16.mxu0 %vm172_vm2, %v12615_v60  ;;  %v13407_v23 = vpack.c.bf16 %v13167_v57, %v13124_v41  ;;  %v17632_v57 = vld [vmem:[#allocation69_spill] sm:$0xff]  ;;  %v2999_v30 = vsel %vm2969_vm5, %v2997_v52, %v2998_v5 }
  0xfb   : > { %v3101_v41 = vrot.slane %v17632_v57, 2  ;;  %v13433_v1 = vpack.c.bf16 %v17632_v57, %v17631_v21  ;;  %17642 = vst [vmem:[#allocation5_spill] sm:$0xff] %v13445_v22  ;;  %v3107_v48 = vsel %vm2969_vm5, %v3105_v17, %v3106_v44  ;;  %17646 = vst [vmem:[#allocation70_spill] sm:$0xff] %v13456_v18  ;;  %v17648_v21 = vld [vmem:[#allocation41_spill] sm:$0xff]  ;;  %v3111_v57 = vsel %vm2969_vm5, %v3108_v31, %v3110_v35 }
  0xfc   : > { %17627 = vst [vmem:[#allocation99_spill] sm:$0xff] %v13407_v23  ;;  %v17654_v52 = vld [vmem:[#allocation29_spill] sm:$0xff] }
  0xfd   : > { %10690 = vmatmul.mubr.msk.bf16.vlgmr.msra.gmra.mxu1 %vm172_vm2, %v17635_v32  ;;  %17637 = vst [vmem:[#allocation69_spill] sm:$0xff] %v13433_v1  ;;  %v3102_v2 = vsel %vm2969_vm5, %v3099_v33, %v3101_v41  ;;  %v3104_v13 = vsel %vm2969_vm5, %v3101_v41, %v3103_v47  ;;  %v13460_v47 = vpack.c.bf16 %v13241_v15, %v17644_v53  ;;  %v17649_v15 = vrot.slane %v13295_v37, 2 }
  0xfe   : > { %10948 = vmatpush3.bf16.msra.mxu1 %v17639_v49  ;;  %10693 = vmatprep.mubr.msk.bf16.mxu1 %vm172_vm2, %v17640_v40  ;;  %v13447_v10 = vpack.c.bf16 %v3104_v13, %v3102_v2  ;;  %v3109_v33 = vsel %vm2969_vm5, %v3106_v44, %v3108_v31  ;;  %v3113_v41 = vsel %vm2969_vm5, %v3110_v35, %v3112_v36  ;;  %v11742_v36 = vld [vmem:[#allocation2 + $0x90] sm:$0xff]  ;;  %v11743_v49 = vld [vmem:[#allocation2 + $0x98] sm:$0x3]  ;;  %v11744_v2 = vld [vmem:[#allocation2 + $0xa0] sm:$0xff] }
  0xff   : > { %17647 = vst [vmem:[#allocation59_spill] sm:$0xff] %v13460_v47  ;;  %v3001_v34 = vsel %vm2969_vm5, %v2998_v5, %v17649_v15  ;;  %v13479_v32 = vpack.c.bf16 %v3109_v33, %v3107_v48  ;;  %v13481_v25 = vpack.c.bf16 %v3113_v41, %v3111_v57  ;;  %v3002_v17 = vrot.slane %v11742_v36, 2  ;;  %v11746_v44 = vld [vmem:[#allocation2 + $0xb0] sm:$0xff]  ;;  %v17655_v31 = vld [vmem:[#allocation50_spill] sm:$0xff] }
 0x100   : > { %17643 = vst [vmem:[#allocation4_spill] sm:$0xff] %v13447_v10  ;;  %v13485_v24 = vpack.c.bf16 %v3001_v34, %v2999_v30  ;;  %v3004_v58 = vrot.slane %v11743_v49, 2  ;;  %v3006_v13 = vrot.slane %v11744_v2, 2  ;;  %v3007_v5 = vrot.slane %v11745_v56, 2  ;;  %v17659_v34 = vld [vmem:[#allocation30_spill] sm:$0xff] }
 0x101   : > { %10824 = vmatmul.mubr.msk.bf16.gmra.mxu0 %vm172_vm2, %v17645_v61  ;;  %17650 = vst [vmem:[#allocation16_spill] sm:$0xff] %v13479_v32  ;;  %17651 = vst [vmem:[#allocation71_spill] sm:$0xff] %v13481_v25  ;;  %v3009_v53 = vrot.slane %v11746_v44, 2  ;;  %v17656_v35 = vmov %v17649_v15  ;;  %v13499_v57 = vpack.c.bf16 %v13286_v38, %v13283_v3  ;;  %v11749_v3 = vld [vmem:[#allocation2 + $0xc8] sm:$0xff] }
 0x102   : > { %10827 = vmatprep.mubr.msk.bf16.mxu0 %vm172_vm2, %v17648_v21  ;;  %17653 = vst [vmem:[#allocation72_spill] sm:$0xff] %v13485_v24  ;;  %v3003_v48 = vsel %vm2969_vm5, %v17656_v35, %v3002_v17  ;;  %v3005_v33 = vsel %vm2969_vm5, %v3002_v17, %v3004_v58  ;;  %v3008_v41 = vsel %vm2969_vm5, %v3006_v13, %v3007_v5  ;;  %v11748_v35 = vld [vmem:[#allocation2 + $0xc0] sm:$0x3]  ;;  %v3015_v38 = vrot.slane %v11749_v3, 2  ;;  %v11750_v17 = vld [vmem:[#allocation2 + $0xd0] sm:$0xff]  ;;  %v11751_v13 = vld [vmem:[#allocation2 + $0xd8] sm:$0xff] }
 0x103   : > { %17657 = vst [vmem:[#allocation101_spill] sm:$0xff] %v13499_v57  ;;  %v3010_v30 = vsel %vm2969_vm5, %v3007_v5, %v3009_v53  ;;  %v13503_v15 = vpack.c.bf16 %v3005_v33, %v3003_v48  ;;  %v3013_v21 = vrot.slane %v11748_v35, 2  ;;  %v3016_v58 = vrot.slane %v11750_v17, 2 }
 0x104   : > { %v13507_v49 = vpack.c.bf16 %v3010_v30, %v3008_v41  ;;  %v3018_v5 = vrot.slane %v11751_v13, 2  ;;  %v13514_v48 = vpack.c.bf16 %v11742_v36, %v13295_v37  ;;  %v13520_v30 = vpack.c.bf16 %v11745_v56, %v11744_v2  ;;  %v11752_v36 = vld [vmem:[#allocation2 + $0xe0] sm:$0xff]  ;;  %v11755_v56 = vld [vmem:[#allocation2 + $0xf8] sm:$0xff] }
 0x105   : > { %10694 = vmatmul.mubr.msk.bf16.gmra.mxu1 %vm172_vm2, %v17652_v16  ;;  %17658 = vst [vmem:[#allocation102_spill] sm:$0xff] %v13503_v15  ;;  %v3017_v35 = vsel %vm2969_vm5, %v3015_v38, %v3016_v58 }
 0x106   : > { %10697 = vmatprep.mubr.msk.bf16.mxu1 %vm172_vm2, %v17654_v52  ;;  %17660 = vst [vmem:[#allocation103_spill] sm:$0xff] %v13507_v49  ;;  %17661 = vst [vmem:[#allocation104_spill] sm:$0xff] %v13514_v48  ;;  %v3019_v61 = vsel %vm2969_vm5, %v3016_v58, %v3018_v5 }
 0x107   : > { %17662 = vst [vmem:[#allocation105_spill] sm:$0xff] %v13520_v30  ;;  %v13528_v37 = vpack.c.bf16 %v3019_v61, %v3017_v35 }
 0x109   : > { %10828 = vmatmul.mubr.msk.bf16.gmra.mxu0 %vm172_vm2, %v17655_v31  ;;  %17664 = vst [vmem:[#allocation107_spill] sm:$0xff] %v13528_v37 }
 0x10a   : > { %10831 = vmatprep.mubr.msk.bf16.mxu0 %vm172_vm2, %v13485_v24  ;;  %v11747_v24 = vld [vmem:[#allocation2 + $0xb8] sm:$0xff] }
 0x10b   : > { %v3011_v31 = vrot.slane %v11747_v24, 2  ;;  %v13534_v58 = vpack.c.bf16 %v11747_v24, %v11746_v44  ;;  %v11757_v44 = vld [vmem:[#allocation2 + $0x108] sm:$0xff] }
 0x10d   : > { %10698 = vmatmul.mubr.msk.bf16.gmra.mxu1 %vm172_vm2, %v17659_v34  ;;  %v3012_v33 = vsel %vm2969_vm5, %v3009_v53, %v3011_v31  ;;  %v3014_v41 = vsel %vm2969_vm5, %v3011_v31, %v3013_v21  ;;  %v11754_v21 = vld [vmem:[#allocation2 + $0xf0] sm:$0xff]  ;;  %v3025_v53 = vrot.slane %v11755_v56, 2  ;;  %v11756_v31 = vld [vmem:[#allocation2 + $0x100] sm:$0xff]  ;;  %17665 = vst [vmem:[#allocation108_spill] sm:$0xff] %v13534_v58 }
 0x10e   : > { %10701 = vmatprep.mubr.msk.bf16.mxu1 %vm172_vm2, %v13499_v57  ;;  %v13524_v60 = vpack.c.bf16 %v3014_v41, %v3012_v33  ;;  %v3024_v2 = vrot.slane %v11754_v21, 2  ;;  %v3027_v38 = vrot.slane %v11756_v31, 2  ;;  %v13540_v33 = vpack.c.bf16 %v11750_v17, %v11749_v3  ;;  %v11760_v3 = vld [vmem:[#allocation2 + $0x120] sm:$0xff] }
 0x10f   : > { %v3034_v17 = vrot.slane %v11760_v3, 2 }
 0x110   : > { %17663 = vst [vmem:[#allocation106_spill] sm:$0xff] %v13524_v60  ;;  %17666 = vst [vmem:[#allocation109_spill] sm:$0xff] %v13540_v33  ;;  %v3026_v41 = vsel %vm2969_vm5, %v3024_v2, %v3025_v53  ;;  %v3028_v35 = vsel %vm2969_vm5, %v3025_v53, %v3027_v38  ;;  %v13554_v53 = vpack.c.bf16 %v11752_v36, %v11751_v13 }
 0x111   : > { %10832 = vmatmul.mubr.msk.bf16.gmra.mxu0 %vm172_vm2, %v13503_v15  ;;  %v3020_v15 = vrot.slane %v11752_v36, 2  ;;  %v13548_v24 = vpack.c.bf16 %v3028_v35, %v3026_v41  ;;  %v11762_v36 = vld [vmem:[#allocation2 + $0x130] sm:$0xff] }
 0x112   : > { %10835 = vmatprep.mubr.msk.bf16.mxu0 %vm172_vm2, %v13507_v49  ;;  %v11753_v49 = vld [vmem:[#allocation2 + $0xe8] sm:$0x3]  ;;  %17669 = vst [vmem:[#allocation112_spill] sm:$0xff] %v13554_v53 }
 0x113   : > { %v3022_v9 = vrot.slane %v11753_v49, 2  ;;  %v3021_v61 = vsel %vm2969_vm5, %v3018_v5, %v3020_v15  ;;  %17668 = vst [vmem:[#allocation111_spill] sm:$0xff] %v13548_v24  ;;  %v11761_v5 = vld [vmem:[#allocation2 + $0x128] sm:$0xff] }
 0x114   : > { %v3036_v2 = vrot.slane %v11761_v5, 2 }
 0x115   : > { %10702 = vmatmul.mubr.msk.bf16.gmra.mxu1 %vm172_vm2, %v13514_v48  ;;  %v3023_v49 = vsel %vm2969_vm5, %v3020_v15, %v3022_v9  ;;  %v11759_v9 = vld [vmem:[#allocation2 + $0x118] sm:$0xff] }
 0x116   : > { %10705 = vmatprep.mubr.msk.bf16.mxu1 %vm172_vm2, %v13520_v30  ;;  %v13544_v45 = vpack.c.bf16 %v3023_v49, %v3021_v61  ;;  %v3033_v15 = vrot.slane %v11759_v9, 2  ;;  %v13560_v49 = vpack.c.bf16 %v11755_v56, %v11754_v21  ;;  %v3037_v35 = vsel %vm2969_vm5, %v3034_v17, %v3036_v2  ;;  %v11765_v21 = vld [vmem:[#allocation2 + $0x148] sm:$0xff] }
 0x117   : > { %v3043_v56 = vrot.slane %v11765_v21, 2 }
 0x118   : > { %17667 = vst [vmem:[#allocation110_spill] sm:$0xff] %v13544_v45  ;;  %17670 = vst [vmem:[#allocation113_spill] sm:$0xff] %v13560_v49  ;;  %v3035_v41 = vsel %vm2969_vm5, %v3033_v15, %v3034_v17  ;;  %v13574_v17 = vpack.c.bf16 %v11757_v44, %v11756_v31 }
 0x119   : > { %10836 = vmatmul.mubr.msk.bf16.gmra.mxu0 %vm172_vm2, %v13524_v60  ;;  %v3029_v60 = vrot.slane %v11757_v44, 2  ;;  %v13568_v13 = vpack.c.bf16 %v3037_v35, %v3035_v41  ;;  %v11767_v44 = vld [vmem:[#allocation2 + $0x158] sm:$0xff] }
 0x11a   : > { %10839 = vmatprep.mubr.msk.bf16.mxu0 %vm172_vm2, %v13528_v37  ;;  %v11758_v37 = vld [vmem:[#allocation2 + $0x110] sm:$0x3]  ;;  %17673 = vst [vmem:[#allocation116_spill] sm:$0xff] %v13574_v17 }
 0x11b   : > { %v3031_v19 = vrot.slane %v11758_v37, 2  ;;  %v3030_v61 = vsel %vm2969_vm5, %v3027_v38, %v3029_v60  ;;  %17672 = vst [vmem:[#allocation115_spill] sm:$0xff] %v13568_v13  ;;  %v11766_v38 = vld [vmem:[#allocation2 + $0x150] sm:$0xff] }
 0x11c   : > { %v3045_v15 = vrot.slane %v11766_v38, 2 }
 0x11d   : > { %10706 = vmatmul.mubr.msk.bf16.gmra.mxu1 %vm172_vm2, %v13534_v58  ;;  %v3032_v37 = vsel %vm2969_vm5, %v3029_v60, %v3031_v19  ;;  %v11764_v60 = vld [vmem:[#allocation2 + $0x140] sm:$0xff] }
 0x11e   : > { %10709 = vmatprep.mubr.msk.bf16.mxu1 %vm172_vm2, %v13540_v33  ;;  %v13564_v12 = vpack.c.bf16 %v3032_v37, %v3030_v61  ;;  %v3042_v19 = vrot.slane %v11764_v60, 2  ;;  %v13580_v37 = vpack.c.bf16 %v11760_v3, %v11759_v9  ;;  %v3046_v35 = vsel %vm2969_vm5, %v3043_v56, %v3045_v15 }
 0x11f   : > { %v13600_v3 = vpack.c.bf16 %v11765_v21, %v11764_v60 }
 0x120   : > { %17671 = vst [vmem:[#allocation114_spill] sm:$0xff] %v13564_v12  ;;  %17674 = vst [vmem:[#allocation117_spill] sm:$0xff] %v13580_v37  ;;  %v3044_v41 = vsel %vm2969_vm5, %v3042_v19, %v3043_v56 }
 0x121   : > { %10840 = vmatmul.mubr.msk.bf16.gmra.mxu0 %vm172_vm2, %v13544_v45  ;;  %v3038_v45 = vrot.slane %v11762_v36, 2  ;;  %v13588_v31 = vpack.c.bf16 %v3046_v35, %v3044_v41  ;;  %17678 = vst [vmem:[#allocation121_spill] sm:$0xff] %v13600_v3 }
 0x122   : > { %10843 = vmatprep.mubr.msk.bf16.mxu0 %vm172_vm2, %v13548_v24  ;;  %v11763_v24 = vld [vmem:[#allocation2 + $0x138] sm:$0x3] }
 0x123   : > { %v3040_v27 = vrot.slane %v11763_v24, 2  ;;  %v3039_v61 = vsel %vm2969_vm5, %v3036_v2, %v3038_v45  ;;  %17676 = vst [vmem:[#allocation119_spill] sm:$0xff] %v13588_v31 }
 0x125   : > { %10710 = vmatmul.mubr.msk.bf16.gmra.mxu1 %vm172_vm2, %v13554_v53  ;;  %v3041_v24 = vsel %vm2969_vm5, %v3038_v45, %v3040_v27  ;;  %v13594_v27 = vpack.c.bf16 %v11762_v36, %v11761_v5  ;;  %v13612_v5 = vpack.c.bf16 %v11767_v44, %v11766_v38  ;;  %v11770_v36 = vld [vmem:[#allocation2 + $0x170] sm:$0xff] }
 0x126   : > { %10713 = vmatprep.mubr.msk.bf16.mxu1 %vm172_vm2, %v13560_v49  ;;  %v13584_v54 = vpack.c.bf16 %v3041_v24, %v3039_v61  ;;  %v11779_v49 = vld [vmem:[#allocation2 + $0x2c8] sm:$0x3] }
 0x127   : > { %17677 = vst [vmem:[#allocation120_spill] sm:$0xff] %v13594_v27  ;;  %17680 = vst [vmem:[#allocation123_spill] sm:$0xff] %v13612_v5 }
 0x128   : > { %17675 = vst [vmem:[#allocation118_spill] sm:$0xff] %v13584_v54 }
 0x129   : > { %10844 = vmatmul.mubr.msk.bf16.gmra.mxu0 %vm172_vm2, %v13564_v12  ;;  %v3047_v12 = vrot.slane %v11767_v44, 2 }
 0x12a   : > { %10847 = vmatprep.mubr.msk.bf16.mxu0 %vm172_vm2, %v13568_v13  ;;  %v11768_v13 = vld [vmem:[#allocation2 + $0x160] sm:$0x3] }
 0x12b   : > { %v3049_v55 = vrot.slane %v11768_v13, 2  ;;  %v3048_v45 = vsel %vm2969_vm5, %v3045_v15, %v3047_v12  ;;  %v13608_v13 = vpop.f32.mrf.mxu0 }
 0x12d   : > { %10714 = vmatmul.mubr.msk.bf16.gmra.mxu1 %vm172_vm2, %v13574_v17  ;;  %v3050_v9 = vsel %vm2969_vm5, %v3047_v12, %v3049_v55  ;;  %v13616_v12 = vpop.f32.mrf.mxu0  ;;  %v11769_v55 = vld [vmem:[#allocation2 + $0x168] sm:$0xff] }
 0x12e   : > { %10717 = vmatprep.mubr.msk.bf16.mxu1 %vm172_vm2, %v13580_v37  ;;  %v13602_v2 = vpack.c.bf16 %v3050_v9, %v3048_v45  ;;  %v13618_v60 = vpack.c.bf16 %v11770_v36, %v11769_v55 }
 0x12f   : > { %v13620_v19 = vpop.f32.mrf.mxu0 }
 0x130   : > { %17679 = vst [vmem:[#allocation122_spill] sm:$0xff] %v13602_v2  ;;  %17681 = vst [vmem:[#allocation124_spill] sm:$0xff] %v13618_v60 }
 0x131   : > { %10848 = vmatmul.mubr.msk.bf16.gmra.mxu0 %vm172_vm2, %v13584_v54  ;;  %v13626_v56 = vpop.f32.mrf.mxu0 }
 0x132   : > { %10851 = vmatprep.mubr.msk.bf16.mxu0 %vm172_vm2, %v13588_v31  ;;  %v13622_v21 = vpop.f32.mrf.mxu1 }
 0x133   : > { %17682 = vst [vmem:[#allocation125_spill] sm:$0xff] %v13622_v21 }
 0x134   : > { %v13630_v38 = vpop.f32.mrf.mxu1 }
 0x135   : > { %10718 = vmatmul.mubr.msk.bf16.gmra.mxu1 %vm172_vm2, %v13594_v27  ;;  %17683 = vst [vmem:[#allocation126_spill] sm:$0xff] %v13630_v38  ;;  %v13632_v15 = vpop.f32.mrf.mxu0 }
 0x136   : > { %10721 = vmatprep.mubr.msk.bf16.mxu1 %vm172_vm2, %v13600_v3  ;;  %v13636_v61 = vpop.f32.mrf.mxu1 }
 0x137   : > { %17684 = vst [vmem:[#allocation127_spill] sm:$0xff] %v13636_v61  ;;  %v13640_v24 = vpop.f32.mrf.mxu0 }
 0x138   : > { %v13642_v41 = vpop.f32.mrf.mxu1 }
 0x139   : > { %10852 = vmatmul.mubr.msk.bf16.gmra.mxu0 %vm172_vm2, %v13602_v2  ;;  %17685 = vst [vmem:[#allocation128_spill] sm:$0xff] %v13642_v41  ;;  %v13644_v35 = vpop.f32.mrf.mxu0 }
 0x13a   : > { %10855 = vmatprep.mubr.msk.bf16.mxu0 %vm172_vm2, %v13309_v26  ;;  %v13646_v44 = vpop.f32.mrf.mxu1 }
 0x13b   : > { %17686 = vst [vmem:[#allocation129_spill] sm:$0xff] %v13646_v44  ;;  %v13650_v45 = vpop.f32.mrf.mxu0 }
 0x13c   : > { %v13654_v9 = vpop.f32.mrf.mxu1 }
 0x13d   : > { %10722 = vmatmul.mubr.msk.bf16.gmra.mxu1 %vm172_vm2, %v13612_v5  ;;  %17687 = vst [vmem:[#allocation130_spill] sm:$0xff] %v13654_v9  ;;  %v13656_v55 = vpop.f32.mrf.mxu0  ;;  %v13778_v5 = vld [vmem:[#allocation2 + $0x2b8] sm:$0xff] }
 0x13e   : > { %10725 = vmatprep.mubr.msk.bf16.mxu1 %vm172_vm2, %v13618_v60  ;;  %v13660_v36 = vpop.f32.mrf.mxu1 }
 0x13f   : > { %17688 = vst [vmem:[#allocation131_spill] sm:$0xff] %v13660_v36 }
 0x141   : > { %10856 = vmatmul.mubr.msk.bf16.gmra.mxu0 %vm172_vm2, %v13316_v42  ;;  %v13666_v42 = vpop.f32.mrf.mxu1 }
 0x142   : > { %10859 = vmatprep.mubr.msk.bf16.mxu0 %vm172_vm2, %v13335_v4  ;;  %v13664_v4 = vpop.f32.mrf.mxu0  ;;  %17689 = vst [vmem:[#allocation132_spill] sm:$0xff] %v13666_v42 }
 0x143   : > { %v13670_v2 = vpop.f32.mrf.mxu1 }
 0x144   : > { %v13668_v26 = vpop.f32.mrf.mxu0  ;;  %17690 = vst [vmem:[#allocation133_spill] sm:$0xff] %v13670_v2 }
 0x145   : > { %10726 = vmatmul.mubr.msk.bf16.gmra.mxu1 %vm172_vm2, %v13306_v46 }
 0x146   : > { %10729 = vmatprep.mubr.msk.bf16.mxu1 %vm172_vm2, %v13322_v20  ;;  %v13674_v31 = vpop.f32.mrf.mxu0 }
 0x148   : > { %v13680_v54 = vpop.f32.mrf.mxu0 }
 0x149   : > { %10860 = vmatmul.mubr.msk.bf16.gmra.mxu0 %vm172_vm2, %v13340_v50  ;;  %v13678_v50 = vpop.f32.mrf.mxu1 }
 0x14a   : > { %10863 = vmatprep.mubr.msk.bf16.mxu0 %vm172_vm2, %v13365_v43  ;;  %17691 = vst [vmem:[#allocation134_spill] sm:$0xff] %v13678_v50  ;;  %v13688_v0 = vpop.f32.mrf.mxu0 }
 0x14b   : > { %v13684_v43 = vpop.f32.mrf.mxu1 }
 0x14c   : > { %17692 = vst [vmem:[#allocation135_spill] sm:$0xff] %v13684_v43  ;;  %v13692_v42 = vpop.f32.mrf.mxu0 }
 0x14d   : > { %10730 = vmatmul.mubr.msk.bf16.gmra.mxu1 %vm172_vm2, %v13332_v8  ;;  %v13690_v2 = vpop.f32.mrf.mxu1 }
 0x14e   : > { %10733 = vmatprep.mubr.msk.bf16.mxu1 %vm172_vm2, %v13348_v63  ;;  %17693 = vst [vmem:[#allocation136_spill] sm:$0xff] %v13690_v2  ;;  %v13698_v50 = vpop.f32.mrf.mxu0  ;;  %v11773_v63 = vld [vmem:[#allocation2 + $0x290] sm:$0xff] }
 0x14f   : > { %v13694_v36 = vpop.f32.mrf.mxu1  ;;  %v3117_v44 = vrot.slane %v11773_v63, 2 }
 0x150   : > { %17694 = vst [vmem:[#allocation137_spill] sm:$0xff] %v13694_v36  ;;  %v13704_v43 = vpop.f32.mrf.mxu0 }
 0x151   : > { %10864 = vmatmul.mubr.msk.bf16.gmra.mxu0 %vm172_vm2, %v13367_v6  ;;  %v13702_v6 = vpop.f32.mrf.mxu1 }
 0x152   : > { %10867 = vmatprep.mubr.msk.bf16.mxu0 %vm172_vm2, %v13394_v51  ;;  %17695 = vst [vmem:[#allocation138_spill] sm:$0xff] %v13702_v6  ;;  %v13712_v36 = vpop.f32.mrf.mxu0 }
 0x153   : > { %v13708_v51 = vpop.f32.mrf.mxu1 }
 0x154   : > { %17696 = vst [vmem:[#allocation139_spill] sm:$0xff] %v13708_v51 }
 0x155   : > { %10734 = vmatmul.mubr.msk.bf16.gmra.mxu1 %vm172_vm2, %v13352_v14  ;;  %v13714_v2 = vpop.f32.mrf.mxu1  ;;  %v13716_v14 = vpop.f32.mrf.mxu0 }
 0x156   : > { %10737 = vmatprep.mubr.msk.bf16.mxu1 %vm172_vm2, %v13374_v29  ;;  %17697 = vst [vmem:[#allocation140_spill] sm:$0xff] %v13714_v2 }
 0x157   : > { %v13718_v9 = vpop.f32.mrf.mxu1  ;;  %v13722_v6 = vpop.f32.mrf.mxu0 }
 0x158   : > { %17698 = vst [vmem:[#allocation141_spill] sm:$0xff] %v13718_v9 }
 0x159   : > { %10868 = vmatmul.mubr.msk.bf16.gmra.mxu0 %vm172_vm2, %v13396_v39  ;;  %v13726_v39 = vpop.f32.mrf.mxu1  ;;  %v13728_v51 = vpop.f32.mrf.mxu0 }
 0x15a   : > { %10871 = vmatprep.mubr.msk.bf16.mxu0 %vm172_vm2, %v13416_v28  ;;  %17699 = vst [vmem:[#allocation142_spill] sm:$0xff] %v13726_v39 }
 0x15b   : > { %v13732_v28 = vpop.f32.mrf.mxu1  ;;  %v13736_v9 = vpop.f32.mrf.mxu0 }
 0x15c   : > { %17700 = vst [vmem:[#allocation143_spill] sm:$0xff] %v13732_v28 }
 0x15d   : > { %10738 = vmatmul.mubr.msk.bf16.gmra.mxu1 %vm172_vm2, %v13378_v7  ;;  %v13738_v2 = vpop.f32.mrf.mxu1  ;;  %v13740_v7 = vpop.f32.mrf.mxu0 }
 0x15e   : > { %10741 = vmatprep.mubr.msk.bf16.mxu1 %vm172_vm2, %v13403_v59  ;;  %17701 = vst [vmem:[#allocation144_spill] sm:$0xff] %v13738_v2  ;;  %v11772_v59 = vld [vmem:[#allocation2 + $0x288] sm:$0xff] }
 0x15f   : > { %v13742_v29 = vpop.f32.mrf.mxu1  ;;  %v13746_v39 = vpop.f32.mrf.mxu0 }
 0x160   : > { %17702 = vst [vmem:[#allocation145_spill] sm:$0xff] %v13742_v29 }
 0x161   : > { %10872 = vmatmul.mubr.msk.bf16.gmra.mxu0 %vm172_vm2, %v13418_v62  ;;  %v11771_v62 = vld [vmem:[#allocation2 + $0x280] sm:$0xff]  ;;  %v13750_v8 = vpop.f32.mrf.mxu1  ;;  %v13752_v2 = vpop.f32.mrf.mxu0 }
 0x162   : > { %10875 = vmatprep.mubr.msk.bf16.mxu0 %vm172_vm2, %v13445_v22  ;;  %v3114_v28 = vrot.slane %v11771_v62, 2  ;;  %v3115_v22 = vrot.slane %v11772_v59, 2  ;;  %17703 = vst [vmem:[#allocation146_spill] sm:$0xff] %v13750_v8  ;;  %v11774_v8 = vld [vmem:[#allocation2 + $0x2a0] sm:$0x3]  ;;  %v13795_v27 = vpack.c.bf16 %v11772_v59, %v11771_v62 }
 0x163   : > { %v13756_v29 = vpop.f32.mrf.mxu1  ;;  %v3121_v20 = vrot.slane %v11774_v8, 2  ;;  %v3126_v8 = vrot.slane %v13778_v5, 2 }
 0x164   : > { %17704 = vst [vmem:[#allocation147_spill] sm:$0xff] %v13756_v29  ;;  %v3118_v41 = vsel %vm2969_vm5, %v3115_v22, %v3117_v44  ;;  %17710 = vst [vmem:[#allocation153_spill] sm:$0xff] %v13795_v27 }
 0x165   : > { %10742 = vmatmul.mubr.msk.bf16.gmra.mxu1 %vm172_vm2, %v13407_v23  ;;  %v13760_v23 = vpop.f32.mrf.mxu0  ;;  %v13764_v61 = vpop.f32.mrf.mxu1 }
 0x166   : > { %10745 = vmatprep.mubr.msk.bf16.mxu1 %vm172_vm2, %v13429_v11  ;;  %v3116_v11 = vsel %vm2969_vm5, %v3114_v28, %v3115_v22  ;;  %17705 = vst [vmem:[#allocation148_spill] sm:$0xff] %v13764_v61  ;;  %v11776_v28 = vld [vmem:[#allocation2 + $0x2a8] sm:$0xff]  ;;  %v11777_v61 = vld [vmem:[#allocation2 + $0x2b0] sm:$0xff] }
 0x167   : > { %v13766_v38 = vpop.f32.mrf.mxu0  ;;  %v3123_v22 = vrot.slane %v11776_v28, 2  ;;  %v3124_v60 = vrot.slane %v11777_v61, 2  ;;  %v13834_v58 = vpack.c.bf16 %v11777_v61, %v11776_v28  ;;  %v11785_v28 = vld [vmem:[#allocation2 + $0x2e8] sm:$0xff] }
 0x168   : > { %v13768_v21 = vpop.f32.mrf.mxu1 }
 0x169   : > { %10876 = vmatmul.mubr.msk.bf16.gmra.mxu0 %vm172_vm2, %v13447_v10  ;;  %17706 = vst [vmem:[#allocation149_spill] sm:$0xff] %v13768_v21  ;;  %v13772_v10 = vpack.c.bf16 %v3118_v41, %v3116_v11  ;;  %v13774_v46 = vpop.f32.mrf.mxu0  ;;  %v3127_v37 = vsel %vm2969_vm5, %v3124_v60, %v3126_v8  ;;  %17720 = vst [vmem:[#allocation163_spill] sm:$0xff] %v13834_v58 }
 0x16a   : > { %10879 = vmatprep.mubr.msk.bf16.mxu0 %vm172_vm2, %v13479_v32  ;;  %v11775_v32 = vld [vmem:[#allocation2 + $0x298] sm:$0xff]  ;;  %v13781_v21 = vpop.f32.mrf.mxu1 }
 0x16b   : > { %17707 = vst [vmem:[#allocation150_spill] sm:$0xff] %v13772_v10  ;;  %v3119_v29 = vrot.slane %v11775_v32, 2  ;;  %17708 = vst [vmem:[#allocation151_spill] sm:$0xff] %v13781_v21  ;;  %v3125_v21 = vsel %vm2969_vm5, %v3123_v22, %v3124_v60  ;;  %v11781_v60 = vld [vmem:[#allocation2 + $0x2d0] sm:$0xff] }
 0x16c   : > { %v13787_v11 = vpop.f32.mrf.mxu1 }
 0x16d   : > { %10746 = vmatmul.mubr.msk.bf16.gmra.mxu1 %vm172_vm2, %v13433_v1  ;;  %v13783_v1 = vpop.f32.mrf.mxu0  ;;  %17709 = vst [vmem:[#allocation152_spill] sm:$0xff] %v13787_v11  ;;  %v3120_v41 = vsel %vm2969_vm5, %v3117_v44, %v3119_v29  ;;  %v3132_v44 = vrot.slane %v11781_v60, 2 }
 0x16e   : > { %10749 = vmatprep.mubr.msk.bf16.mxu1 %vm172_vm2, %v13456_v18  ;;  %v3122_v18 = vsel %vm2969_vm5, %v3119_v29, %v3121_v20  ;;  %v13799_v17 = vpop.f32.mrf.mxu1  ;;  %v13809_v20 = vpack.c.bf16 %v3127_v37, %v3125_v21  ;;  %v11780_v29 = vld [vmem:[#allocation2 + $0x2c0] sm:$0xff]  ;;  %v13826_v21 = vpack.c.bf16 %v11775_v32, %v11773_v63  ;;  %v776_v32 = vld [vmem:[%s17139_s1 + $0xa] sm:$0x3] }
 0x16f   : > { %v13793_v3 = vpop.f32.mrf.mxu0  ;;  %17711 = vst [vmem:[#allocation154_spill] sm:$0xff] %v13799_v17  ;;  %v13803_v11 = vpack.c.bf16 %v3122_v18, %v3120_v41  ;;  %v3128_v59 = vrot.slane %v11780_v29, 2  ;;  %v11782_v18 = vld [vmem:[#allocation2 + $0x2d8] sm:$0xff]  ;;  %v13815_v41 = vld [vmem:[#allocation2 + $0x2e0] sm:$0xff]  ;;  %v13879_v34 = vpack.c.bf16 %v11780_v29, %v13778_v5 }
 0x170   : > { %17714 = vst [vmem:[#allocation157_spill] sm:$0xff] %v13809_v20  ;;  %v3133_v22 = vrot.slane %v11782_v18, 2  ;;  %17718 = vst [vmem:[#allocation161_spill] sm:$0xff] %v13826_v21 }
 0x171   : > { %10880 = vmatmul.mubr.msk.bf16.gmra.mxu0 %vm172_vm2, %v13481_v25  ;;  %v13801_v25 = vpop.f32.mrf.mxu0  ;;  %17712 = vst [vmem:[#allocation155_spill] sm:$0xff] %v13803_v11  ;;  %17732 = vst [vmem:[#allocation174_spill] sm:$0xff] %v13879_v34 }
 0x172   : > { %10883 = vmatprep.mubr.msk.bf16.mxu0 %vm172_vm2, %v13772_v10  ;;  %v3130_v10 = vrot.slane %v11779_v49, 2  ;;  %v3135_v49 = vrot.slane %v13815_v41, 2 }
 0x173   : > { %v13805_v53 = vpop.f32.mrf.mxu1  ;;  %v13811_v62 = vpop.f32.mrf.mxu0 }
 0x174   : > { %17713 = vst [vmem:[#allocation156_spill] sm:$0xff] %v13805_v53  ;;  %v3136_v30 = vsel %vm2969_vm5, %v3133_v22, %v3135_v49 }
 0x175   : > { %10750 = vmatmul.mubr.msk.bf16.gmra.mxu1 %vm172_vm2, %v13460_v47  ;;  %v13818_v53 = vpop.f32.mrf.mxu1  ;;  %v13820_v17 = vpop.f32.mrf.mxu0  ;;  %v3131_v47 = vsel %vm2969_vm5, %v3128_v59, %v3130_v10 }
 0x176   : > { %10753 = vmatprep.mubr.msk.bf16.mxu1 %vm172_vm2, %v13795_v27  ;;  %17715 = vst [vmem:[#allocation158_spill] sm:$0xff] %v13818_v53  ;;  %17716 = vst [vmem:[#allocation159_spill] sm:$0xff] %v13820_v17  ;;  %v3129_v27 = vsel %vm2969_vm5, %v3126_v8, %v3128_v59  ;;  %v3134_v53 = vsel %vm2969_vm5, %v3132_v44, %v3133_v22  ;;  %v11784_v8 = vld [vmem:[#allocation2 + $0x2f0] sm:$0x3]  ;;  %v3137_v44 = vrot.slane %v11785_v28, 2 }
 0x177   : > { %v13824_v37 = vpop.f32.mrf.mxu1  ;;  %v13832_v33 = vpop.f32.mrf.mxu0  ;;  %v13842_v63 = vpack.c.bf16 %v3131_v47, %v3129_v27  ;;  %v3139_v10 = vrot.slane %v11784_v8, 2  ;;  %v13851_v61 = vpack.c.bf16 %v3136_v30, %v3134_v53  ;;  %v17726_v22 = vld [vmem:[#allocation3_spill] sm:$0xff]  ;;  %v11786_v27 = vld [vmem:[#allocation2 + $0x2f8] sm:$0xff]  ;;  %v11787_v8 = vld [vmem:[#allocation2 + $0x300] sm:$0xff] }
 0x178   : > { %17717 = vst [vmem:[#allocation160_spill] sm:$0xff] %v13824_v37  ;;  %17719 = vst [vmem:[#allocation162_spill] sm:$0xff] %v13832_v33  ;;  %v3142_v48 = vrot.slane %v11787_v8, 2  ;;  %v777_v30 = vld [vmem:[%s17139_s1 + $0xc] sm:$0x3] }
 0x179   : > { %10884 = vmatmul.mubr.msk.bf16.gmra.mxu0 %vm172_vm2, %v13803_v11  ;;  %v13838_v11 = vpop.f32.mrf.mxu1  ;;  %v13840_v37 = vpop.f32.mrf.mxu0  ;;  %17723 = vst [vmem:[#allocation166_spill] sm:$0xff] %v13842_v63  ;;  %17725 = vst [vmem:[#allocation168_spill] sm:$0xff] %v13851_v61 }
 0x17a   : > { %10887 = vmatprep.mubr.msk.bf16.mxu0 %vm172_vm2, %v13809_v20  ;;  %17721 = vst [vmem:[#allocation164_spill] sm:$0xff] %v13838_v11  ;;  %17722 = vst [vmem:[#allocation165_spill] sm:$0xff] %v13840_v37  ;;  %v13854_v20 = vand.u32 %v17726_v22, %v776_v32  ;;  %v3141_v11 = vrot.slane %v11786_v27, 2  ;;  %v13870_v32 = vand.u32 %v17726_v22, %v777_v30 }
 0x17b   : > { %v13847_v59 = vpop.f32.mrf.mxu1  ;;  %v13856_v47 = vpop.f32.mrf.mxu0  ;;  %v13888_v22 = vpack.c.bf16 %v11782_v18, %v11781_v60  ;;  %v11790_v60 = vld [vmem:[#allocation2 + $0x310] sm:$0xff] }
 0x17c   : > { %17724 = vst [vmem:[#allocation167_spill] sm:$0xff] %v13847_v59  ;;  %17727 = vst [vmem:[#allocation169_spill] sm:$0xff] %v13854_v20  ;;  %v13860_v59 = vld [vmem:[#allocation2 + $0x308] sm:$0xff]  ;;  %11207 = vmatprep.subr.bf16.mxu1 %v13854_v20  ;;  %11337 = vmatprep.subr.bf16.mxu0 %v13870_v32  ;;  %v3146_v18 = vrot.slane %v11790_v60, 2 }
 0x17d   : > { %10754 = vmatmul.mubr.msk.bf16.gmra.mxu1 %vm172_vm2, %v13826_v21  ;;  %17728 = vst [vmem:[#allocation170_spill] sm:$0xff] %v13856_v47  ;;  %v3144_v21 = vrot.slane %v13860_v59, 2  ;;  %v13866_v53 = vpop.f32.mrf.mxu1  ;;  %v3140_v47 = vsel %vm2969_vm5, %v3137_v44, %v3139_v10  ;;  %17734 = vst [vmem:[#allocation176_spill] sm:$0xff] %v13888_v22 }
 0x17e   : > { %10757 = vmatprep.mubr.msk.bf16.mxu1 %vm172_vm2, %v13834_v58  ;;  %17729 = vst [vmem:[#allocation171_spill] sm:$0xff] %v13866_v53  ;;  %v3138_v53 = vsel %vm2969_vm5, %v3135_v49, %v3137_v44 }
 0x17f   : > { %v13876_v57 = vpop.f32.mrf.mxu1  ;;  %v13896_v29 = vpack.c.bf16 %v3140_v47, %v3138_v53  ;;  %v11792_v47 = vld [vmem:[#allocation2 + $0x328] sm:$0xff] }
 0x180   : > { %17731 = vst [vmem:[#allocation173_spill] sm:$0xff] %v13876_v57  ;;  %v3145_v57 = vsel %vm2969_vm5, %v3142_v48, %v3144_v21  ;;  %v3151_v53 = vrot.slane %v11792_v47, 2 }
 0x181   : > { %v13872_v58 = vpop.f32.mrf.mxu0  ;;  %10888 = vmatmul.mubr.msk.bf16.gmra.mxu0 %vm172_vm2, %v13842_v63  ;;  %v3143_v63 = vsel %vm2969_vm5, %v3141_v11, %v3142_v48  ;;  %17737 = vst [vmem:[#allocation179_spill] sm:$0xff] %v13896_v29  ;;  %v11791_v48 = vld [vmem:[#allocation2 + $0x320] sm:$0xff] }
 0x182   : > { %17730 = vst [vmem:[#allocation172_spill] sm:$0xff] %v13872_v58  ;;  %10891 = vmatprep.mubr.msk.bf16.mxu0 %vm172_vm2, %v13851_v61  ;;  %v13892_v58 = vpop.f32.mrf.mxu1  ;;  %v11789_v61 = vld [vmem:[#allocation2 + $0x318] sm:$0x3]  ;;  %v13902_v10 = vpack.c.bf16 %v3145_v57, %v3143_v63  ;;  %v3150_v44 = vrot.slane %v11791_v48, 2  ;;  %v13920_v63 = vpack.c.bf16 %v11785_v28, %v13815_v41  ;;  %v11794_v28 = vld [vmem:[#allocation2 + $0x340] sm:$0x3] }
 0x183   : > { %v13886_v30 = vpop.f32.mrf.mxu0  ;;  %17735 = vst [vmem:[#allocation177_spill] sm:$0xff] %v13892_v58  ;;  %v3148_v49 = vrot.slane %v11789_v61, 2  ;;  %v13908_v58 = vld [vmem:[#allocation2 + $0x330] sm:$0xff] }
 0x184   : > { %17733 = vst [vmem:[#allocation175_spill] sm:$0xff] %v13886_v30  ;;  %17739 = vst [vmem:[#allocation181_spill] sm:$0xff] %v13902_v10  ;;  %v3153_v61 = vrot.slane %v13908_v58, 2 }
 0x185   : > { %v13894_v5 = vpop.f32.mrf.mxu0  ;;  %v13898_v37 = vpop.f32.mrf.mxu1  ;;  %10758 = vmatmul.mubr.msk.bf16.gmra.mxu1 %vm172_vm2, %v13879_v34  ;;  %17744 = vst [vmem:[#allocation186_spill] sm:$0xff] %v13920_v63 }
 0x186   : > { %17736 = vst [vmem:[#allocation178_spill] sm:$0xff] %v13894_v5  ;;  %17738 = vst [vmem:[#allocation180_spill] sm:$0xff] %v13898_v37  ;;  %10761 = vmatprep.mubr.msk.bf16.mxu1 %vm172_vm2, %v13888_v22  ;;  %v3147_v22 = vsel %vm2969_vm5, %v3144_v21, %v3146_v18 }
 0x187   : > { %v13904_v11 = vpop.f32.mrf.mxu0  ;;  %v13911_v37 = vpop.f32.mrf.mxu1 }
 0x188   : > { %17740 = vst [vmem:[#allocation182_spill] sm:$0xff] %v13904_v11  ;;  %17741 = vst [vmem:[#allocation183_spill] sm:$0xff] %v13911_v37  ;;  %v3149_v11 = vsel %vm2969_vm5, %v3146_v18, %v3148_v49  ;;  %v13928_v37 = vpack.c.bf16 %v11787_v8, %v11786_v27  ;;  %v11795_v27 = vld [vmem:[#allocation2 + $0x338] sm:$0xff]  ;;  %v11796_v18 = vld [vmem:[#allocation2 + $0x348] sm:$0xff] }
 0x189   : > { %v13913_v34 = vpop.f32.mrf.mxu0  ;;  %10892 = vmatmul.mubr.msk.bf16.gmra.mxu0 %vm172_vm2, %v13896_v29  ;;  %v13917_v57 = vpop.f32.mrf.mxu1  ;;  %v3154_v29 = vsel %vm2969_vm5, %v3151_v53, %v3153_v61  ;;  %v13936_v41 = vpack.c.bf16 %v3149_v11, %v3147_v22  ;;  %v3155_v8 = vrot.slane %v11795_v27, 2  ;;  %v11797_v22 = vld [vmem:[#allocation2 + $0x350] sm:$0xff] }
 0x18a   : > { %17742 = vst [vmem:[#allocation184_spill] sm:$0xff] %v13913_v34  ;;  %17743 = vst [vmem:[#allocation185_spill] sm:$0xff] %v13917_v57  ;;  %10895 = vmatprep.mubr.msk.bf16.mxu0 %vm172_vm2, %v13902_v10  ;;  %v3152_v34 = vsel %vm2969_vm5, %v3150_v44, %v3151_v53  ;;  %v3157_v10 = vrot.slane %v11794_v28, 2  ;;  %v3159_v44 = vrot.slane %v11796_v18, 2  ;;  %v3160_v11 = vrot.slane %v11797_v22, 2  ;;  %v13948_v53 = vld [vmem:[#allocation2 + $0x358] sm:$0xff] }
 0x18b   : > { %v13926_v5 = vpop.f32.mrf.mxu0  ;;  %17746 = vst [vmem:[#allocation188_spill] sm:$0xff] %v13928_v37  ;;  %v13932_v30 = vpop.f32.mrf.mxu1  ;;  %17749 = vst [vmem:[#allocation191_spill] sm:$0xff] %v13936_v41  ;;  %v13942_v21 = vpack.c.bf16 %v3154_v29, %v3152_v34  ;;  %v3162_v28 = vrot.slane %v13948_v53, 2  ;;  %v13960_v29 = vpack.c.bf16 %v11790_v60, %v13860_v59  ;;  %v11799_v60 = vld [vmem:[#allocation2 + $0x368] sm:$0x3] }
 0x18c   : > { %17745 = vst [vmem:[#allocation187_spill] sm:$0xff] %v13926_v5  ;;  %17747 = vst [vmem:[#allocation189_spill] sm:$0xff] %v13932_v30 }
 0x18d   : > { %v13934_v57 = vpop.f32.mrf.mxu0  ;;  %v13938_v33 = vpop.f32.mrf.mxu1  ;;  %10762 = vmatmul.mubr.msk.bf16.gmra.mxu1 %vm172_vm2, %v13920_v63  ;;  %17751 = vst [vmem:[#allocation193_spill] sm:$0xff] %v13942_v21  ;;  %17756 = vst [vmem:[#allocation198_spill] sm:$0xff] %v13960_v29  ;;  %v3158_v63 = vsel %vm2969_vm5, %v3155_v8, %v3157_v10 }
 0x18e   : > { %17748 = vst [vmem:[#allocation190_spill] sm:$0xff] %v13934_v57  ;;  %17750 = vst [vmem:[#allocation192_spill] sm:$0xff] %v13938_v33  ;;  %10765 = vmatprep.mubr.msk.bf16.mxu1 %vm172_vm2, %v13928_v37  ;;  %v3156_v37 = vsel %vm2969_vm5, %v3153_v61, %v3155_v8  ;;  %v11801_v8 = vld [vmem:[#allocation2 + $0x370] sm:$0xff] }
 0x18f   : > { %v13944_v49 = vpop.f32.mrf.mxu0  ;;  %v13951_v33 = vpop.f32.mrf.mxu1  ;;  %v13976_v59 = vpack.c.bf16 %v3158_v63, %v3156_v37  ;;  %v11802_v37 = vld [vmem:[#allocation2 + $0x378] sm:$0xff] }
 0x190   : > { %17752 = vst [vmem:[#allocation194_spill] sm:$0xff] %v13944_v49  ;;  %17753 = vst [vmem:[#allocation195_spill] sm:$0xff] %v13951_v33  ;;  %v13968_v33 = vpack.c.bf16 %v11792_v47, %v11791_v48  ;;  %v11800_v48 = vld [vmem:[#allocation2 + $0x360] sm:$0xff]  ;;  %v3169_v63 = vrot.slane %v11802_v37, 2 }
 0x191   : > { %v13953_v30 = vpop.f32.mrf.mxu0  ;;  %10896 = vmatmul.mubr.msk.bf16.gmra.mxu0 %vm172_vm2, %v13936_v41  ;;  %v13957_v34 = vpop.f32.mrf.mxu1  ;;  %v3163_v41 = vsel %vm2969_vm5, %v3160_v11, %v3162_v28  ;;  %17761 = vst [vmem:[#allocation203_spill] sm:$0xff] %v13976_v59  ;;  %v3164_v47 = vrot.slane %v11800_v48, 2 }
 0x192   : > { %17754 = vst [vmem:[#allocation196_spill] sm:$0xff] %v13953_v30  ;;  %17755 = vst [vmem:[#allocation197_spill] sm:$0xff] %v13957_v34  ;;  %10899 = vmatprep.mubr.msk.bf16.mxu0 %vm172_vm2, %v13942_v21  ;;  %v3161_v30 = vsel %vm2969_vm5, %v3159_v44, %v3160_v11  ;;  %v3166_v21 = vrot.slane %v11799_v60, 2  ;;  %v3168_v44 = vrot.slane %v11801_v8, 2  ;;  %v13988_v11 = vld [vmem:[#allocation2 + $0x380] sm:$0xff] }
 0x193   : > { %v13966_v49 = vpop.f32.mrf.mxu0  ;;  %17758 = vst [vmem:[#allocation200_spill] sm:$0xff] %v13968_v33  ;;  %v13972_v57 = vpop.f32.mrf.mxu1  ;;  %v13982_v10 = vpack.c.bf16 %v3163_v41, %v3161_v30  ;;  %v3171_v60 = vrot.slane %v13988_v11, 2  ;;  %v14000_v41 = vpack.c.bf16 %v11795_v27, %v13908_v58  ;;  %v11804_v27 = vld [vmem:[#allocation2 + $0x390] sm:$0x3] }
 0x194   : > { %17757 = vst [vmem:[#allocation199_spill] sm:$0xff] %v13966_v49  ;;  %17759 = vst [vmem:[#allocation201_spill] sm:$0xff] %v13972_v57 }
 0x195   : > { %v13974_v34 = vpop.f32.mrf.mxu0  ;;  %v13978_v5 = vpop.f32.mrf.mxu1  ;;  %10766 = vmatmul.mubr.msk.bf16.gmra.mxu1 %vm172_vm2, %v13960_v29  ;;  %17763 = vst [vmem:[#allocation205_spill] sm:$0xff] %v13982_v10  ;;  %17768 = vst [vmem:[#allocation210_spill] sm:$0xff] %v14000_v41  ;;  %v3167_v29 = vsel %vm2969_vm5, %v3164_v47, %v3166_v21 }
 0x196   : > { %17760 = vst [vmem:[#allocation202_spill] sm:$0xff] %v13974_v34  ;;  %17762 = vst [vmem:[#allocation204_spill] sm:$0xff] %v13978_v5  ;;  %10769 = vmatprep.mubr.msk.bf16.mxu1 %vm172_vm2, %v13968_v33  ;;  %v3165_v33 = vsel %vm2969_vm5, %v3162_v28, %v3164_v47  ;;  %v11806_v47 = vld [vmem:[#allocation2 + $0x398] sm:$0xff] }
 0x197   : > { %v13984_v61 = vpop.f32.mrf.mxu0  ;;  %v13991_v5 = vpop.f32.mrf.mxu1  ;;  %v14016_v58 = vpack.c.bf16 %v3167_v29, %v3165_v33  ;;  %v11807_v33 = vld [vmem:[#allocation2 + $0x3a0] sm:$0xff] }
 0x198   : > { %17764 = vst [vmem:[#allocation206_spill] sm:$0xff] %v13984_v61  ;;  %17765 = vst [vmem:[#allocation207_spill] sm:$0xff] %v13991_v5  ;;  %v14008_v5 = vpack.c.bf16 %v11797_v22, %v11796_v18  ;;  %v11805_v18 = vld [vmem:[#allocation2 + $0x388] sm:$0xff]  ;;  %v3178_v29 = vrot.slane %v11807_v33, 2 }
 0x199   : > { %v13993_v57 = vpop.f32.mrf.mxu0  ;;  %10900 = vmatmul.mubr.msk.bf16.gmra.mxu0 %vm172_vm2, %v13976_v59  ;;  %v13997_v30 = vpop.f32.mrf.mxu1  ;;  %v3172_v59 = vsel %vm2969_vm5, %v3169_v63, %v3171_v60  ;;  %17773 = vst [vmem:[#allocation215_spill] sm:$0xff] %v14016_v58  ;;  %v3173_v22 = vrot.slane %v11805_v18, 2 }
 0x19a   : > { %17766 = vst [vmem:[#allocation208_spill] sm:$0xff] %v13993_v57  ;;  %17767 = vst [vmem:[#allocation209_spill] sm:$0xff] %v13997_v30  ;;  %10903 = vmatprep.mubr.msk.bf16.mxu0 %vm172_vm2, %v13982_v10  ;;  %v3170_v57 = vsel %vm2969_vm5, %v3168_v44, %v3169_v63  ;;  %v3175_v10 = vrot.slane %v11804_v27, 2  ;;  %v3177_v44 = vrot.slane %v11806_v47, 2  ;;  %v14028_v63 = vld [vmem:[#allocation2 + $0x3a8] sm:$0xff] }
 0x19b   : > { %v14006_v61 = vpop.f32.mrf.mxu0  ;;  %17770 = vst [vmem:[#allocation212_spill] sm:$0xff] %v14008_v5  ;;  %v14012_v34 = vpop.f32.mrf.mxu1  ;;  %v14022_v21 = vpack.c.bf16 %v3172_v59, %v3170_v57  ;;  %v3180_v27 = vrot.slane %v14028_v63, 2  ;;  %v14040_v59 = vpack.c.bf16 %v11800_v48, %v13948_v53  ;;  %v11809_v48 = vld [vmem:[#allocation2 + $0x3b8] sm:$0x3] }
 0x19c   : > { %17769 = vst [vmem:[#allocation211_spill] sm:$0xff] %v14006_v61  ;;  %17771 = vst [vmem:[#allocation213_spill] sm:$0xff] %v14012_v34 }
 0x19d   : > { %v14014_v30 = vpop.f32.mrf.mxu0  ;;  %v14018_v49 = vpop.f32.mrf.mxu1  ;;  %10770 = vmatmul.mubr.msk.bf16.gmra.mxu1 %vm172_vm2, %v14000_v41  ;;  %17775 = vst [vmem:[#allocation217_spill] sm:$0xff] %v14022_v21  ;;  %17780 = vst [vmem:[#allocation222_spill] sm:$0xff] %v14040_v59  ;;  %v3176_v41 = vsel %vm2969_vm5, %v3173_v22, %v3175_v10 }
 0x19e   : > { %17772 = vst [vmem:[#allocation214_spill] sm:$0xff] %v14014_v30  ;;  %17774 = vst [vmem:[#allocation216_spill] sm:$0xff] %v14018_v49  ;;  %10773 = vmatprep.mubr.msk.bf16.mxu1 %vm172_vm2, %v14008_v5  ;;  %v3174_v5 = vsel %vm2969_vm5, %v3171_v60, %v3173_v22  ;;  %v11811_v22 = vld [vmem:[#allocation2 + $0x3c0] sm:$0xff] }
 0x19f   : > { %v14024_v28 = vpop.f32.mrf.mxu0  ;;  %v14031_v49 = vpop.f32.mrf.mxu1  ;;  %v14056_v53 = vpack.c.bf16 %v3176_v41, %v3174_v5  ;;  %v11812_v5 = vld [vmem:[#allocation2 + $0x3c8] sm:$0xff] }
 0x1a0   : > { %17776 = vst [vmem:[#allocation218_spill] sm:$0xff] %v14024_v28  ;;  %17777 = vst [vmem:[#allocation219_spill] sm:$0xff] %v14031_v49  ;;  %v14048_v49 = vpack.c.bf16 %v11802_v37, %v11801_v8  ;;  %v11810_v8 = vld [vmem:[#allocation2 + $0x3b0] sm:$0xff]  ;;  %v3187_v41 = vrot.slane %v11812_v5, 2 }
 0x1a1   : > { %v14033_v34 = vpop.f32.mrf.mxu0  ;;  %10904 = vmatmul.mubr.msk.bf16.gmra.mxu0 %vm172_vm2, %v14016_v58  ;;  %v14037_v57 = vpop.f32.mrf.mxu1  ;;  %v3181_v58 = vsel %vm2969_vm5, %v3178_v29, %v3180_v27  ;;  %17785 = vst [vmem:[#allocation227_spill] sm:$0xff] %v14056_v53  ;;  %v3182_v37 = vrot.slane %v11810_v8, 2 }
 0x1a2   : > { %17778 = vst [vmem:[#allocation220_spill] sm:$0xff] %v14033_v34  ;;  %17779 = vst [vmem:[#allocation221_spill] sm:$0xff] %v14037_v57  ;;  %10907 = vmatprep.mubr.msk.bf16.mxu0 %vm172_vm2, %v14022_v21  ;;  %v3179_v34 = vsel %vm2969_vm5, %v3177_v44, %v3178_v29  ;;  %v3184_v21 = vrot.slane %v11809_v48, 2  ;;  %v3186_v44 = vrot.slane %v11811_v22, 2  ;;  %v14068_v29 = vld [vmem:[#allocation2 + $0x3d0] sm:$0xff] }
 0x1a3   : > { %v14046_v28 = vpop.f32.mrf.mxu0  ;;  %17782 = vst [vmem:[#allocation224_spill] sm:$0xff] %v14048_v49  ;;  %v14052_v30 = vpop.f32.mrf.mxu1  ;;  %v14062_v10 = vpack.c.bf16 %v3181_v58, %v3179_v34  ;;  %v3189_v48 = vrot.slane %v14068_v29, 2  ;;  %v14080_v58 = vpack.c.bf16 %v11805_v18, %v13988_v11  ;;  %v11814_v18 = vld [vmem:[#allocation2 + $0x3e0] sm:$0x3] }
 0x1a4   : > { %17781 = vst [vmem:[#allocation223_spill] sm:$0xff] %v14046_v28  ;;  %17783 = vst [vmem:[#allocation225_spill] sm:$0xff] %v14052_v30 }
 0x1a5   : > { %v14054_v57 = vpop.f32.mrf.mxu0  ;;  %v14058_v61 = vpop.f32.mrf.mxu1  ;;  %10774 = vmatmul.mubr.msk.bf16.gmra.mxu1 %vm172_vm2, %v14040_v59  ;;  %17787 = vst [vmem:[#allocation229_spill] sm:$0xff] %v14062_v10  ;;  %17792 = vst [vmem:[#allocation234_spill] sm:$0xff] %v14080_v58  ;;  %v3185_v59 = vsel %vm2969_vm5, %v3182_v37, %v3184_v21 }
 0x1a6   : > { %17784 = vst [vmem:[#allocation226_spill] sm:$0xff] %v14054_v57  ;;  %17786 = vst [vmem:[#allocation228_spill] sm:$0xff] %v14058_v61  ;;  %10777 = vmatprep.mubr.msk.bf16.mxu1 %vm172_vm2, %v14048_v49  ;;  %v3183_v49 = vsel %vm2969_vm5, %v3180_v27, %v3182_v37  ;;  %v11816_v37 = vld [vmem:[#allocation2 + $0x3e8] sm:$0xff] }
 0x1a7   : > { %v14064_v60 = vpop.f32.mrf.mxu0  ;;  %v14071_v61 = vpop.f32.mrf.mxu1  ;;  %v14096_v11 = vpack.c.bf16 %v3185_v59, %v3183_v49  ;;  %v11817_v49 = vld [vmem:[#allocation2 + $0x3f0] sm:$0xff] }
 0x1a8   : > { %17788 = vst [vmem:[#allocation230_spill] sm:$0xff] %v14064_v60  ;;  %17789 = vst [vmem:[#allocation231_spill] sm:$0xff] %v14071_v61  ;;  %v14088_v61 = vpack.c.bf16 %v11807_v33, %v11806_v47  ;;  %v11815_v47 = vld [vmem:[#allocation2 + $0x3d8] sm:$0xff]  ;;  %v3196_v59 = vrot.slane %v11817_v49, 2 }
 0x1a9   : > { %v14073_v30 = vpop.f32.mrf.mxu0  ;;  %10908 = vmatmul.mubr.msk.bf16.gmra.mxu0 %vm172_vm2, %v14056_v53  ;;  %v14077_v34 = vpop.f32.mrf.mxu1  ;;  %v3190_v53 = vsel %vm2969_vm5, %v3187_v41, %v3189_v48  ;;  %17797 = vst [vmem:[#allocation239_spill] sm:$0xff] %v14096_v11  ;;  %v3191_v33 = vrot.slane %v11815_v47, 2 }
 0x1aa   : > { %17790 = vst [vmem:[#allocation232_spill] sm:$0xff] %v14073_v30  ;;  %17791 = vst [vmem:[#allocation233_spill] sm:$0xff] %v14077_v34  ;;  %10911 = vmatprep.mubr.msk.bf16.mxu0 %vm172_vm2, %v14062_v10  ;;  %v3188_v30 = vsel %vm2969_vm5, %v3186_v44, %v3187_v41  ;;  %v3193_v10 = vrot.slane %v11814_v18, 2  ;;  %v3195_v44 = vrot.slane %v11816_v37, 2  ;;  %v14108_v41 = vld [vmem:[#allocation2 + $0x3f8] sm:$0xff] }
 0x1ab   : > { %v14086_v60 = vpop.f32.mrf.mxu0  ;;  %17794 = vst [vmem:[#allocation236_spill] sm:$0xff] %v14088_v61  ;;  %v14092_v57 = vpop.f32.mrf.mxu1  ;;  %v14102_v21 = vpack.c.bf16 %v3190_v53, %v3188_v30  ;;  %v3198_v18 = vrot.slane %v14108_v41, 2  ;;  %v14120_v53 = vpack.c.bf16 %v11810_v8, %v14028_v63  ;;  %v11819_v8 = vld [vmem:[#allocation2 + $0x408] sm:$0x3] }
 0x1ac   : > { %17793 = vst [vmem:[#allocation235_spill] sm:$0xff] %v14086_v60  ;;  %17795 = vst [vmem:[#allocation237_spill] sm:$0xff] %v14092_v57 }
 0x1ad   : > { %v14094_v34 = vpop.f32.mrf.mxu0  ;;  %v14098_v28 = vpop.f32.mrf.mxu1  ;;  %10778 = vmatmul.mubr.msk.bf16.gmra.mxu1 %vm172_vm2, %v14080_v58  ;;  %17799 = vst [vmem:[#allocation241_spill] sm:$0xff] %v14102_v21  ;;  %17804 = vst [vmem:[#allocation246_spill] sm:$0xff] %v14120_v53  ;;  %v3194_v58 = vsel %vm2969_vm5, %v3191_v33, %v3193_v10 }
 0x1ae   : > { %17796 = vst [vmem:[#allocation238_spill] sm:$0xff] %v14094_v34  ;;  %17798 = vst [vmem:[#allocation240_spill] sm:$0xff] %v14098_v28  ;;  %10781 = vmatprep.mubr.msk.bf16.mxu1 %vm172_vm2, %v14088_v61  ;;  %v3192_v61 = vsel %vm2969_vm5, %v3189_v48, %v3191_v33  ;;  %v11821_v33 = vld [vmem:[#allocation2 + $0x410] sm:$0xff] }
 0x1af   : > { %v14104_v27 = vpop.f32.mrf.mxu0  ;;  %v14111_v28 = vpop.f32.mrf.mxu1  ;;  %v14136_v63 = vpack.c.bf16 %v3194_v58, %v3192_v61  ;;  %v11822_v61 = vld [vmem:[#allocation2 + $0x418] sm:$0xff] }
 0x1b0   : > { %17800 = vst [vmem:[#allocation242_spill] sm:$0xff] %v14104_v27  ;;  %17801 = vst [vmem:[#allocation243_spill] sm:$0xff] %v14111_v28  ;;  %v14128_v28 = vpack.c.bf16 %v11812_v5, %v11811_v22  ;;  %v11820_v22 = vld [vmem:[#allocation2 + $0x400] sm:$0xff]  ;;  %v3205_v58 = vrot.slane %v11822_v61, 2  ;;  %v14194_v16 = vpack.c.bf16 %v11822_v61, %v11821_v33 }
 0x1b1   : > { %v14113_v57 = vpop.f32.mrf.mxu0  ;;  %10912 = vmatmul.mubr.msk.bf16.gmra.mxu0 %vm172_vm2, %v14096_v11  ;;  %v14117_v30 = vpop.f32.mrf.mxu1  ;;  %v3199_v11 = vsel %vm2969_vm5, %v3196_v59, %v3198_v18  ;;  %17809 = vst [vmem:[#allocation251_spill] sm:$0xff] %v14136_v63  ;;  %v3200_v5 = vrot.slane %v11820_v22, 2 }
 0x1b2   : > { %17802 = vst [vmem:[#allocation244_spill] sm:$0xff] %v14113_v57  ;;  %17803 = vst [vmem:[#allocation245_spill] sm:$0xff] %v14117_v30  ;;  %10915 = vmatprep.mubr.msk.bf16.mxu0 %vm172_vm2, %v14102_v21  ;;  %v3197_v57 = vsel %vm2969_vm5, %v3195_v44, %v3196_v59  ;;  %v3202_v21 = vrot.slane %v11819_v8, 2  ;;  %v3204_v44 = vrot.slane %v11821_v33, 2  ;;  %v14148_v59 = vld [vmem:[#allocation2 + $0x420] sm:$0xff] }
 0x1b3   : > { %v14126_v27 = vpop.f32.mrf.mxu0  ;;  %17806 = vst [vmem:[#allocation248_spill] sm:$0xff] %v14128_v28  ;;  %v14132_v34 = vpop.f32.mrf.mxu1  ;;  %v14142_v10 = vpack.c.bf16 %v3199_v11, %v3197_v57  ;;  %v3207_v8 = vrot.slane %v14148_v59, 2  ;;  %v14158_v11 = vpack.c.bf16 %v11815_v47, %v14068_v29  ;;  %v11824_v29 = vld [vmem:[#allocation2 + $0x430] sm:$0x3] }
 0x1b4   : > { %17805 = vst [vmem:[#allocation247_spill] sm:$0xff] %v14126_v27  ;;  %17807 = vst [vmem:[#allocation249_spill] sm:$0xff] %v14132_v34  ;;  %v3211_v47 = vrot.slane %v11824_v29, 2 }
 0x1b5   : > { %v14134_v30 = vpop.f32.mrf.mxu0  ;;  %v14138_v60 = vpop.f32.mrf.mxu1  ;;  %10782 = vmatmul.mubr.msk.bf16.gmra.mxu1 %vm172_vm2, %v14120_v53  ;;  %17811 = vst [vmem:[#allocation253_spill] sm:$0xff] %v14142_v10  ;;  %17815 = vst [vmem:[#allocation257_spill] sm:$0xff] %v14158_v11  ;;  %v3203_v53 = vsel %vm2969_vm5, %v3200_v5, %v3202_v21  ;;  %v3208_v27 = vsel %vm2969_vm5, %v3205_v58, %v3207_v8  ;;  %v11825_v21 = vld [vmem:[#allocation2 + $0x428] sm:$0xff] }
 0x1b6   : > { %17808 = vst [vmem:[#allocation250_spill] sm:$0xff] %v14134_v30  ;;  %17810 = vst [vmem:[#allocation252_spill] sm:$0xff] %v14138_v60  ;;  %10785 = vmatprep.mubr.msk.bf16.mxu1 %vm172_vm2, %v14128_v28  ;;  %v3201_v28 = vsel %vm2969_vm5, %v3198_v18, %v3200_v5  ;;  %v14164_v30 = vpack.c.bf16 %v11817_v49, %v11816_v37  ;;  %v3209_v37 = vrot.slane %v11825_v21, 2 }
 0x1b7   : > { %v14144_v48 = vpop.f32.mrf.mxu0  ;;  %v14151_v60 = vpop.f32.mrf.mxu1  ;;  %v14170_v52 = vpack.c.bf16 %v3203_v53, %v3201_v28  ;;  %v11827_v28 = vld [vmem:[#allocation2 + $0x440] sm:$0xff] }
 0x1b8   : > { %17812 = vst [vmem:[#allocation254_spill] sm:$0xff] %v14144_v48  ;;  %17813 = vst [vmem:[#allocation255_spill] sm:$0xff] %v14151_v60  ;;  %v3206_v60 = vsel %vm2969_vm5, %v3204_v44, %v3205_v58  ;;  %v11826_v44 = vld [vmem:[#allocation2 + $0x438] sm:$0xff]  ;;  %v3214_v53 = vrot.slane %v11827_v28, 2  ;;  %v3212_v17 = vsel %vm2969_vm5, %v3209_v37, %v3211_v47 }
 0x1b9   : > { %v10821_v34 = vpop.f32.mrf.mxu0  ;;  %10916 = vmatmul.mubr.msk.bf16.gmra.mxu0 %vm172_vm2, %v14136_v63  ;;  %v14155_v57 = vpop.f32.mrf.mxu1  ;;  %17816 = vst [vmem:[#allocation258_spill] sm:$0xff] %v14164_v30  ;;  %17818 = vst [vmem:[#allocation260_spill] sm:$0xff] %v14170_v52  ;;  %v14174_v18 = vpack.c.bf16 %v3208_v27, %v3206_v60  ;;  %v3213_v58 = vrot.slane %v11826_v44, 2  ;;  %v11829_v47 = vld [vmem:[#allocation2 + $0x458] sm:$0x3] }
 0x1ba   : > { %17814 = vst [vmem:[#allocation256_spill] sm:$0xff] %v14155_v57  ;;  %10919 = vmatprep.mubr.msk.bf16.mxu0 %vm172_vm2, %v14142_v10  ;;  %v14179_v10 = vld [vmem:[#allocation2 + $0x448] sm:$0xff]  ;;  %v3220_v33 = vrot.slane %v11829_v47, 2 }
 0x1bb   : > { %v3679_v48 = vpop.f32.mrf.mxu0  ;;  %v14168_v63 = vpop.f32.mrf.mxu1  ;;  %17819 = vst [vmem:[#allocation261_spill] sm:$0xff] %v14174_v18  ;;  %v3216_v29 = vrot.slane %v14179_v10, 2 }
 0x1bc   : > { %17817 = vst [vmem:[#allocation259_spill] sm:$0xff] %v14168_v63 }
 0x1bd   : > { %v10822_v57 = vpop.f32.mrf.mxu0  ;;  %v10691_v20 = vpop.f32.mrf.mxu1  ;;  %10786 = vmatmul.mubr.msk.bf16.gmra.mxu1 %vm172_vm2, %v14158_v11  ;;  %v3210_v11 = vsel %vm2969_vm5, %v3207_v8, %v3209_v37  ;;  %v11830_v37 = vld [vmem:[#allocation2 + $0x450] sm:$0xff] }
 0x1be   : > { %v2467_v49 = vadd.f32 %v10691_v20, %v13608_v13  ;;  %10789 = vmatprep.mubr.msk.bf16.mxu1 %vm172_vm2, %v14164_v30  ;;  %v14188_v30 = vpack.c.bf16 %v11820_v22, %v14108_v41 }
 0x1bf   : > { %v3682_v5 = vpop.f32.mrf.mxu0  ;;  %v2458_v63 = vpop.f32.mrf.mxu1 }
 0x1c0   : > { %v2459_v60 = vadd.f32 %v2458_v63, %v13616_v12  ;;  %v14185_v13 = vadd.f32 %v10821_v34, %v2467_v49  ;;  %v3217_v34 = vsel %vm2969_vm5, %v3214_v53, %v3216_v29 }
 0x1c1   : > { %v10825_v27 = vpop.f32.mrf.mxu0  ;;  %10920 = vmatmul.mubr.msk.bf16.gmra.mxu0 %vm172_vm2, %v14170_v52  ;;  %v10692_v20 = vpop.f32.mrf.mxu1  ;;  %v3215_v52 = vsel %vm2969_vm5, %v3213_v58, %v3214_v53  ;;  %v3218_v58 = vrot.slane %v11830_v37, 2 }
 0x1c2   : > { %17820 = vst [vmem:[#allocation262_spill] sm:$0xff] %v14185_v13  ;;  %10923 = vmatprep.mubr.msk.bf16.mxu0 %vm172_vm2, %v14174_v18  ;;  %v2470_v12 = vadd.f32 %v10692_v20, %v13620_v19  ;;  %v14199_v49 = vadd.f32 %v3679_v48, %v2459_v60  ;;  %v14202_v18 = vpack.c.bf16 %v3212_v17, %v3210_v11  ;;  %v11831_v48 = vld [vmem:[#allocation2 + $0x460] sm:$0xff]  ;;  %v11832_v17 = vld [vmem:[#allocation2 + $0x468] sm:$0xff]  ;;  %v14213_v11 = vld [vmem:[#allocation2 + $0x470] sm:$0xff] }
 0x1c3   : > { %v3695_v63 = vpop.f32.mrf.mxu0  ;;  %v2461_v41 = vpop.f32.mrf.mxu1  ;;  %v14208_v19 = vpack.c.bf16 %v3217_v34, %v3215_v52  ;;  %v3222_v53 = vrot.slane %v11831_v48, 2  ;;  %v3225_v20 = vrot.slane %v14213_v11, 2 }
 0x1c4   : > { %v2462_v22 = vadd.f32 %v2461_v41, %v13626_v56  ;;  %17821 = vst [vmem:[#allocation263_spill] sm:$0xff] %v14202_v18  ;;  %v14204_v8 = vadd.f32 %v10822_v57, %v2470_v12  ;;  %v3223_v57 = vrot.slane %v11832_v17, 2 }
 0x1c5   : > { %v10826_v13 = vpop.f32.mrf.mxu0  ;;  %v10695_v61 = vpop.f32.mrf.mxu1  ;;  %10790 = vmatmul.mubr.msk.bf16.gmra.mxu1 %vm172_vm2, %v14188_v30  ;;  %17823 = vst [vmem:[#allocation265_spill] sm:$0xff] %v14208_v19 }
 0x1c6   : > { %17822 = vst [vmem:[#allocation264_spill] sm:$0xff] %v14204_v8  ;;  %v2483_v60 = vadd.f32 %v10695_v61, %v13632_v15  ;;  %10793 = vmatprep.mubr.msk.bf16.mxu1 %vm172_vm2, %v14194_v16  ;;  %v14216_v12 = vadd.f32 %v3682_v5, %v2462_v22  ;;  %v14224_v61 = vpack.c.bf16 %v11825_v21, %v14148_v59 }
 0x1c7   : > { %v3698_v56 = vpop.f32.mrf.mxu0  ;;  %v2474_v52 = vpop.f32.mrf.mxu1  ;;  %v3219_v8 = vsel %vm2969_vm5, %v3216_v29, %v3218_v58  ;;  %v3221_v5 = vsel %vm2969_vm5, %v3218_v58, %v3220_v33  ;;  %v14230_v22 = vpack.c.bf16 %v11827_v28, %v11826_v44  ;;  %v11834_v33 = vld [vmem:[#allocation2 + $0x480] sm:$0x3]  ;;  %v11835_v58 = vld [vmem:[#allocation2 + $0x478] sm:$0xff] }
 0x1c8   : > { %v2475_v34 = vadd.f32 %v2474_v52, %v13640_v24  ;;  %v14221_v15 = vadd.f32 %v10825_v27, %v2483_v60  ;;  %v3226_v27 = vsel %vm2969_vm5, %v3223_v57, %v3225_v20  ;;  %v3229_v44 = vrot.slane %v11834_v33, 2 }
 0x1c9   : > { %v10829_v41 = vpop.f32.mrf.mxu0  ;;  %10924 = vmatmul.mubr.msk.bf16.gmra.mxu0 %vm172_vm2, %v14202_v18  ;;  %v10696_v47 = vpop.f32.mrf.mxu1  ;;  %v3224_v18 = vsel %vm2969_vm5, %v3222_v53, %v3223_v57  ;;  %v3227_v53 = vrot.slane %v11835_v58, 2 }
 0x1ca   : > { %17824 = vst [vmem:[#allocation266_spill] sm:$0xff] %v14221_v15  ;;  %10927 = vmatprep.mubr.msk.bf16.mxu0 %vm172_vm2, %v14208_v19  ;;  %v2486_v24 = vadd.f32 %v10696_v47, %v13644_v35  ;;  %v14235_v60 = vadd.f32 %v3695_v63, %v2475_v34  ;;  %v14238_v19 = vpack.c.bf16 %v3221_v5, %v3219_v8  ;;  %v11836_v63 = vld [vmem:[#allocation2 + $0x488] sm:$0xff]  ;;  %v14249_v47 = vld [vmem:[#allocation2 + $0x498] sm:$0xff] }
 0x1cb   : > { %v3711_v52 = vpop.f32.mrf.mxu0  ;;  %v2477_v59 = vpop.f32.mrf.mxu1  ;;  %v14244_v35 = vpack.c.bf16 %v3226_v27, %v3224_v18  ;;  %v3231_v57 = vrot.slane %v11836_v63, 2  ;;  %v3234_v5 = vrot.slane %v14249_v47, 2 }
 0x1cc   : > { %v2478_v21 = vadd.f32 %v2477_v59, %v13650_v45  ;;  %17825 = vst [vmem:[#allocation267_spill] sm:$0xff] %v14238_v19  ;;  %v14240_v29 = vadd.f32 %v10826_v13, %v2486_v24  ;;  %v11837_v13 = vld [vmem:[#allocation2 + $0x490] sm:$0xff] }
 0x1cd   : > { %v10830_v15 = vpop.f32.mrf.mxu0  ;;  %v10699_v28 = vpop.f32.mrf.mxu1  ;;  %10794 = vmatmul.mubr.msk.bf16.gmra.mxu1 %vm172_vm2, %v14224_v61  ;;  %17827 = vst [vmem:[#allocation269_spill] sm:$0xff] %v14244_v35  ;;  %v3232_v8 = vrot.slane %v11837_v13, 2 }
 0x1ce   : > { %17826 = vst [vmem:[#allocation268_spill] sm:$0xff] %v14240_v29  ;;  %v2499_v34 = vadd.f32 %v10699_v28, %v13656_v55  ;;  %10797 = vmatprep.mubr.msk.bf16.mxu1 %vm172_vm2, %v14230_v22  ;;  %v14252_v24 = vadd.f32 %v3698_v56, %v2478_v21  ;;  %v14260_v28 = vpack.c.bf16 %v11830_v37, %v14179_v10 }
 0x1cf   : > { %v3714_v45 = vpop.f32.mrf.mxu0  ;;  %v2490_v18 = vpop.f32.mrf.mxu1  ;;  %v3228_v29 = vsel %vm2969_vm5, %v3225_v20, %v3227_v53  ;;  %v3230_v56 = vsel %vm2969_vm5, %v3227_v53, %v3229_v44  ;;  %v14266_v21 = vpack.c.bf16 %v11832_v17, %v11831_v48  ;;  %v11839_v44 = vld [vmem:[#allocation2 + $0x4a8] sm:$0x3]  ;;  %v11840_v53 = vld [vmem:[#allocation2 + $0x4a0] sm:$0xff] }
 0x1d0   : > { %v2491_v27 = vadd.f32 %v2490_v18, %v13664_v4  ;;  %v14257_v55 = vadd.f32 %v10829_v41, %v2499_v34  ;;  %v3235_v41 = vsel %vm2969_vm5, %v3232_v8, %v3234_v5  ;;  %v3238_v48 = vrot.slane %v11839_v44, 2 }
 0x1d1   : > { %v10833_v59 = vpop.f32.mrf.mxu0  ;;  %10928 = vmatmul.mubr.msk.bf16.gmra.mxu0 %vm172_vm2, %v14238_v19  ;;  %v10700_v33 = vpop.f32.mrf.mxu1  ;;  %v3233_v19 = vsel %vm2969_vm5, %v3231_v57, %v3232_v8  ;;  %v3236_v57 = vrot.slane %v11840_v53, 2 }
 0x1d2   : > { %17828 = vst [vmem:[#allocation270_spill] sm:$0xff] %v14257_v55  ;;  %10931 = vmatprep.mubr.msk.bf16.mxu0 %vm172_vm2, %v14244_v35  ;;  %v2502_v4 = vadd.f32 %v10700_v33, %v13668_v26  ;;  %v14271_v34 = vadd.f32 %v3711_v52, %v2491_v27  ;;  %v14274_v35 = vpack.c.bf16 %v3230_v56, %v3228_v29  ;;  %v11841_v52 = vld [vmem:[#allocation2 + $0x4b0] sm:$0xff]  ;;  %v14285_v33 = vld [vmem:[#allocation2 + $0x4c0] sm:$0xff] }
 0x1d3   : > { %v3727_v18 = vpop.f32.mrf.mxu0  ;;  %v2493_v10 = vpop.f32.mrf.mxu1  ;;  %v14280_v26 = vpack.c.bf16 %v3235_v41, %v3233_v19  ;;  %v3240_v8 = vrot.slane %v11841_v52, 2  ;;  %v3243_v56 = vrot.slane %v14285_v33, 2 }
 0x1d4   : > { %v2494_v37 = vadd.f32 %v2493_v10, %v13674_v31  ;;  %17829 = vst [vmem:[#allocation271_spill] sm:$0xff] %v14274_v35  ;;  %v14276_v20 = vadd.f32 %v10830_v15, %v2502_v4  ;;  %v11842_v15 = vld [vmem:[#allocation2 + $0x4b8] sm:$0xff] }
 0x1d5   : > { %v10834_v55 = vpop.f32.mrf.mxu0  ;;  %v10703_v17 = vpop.f32.mrf.mxu1  ;;  %10798 = vmatmul.mubr.msk.bf16.gmra.mxu1 %vm172_vm2, %v14260_v28  ;;  %17831 = vst [vmem:[#allocation273_spill] sm:$0xff] %v14280_v26  ;;  %v3241_v29 = vrot.slane %v11842_v15, 2 }
 0x1d6   : > { %17830 = vst [vmem:[#allocation272_spill] sm:$0xff] %v14276_v20  ;;  %v2515_v27 = vadd.f32 %v10703_v17, %v13680_v54  ;;  %10801 = vmatprep.mubr.msk.bf16.mxu1 %vm172_vm2, %v14266_v21  ;;  %v14288_v4 = vadd.f32 %v3714_v45, %v2494_v37  ;;  %v14296_v17 = vpack.c.bf16 %v11835_v58, %v14213_v11 }
 0x1d7   : > { %v3730_v31 = vpop.f32.mrf.mxu0  ;;  %v2506_v19 = vpop.f32.mrf.mxu1  ;;  %v3237_v20 = vsel %vm2969_vm5, %v3234_v5, %v3236_v57  ;;  %v3239_v45 = vsel %vm2969_vm5, %v3236_v57, %v3238_v48  ;;  %v14302_v37 = vpack.c.bf16 %v11837_v13, %v11836_v63  ;;  %v11844_v48 = vld [vmem:[#allocation2 + $0x4d0] sm:$0x3]  ;;  %v11845_v57 = vld [vmem:[#allocation2 + $0x4c8] sm:$0xff] }
 0x1d8   : > { %v2507_v41 = vadd.f32 %v2506_v19, %v13688_v0  ;;  %v14293_v54 = vadd.f32 %v10833_v59, %v2515_v27  ;;  %v3244_v59 = vsel %vm2969_vm5, %v3241_v29, %v3243_v56  ;;  %v3247_v63 = vrot.slane %v11844_v48, 2 }
 0x1d9   : > { %v10837_v10 = vpop.f32.mrf.mxu0  ;;  %10932 = vmatmul.mubr.msk.bf16.gmra.mxu0 %vm172_vm2, %v14274_v35  ;;  %v10704_v44 = vpop.f32.mrf.mxu1  ;;  %v3242_v35 = vsel %vm2969_vm5, %v3240_v8, %v3241_v29  ;;  %v3245_v8 = vrot.slane %v11845_v57, 2 }
 0x1da   : > { %17832 = vst [vmem:[#allocation274_spill] sm:$0xff] %v14293_v54  ;;  %10935 = vmatprep.mubr.msk.bf16.mxu0 %vm172_vm2, %v14280_v26  ;;  %v2518_v0 = vadd.f32 %v10704_v44, %v13692_v42  ;;  %v14307_v27 = vadd.f32 %v3727_v18, %v2507_v41  ;;  %v14310_v26 = vpack.c.bf16 %v3239_v45, %v3237_v20  ;;  %v11846_v18 = vld [vmem:[#allocation2 + $0x4d8] sm:$0xff]  ;;  %v14321_v44 = vld [vmem:[#allocation2 + $0x4e8] sm:$0xff] }
 0x1db   : > { %v3743_v19 = vpop.f32.mrf.mxu0  ;;  %v2509_v11 = vpop.f32.mrf.mxu1  ;;  %v14316_v42 = vpack.c.bf16 %v3244_v59, %v3242_v35  ;;  %v3249_v29 = vrot.slane %v11846_v18, 2  ;;  %v3252_v45 = vrot.slane %v14321_v44, 2 }
 0x1dc   : > { %v2510_v58 = vadd.f32 %v2509_v11, %v13698_v50  ;;  %17833 = vst [vmem:[#allocation275_spill] sm:$0xff] %v14310_v26  ;;  %v14312_v5 = vadd.f32 %v10834_v55, %v2518_v0  ;;  %v11847_v55 = vld [vmem:[#allocation2 + $0x4e0] sm:$0xff] }
 0x1dd   : > { %v10838_v54 = vpop.f32.mrf.mxu0  ;;  %v10707_v13 = vpop.f32.mrf.mxu1  ;;  %10802 = vmatmul.mubr.msk.bf16.gmra.mxu1 %vm172_vm2, %v14296_v17  ;;  %17835 = vst [vmem:[#allocation277_spill] sm:$0xff] %v14316_v42  ;;  %v3250_v20 = vrot.slane %v11847_v55, 2 }
 0x1de   : > { %17834 = vst [vmem:[#allocation276_spill] sm:$0xff] %v14312_v5  ;;  %v2531_v41 = vadd.f32 %v10707_v13, %v13704_v43  ;;  %10805 = vmatprep.mubr.msk.bf16.mxu1 %vm172_vm2, %v14302_v37  ;;  %v14324_v0 = vadd.f32 %v3730_v31, %v2510_v58  ;;  %v14332_v13 = vpack.c.bf16 %v11840_v53, %v14249_v47 }
 0x1df   : > { %v3746_v50 = vpop.f32.mrf.mxu0  ;;  %v2522_v35 = vpop.f32.mrf.mxu1  ;;  %v3246_v5 = vsel %vm2969_vm5, %v3243_v56, %v3245_v8  ;;  %v3248_v31 = vsel %vm2969_vm5, %v3245_v8, %v3247_v63  ;;  %v14338_v58 = vpack.c.bf16 %v11842_v15, %v11841_v52  ;;  %v11849_v63 = vld [vmem:[#allocation2 + $0x4f8] sm:$0x3]  ;;  %v11850_v8 = vld [vmem:[#allocation2 + $0x4f0] sm:$0xff] }
 0x1e0   : > { %v2523_v59 = vadd.f32 %v2522_v35, %v13712_v36  ;;  %v14329_v43 = vadd.f32 %v10837_v10, %v2531_v41  ;;  %17837 = vst [vmem:[#allocation279_spill] sm:$0xff] %v14332_v13  ;;  %v3253_v10 = vsel %vm2969_vm5, %v3250_v20, %v3252_v45  ;;  %v3256_v52 = vrot.slane %v11849_v63, 2 }
 0x1e1   : > { %v10841_v11 = vpop.f32.mrf.mxu0  ;;  %10936 = vmatmul.mubr.msk.bf16.gmra.mxu0 %vm172_vm2, %v14310_v26  ;;  %v10708_v48 = vpop.f32.mrf.mxu1  ;;  %17838 = vst [vmem:[#allocation280_spill] sm:$0xff] %v14338_v58  ;;  %v3251_v26 = vsel %vm2969_vm5, %v3249_v29, %v3250_v20  ;;  %v3254_v29 = vrot.slane %v11850_v8, 2 }
 0x1e2   : > { %17836 = vst [vmem:[#allocation278_spill] sm:$0xff] %v14329_v43  ;;  %10939 = vmatprep.mubr.msk.bf16.mxu0 %vm172_vm2, %v14316_v42  ;;  %v2534_v36 = vadd.f32 %v10708_v48, %v13716_v14  ;;  %v14343_v41 = vadd.f32 %v3743_v19, %v2523_v59  ;;  %v14346_v42 = vpack.c.bf16 %v3248_v31, %v3246_v5 }
 0x1e3   : > { %v3759_v35 = vpop.f32.mrf.mxu0  ;;  %v2525_v47 = vpop.f32.mrf.mxu1  ;;  %v14352_v14 = vpack.c.bf16 %v3253_v10, %v3251_v26  ;;  %v14365_v31 = vpack.c.bf16 %v11845_v57, %v14285_v33  ;;  %v14372_v10 = vpack.c.bf16 %v11847_v55, %v11846_v18 }
 0x1e4   : > { %v2526_v53 = vadd.f32 %v2525_v47, %v13722_v6  ;;  %17839 = vst [vmem:[#allocation281_spill] sm:$0xff] %v14346_v42  ;;  %v14348_v56 = vadd.f32 %v10838_v54, %v2534_v36 }
 0x1e5   : > { %v10842_v43 = vpop.f32.mrf.mxu0  ;;  %v10711_v15 = vpop.f32.mrf.mxu1  ;;  %10806 = vmatmul.mubr.msk.bf16.gmra.mxu1 %vm172_vm2, %v14332_v13  ;;  %17840 = vst [vmem:[#allocation282_spill] sm:$0xff] %v14352_v14 }
 0x1e6   : > { %v2547_v19 = vadd.f32 %v10711_v15, %v13728_v51  ;;  %10809 = vmatprep.mubr.msk.bf16.mxu1 %vm172_vm2, %v14338_v58  ;;  %v14357_v6 = vadd.f32 %v3746_v50, %v2526_v53  ;;  %v3255_v51 = vsel %vm2969_vm5, %v3252_v45, %v3254_v29  ;;  %v3257_v50 = vsel %vm2969_vm5, %v3254_v29, %v3256_v52 }
 0x1e7   : > { %v3762_v20 = vpop.f32.mrf.mxu0  ;;  %v2538_v54 = vpop.f32.mrf.mxu1  ;;  %v14377_v33 = vpack.c.bf16 %v3257_v50, %v3255_v51  ;;  %v14394_v29 = vpack.c.bf16 %v11850_v8, %v14321_v44 }
 0x1e8   : > { %v2539_v5 = vadd.f32 %v2538_v54, %v13736_v9  ;;  %v14362_v48 = vadd.f32 %v10841_v11, %v2547_v19 }
 0x1e9   : > { %v10845_v59 = vpop.f32.mrf.mxu0  ;;  %10940 = vmatmul.mubr.msk.bf16.gmra.mxu0 %vm172_vm2, %v14346_v42  ;;  %v10712_v26 = vpop.f32.mrf.mxu1  ;;  %17841 = vst [vmem:[#allocation283_spill] sm:$0xff] %v14377_v33 }
 0x1ea   : > { %10943 = vmatprep.mubr.msk.bf16.mxu0 %vm172_vm2, %v14352_v14  ;;  %v2550_v36 = vadd.f32 %v10712_v26, %v13740_v7  ;;  %v14374_v47 = vadd.f32 %v3759_v35, %v2539_v5 }
 0x1eb   : > { %v3775_v9 = vpop.f32.mrf.mxu0  ;;  %v2541_v11 = vpop.f32.mrf.mxu1 }
 0x1ec   : > { %v2542_v53 = vadd.f32 %v2541_v11, %v13746_v39  ;;  %v14379_v57 = vadd.f32 %v10842_v43, %v2550_v36 }
 0x1ed   : > { %v10846_v63 = vpop.f32.mrf.mxu0  ;;  %v10715_v15 = vpop.f32.mrf.mxu1  ;;  %10810 = vmatmul.mubr.msk.bf16.gmra.mxu1 %vm172_vm2, %v14365_v31 }
 0x1ee   : > { %v2563_v45 = vadd.f32 %v10715_v15, %v13752_v2  ;;  %10813 = vmatprep.mubr.msk.bf16.mxu1 %vm172_vm2, %v14372_v10  ;;  %v14386_v18 = vadd.f32 %v3762_v20, %v2542_v53  ;;  %v17842_v2 = vld [vmem:[#allocation8_spill] sm:$0xff] }
 0x1ef   : > { %v3778_v7 = vpop.f32.mrf.mxu0  ;;  %v2554_v55 = vpop.f32.mrf.mxu1 }
 0x1f0   : > { %v2555_v39 = vadd.f32 %v2554_v55, %v13760_v23  ;;  %v14391_v43 = vadd.f32 %v10845_v59, %v2563_v45 }
 0x1f1   : > { %v10849_v35 = vpop.f32.mrf.mxu0  ;;  %10944 = vmatmul.mubr.msk.bf16.gmra.mxu0 %vm172_vm2, %v14377_v33  ;;  %v10716_v52 = vpop.f32.mrf.mxu1 }
 0x1f2   : > { %11079 = vmatprep.mubr.msk.bf16.mxu0 %vm172_vm2, %v17842_v2  ;;  %v2566_v19 = vadd.f32 %v10716_v52, %v13766_v38  ;;  %v14399_v54 = vadd.f32 %v3775_v9, %v2555_v39  ;;  %v17846_v52 = vld [vmem:[#allocation159_spill] sm:$0xff]  ;;  %v17847_v2 = vld [vmem:[#allocation169_spill] sm:$0xff] }
 0x1f3   : > { %v3791_v20 = vpop.f32.mrf.mxu0  ;;  %v2557_v5 = vpop.f32.mrf.mxu1 }
 0x1f4   : > { %v2558_v23 = vadd.f32 %v2557_v5, %v13774_v46  ;;  %v14402_v51 = vadd.f32 %v10846_v63, %v2566_v19  ;;  %v17843_v46 = vld [vmem:[#allocation9_spill] sm:$0xff]  ;;  %v17844_v63 = vld [vmem:[#allocation12_spill] sm:$0xff] }
 0x1f5   : > { %v10850_v26 = vpop.f32.mrf.mxu0  ;;  %v10719_v59 = vpop.f32.mrf.mxu1  ;;  %10814 = vmatmul.mubr.msk.bf16.gmra.mxu1 %vm172_vm2, %v14394_v29  ;;  %v17848_v5 = vld [vmem:[#allocation29_spill] sm:$0xff] }
 0x1f6   : > { %v2579_v44 = vadd.f32 %v10719_v59, %v13783_v1  ;;  %10949 = vmatprep.mubr.msk.bf16.mxu1 %vm172_vm2, %v17640_v40  ;;  %v14409_v38 = vadd.f32 %v3778_v7, %v2558_v23  ;;  %v17849_v23 = vld [vmem:[#allocation162_spill] sm:$0xff] }
 0x1f7   : > { %v3794_v8 = vpop.f32.mrf.mxu0  ;;  %v2570_v50 = vpop.f32.mrf.mxu1 }
 0x1f8   : > { %v2571_v36 = vadd.f32 %v2570_v50, %v13793_v3  ;;  %v14414_v11 = vadd.f32 %v10849_v35, %v2579_v44  ;;  %v17845_v35 = vld [vmem:[#allocation17_spill] sm:$0xff] }
 0x1f9   : > { %v10853_v9 = vpop.f32.mrf.mxu0  ;;  %11080 = vmatmul.mubr.msk.bf16.vlgmr.msra.gmra.mxu0 %vm172_vm2, %v17843_v46  ;;  %v10720_v53 = vpop.f32.mrf.mxu1  ;;  %v17852_v46 = vld [vmem:[#allocation165_spill] sm:$0xff] }
 0x1fa   : > { %11338 = vmatpush3.bf16.msra.mxu0 %v13870_v32  ;;  %11083 = vmatprep.mubr.msk.bf16.mxu0 %vm172_vm2, %v17844_v63  ;;  %v2582_v1 = vadd.f32 %v10720_v53, %v13801_v25  ;;  %v14420_v15 = vadd.f32 %v3791_v20, %v2571_v36  ;;  %v17851_v36 = vld [vmem:[#allocation18_spill] sm:$0xff] }
 0x1fb   : > { %v3807_v40 = vpop.f32.mrf.mxu0  ;;  %v2573_v45 = vpop.f32.mrf.mxu1 }
 0x1fc   : > { %v2574_v3 = vadd.f32 %v2573_v45, %v13811_v62  ;;  %v14423_v55 = vadd.f32 %v10850_v26, %v2582_v1  ;;  %v17850_v26 = vld [vmem:[#allocation13_spill] sm:$0xff] }
 0x1fd   : > { %v10854_v7 = vpop.f32.mrf.mxu0  ;;  %v10723_v39 = vpop.f32.mrf.mxu1  ;;  %10950 = vmatmul.mubr.msk.bf16.vlgmr.msra.gmra.mxu1 %vm172_vm2, %v17845_v35 }
 0x1fe   : > { %v2595_v32 = vadd.f32 %v10723_v39, %v17846_v52  ;;  %11208 = vmatpush3.bf16.msra.mxu1 %v17847_v2  ;;  %10953 = vmatprep.mubr.msk.bf16.mxu1 %vm172_vm2, %v17848_v5  ;;  %v14431_v25 = vadd.f32 %v3794_v8, %v2574_v3  ;;  %v17854_v3 = vld [vmem:[#allocation170_spill] sm:$0xff] }
 0x1ff   : > { %v3810_v19 = vpop.f32.mrf.mxu0  ;;  %v2586_v20 = vpop.f32.mrf.mxu1 }
 0x200   : > { %v2587_v62 = vadd.f32 %v2586_v20, %v17849_v23  ;;  %v14436_v44 = vadd.f32 %v10853_v9, %v2595_v32  ;;  %v17856_v20 = vld [vmem:[#allocation30_spill] sm:$0xff]  ;;  %v17857_v9 = vld [vmem:[#allocation172_spill] sm:$0xff] }
 0x201   : > { %v10857_v59 = vpop.f32.mrf.mxu0  ;;  %11084 = vmatmul.mubr.msk.bf16.gmra.mxu0 %vm172_vm2, %v17850_v26  ;;  %v10724_v50 = vpop.f32.mrf.mxu1  ;;  %v17858_v26 = vld [vmem:[#allocation101_spill] sm:$0xff] }
 0x202   : > { %11087 = vmatprep.mubr.msk.bf16.mxu0 %vm172_vm2, %v17851_v36  ;;  %v2598_v53 = vadd.f32 %v10724_v50, %v17852_v46  ;;  %v14441_v45 = vadd.f32 %v3807_v40, %v2587_v62  ;;  %v17860_v62 = vld [vmem:[#allocation175_spill] sm:$0xff] }
 0x203   : > { %v3823_v1 = vpop.f32.mrf.mxu0  ;;  %v2589_v8 = vpop.f32.mrf.mxu1 }
 0x204   : > { %17853 = vst [vmem:[#allocation8_spill] sm:$0xff] %v14441_v45  ;;  %v2590_v39 = vadd.f32 %v2589_v8, %v17854_v3  ;;  %v14444_v52 = vadd.f32 %v10854_v7, %v2598_v53  ;;  %v17861_v8 = vld [vmem:[#allocation19_spill] sm:$0xff]  ;;  %v17863_v3 = vld [vmem:[#allocation22_spill] sm:$0xff] }
 0x205   : > { %v10858_v35 = vpop.f32.mrf.mxu0  ;;  %v10727_v2 = vpop.f32.mrf.mxu1  ;;  %10954 = vmatmul.mubr.msk.bf16.gmra.mxu1 %vm172_vm2, %v17856_v20  ;;  %v18061_v45 = vld [vmem:[#allocation198_spill] sm:$0xff] }
 0x206   : > { %17855 = vst [vmem:[#allocation9_spill] sm:$0xff] %v14444_v52  ;;  %v2611_v32 = vadd.f32 %v10727_v2, %v17857_v9  ;;  %10957 = vmatprep.mubr.msk.bf16.mxu1 %vm172_vm2, %v17858_v26  ;;  %v14451_v50 = vadd.f32 %v3810_v19, %v2590_v39  ;;  %v17864_v2 = vld [vmem:[#allocation178_spill] sm:$0xff] }
 0x207   : > { %v3826_v23 = vpop.f32.mrf.mxu0  ;;  %v2602_v40 = vpop.f32.mrf.mxu1  ;;  %v17866_v39 = vld [vmem:[#allocation182_spill] sm:$0xff] }
 0x208   : > { %17859 = vst [vmem:[#allocation17_spill] sm:$0xff] %v14451_v50  ;;  %v2603_v46 = vadd.f32 %v2602_v40, %v17860_v62  ;;  %v14456_v7 = vadd.f32 %v10857_v59, %v2611_v32  ;;  %v17868_v50 = vld [vmem:[#allocation104_spill] sm:$0xff] }
 0x209   : > { %v10861_v36 = vpop.f32.mrf.mxu0  ;;  %11088 = vmatmul.mubr.msk.bf16.gmra.mxu0 %vm172_vm2, %v17861_v8  ;;  %v10728_v53 = vpop.f32.mrf.mxu1  ;;  %v17869_v59 = vld [vmem:[#allocation184_spill] sm:$0xff] }
 0x20a   : > { %17862 = vst [vmem:[#allocation159_spill] sm:$0xff] %v14456_v7  ;;  %11091 = vmatprep.mubr.msk.bf16.mxu0 %vm172_vm2, %v17863_v3  ;;  %v2614_v9 = vadd.f32 %v10728_v53, %v17864_v2  ;;  %v14461_v33 = vadd.f32 %v3823_v1, %v2603_v46  ;;  %v17870_v7 = vld [vmem:[#allocation105_spill] sm:$0xff]  ;;  %v17872_v46 = vld [vmem:[#allocation187_spill] sm:$0xff] }
 0x20b   : > { %v3839_v63 = vpop.f32.mrf.mxu0  ;;  %v2605_v19 = vpop.f32.mrf.mxu1 }
 0x20c   : > { %17865 = vst [vmem:[#allocation169_spill] sm:$0xff] %v14461_v33  ;;  %v2606_v14 = vadd.f32 %v2605_v19, %v17866_v39  ;;  %v14464_v40 = vadd.f32 %v10858_v35, %v2614_v9  ;;  %v17873_v19 = vld [vmem:[#allocation23_spill] sm:$0xff] }
 0x20d   : > { %v10862_v42 = vpop.f32.mrf.mxu0  ;;  %v10731_v62 = vpop.f32.mrf.mxu1  ;;  %10958 = vmatmul.mubr.msk.bf16.gmra.mxu1 %vm172_vm2, %v17868_v50  ;;  %v17875_v39 = vld [vmem:[#allocation27_spill] sm:$0xff]  ;;  %v18051_v50 = vld [vmem:[#allocation188_spill] sm:$0xff] }
 0x20e   : > { %17867 = vst [vmem:[#allocation29_spill] sm:$0xff] %v14464_v40  ;;  %v2627_v32 = vadd.f32 %v10731_v62, %v17869_v59  ;;  %10961 = vmatprep.mubr.msk.bf16.mxu1 %vm172_vm2, %v17870_v7  ;;  %v14471_v53 = vadd.f32 %v3826_v23, %v2606_v14  ;;  %v17876_v62 = vld [vmem:[#allocation190_spill] sm:$0xff]  ;;  %v17880_v7 = vld [vmem:[#allocation108_spill] sm:$0xff] }
 0x20f   : > { %v3842_v8 = vpop.f32.mrf.mxu0  ;;  %v2618_v1 = vpop.f32.mrf.mxu1  ;;  %v17878_v23 = vld [vmem:[#allocation194_spill] sm:$0xff] }
 0x210   : > { %17871 = vst [vmem:[#allocation162_spill] sm:$0xff] %v14471_v53  ;;  %v2619_v2 = vadd.f32 %v2618_v1, %v17872_v46  ;;  %v14476_v35 = vadd.f32 %v10861_v36, %v2627_v32  ;;  %v17881_v36 = vld [vmem:[#allocation196_spill] sm:$0xff] }
 0x211   : > { %v10865_v3 = vpop.f32.mrf.mxu0  ;;  %11092 = vmatmul.mubr.msk.bf16.gmra.mxu0 %vm172_vm2, %v17873_v19  ;;  %v10732_v9 = vpop.f32.mrf.mxu1 }
 0x212   : > { %17874 = vst [vmem:[#allocation165_spill] sm:$0xff] %v14476_v35  ;;  %11095 = vmatprep.mubr.msk.bf16.mxu0 %vm172_vm2, %v17875_v39  ;;  %v2630_v59 = vadd.f32 %v10732_v9, %v17876_v62  ;;  %v14481_v33 = vadd.f32 %v3839_v63, %v2619_v2  ;;  %v17882_v35 = vld [vmem:[#allocation109_spill] sm:$0xff]  ;;  %v17884_v2 = vld [vmem:[#allocation199_spill] sm:$0xff] }
 0x213   : > { %v3855_v40 = vpop.f32.mrf.mxu0  ;;  %v2621_v14 = vpop.f32.mrf.mxu1 }
 0x214   : > { %17877 = vst [vmem:[#allocation170_spill] sm:$0xff] %v14481_v33  ;;  %v2622_v53 = vadd.f32 %v2621_v14, %v17878_v23  ;;  %v14484_v1 = vadd.f32 %v10862_v42, %v2630_v59  ;;  %v17885_v14 = vld [vmem:[#allocation31_spill] sm:$0xff]  ;;  %v17887_v23 = vld [vmem:[#allocation33_spill] sm:$0xff] }
 0x215   : > { %v10866_v52 = vpop.f32.mrf.mxu0  ;;  %v10735_v46 = vpop.f32.mrf.mxu1  ;;  %10962 = vmatmul.mubr.msk.bf16.gmra.mxu1 %vm172_vm2, %v17880_v7  ;;  %v17892_v7 = vld [vmem:[#allocation112_spill] sm:$0xff] }
 0x216   : > { %17879 = vst [vmem:[#allocation30_spill] sm:$0xff] %v14484_v1  ;;  %v2643_v32 = vadd.f32 %v10735_v46, %v17881_v36  ;;  %10965 = vmatprep.mubr.msk.bf16.mxu1 %vm172_vm2, %v17882_v35  ;;  %v14491_v9 = vadd.f32 %v3842_v8, %v2622_v53  ;;  %v17888_v46 = vld [vmem:[#allocation202_spill] sm:$0xff] }
 0x217   : > { %v3858_v19 = vpop.f32.mrf.mxu0  ;;  %v2634_v63 = vpop.f32.mrf.mxu1  ;;  %v17890_v53 = vld [vmem:[#allocation206_spill] sm:$0xff] }
 0x218   : > { %17883 = vst [vmem:[#allocation172_spill] sm:$0xff] %v14491_v9  ;;  %v2635_v62 = vadd.f32 %v2634_v63, %v17884_v2  ;;  %v14496_v42 = vadd.f32 %v10865_v3, %v2643_v32  ;;  %v17893_v3 = vld [vmem:[#allocation208_spill] sm:$0xff] }
 0x219   : > { %v10869_v39 = vpop.f32.mrf.mxu0  ;;  %11096 = vmatmul.mubr.msk.bf16.gmra.mxu0 %vm172_vm2, %v17885_v14  ;;  %v10736_v59 = vpop.f32.mrf.mxu1 }
 0x21a   : > { %17886 = vst [vmem:[#allocation101_spill] sm:$0xff] %v14496_v42  ;;  %11099 = vmatprep.mubr.msk.bf16.mxu0 %vm172_vm2, %v17887_v23  ;;  %v2646_v36 = vadd.f32 %v10736_v59, %v17888_v46  ;;  %v14501_v33 = vadd.f32 %v3855_v40, %v2635_v62  ;;  %v17894_v42 = vld [vmem:[#allocation113_spill] sm:$0xff]  ;;  %v17896_v62 = vld [vmem:[#allocation211_spill] sm:$0xff] }
 0x21b   : > { %v3871_v1 = vpop.f32.mrf.mxu0  ;;  %v2637_v8 = vpop.f32.mrf.mxu1 }
 0x21c   : > { %17889 = vst [vmem:[#allocation175_spill] sm:$0xff] %v14501_v33  ;;  %v2638_v9 = vadd.f32 %v2637_v8, %v17890_v53  ;;  %v14504_v63 = vadd.f32 %v10866_v52, %v2646_v36  ;;  %v17897_v8 = vld [vmem:[#allocation36_spill] sm:$0xff]  ;;  %v17899_v53 = vld [vmem:[#allocation37_spill] sm:$0xff] }
 0x21d   : > { %v10870_v35 = vpop.f32.mrf.mxu0  ;;  %v10739_v2 = vpop.f32.mrf.mxu1  ;;  %10966 = vmatmul.mubr.msk.bf16.gmra.mxu1 %vm172_vm2, %v17892_v7  ;;  %v17904_v7 = vld [vmem:[#allocation116_spill] sm:$0xff] }
 0x21e   : > { %17891 = vst [vmem:[#allocation178_spill] sm:$0xff] %v14504_v63  ;;  %v2659_v32 = vadd.f32 %v10739_v2, %v17893_v3  ;;  %10969 = vmatprep.mubr.msk.bf16.mxu1 %vm172_vm2, %v17894_v42  ;;  %v14511_v59 = vadd.f32 %v3858_v19, %v2638_v9  ;;  %v17900_v2 = vld [vmem:[#allocation214_spill] sm:$0xff] }
 0x21f   : > { %v3874_v14 = vpop.f32.mrf.mxu0  ;;  %v2650_v40 = vpop.f32.mrf.mxu1  ;;  %v17902_v9 = vld [vmem:[#allocation218_spill] sm:$0xff] }
 0x220   : > { %17895 = vst [vmem:[#allocation182_spill] sm:$0xff] %v14511_v59  ;;  %v2651_v46 = vadd.f32 %v2650_v40, %v17896_v62  ;;  %v14516_v52 = vadd.f32 %v10869_v39, %v2659_v32  ;;  %v17905_v39 = vld [vmem:[#allocation220_spill] sm:$0xff] }
 0x221   : > { %v10873_v23 = vpop.f32.mrf.mxu0  ;;  %11100 = vmatmul.mubr.msk.bf16.gmra.mxu0 %vm172_vm2, %v17897_v8  ;;  %v10740_v36 = vpop.f32.mrf.mxu1 }
 0x222   : > { %17898 = vst [vmem:[#allocation184_spill] sm:$0xff] %v14516_v52  ;;  %11103 = vmatprep.mubr.msk.bf16.mxu0 %vm172_vm2, %v17899_v53  ;;  %v2662_v3 = vadd.f32 %v10740_v36, %v17900_v2  ;;  %v14521_v33 = vadd.f32 %v3871_v1, %v2651_v46  ;;  %v17906_v52 = vld [vmem:[#allocation117_spill] sm:$0xff]  ;;  %v17908_v46 = vld [vmem:[#allocation223_spill] sm:$0xff] }
 0x223   : > { %v3887_v63 = vpop.f32.mrf.mxu0  ;;  %v2653_v19 = vpop.f32.mrf.mxu1 }
 0x224   : > { %17901 = vst [vmem:[#allocation187_spill] sm:$0xff] %v14521_v33  ;;  %v2654_v59 = vadd.f32 %v2653_v19, %v17902_v9  ;;  %v14524_v40 = vadd.f32 %v10870_v35, %v2662_v3  ;;  %v17909_v19 = vld [vmem:[#allocation40_spill] sm:$0xff]  ;;  %v17911_v9 = vld [vmem:[#allocation42_spill] sm:$0xff] }
 0x225   : > { %v10874_v42 = vpop.f32.mrf.mxu0  ;;  %v10743_v62 = vpop.f32.mrf.mxu1  ;;  %10970 = vmatmul.mubr.msk.bf16.gmra.mxu1 %vm172_vm2, %v17904_v7  ;;  %v17916_v7 = vld [vmem:[#allocation120_spill] sm:$0xff] }
 0x226   : > { %17903 = vst [vmem:[#allocation190_spill] sm:$0xff] %v14524_v40  ;;  %v2675_v32 = vadd.f32 %v10743_v62, %v17905_v39  ;;  %10973 = vmatprep.mubr.msk.bf16.mxu1 %vm172_vm2, %v17906_v52  ;;  %v14531_v36 = vadd.f32 %v3874_v14, %v2654_v59  ;;  %v17912_v62 = vld [vmem:[#allocation226_spill] sm:$0xff] }
 0x227   : > { %v3890_v8 = vpop.f32.mrf.mxu0  ;;  %v2666_v1 = vpop.f32.mrf.mxu1  ;;  %v17914_v59 = vld [vmem:[#allocation230_spill] sm:$0xff] }
 0x228   : > { %17907 = vst [vmem:[#allocation194_spill] sm:$0xff] %v14531_v36  ;;  %v2667_v2 = vadd.f32 %v2666_v1, %v17908_v46  ;;  %v14536_v35 = vadd.f32 %v10873_v23, %v2675_v32  ;;  %v17917_v23 = vld [vmem:[#allocation232_spill] sm:$0xff] }
 0x229   : > { %v10877_v53 = vpop.f32.mrf.mxu0  ;;  %11104 = vmatmul.mubr.msk.bf16.gmra.mxu0 %vm172_vm2, %v17909_v19  ;;  %v10744_v3 = vpop.f32.mrf.mxu1 }
 0x22a   : > { %17910 = vst [vmem:[#allocation196_spill] sm:$0xff] %v14536_v35  ;;  %11107 = vmatprep.mubr.msk.bf16.mxu0 %vm172_vm2, %v17911_v9  ;;  %v2678_v39 = vadd.f32 %v10744_v3, %v17912_v62  ;;  %v14541_v33 = vadd.f32 %v3887_v63, %v2667_v2  ;;  %v17918_v35 = vld [vmem:[#allocation121_spill] sm:$0xff]  ;;  %v17920_v2 = vld [vmem:[#allocation235_spill] sm:$0xff] }
 0x22b   : > { %v3903_v40 = vpop.f32.mrf.mxu0  ;;  %v2669_v14 = vpop.f32.mrf.mxu1 }
 0x22c   : > { %17913 = vst [vmem:[#allocation199_spill] sm:$0xff] %v14541_v33  ;;  %v2670_v36 = vadd.f32 %v2669_v14, %v17914_v59  ;;  %v14544_v1 = vadd.f32 %v10874_v42, %v2678_v39  ;;  %v17921_v14 = vld [vmem:[#allocation45_spill] sm:$0xff]  ;;  %v17923_v59 = vld [vmem:[#allocation46_spill] sm:$0xff] }
 0x22d   : > { %v10878_v52 = vpop.f32.mrf.mxu0  ;;  %v10747_v46 = vpop.f32.mrf.mxu1  ;;  %10974 = vmatmul.mubr.msk.bf16.gmra.mxu1 %vm172_vm2, %v17916_v7  ;;  %v17928_v7 = vld [vmem:[#allocation123_spill] sm:$0xff] }
 0x22e   : > { %17915 = vst [vmem:[#allocation202_spill] sm:$0xff] %v14544_v1  ;;  %v2691_v32 = vadd.f32 %v10747_v46, %v17917_v23  ;;  %10977 = vmatprep.mubr.msk.bf16.mxu1 %vm172_vm2, %v17918_v35  ;;  %v14551_v3 = vadd.f32 %v3890_v8, %v2670_v36  ;;  %v17924_v46 = vld [vmem:[#allocation238_spill] sm:$0xff] }
 0x22f   : > { %v3906_v19 = vpop.f32.mrf.mxu0  ;;  %v2682_v63 = vpop.f32.mrf.mxu1  ;;  %v17926_v36 = vld [vmem:[#allocation242_spill] sm:$0xff] }
 0x230   : > { %17919 = vst [vmem:[#allocation206_spill] sm:$0xff] %v14551_v3  ;;  %v2683_v62 = vadd.f32 %v2682_v63, %v17920_v2  ;;  %v14556_v42 = vadd.f32 %v10877_v53, %v2691_v32  ;;  %v17929_v53 = vld [vmem:[#allocation244_spill] sm:$0xff] }
 0x231   : > { %v10881_v9 = vpop.f32.mrf.mxu0  ;;  %11108 = vmatmul.mubr.msk.bf16.gmra.mxu0 %vm172_vm2, %v17921_v14  ;;  %v10748_v39 = vpop.f32.mrf.mxu1 }
 0x232   : > { %17922 = vst [vmem:[#allocation208_spill] sm:$0xff] %v14556_v42  ;;  %11111 = vmatprep.mubr.msk.bf16.mxu0 %vm172_vm2, %v17923_v59  ;;  %v2694_v23 = vadd.f32 %v10748_v39, %v17924_v46  ;;  %v14561_v33 = vadd.f32 %v3903_v40, %v2683_v62  ;;  %v17930_v42 = vld [vmem:[#allocation124_spill] sm:$0xff]  ;;  %v17932_v62 = vld [vmem:[#allocation247_spill] sm:$0xff] }
 0x233   : > { %v3919_v1 = vpop.f32.mrf.mxu0  ;;  %v2685_v8 = vpop.f32.mrf.mxu1 }
 0x234   : > { %17925 = vst [vmem:[#allocation211_spill] sm:$0xff] %v14561_v33  ;;  %v2686_v3 = vadd.f32 %v2685_v8, %v17926_v36  ;;  %v14564_v63 = vadd.f32 %v10878_v52, %v2694_v23  ;;  %v17933_v8 = vld [vmem:[#allocation49_spill] sm:$0xff]  ;;  %v17935_v36 = vld [vmem:[#allocation51_spill] sm:$0xff] }
 0x235   : > { %v10882_v35 = vpop.f32.mrf.mxu0  ;;  %v10751_v2 = vpop.f32.mrf.mxu1  ;;  %10978 = vmatmul.mubr.msk.bf16.gmra.mxu1 %vm172_vm2, %v17928_v7  ;;  %v17940_v7 = vld [vmem:[#allocation83_spill] sm:$0xff] }
 0x236   : > { %17927 = vst [vmem:[#allocation214_spill] sm:$0xff] %v14564_v63  ;;  %v2707_v32 = vadd.f32 %v10751_v2, %v17929_v53  ;;  %10981 = vmatprep.mubr.msk.bf16.mxu1 %vm172_vm2, %v17930_v42  ;;  %v14571_v39 = vadd.f32 %v3906_v19, %v2686_v3  ;;  %v17936_v2 = vld [vmem:[#allocation250_spill] sm:$0xff] }
 0x237   : > { %v3922_v14 = vpop.f32.mrf.mxu0  ;;  %v2698_v40 = vpop.f32.mrf.mxu1  ;;  %v17938_v3 = vld [vmem:[#allocation254_spill] sm:$0xff] }
 0x238   : > { %17931 = vst [vmem:[#allocation218_spill] sm:$0xff] %v14571_v39  ;;  %v2699_v46 = vadd.f32 %v2698_v40, %v17932_v62  ;;  %v14576_v52 = vadd.f32 %v10881_v9, %v2707_v32  ;;  %v17941_v9 = vld [vmem:[#allocation125_spill] sm:$0xff] }
 0x239   : > { %v10885_v59 = vpop.f32.mrf.mxu0  ;;  %11112 = vmatmul.mubr.msk.bf16.gmra.mxu0 %vm172_vm2, %v17933_v8  ;;  %v10752_v23 = vpop.f32.mrf.mxu1 }
 0x23a   : > { %17934 = vst [vmem:[#allocation220_spill] sm:$0xff] %v14576_v52  ;;  %11115 = vmatprep.mubr.msk.bf16.mxu0 %vm172_vm2, %v17935_v36  ;;  %v2710_v53 = vadd.f32 %v10752_v23, %v17936_v2  ;;  %v14581_v33 = vadd.f32 %v3919_v1, %v2699_v46  ;;  %v17942_v52 = vld [vmem:[#allocation86_spill] sm:$0xff] }
 0x23b   : > { %v3935_v63 = vpop.f32.mrf.mxu0  ;;  %v2701_v19 = vpop.f32.mrf.mxu1  ;;  %v17944_v46 = vld [vmem:[#allocation126_spill] sm:$0xff] }
 0x23c   : > { %17937 = vst [vmem:[#allocation223_spill] sm:$0xff] %v14581_v33  ;;  %v2702_v39 = vadd.f32 %v2701_v19, %v17938_v3  ;;  %v14584_v40 = vadd.f32 %v10882_v35, %v2710_v53  ;;  %v17945_v19 = vld [vmem:[#allocation54_spill] sm:$0xff]  ;;  %v17947_v3 = vld [vmem:[#allocation55_spill] sm:$0xff] }
 0x23d   : > { %v10886_v42 = vpop.f32.mrf.mxu0  ;;  %v10755_v62 = vpop.f32.mrf.mxu1  ;;  %10982 = vmatmul.mubr.msk.bf16.gmra.mxu1 %vm172_vm2, %v17940_v7  ;;  %v17952_v7 = vld [vmem:[#allocation87_spill] sm:$0xff] }
 0x23e   : > { %17939 = vst [vmem:[#allocation226_spill] sm:$0xff] %v14584_v40  ;;  %v2723_v32 = vadd.f32 %v10755_v62, %v17941_v9  ;;  %10985 = vmatprep.mubr.msk.bf16.mxu1 %vm172_vm2, %v17942_v52  ;;  %v14591_v23 = vadd.f32 %v3922_v14, %v2702_v39  ;;  %v17948_v62 = vld [vmem:[#allocation127_spill] sm:$0xff]  ;;  %v17950_v39 = vld [vmem:[#allocation128_spill] sm:$0xff] }
 0x23f   : > { %v3938_v8 = vpop.f32.mrf.mxu0  ;;  %v2714_v1 = vpop.f32.mrf.mxu1 }
 0x240   : > { %17943 = vst [vmem:[#allocation230_spill] sm:$0xff] %v14591_v23  ;;  %v2715_v2 = vadd.f32 %v2714_v1, %v17944_v46  ;;  %v14596_v35 = vadd.f32 %v10885_v59, %v2723_v32  ;;  %v17953_v59 = vld [vmem:[#allocation129_spill] sm:$0xff] }
 0x241   : > { %v10889_v36 = vpop.f32.mrf.mxu0  ;;  %11116 = vmatmul.mubr.msk.bf16.gmra.mxu0 %vm172_vm2, %v17945_v19  ;;  %v10756_v53 = vpop.f32.mrf.mxu1 }
 0x242   : > { %17946 = vst [vmem:[#allocation232_spill] sm:$0xff] %v14596_v35  ;;  %11119 = vmatprep.mubr.msk.bf16.mxu0 %vm172_vm2, %v17947_v3  ;;  %v2726_v9 = vadd.f32 %v10756_v53, %v17948_v62  ;;  %v14601_v33 = vadd.f32 %v3935_v63, %v2715_v2  ;;  %v17954_v35 = vld [vmem:[#allocation90_spill] sm:$0xff] }
 0x243   : > { %v3951_v40 = vpop.f32.mrf.mxu0  ;;  %v2717_v14 = vpop.f32.mrf.mxu1  ;;  %v17956_v2 = vld [vmem:[#allocation130_spill] sm:$0xff] }
 0x244   : > { %17949 = vst [vmem:[#allocation235_spill] sm:$0xff] %v14601_v33  ;;  %v2718_v23 = vadd.f32 %v2717_v14, %v17950_v39  ;;  %v14604_v1 = vadd.f32 %v10886_v42, %v2726_v9  ;;  %v17957_v14 = vld [vmem:[#allocation58_spill] sm:$0xff]  ;;  %v17959_v39 = vld [vmem:[#allocation60_spill] sm:$0xff] }
 0x245   : > { %v10890_v52 = vpop.f32.mrf.mxu0  ;;  %v10759_v46 = vpop.f32.mrf.mxu1  ;;  %10986 = vmatmul.mubr.msk.bf16.gmra.mxu1 %vm172_vm2, %v17952_v7  ;;  %v17964_v7 = vld [vmem:[#allocation91_spill] sm:$0xff] }
 0x246   : > { %17951 = vst [vmem:[#allocation238_spill] sm:$0xff] %v14604_v1  ;;  %v2739_v32 = vadd.f32 %v10759_v46, %v17953_v59  ;;  %10989 = vmatprep.mubr.msk.bf16.mxu1 %vm172_vm2, %v17954_v35  ;;  %v14611_v53 = vadd.f32 %v3938_v8, %v2718_v23  ;;  %v17960_v46 = vld [vmem:[#allocation131_spill] sm:$0xff]  ;;  %v17962_v23 = vld [vmem:[#allocation132_spill] sm:$0xff] }
 0x247   : > { %v3954_v19 = vpop.f32.mrf.mxu0  ;;  %v2730_v63 = vpop.f32.mrf.mxu1 }
 0x248   : > { %17955 = vst [vmem:[#allocation242_spill] sm:$0xff] %v14611_v53  ;;  %v2731_v62 = vadd.f32 %v2730_v63, %v17956_v2  ;;  %v14616_v42 = vadd.f32 %v10889_v36, %v2739_v32  ;;  %v17965_v36 = vld [vmem:[#allocation133_spill] sm:$0xff] }
 0x249   : > { %v10893_v3 = vpop.f32.mrf.mxu0  ;;  %11120 = vmatmul.mubr.msk.bf16.gmra.mxu0 %vm172_vm2, %v17957_v14  ;;  %v10760_v9 = vpop.f32.mrf.mxu1 }
 0x24a   : > { %17958 = vst [vmem:[#allocation244_spill] sm:$0xff] %v14616_v42  ;;  %11123 = vmatprep.mubr.msk.bf16.mxu0 %vm172_vm2, %v17959_v39  ;;  %v2742_v59 = vadd.f32 %v10760_v9, %v17960_v46  ;;  %v14621_v33 = vadd.f32 %v3951_v40, %v2731_v62  ;;  %v17966_v42 = vld [vmem:[#allocation94_spill] sm:$0xff] }
 0x24b   : > { %v3967_v1 = vpop.f32.mrf.mxu0  ;;  %v2733_v8 = vpop.f32.mrf.mxu1  ;;  %v17968_v62 = vld [vmem:[#allocation134_spill] sm:$0xff] }
 0x24c   : > { %17961 = vst [vmem:[#allocation247_spill] sm:$0xff] %v14621_v33  ;;  %v2734_v53 = vadd.f32 %v2733_v8, %v17962_v23  ;;  %v14624_v63 = vadd.f32 %v10890_v52, %v2742_v59  ;;  %v17969_v8 = vld [vmem:[#allocation65_spill] sm:$0xff]  ;;  %v17971_v23 = vld [vmem:[#allocation66_spill] sm:$0xff] }
 0x24d   : > { %v10894_v35 = vpop.f32.mrf.mxu0  ;;  %v10763_v2 = vpop.f32.mrf.mxu1  ;;  %10990 = vmatmul.mubr.msk.bf16.gmra.mxu1 %vm172_vm2, %v17964_v7  ;;  %v17976_v7 = vld [vmem:[#allocation95_spill] sm:$0xff] }
 0x24e   : > { %17963 = vst [vmem:[#allocation250_spill] sm:$0xff] %v14624_v63  ;;  %v2755_v32 = vadd.f32 %v10763_v2, %v17965_v36  ;;  %10993 = vmatprep.mubr.msk.bf16.mxu1 %vm172_vm2, %v17966_v42  ;;  %v14631_v9 = vadd.f32 %v3954_v19, %v2734_v53  ;;  %v17972_v2 = vld [vmem:[#allocation135_spill] sm:$0xff]  ;;  %v17974_v53 = vld [vmem:[#allocation136_spill] sm:$0xff] }
 0x24f   : > { %v3970_v14 = vpop.f32.mrf.mxu0  ;;  %v2746_v40 = vpop.f32.mrf.mxu1 }
 0x250   : > { %17967 = vst [vmem:[#allocation254_spill] sm:$0xff] %v14631_v9  ;;  %v2747_v46 = vadd.f32 %v2746_v40, %v17968_v62  ;;  %v14636_v52 = vadd.f32 %v10893_v3, %v2755_v32  ;;  %v17977_v3 = vld [vmem:[#allocation137_spill] sm:$0xff] }
 0x251   : > { %v10897_v39 = vpop.f32.mrf.mxu0  ;;  %11124 = vmatmul.mubr.msk.bf16.gmra.mxu0 %vm172_vm2, %v17969_v8  ;;  %v10764_v59 = vpop.f32.mrf.mxu1 }
 0x252   : > { %17970 = vst [vmem:[#allocation125_spill] sm:$0xff] %v14636_v52  ;;  %11127 = vmatprep.mubr.msk.bf16.mxu0 %vm172_vm2, %v17971_v23  ;;  %v2758_v36 = vadd.f32 %v10764_v59, %v17972_v2  ;;  %v14641_v33 = vadd.f32 %v3967_v1, %v2747_v46  ;;  %v17978_v52 = vld [vmem:[#allocation98_spill] sm:$0xff] }
 0x253   : > { %v3983_v63 = vpop.f32.mrf.mxu0  ;;  %v2749_v19 = vpop.f32.mrf.mxu1  ;;  %v17980_v46 = vld [vmem:[#allocation138_spill] sm:$0xff] }
 0x254   : > { %17973 = vst [vmem:[#allocation126_spill] sm:$0xff] %v14641_v33  ;;  %v2750_v9 = vadd.f32 %v2749_v19, %v17974_v53  ;;  %v14644_v40 = vadd.f32 %v10894_v35, %v2758_v36  ;;  %v17981_v19 = vld [vmem:[#allocation73_spill] sm:$0xff]  ;;  %v17983_v53 = vld [vmem:[#allocation74_spill] sm:$0xff] }
 0x255   : > { %v10898_v42 = vpop.f32.mrf.mxu0  ;;  %v10767_v62 = vpop.f32.mrf.mxu1  ;;  %10994 = vmatmul.mubr.msk.bf16.gmra.mxu1 %vm172_vm2, %v17976_v7  ;;  %v18012_v7 = vld [vmem:[#allocation59_spill] sm:$0xff] }
 0x256   : > { %17975 = vst [vmem:[#allocation127_spill] sm:$0xff] %v14644_v40  ;;  %v2771_v32 = vadd.f32 %v10767_v62, %v17977_v3  ;;  %10997 = vmatprep.mubr.msk.bf16.mxu1 %vm172_vm2, %v17978_v52  ;;  %v14651_v59 = vadd.f32 %v3970_v14, %v2750_v9  ;;  %v17984_v62 = vld [vmem:[#allocation139_spill] sm:$0xff]  ;;  %v17986_v9 = vld [vmem:[#allocation140_spill] sm:$0xff] }
 0x257   : > { %v3986_v8 = vpop.f32.mrf.mxu0  ;;  %v2762_v1 = vpop.f32.mrf.mxu1 }
 0x258   : > { %17979 = vst [vmem:[#allocation128_spill] sm:$0xff] %v14651_v59  ;;  %v2763_v2 = vadd.f32 %v2762_v1, %v17980_v46  ;;  %v14656_v35 = vadd.f32 %v10897_v39, %v2771_v32  ;;  %v17989_v39 = vld [vmem:[#allocation141_spill] sm:$0xff] }
 0x259   : > { %v10901_v23 = vpop.f32.mrf.mxu0  ;;  %11128 = vmatmul.mubr.msk.bf16.gmra.mxu0 %vm172_vm2, %v17981_v19  ;;  %v10768_v36 = vpop.f32.mrf.mxu1  ;;  %v17988_v19 = vld [vmem:[#allocation99_spill] sm:$0xff] }
 0x25a   : > { %17982 = vst [vmem:[#allocation129_spill] sm:$0xff] %v14656_v35  ;;  %11131 = vmatprep.mubr.msk.bf16.mxu0 %vm172_vm2, %v17983_v53  ;;  %v2774_v3 = vadd.f32 %v10768_v36, %v17984_v62  ;;  %v14661_v33 = vadd.f32 %v3983_v63, %v2763_v2  ;;  %v17990_v36 = vld [vmem:[#allocation64_spill] sm:$0xff]  ;;  %v17992_v62 = vld [vmem:[#allocation142_spill] sm:$0xff] }
 0x25b   : > { %v3999_v40 = vpop.f32.mrf.mxu0  ;;  %v2765_v14 = vpop.f32.mrf.mxu1 }
 0x25c   : > { %17985 = vst [vmem:[#allocation130_spill] sm:$0xff] %v14661_v33  ;;  %v2766_v59 = vadd.f32 %v2765_v14, %v17986_v9  ;;  %v14664_v1 = vadd.f32 %v10898_v42, %v2774_v3  ;;  %v17993_v3 = vld [vmem:[#allocation77_spill] sm:$0xff]  ;;  %v17995_v33 = vld [vmem:[#allocation78_spill] sm:$0xff] }
 0x25d   : > { %v10902_v52 = vpop.f32.mrf.mxu0  ;;  %v10771_v46 = vpop.f32.mrf.mxu1  ;;  %10998 = vmatmul.mubr.msk.bf16.gmra.mxu1 %vm172_vm2, %v17988_v19  ;;  %v18005_v19 = vld [vmem:[#allocation81_spill] sm:$0xff] }
 0x25e   : > { %17987 = vst [vmem:[#allocation131_spill] sm:$0xff] %v14664_v1  ;;  %v2787_v32 = vadd.f32 %v10771_v46, %v17989_v39  ;;  %11001 = vmatprep.mubr.msk.bf16.mxu1 %vm172_vm2, %v17990_v36  ;;  %v14671_v63 = vadd.f32 %v3986_v8, %v2766_v59  ;;  %v17996_v46 = vld [vmem:[#allocation143_spill] sm:$0xff]  ;;  %v468_v36 = vld [vmem:[%s12274_s24 + $0x3e0] sm:$0xff]  ;;  %v469_v8 = vld [vmem:[%s12274_s24 + $0x3e8] sm:$0xff] }
 0x25f   : > { %v4002_v53 = vpop.f32.mrf.mxu0  ;;  %v2778_v2 = vpop.f32.mrf.mxu1  ;;  %v470_v59 = vld [vmem:[%s12274_s24 + $0x3f0] sm:$0xff]  ;;  %597 = vst.msk [vmem:[#allocation2 + $0x501] sm:$0xff] %vm172_vm2, %v468_v36  ;;  %598 = vst.msk [vmem:[#allocation2 + $0x509] sm:$0xff] %vm172_vm2, %v469_v8  ;;  %v18002_v36 = vld [vmem:[#allocation70_spill] sm:$0xff] }
 0x260   : > { %17991 = vst [vmem:[#allocation132_spill] sm:$0xff] %v14671_v63  ;;  %v2779_v14 = vadd.f32 %v2778_v2, %v17992_v62  ;;  %v14676_v9 = vadd.f32 %v10901_v23, %v2787_v32  ;;  %599 = vst.msk [vmem:[#allocation2 + $0x511] sm:$0xff] %vm172_vm2, %v470_v59  ;;  %v471_v23 = vld [vmem:[%s12274_s24 + $0x3f8] sm:$0xff] }
 0x261   : > { %v10905_v42 = vpop.f32.mrf.mxu0  ;;  %11132 = vmatmul.mubr.msk.bf16.gmra.mxu0 %vm172_vm2, %v17993_v3  ;;  %v10772_v1 = vpop.f32.mrf.mxu1  ;;  %v17998_v32 = vld [vmem:[#allocation144_spill] sm:$0xff]  ;;  %600 = vst.msk [vmem:[#allocation2 + $0x519] sm:$0xff] %vm172_vm2, %v471_v23  ;;  %v18007_v23 = vld [vmem:[#allocation6_spill] sm:$0xff] }
 0x262   : > { %17994 = vst [vmem:[#allocation133_spill] sm:$0xff] %v14676_v9  ;;  %11135 = vmatprep.mubr.msk.bf16.mxu0 %vm172_vm2, %v17995_v33  ;;  %v2790_v39 = vadd.f32 %v10772_v1, %v17996_v46  ;;  %v14684_v63 = vadd.f32 %v3999_v40, %v2779_v14  ;;  %v18000_v33 = vld [vmem:[#allocation69_spill] sm:$0xff]  ;;  %v18004_v9 = vld [vmem:[#allocation146_spill] sm:$0xff] }
 0x263   : > { %v4015_v35 = vpop.f32.mrf.mxu0  ;;  %v2781_v2 = vpop.f32.mrf.mxu1  ;;  %v18001_v40 = vld [vmem:[#allocation145_spill] sm:$0xff] }
 0x264   : > { %17997 = vst [vmem:[#allocation134_spill] sm:$0xff] %v14684_v63  ;;  %v2782_v62 = vadd.f32 %v2781_v2, %v17998_v32  ;;  %v14692_v1 = vadd.f32 %v10902_v52, %v2790_v39 }
 0x265   : > { %v10906_v3 = vpop.f32.mrf.mxu0  ;;  %v10775_v46 = vpop.f32.mrf.mxu1  ;;  %11002 = vmatmul.mubr.msk.bf16.gmra.mxu1 %vm172_vm2, %v18000_v33 }
 0x266   : > { %17999 = vst [vmem:[#allocation135_spill] sm:$0xff] %v14692_v1  ;;  %v2803_v14 = vadd.f32 %v10775_v46, %v18001_v40  ;;  %11005 = vmatprep.mubr.msk.bf16.mxu1 %vm172_vm2, %v18002_v36  ;;  %v14699_v8 = vadd.f32 %v4002_v53, %v2782_v62  ;;  %v18008_v46 = vld [vmem:[#allocation147_spill] sm:$0xff]  ;;  %v18010_v62 = vld [vmem:[#allocation148_spill] sm:$0xff] }
 0x267   : > { %v4018_v63 = vpop.f32.mrf.mxu0  ;;  %v2794_v59 = vpop.f32.mrf.mxu1 }
 0x268   : > { %18003 = vst [vmem:[#allocation136_spill] sm:$0xff] %v14699_v8  ;;  %v2795_v2 = vadd.f32 %v2794_v59, %v18004_v9  ;;  %v14704_v52 = vadd.f32 %v10905_v42, %v2803_v14  ;;  %v18013_v42 = vld [vmem:[#allocation149_spill] sm:$0xff] }
 0x269   : > { %v10909_v32 = vpop.f32.mrf.mxu0  ;;  %11136 = vmatmul.mubr.msk.bf16.gmra.mxu0 %vm172_vm2, %v18005_v19  ;;  %v10776_v39 = vpop.f32.mrf.mxu1 }
 0x26a   : > { %18006 = vst [vmem:[#allocation137_spill] sm:$0xff] %v14704_v52  ;;  %11139 = vmatprep.mubr.msk.bf16.mxu0 %vm172_vm2, %v18007_v23  ;;  %v2806_v40 = vadd.f32 %v10776_v39, %v18008_v46  ;;  %v14709_v33 = vadd.f32 %v4015_v35, %v2795_v2  ;;  %v18014_v52 = vld [vmem:[#allocation153_spill] sm:$0xff]  ;;  %v18016_v35 = vld [vmem:[#allocation151_spill] sm:$0xff] }
 0x26b   : > { %v4031_v1 = vpop.f32.mrf.mxu0  ;;  %v2797_v53 = vpop.f32.mrf.mxu1 }
 0x26c   : > { %18009 = vst [vmem:[#allocation138_spill] sm:$0xff] %v14709_v33  ;;  %v2798_v8 = vadd.f32 %v2797_v53, %v18010_v62  ;;  %v14712_v9 = vadd.f32 %v10906_v3, %v2806_v40  ;;  %v18017_v53 = vld [vmem:[#allocation7_spill] sm:$0xff]  ;;  %v18019_v62 = vld [vmem:[#allocation10_spill] sm:$0xff] }
 0x26d   : > { %v10910_v36 = vpop.f32.mrf.mxu0  ;;  %v10779_v59 = vpop.f32.mrf.mxu1  ;;  %11006 = vmatmul.mubr.msk.bf16.gmra.mxu1 %vm172_vm2, %v18012_v7  ;;  %v18024_v7 = vld [vmem:[#allocation161_spill] sm:$0xff] }
 0x26e   : > { %18011 = vst [vmem:[#allocation139_spill] sm:$0xff] %v14712_v9  ;;  %v2819_v14 = vadd.f32 %v10779_v59, %v18013_v42  ;;  %11009 = vmatprep.mubr.msk.bf16.mxu1 %vm172_vm2, %v18014_v52  ;;  %v14719_v46 = vadd.f32 %v4018_v63, %v2798_v8  ;;  %v18020_v59 = vld [vmem:[#allocation152_spill] sm:$0xff]  ;;  %v18022_v63 = vld [vmem:[#allocation154_spill] sm:$0xff] }
 0x26f   : > { %v4034_v19 = vpop.f32.mrf.mxu0  ;;  %v2810_v39 = vpop.f32.mrf.mxu1 }
 0x270   : > { %18015 = vst [vmem:[#allocation140_spill] sm:$0xff] %v14719_v46  ;;  %v2811_v2 = vadd.f32 %v2810_v39, %v18016_v35  ;;  %v14724_v3 = vadd.f32 %v10909_v32, %v2819_v14  ;;  %v18025_v32 = vld [vmem:[#allocation156_spill] sm:$0xff] }
 0x271   : > { %v10913_v23 = vpop.f32.mrf.mxu0  ;;  %11140 = vmatmul.mubr.msk.bf16.gmra.mxu0 %vm172_vm2, %v18017_v53  ;;  %v10780_v40 = vpop.f32.mrf.mxu1 }
 0x272   : > { %18018 = vst [vmem:[#allocation141_spill] sm:$0xff] %v14724_v3  ;;  %11143 = vmatprep.mubr.msk.bf16.mxu0 %vm172_vm2, %v18019_v62  ;;  %v2822_v42 = vadd.f32 %v10780_v40, %v18020_v59  ;;  %v14729_v33 = vadd.f32 %v4031_v1, %v2811_v2  ;;  %v18026_v3 = vld [vmem:[#allocation163_spill] sm:$0xff]  ;;  %v18028_v2 = vld [vmem:[#allocation158_spill] sm:$0xff] }
 0x273   : > { %v4047_v9 = vpop.f32.mrf.mxu0  ;;  %v2813_v52 = vpop.f32.mrf.mxu1 }
 0x274   : > { %18021 = vst [vmem:[#allocation142_spill] sm:$0xff] %v14729_v33  ;;  %v2814_v8 = vadd.f32 %v2813_v52, %v18022_v63  ;;  %v14732_v39 = vadd.f32 %v10910_v36, %v2822_v42  ;;  %v18029_v52 = vld [vmem:[#allocation11_spill] sm:$0xff]  ;;  %v18031_v63 = vld [vmem:[#allocation14_spill] sm:$0xff] }
 0x275   : > { %v10914_v46 = vpop.f32.mrf.mxu0  ;;  %v10783_v35 = vpop.f32.mrf.mxu1  ;;  %11010 = vmatmul.mubr.msk.bf16.gmra.mxu1 %vm172_vm2, %v18024_v7 }
 0x276   : > { %18023 = vst [vmem:[#allocation143_spill] sm:$0xff] %v14732_v39  ;;  %v2835_v14 = vadd.f32 %v10783_v35, %v18025_v32  ;;  %11013 = vmatprep.mubr.msk.bf16.mxu1 %vm172_vm2, %v18026_v3  ;;  %v14739_v40 = vadd.f32 %v4034_v19, %v2814_v8  ;;  %v18032_v35 = vld [vmem:[#allocation160_spill] sm:$0xff] }
 0x277   : > { %v4050_v53 = vpop.f32.mrf.mxu0  ;;  %v2826_v1 = vpop.f32.mrf.mxu1  ;;  %v18034_v8 = vld [vmem:[#allocation164_spill] sm:$0xff] }
 0x278   : > { %18027 = vst [vmem:[#allocation144_spill] sm:$0xff] %v14739_v40  ;;  %v2827_v59 = vadd.f32 %v2826_v1, %v18028_v2  ;;  %v14744_v36 = vadd.f32 %v10913_v23, %v2835_v14  ;;  %v778_v1 = vld [vmem:[%s17139_s1 + $0xe] sm:$0x3] }
 0x279   : > { %v10917_v62 = vpop.f32.mrf.mxu0  ;;  %11144 = vmatmul.mubr.msk.bf16.gmra.mxu0 %vm172_vm2, %v18029_v52  ;;  %v10784_v42 = vpop.f32.mrf.mxu1  ;;  %v18036_v14 = vld [vmem:[#allocation174_spill] sm:$0xff] }
 0x27a   : > { %18030 = vst [vmem:[#allocation145_spill] sm:$0xff] %v14744_v36  ;;  %11147 = vmatprep.mubr.msk.bf16.mxu0 %vm172_vm2, %v18031_v63  ;;  %v2838_v32 = vadd.f32 %v10784_v42, %v18032_v35  ;;  %v14749_v33 = vadd.f32 %v4047_v9, %v2827_v59  ;;  %v18037_v63 = vld [vmem:[#allocation3_spill] sm:$0xff]  ;;  %v18039_v35 = vld [vmem:[#allocation176_spill] sm:$0xff] }
 0x27b   : > { %v4063_v39 = vpop.f32.mrf.mxu0  ;;  %v2829_v19 = vpop.f32.mrf.mxu1  ;;  %v14760_v52 = vand.u32 %v18037_v63, %v778_v1  ;;  %v18038_v42 = vld [vmem:[#allocation167_spill] sm:$0xff] }
 0x27c   : > { %18033 = vst [vmem:[#allocation146_spill] sm:$0xff] %v14749_v33  ;;  %v2830_v40 = vadd.f32 %v2829_v19, %v18034_v8  ;;  %v14755_v2 = vadd.f32 %v10914_v46, %v2838_v32  ;;  %v779_v19 = vld [vmem:[%s17139_s1 + $0x10] sm:$0x3] }
 0x27d   : > { %v10918_v3 = vpop.f32.mrf.mxu0  ;;  %v10787_v23 = vpop.f32.mrf.mxu1  ;;  %11014 = vmatmul.mubr.msk.bf16.gmra.mxu1 %vm172_vm2, %v18036_v14  ;;  %11467 = vmatprep.subr.bf16.mxu1 %v14760_v52  ;;  %v14772_v32 = vand.u32 %v18037_v63, %v779_v19  ;;  %v18041_v1 = vld [vmem:[#allocation171_spill] sm:$0xff]  ;;  %v18047_v19 = vld [vmem:[#allocation177_spill] sm:$0xff] }
 0x27e   : > { %18035 = vst [vmem:[#allocation147_spill] sm:$0xff] %v14755_v2  ;;  %v2851_v9 = vadd.f32 %v10787_v23, %v18038_v42  ;;  %11017 = vmatprep.mubr.msk.bf16.mxu1 %vm172_vm2, %v18039_v35  ;;  %v14768_v8 = vadd.f32 %v4050_v53, %v2830_v40  ;;  %v18042_v23 = vld [vmem:[#allocation15_spill] sm:$0xff]  ;;  %v18044_v35 = vld [vmem:[#allocation20_spill] sm:$0xff]  ;;  %v18045_v53 = vld [vmem:[#allocation173_spill] sm:$0xff] }
 0x27f   : > { %v4066_v59 = vpop.f32.mrf.mxu0  ;;  %v2842_v46 = vpop.f32.mrf.mxu1  ;;  %11597 = vmatprep.subr.bf16.mxu0 %v14772_v32 }
 0x280   : > { %18040 = vst [vmem:[#allocation148_spill] sm:$0xff] %v14768_v8  ;;  %v2843_v2 = vadd.f32 %v2842_v46, %v18041_v1  ;;  %v14777_v42 = vadd.f32 %v10917_v62, %v2851_v9  ;;  %v18049_v62 = vld [vmem:[#allocation186_spill] sm:$0xff]  ;;  %v18050_v9 = vld [vmem:[#allocation180_spill] sm:$0xff] }
 0x281   : > { %v10921_v33 = vpop.f32.mrf.mxu0  ;;  %11148 = vmatmul.mubr.msk.bf16.gmra.mxu0 %vm172_vm2, %v18042_v23  ;;  %v10788_v36 = vpop.f32.mrf.mxu1 }
 0x282   : > { %18043 = vst [vmem:[#allocation149_spill] sm:$0xff] %v14777_v42  ;;  %11151 = vmatprep.mubr.msk.bf16.mxu0 %vm172_vm2, %v18044_v35  ;;  %v2854_v40 = vadd.f32 %v10788_v36, %v18045_v53  ;;  %v14783_v14 = vadd.f32 %v4063_v39, %v2843_v2  ;;  %v18053_v2 = vld [vmem:[#allocation183_spill] sm:$0xff] }
 0x283   : > { %v4079_v8 = vpop.f32.mrf.mxu0  ;;  %v2845_v63 = vpop.f32.mrf.mxu1 }
 0x284   : > { %18046 = vst [vmem:[#allocation151_spill] sm:$0xff] %v14783_v14  ;;  %v2846_v46 = vadd.f32 %v2845_v63, %v18047_v19  ;;  %v14786_v7 = vadd.f32 %v10918_v3, %v2854_v40  ;;  %v18054_v63 = vld [vmem:[#allocation21_spill] sm:$0xff]  ;;  %v18056_v19 = vld [vmem:[#allocation24_spill] sm:$0xff] }
 0x285   : > { %v10922_v1 = vpop.f32.mrf.mxu0  ;;  %v10791_v23 = vpop.f32.mrf.mxu1  ;;  %11018 = vmatmul.mubr.msk.bf16.gmra.mxu1 %vm172_vm2, %v18049_v62 }
 0x286   : > { %18048 = vst [vmem:[#allocation152_spill] sm:$0xff] %v14786_v7  ;;  %v2867_v42 = vadd.f32 %v10791_v23, %v18050_v9  ;;  %11021 = vmatprep.mubr.msk.bf16.mxu1 %vm172_vm2, %v18051_v50  ;;  %v14793_v36 = vadd.f32 %v4066_v59, %v2846_v46  ;;  %v18057_v23 = vld [vmem:[#allocation185_spill] sm:$0xff] }
 0x287   : > { %v4082_v35 = vpop.f32.mrf.mxu0  ;;  %v2858_v39 = vpop.f32.mrf.mxu1  ;;  %v18059_v46 = vld [vmem:[#allocation189_spill] sm:$0xff] }
 0x288   : > { %18052 = vst [vmem:[#allocation154_spill] sm:$0xff] %v14793_v36  ;;  %v2859_v53 = vadd.f32 %v2858_v39, %v18053_v2  ;;  %v14798_v3 = vadd.f32 %v10921_v33, %v2867_v42  ;;  %v18062_v33 = vld [vmem:[#allocation192_spill] sm:$0xff] }
 0x289   : > { %v10925_v14 = vpop.f32.mrf.mxu0  ;;  %11152 = vmatmul.mubr.msk.bf16.gmra.mxu0 %vm172_vm2, %v18054_v63  ;;  %v10792_v40 = vpop.f32.mrf.mxu1 }
 0x28a   : > { %18055 = vst [vmem:[#allocation156_spill] sm:$0xff] %v14798_v3  ;;  %11155 = vmatprep.mubr.msk.bf16.mxu0 %vm172_vm2, %v18056_v19  ;;  %v2870_v9 = vadd.f32 %v10792_v40, %v18057_v23  ;;  %v14803_v62 = vadd.f32 %v4079_v8, %v2859_v53  ;;  %v18063_v3 = vld [vmem:[#allocation200_spill] sm:$0xff]  ;;  %v18065_v53 = vld [vmem:[#allocation195_spill] sm:$0xff] }
 0x28b   : > { %v4095_v7 = vpop.f32.mrf.mxu0  ;;  %v2861_v59 = vpop.f32.mrf.mxu1 }
 0x28c   : > { %18058 = vst [vmem:[#allocation158_spill] sm:$0xff] %v14803_v62  ;;  %v2862_v36 = vadd.f32 %v2861_v59, %v18059_v46  ;;  %v14806_v39 = vadd.f32 %v10922_v1, %v2870_v9  ;;  %v18066_v59 = vld [vmem:[#allocation26_spill] sm:$0xff]  ;;  %v18068_v46 = vld [vmem:[#allocation32_spill] sm:$0xff] }
 0x28d   : > { %v10926_v50 = vpop.f32.mrf.mxu0  ;;  %v10795_v2 = vpop.f32.mrf.mxu1  ;;  %11022 = vmatmul.mubr.msk.bf16.gmra.mxu1 %vm172_vm2, %v18061_v45  ;;  %v18073_v45 = vld [vmem:[#allocation210_spill] sm:$0xff] }
 0x28e   : > { %18060 = vst [vmem:[#allocation160_spill] sm:$0xff] %v14806_v39  ;;  %v2883_v42 = vadd.f32 %v10795_v2, %v18062_v33  ;;  %11025 = vmatprep.mubr.msk.bf16.mxu1 %vm172_vm2, %v18063_v3  ;;  %v14813_v40 = vadd.f32 %v4082_v35, %v2862_v36  ;;  %v18069_v2 = vld [vmem:[#allocation197_spill] sm:$0xff] }
 0x28f   : > { %v4098_v63 = vpop.f32.mrf.mxu0  ;;  %v2874_v8 = vpop.f32.mrf.mxu1  ;;  %v18071_v36 = vld [vmem:[#allocation201_spill] sm:$0xff] }
 0x290   : > { %18064 = vst [vmem:[#allocation164_spill] sm:$0xff] %v14813_v40  ;;  %v2875_v23 = vadd.f32 %v2874_v8, %v18065_v53  ;;  %v14818_v1 = vadd.f32 %v10925_v14, %v2883_v42  ;;  %v18074_v14 = vld [vmem:[#allocation204_spill] sm:$0xff] }
 0x291   : > { %v10929_v19 = vpop.f32.mrf.mxu0  ;;  %11156 = vmatmul.mubr.msk.bf16.gmra.mxu0 %vm172_vm2, %v18066_v59  ;;  %v10796_v9 = vpop.f32.mrf.mxu1 }
 0x292   : > { %18067 = vst [vmem:[#allocation3_spill] sm:$0xff] %v14818_v1  ;;  %11159 = vmatprep.mubr.msk.bf16.mxu0 %vm172_vm2, %v18068_v46  ;;  %v2886_v33 = vadd.f32 %v10796_v9, %v18069_v2  ;;  %v14823_v62 = vadd.f32 %v4095_v7, %v2875_v23  ;;  %v18075_v1 = vld [vmem:[#allocation212_spill] sm:$0xff]  ;;  %v18077_v23 = vld [vmem:[#allocation207_spill] sm:$0xff] }
 0x293   : > { %v4111_v39 = vpop.f32.mrf.mxu0  ;;  %v2877_v35 = vpop.f32.mrf.mxu1 }
 0x294   : > { %18070 = vst [vmem:[#allocation167_spill] sm:$0xff] %v14823_v62  ;;  %v2878_v40 = vadd.f32 %v2877_v35, %v18071_v36  ;;  %v14826_v8 = vadd.f32 %v10926_v50, %v2886_v33  ;;  %v18078_v35 = vld [vmem:[#allocation34_spill] sm:$0xff]  ;;  %v18080_v36 = vld [vmem:[#allocation35_spill] sm:$0xff] }
 0x295   : > { %v10930_v3 = vpop.f32.mrf.mxu0  ;;  %v10799_v53 = vpop.f32.mrf.mxu1  ;;  %11026 = vmatmul.mubr.msk.bf16.gmra.mxu1 %vm172_vm2, %v18073_v45  ;;  %v18085_v45 = vld [vmem:[#allocation222_spill] sm:$0xff] }
 0x296   : > { %18072 = vst [vmem:[#allocation171_spill] sm:$0xff] %v14826_v8  ;;  %v2899_v42 = vadd.f32 %v10799_v53, %v18074_v14  ;;  %11029 = vmatprep.mubr.msk.bf16.mxu1 %vm172_vm2, %v18075_v1  ;;  %v14833_v9 = vadd.f32 %v4098_v63, %v2878_v40  ;;  %v18081_v53 = vld [vmem:[#allocation209_spill] sm:$0xff] }
 0x297   : > { %v4114_v59 = vpop.f32.mrf.mxu0  ;;  %v2890_v7 = vpop.f32.mrf.mxu1  ;;  %v18083_v40 = vld [vmem:[#allocation213_spill] sm:$0xff] }
 0x298   : > { %18076 = vst [vmem:[#allocation173_spill] sm:$0xff] %v14833_v9  ;;  %v2891_v2 = vadd.f32 %v2890_v7, %v18077_v23  ;;  %v14838_v50 = vadd.f32 %v10929_v19, %v2899_v42  ;;  %v18086_v19 = vld [vmem:[#allocation216_spill] sm:$0xff] }
 0x299   : > { %v10933_v46 = vpop.f32.mrf.mxu0  ;;  %11160 = vmatmul.mubr.msk.bf16.gmra.mxu0 %vm172_vm2, %v18078_v35  ;;  %v10800_v33 = vpop.f32.mrf.mxu1 }
 0x29a   : > { %18079 = vst [vmem:[#allocation177_spill] sm:$0xff] %v14838_v50  ;;  %11163 = vmatprep.mubr.msk.bf16.mxu0 %vm172_vm2, %v18080_v36  ;;  %v2902_v14 = vadd.f32 %v10800_v33, %v18081_v53  ;;  %v14843_v62 = vadd.f32 %v4111_v39, %v2891_v2  ;;  %v18087_v50 = vld [vmem:[#allocation224_spill] sm:$0xff]  ;;  %v18089_v2 = vld [vmem:[#allocation219_spill] sm:$0xff] }
 0x29b   : > { %v4127_v8 = vpop.f32.mrf.mxu0  ;;  %v2893_v63 = vpop.f32.mrf.mxu1 }
 0x29c   : > { %18082 = vst [vmem:[#allocation180_spill] sm:$0xff] %v14843_v62  ;;  %v2894_v9 = vadd.f32 %v2893_v63, %v18083_v40  ;;  %v14846_v7 = vadd.f32 %v10930_v3, %v2902_v14  ;;  %v18090_v63 = vld [vmem:[#allocation38_spill] sm:$0xff]  ;;  %v18092_v40 = vld [vmem:[#allocation39_spill] sm:$0xff] }
 0x29d   : > { %v10934_v1 = vpop.f32.mrf.mxu0  ;;  %v10803_v23 = vpop.f32.mrf.mxu1  ;;  %11030 = vmatmul.mubr.msk.bf16.gmra.mxu1 %vm172_vm2, %v18085_v45  ;;  %v18097_v45 = vld [vmem:[#allocation234_spill] sm:$0xff] }
 0x29e   : > { %18084 = vst [vmem:[#allocation183_spill] sm:$0xff] %v14846_v7  ;;  %v2915_v42 = vadd.f32 %v10803_v23, %v18086_v19  ;;  %11033 = vmatprep.mubr.msk.bf16.mxu1 %vm172_vm2, %v18087_v50  ;;  %v14853_v33 = vadd.f32 %v4114_v59, %v2894_v9  ;;  %v18093_v23 = vld [vmem:[#allocation221_spill] sm:$0xff] }
 0x29f   : > { %v4130_v35 = vpop.f32.mrf.mxu0  ;;  %v2906_v39 = vpop.f32.mrf.mxu1  ;;  %v18095_v9 = vld [vmem:[#allocation225_spill] sm:$0xff] }
 0x2a0   : > { %18088 = vst [vmem:[#allocation185_spill] sm:$0xff] %v14853_v33  ;;  %v2907_v53 = vadd.f32 %v2906_v39, %v18089_v2  ;;  %v14858_v3 = vadd.f32 %v10933_v46, %v2915_v42  ;;  %v18098_v46 = vld [vmem:[#allocation228_spill] sm:$0xff] }
 0x2a1   : > { %v10937_v36 = vpop.f32.mrf.mxu0  ;;  %11164 = vmatmul.mubr.msk.bf16.gmra.mxu0 %vm172_vm2, %v18090_v63  ;;  %v10804_v14 = vpop.f32.mrf.mxu1 }
 0x2a2   : > { %18091 = vst [vmem:[#allocation189_spill] sm:$0xff] %v14858_v3  ;;  %11167 = vmatprep.mubr.msk.bf16.mxu0 %vm172_vm2, %v18092_v40  ;;  %v2918_v19 = vadd.f32 %v10804_v14, %v18093_v23  ;;  %v14863_v62 = vadd.f32 %v4127_v8, %v2907_v53  ;;  %v18099_v3 = vld [vmem:[#allocation236_spill] sm:$0xff]  ;;  %v18101_v53 = vld [vmem:[#allocation231_spill] sm:$0xff] }
 0x2a3   : > { %v4143_v7 = vpop.f32.mrf.mxu0  ;;  %v2909_v59 = vpop.f32.mrf.mxu1 }
 0x2a4   : > { %18094 = vst [vmem:[#allocation192_spill] sm:$0xff] %v14863_v62  ;;  %v2910_v33 = vadd.f32 %v2909_v59, %v18095_v9  ;;  %v14866_v39 = vadd.f32 %v10934_v1, %v2918_v19  ;;  %v18102_v59 = vld [vmem:[#allocation43_spill] sm:$0xff]  ;;  %v18104_v9 = vld [vmem:[#allocation44_spill] sm:$0xff] }
 0x2a5   : > { %v10938_v50 = vpop.f32.mrf.mxu0  ;;  %v10807_v2 = vpop.f32.mrf.mxu1  ;;  %11034 = vmatmul.mubr.msk.bf16.gmra.mxu1 %vm172_vm2, %v18097_v45  ;;  %v18109_v45 = vld [vmem:[#allocation246_spill] sm:$0xff] }
 0x2a6   : > { %18096 = vst [vmem:[#allocation195_spill] sm:$0xff] %v14866_v39  ;;  %v2931_v42 = vadd.f32 %v10807_v2, %v18098_v46  ;;  %11037 = vmatprep.mubr.msk.bf16.mxu1 %vm172_vm2, %v18099_v3  ;;  %v14873_v14 = vadd.f32 %v4130_v35, %v2910_v33  ;;  %v18105_v2 = vld [vmem:[#allocation233_spill] sm:$0xff] }
 0x2a7   : > { %v4146_v63 = vpop.f32.mrf.mxu0  ;;  %v2922_v8 = vpop.f32.mrf.mxu1  ;;  %v18107_v33 = vld [vmem:[#allocation237_spill] sm:$0xff] }
 0x2a8   : > { %18100 = vst [vmem:[#allocation197_spill] sm:$0xff] %v14873_v14  ;;  %v2923_v23 = vadd.f32 %v2922_v8, %v18101_v53  ;;  %v14878_v1 = vadd.f32 %v10937_v36, %v2931_v42  ;;  %v18110_v36 = vld [vmem:[#allocation240_spill] sm:$0xff] }
 0x2a9   : > { %v10941_v40 = vpop.f32.mrf.mxu0  ;;  %11168 = vmatmul.mubr.msk.bf16.gmra.mxu0 %vm172_vm2, %v18102_v59  ;;  %v10808_v19 = vpop.f32.mrf.mxu1 }
 0x2aa   : > { %18103 = vst [vmem:[#allocation201_spill] sm:$0xff] %v14878_v1  ;;  %11171 = vmatprep.mubr.msk.bf16.mxu0 %vm172_vm2, %v18104_v9  ;;  %v2934_v46 = vadd.f32 %v10808_v19, %v18105_v2  ;;  %v14883_v62 = vadd.f32 %v4143_v7, %v2923_v23  ;;  %v18111_v1 = vld [vmem:[#allocation248_spill] sm:$0xff]  ;;  %v18113_v23 = vld [vmem:[#allocation243_spill] sm:$0xff] }
 0x2ab   : > { %v4159_v39 = vpop.f32.mrf.mxu0  ;;  %v2925_v35 = vpop.f32.mrf.mxu1 }
 0x2ac   : > { %18106 = vst [vmem:[#allocation204_spill] sm:$0xff] %v14883_v62  ;;  %v2926_v14 = vadd.f32 %v2925_v35, %v18107_v33  ;;  %v14886_v8 = vadd.f32 %v10938_v50, %v2934_v46  ;;  %v18114_v35 = vld [vmem:[#allocation47_spill] sm:$0xff]  ;;  %v18116_v33 = vld [vmem:[#allocation48_spill] sm:$0xff] }
 0x2ad   : > { %v10942_v3 = vpop.f32.mrf.mxu0  ;;  %v10811_v53 = vpop.f32.mrf.mxu1  ;;  %11038 = vmatmul.mubr.msk.bf16.gmra.mxu1 %vm172_vm2, %v18109_v45  ;;  %v18121_v45 = vld [vmem:[#allocation257_spill] sm:$0xff] }
 0x2ae   : > { %18108 = vst [vmem:[#allocation207_spill] sm:$0xff] %v14886_v8  ;;  %v2947_v42 = vadd.f32 %v10811_v53, %v18110_v36  ;;  %11041 = vmatprep.mubr.msk.bf16.mxu1 %vm172_vm2, %v18111_v1  ;;  %v14893_v19 = vadd.f32 %v4146_v63, %v2926_v14  ;;  %v18117_v53 = vld [vmem:[#allocation245_spill] sm:$0xff] }
 0x2af   : > { %v4162_v59 = vpop.f32.mrf.mxu0  ;;  %v2938_v7 = vpop.f32.mrf.mxu1  ;;  %v18119_v14 = vld [vmem:[#allocation249_spill] sm:$0xff] }
 0x2b0   : > { %18112 = vst [vmem:[#allocation209_spill] sm:$0xff] %v14893_v19  ;;  %v2939_v2 = vadd.f32 %v2938_v7, %v18113_v23  ;;  %v14898_v50 = vadd.f32 %v10941_v40, %v2947_v42  ;;  %v18122_v40 = vld [vmem:[#allocation252_spill] sm:$0xff] }
 0x2b1   : > { %v10945_v9 = vpop.f32.mrf.mxu0  ;;  %11172 = vmatmul.mubr.msk.bf16.gmra.mxu0 %vm172_vm2, %v18114_v35  ;;  %v10812_v46 = vpop.f32.mrf.mxu1 }
 0x2b2   : > { %18115 = vst [vmem:[#allocation213_spill] sm:$0xff] %v14898_v50  ;;  %11175 = vmatprep.mubr.msk.bf16.mxu0 %vm172_vm2, %v18116_v33  ;;  %v2950_v36 = vadd.f32 %v10812_v46, %v18117_v53  ;;  %v14903_v62 = vadd.f32 %v4159_v39, %v2939_v2  ;;  %v18123_v50 = vld [vmem:[#allocation258_spill] sm:$0xff]  ;;  %v18125_v2 = vld [vmem:[#allocation255_spill] sm:$0xff] }
 0x2b3   : > { %v4175_v8 = vpop.f32.mrf.mxu0  ;;  %v2941_v63 = vpop.f32.mrf.mxu1 }
 0x2b4   : > { %18118 = vst [vmem:[#allocation216_spill] sm:$0xff] %v14903_v62  ;;  %v2942_v19 = vadd.f32 %v2941_v63, %v18119_v14  ;;  %v14906_v7 = vadd.f32 %v10942_v3, %v2950_v36  ;;  %v18126_v63 = vld [vmem:[#allocation52_spill] sm:$0xff]  ;;  %v18127_v14 = vld [vmem:[#allocation53_spill] sm:$0xff] }
 0x2b5   : > { %v10946_v1 = vpop.f32.mrf.mxu0  ;;  %v10815_v23 = vpop.f32.mrf.mxu1  ;;  %11042 = vmatmul.mubr.msk.bf16.gmra.mxu1 %vm172_vm2, %v18121_v45 }
 0x2b6   : > { %18120 = vst [vmem:[#allocation219_spill] sm:$0xff] %v14906_v7  ;;  %v2963_v42 = vadd.f32 %v10815_v23, %v18122_v40  ;;  %11045 = vmatprep.mubr.msk.bf16.mxu1 %vm172_vm2, %v18123_v50  ;;  %v14913_v46 = vadd.f32 %v4162_v59, %v2942_v19  ;;  %v18128_v23 = vld [vmem:[#allocation256_spill] sm:$0xff]  ;;  %v18129_v19 = vld [vmem:[#allocation259_spill] sm:$0xff] }
 0x2b7   : > { %v4178_v35 = vpop.f32.mrf.mxu0  ;;  %v2954_v39 = vpop.f32.mrf.mxu1 }
 0x2b8   : > { %18124 = vst [vmem:[#allocation221_spill] sm:$0xff] %v14913_v46  ;;  %v2955_v53 = vadd.f32 %v2954_v39, %v18125_v2  ;;  %v14918_v3 = vadd.f32 %v10945_v9, %v2963_v42  ;;  %v18131_v9 = vld [vmem:[#allocation262_spill] sm:$0xff] }
 0x2b9   : > { %v11081_v33 = vpop.f32.mrf.mxu0  ;;  %11176 = vmatmul.mubr.msk.bf16.gmra.mxu0 %vm172_vm2, %v18126_v63  ;;  %v10816_v36 = vpop.f32.mrf.mxu1 }
 0x2ba   : > { %11179 = vmatprep.mubr.msk.bf16.mxu0 %vm172_vm2, %v18127_v14  ;;  %v2966_v40 = vadd.f32 %v10816_v36, %v18128_v23  ;;  %v14923_v62 = vadd.f32 %v4175_v8, %v2955_v53 }
 0x2bb   : > { %v5065_v7 = vpop.f32.mrf.mxu0  ;;  %v2957_v59 = vpop.f32.mrf.mxu1 }
 0x2bc   : > { %v2958_v46 = vadd.f32 %v2957_v59, %v18129_v19  ;;  %v14926_v39 = vadd.f32 %v10946_v1, %v2966_v40  ;;  %v18133_v59 = vld [vmem:[#allocation56_spill] sm:$0xff]  ;;  %v18134_v19 = vld [vmem:[#allocation57_spill] sm:$0xff] }
 0x2bd   : > { %v11082_v50 = vpop.f32.mrf.mxu0  ;;  %v10951_v2 = vpop.f32.mrf.mxu1  ;;  %11046 = vmatmul.mubr.msk.bf16.gmra.mxu1 %vm172_vm2, %v14188_v30 }
 0x2be   : > { %18130 = vst [vmem:[#allocation225_spill] sm:$0xff] %v14926_v39  ;;  %v4876_v42 = vadd.f32 %v10951_v2, %v18131_v9  ;;  %11049 = vmatprep.mubr.msk.bf16.mxu1 %vm172_vm2, %v14194_v16  ;;  %v14933_v36 = vadd.f32 %v4178_v35, %v2958_v46  ;;  %v18135_v2 = vld [vmem:[#allocation264_spill] sm:$0xff] }
 0x2bf   : > { %v5068_v63 = vpop.f32.mrf.mxu0  ;;  %v4363_v8 = vpop.f32.mrf.mxu1 }
 0x2c0   : > { %18132 = vst [vmem:[#allocation228_spill] sm:$0xff] %v14933_v36  ;;  %v4874_v53 = vadd.f32 %v4363_v8, %v14199_v49  ;;  %v14938_v1 = vadd.f32 %v11081_v33, %v4876_v42  ;;  %v18137_v33 = vld [vmem:[#allocation266_spill] sm:$0xff] }
 0x2c1   : > { %v11085_v23 = vpop.f32.mrf.mxu0  ;;  %11180 = vmatmul.mubr.msk.bf16.gmra.mxu0 %vm172_vm2, %v18133_v59  ;;  %v10952_v40 = vpop.f32.mrf.mxu1 }
 0x2c2   : > { %11183 = vmatprep.mubr.msk.bf16.mxu0 %vm172_vm2, %v18134_v19  ;;  %v4877_v9 = vadd.f32 %v10952_v40, %v18135_v2  ;;  %v14943_v39 = vadd.f32 %v5065_v7, %v4874_v53 }
 0x2c3   : > { %v5081_v14 = vpop.f32.mrf.mxu0  ;;  %v4366_v35 = vpop.f32.mrf.mxu1 }
 0x2c4   : > { %v4875_v46 = vadd.f32 %v4366_v35, %v14216_v12  ;;  %v14946_v49 = vadd.f32 %v11082_v50, %v4877_v9  ;;  %v18139_v12 = vld [vmem:[#allocation61_spill] sm:$0xff]  ;;  %v18140_v35 = vld [vmem:[#allocation62_spill] sm:$0xff] }
 0x2c5   : > { %v11086_v36 = vpop.f32.mrf.mxu0  ;;  %v10955_v8 = vpop.f32.mrf.mxu1  ;;  %11050 = vmatmul.mubr.msk.bf16.gmra.mxu1 %vm172_vm2, %v14224_v61 }
 0x2c6   : > { %18136 = vst [vmem:[#allocation231_spill] sm:$0xff] %v14946_v49  ;;  %v4880_v42 = vadd.f32 %v10955_v8, %v18137_v33  ;;  %11053 = vmatprep.mubr.msk.bf16.mxu1 %vm172_vm2, %v14230_v22  ;;  %v14953_v40 = vadd.f32 %v5068_v63, %v4875_v46  ;;  %v18141_v8 = vld [vmem:[#allocation268_spill] sm:$0xff] }
 0x2c7   : > { %v5084_v59 = vpop.f32.mrf.mxu0  ;;  %v4379_v7 = vpop.f32.mrf.mxu1 }
 0x2c8   : > { %18138 = vst [vmem:[#allocation233_spill] sm:$0xff] %v14953_v40  ;;  %v4878_v53 = vadd.f32 %v4379_v7, %v14235_v60  ;;  %v14958_v50 = vadd.f32 %v11085_v23, %v4880_v42  ;;  %v18143_v23 = vld [vmem:[#allocation270_spill] sm:$0xff] }
 0x2c9   : > { %v11089_v2 = vpop.f32.mrf.mxu0  ;;  %11184 = vmatmul.mubr.msk.bf16.gmra.mxu0 %vm172_vm2, %v18139_v12  ;;  %v10956_v9 = vpop.f32.mrf.mxu1 }
 0x2ca   : > { %11187 = vmatprep.mubr.msk.bf16.mxu0 %vm172_vm2, %v18140_v35  ;;  %v4881_v33 = vadd.f32 %v10956_v9, %v18141_v8  ;;  %v14963_v49 = vadd.f32 %v5081_v14, %v4878_v53 }
 0x2cb   : > { %v5097_v19 = vpop.f32.mrf.mxu0  ;;  %v4382_v63 = vpop.f32.mrf.mxu1 }
 0x2cc   : > { %v4879_v46 = vadd.f32 %v4382_v63, %v14252_v24  ;;  %v14966_v60 = vadd.f32 %v11086_v36, %v4881_v33  ;;  %v18145_v24 = vld [vmem:[#allocation67_spill] sm:$0xff]  ;;  %v18146_v63 = vld [vmem:[#allocation68_spill] sm:$0xff] }
 0x2cd   : > { %v11090_v40 = vpop.f32.mrf.mxu0  ;;  %v10959_v7 = vpop.f32.mrf.mxu1  ;;  %11054 = vmatmul.mubr.msk.bf16.gmra.mxu1 %vm172_vm2, %v14260_v28 }
 0x2ce   : > { %18142 = vst [vmem:[#allocation237_spill] sm:$0xff] %v14966_v60  ;;  %v4884_v42 = vadd.f32 %v10959_v7, %v18143_v23  ;;  %11057 = vmatprep.mubr.msk.bf16.mxu1 %vm172_vm2, %v14266_v21  ;;  %v14973_v9 = vadd.f32 %v5084_v59, %v4879_v46  ;;  %v18147_v7 = vld [vmem:[#allocation272_spill] sm:$0xff] }
 0x2cf   : > { %v5100_v12 = vpop.f32.mrf.mxu0  ;;  %v4395_v14 = vpop.f32.mrf.mxu1 }
 0x2d0   : > { %18144 = vst [vmem:[#allocation240_spill] sm:$0xff] %v14973_v9  ;;  %v4882_v53 = vadd.f32 %v4395_v14, %v14271_v34  ;;  %v14978_v36 = vadd.f32 %v11089_v2, %v4884_v42  ;;  %v18150_v2 = vld [vmem:[#allocation274_spill] sm:$0xff] }
 0x2d1   : > { %v11093_v8 = vpop.f32.mrf.mxu0  ;;  %11188 = vmatmul.mubr.msk.bf16.gmra.mxu0 %vm172_vm2, %v18145_v24  ;;  %v10960_v33 = vpop.f32.mrf.mxu1 }
 0x2d2   : > { %11191 = vmatprep.mubr.msk.bf16.mxu0 %vm172_vm2, %v18146_v63  ;;  %v4885_v23 = vadd.f32 %v10960_v33, %v18147_v7  ;;  %v14983_v60 = vadd.f32 %v5097_v19, %v4882_v53 }
 0x2d3   : > { %v5113_v35 = vpop.f32.mrf.mxu0  ;;  %v4398_v59 = vpop.f32.mrf.mxu1 }
 0x2d4   : > { %18148 = vst [vmem:[#allocation243_spill] sm:$0xff] %v14983_v60  ;;  %v4883_v46 = vadd.f32 %v4398_v59, %v14288_v4  ;;  %v14986_v34 = vadd.f32 %v11090_v40, %v4885_v23  ;;  %v18152_v4 = vld [vmem:[#allocation75_spill] sm:$0xff]  ;;  %v18154_v59 = vld [vmem:[#allocation76_spill] sm:$0xff] }
 0x2d5   : > { %v11094_v9 = vpop.f32.mrf.mxu0  ;;  %v10963_v14 = vpop.f32.mrf.mxu1  ;;  %11058 = vmatmul.mubr.msk.bf16.gmra.mxu1 %vm172_vm2, %v14296_v17 }
 0x2d6   : > { %18149 = vst [vmem:[#allocation245_spill] sm:$0xff] %v14986_v34  ;;  %v4888_v42 = vadd.f32 %v10963_v14, %v18150_v2  ;;  %11061 = vmatprep.mubr.msk.bf16.mxu1 %vm172_vm2, %v14302_v37  ;;  %v14993_v33 = vadd.f32 %v5100_v12, %v4883_v46  ;;  %v18155_v14 = vld [vmem:[#allocation276_spill] sm:$0xff]  ;;  %v761_v34 = vld [vmem:[#allocation2 + $0x500] sm:$0xff]  ;;  %v762_v46 = vld [vmem:[#allocation2 + $0x508] sm:$0xff] }
 0x2d7   : > { %v5116_v24 = vpop.f32.mrf.mxu0  ;;  %v4411_v19 = vpop.f32.mrf.mxu1 }
 0x2d8   : > { %18151 = vst [vmem:[#allocation249_spill] sm:$0xff] %v14993_v33  ;;  %v4886_v53 = vadd.f32 %v4411_v19, %v14307_v27  ;;  %v14998_v40 = vadd.f32 %v11093_v8, %v4888_v42  ;;  %v15005_v33 = vld [vmem:[#allocation2 + $0x510] sm:$0xff]  ;;  %v5007_v42 = vrot.slane %v761_v34, 1 }
 0x2d9   : > { %v11097_v7 = vpop.f32.mrf.mxu0  ;;  %11192 = vmatmul.mubr.msk.bf16.gmra.mxu0 %vm172_vm2, %v18152_v4  ;;  %v10964_v23 = vpop.f32.mrf.mxu1 }
 0x2da   : > { %18153 = vst [vmem:[#allocation257_spill] sm:$0xff] %v14998_v40  ;;  %11195 = vmatprep.mubr.msk.bf16.mxu0 %vm172_vm2, %v18154_v59  ;;  %v4889_v2 = vadd.f32 %v10964_v23, %v18155_v14  ;;  %v15003_v60 = vadd.f32 %v5113_v35, %v4886_v53  ;;  %v18158_v59 = vld [vmem:[#allocation278_spill] sm:$0xff]  ;;  %v5008_v35 = vrot.slane %v762_v46, 1  ;;  %v5010_v53 = vrot.slane %v15005_v33, 1 }
 0x2db   : > { %v5129_v63 = vpop.f32.mrf.mxu0  ;;  %v4414_v12 = vpop.f32.mrf.mxu1 }
 0x2dc   : > { %18156 = vst [vmem:[#allocation252_spill] sm:$0xff] %v15003_v60  ;;  %v4887_v27 = vadd.f32 %v4414_v12, %v14324_v0  ;;  %v15008_v4 = vadd.f32 %v11094_v9, %v4889_v2  ;;  %v18160_v12 = vld [vmem:[#allocation79_spill] sm:$0xff] }
 0x2dd   : > { %v11098_v19 = vpop.f32.mrf.mxu0  ;;  %v10967_v8 = vpop.f32.mrf.mxu1  ;;  %11062 = vmatmul.mubr.msk.bf16.gmra.mxu1 %vm172_vm2, %v14332_v13  ;;  %v5009_v13 = vsel %vm1004_vm4, %v5007_v42, %v5008_v35 }
 0x2de   : > { %18157 = vst [vmem:[#allocation255_spill] sm:$0xff] %v15008_v4  ;;  %v4892_v23 = vadd.f32 %v10967_v8, %v18158_v59  ;;  %11065 = vmatprep.mubr.msk.bf16.mxu1 %vm172_vm2, %v14338_v58  ;;  %v15016_v60 = vadd.f32 %v5116_v24, %v4887_v27  ;;  %v18162_v59 = vld [vmem:[#allocation80_spill] sm:$0xff]  ;;  %v5011_v24 = vsel %vm1004_vm4, %v5008_v35, %v5010_v53 }
 0x2df   : > { %v5132_v14 = vpop.f32.mrf.mxu0  ;;  %v4427_v0 = vpop.f32.mrf.mxu1  ;;  %v764_v27 = vld [vmem:[#allocation2 + $0x518] sm:$0xff] }
 0x2e0   : > { %18159 = vst [vmem:[#allocation256_spill] sm:$0xff] %v15016_v60  ;;  %v4890_v9 = vadd.f32 %v4427_v0, %v14343_v41  ;;  %v15021_v4 = vadd.f32 %v11097_v7, %v4892_v23  ;;  %v765_v60 = vld [vmem:[#allocation2 + $0x520] sm:$0x3] }
 0x2e1   : > { %v11101_v2 = vpop.f32.mrf.mxu0  ;;  %11196 = vmatmul.mubr.msk.bf16.gmra.mxu0 %vm172_vm2, %v18160_v12  ;;  %v10968_v40 = vpop.f32.mrf.mxu1  ;;  %v5014_v42 = vrot.slane %v765_v60, 1 }
 0x2e2   : > { %18161 = vst [vmem:[#allocation259_spill] sm:$0xff] %v15021_v4  ;;  %11199 = vmatprep.mubr.msk.bf16.mxu0 %vm172_vm2, %v18162_v59  ;;  %v4893_v8 = vadd.f32 %v10968_v40, %v14348_v56  ;;  %v15028_v41 = vadd.f32 %v5129_v63, %v4890_v9  ;;  %v15035_v56 = vpack.c.bf16 %v5011_v24, %v5009_v13  ;;  %v5012_v40 = vrot.slane %v764_v27, 1 }
 0x2e3   : > { %v5145_v58 = vpop.f32.mrf.mxu0  ;;  %v4430_v0 = vpop.f32.mrf.mxu1 }
 0x2e4   : > { %v4891_v12 = vadd.f32 %v4430_v0, %v14357_v6  ;;  %v15031_v23 = vadd.f32 %v11098_v19, %v4893_v8  ;;  %18163 = vst [vmem:[#allocation262_spill] sm:$0xff] %v15035_v56  ;;  %v18164_v8 = vld [vmem:[#allocation82_spill] sm:$0xff]  ;;  %v5015_v60 = vsel %vm1004_vm4, %v5012_v40, %v5014_v42  ;;  %v15074_v42 = vpack.c.bf16 %v764_v27, %v15005_v33 }
 0x2e5   : > { %v11102_v7 = vpop.f32.mrf.mxu0  ;;  %v10971_v4 = vpop.f32.mrf.mxu1  ;;  %11066 = vmatmul.mubr.msk.bf16.gmra.mxu1 %vm172_vm2, %v14365_v31 }
 0x2e6   : > { %v4896_v35 = vadd.f32 %v10971_v4, %v14362_v48  ;;  %11069 = vmatprep.mubr.msk.bf16.mxu1 %vm172_vm2, %v14372_v10  ;;  %v15040_v63 = vadd.f32 %v5132_v14, %v4891_v12  ;;  %v5013_v48 = vsel %vm1004_vm4, %v5010_v53, %v5012_v40  ;;  %v15052_v12 = vpack.c.bf16 %v762_v46, %v761_v34 }
 0x2e7   : > { %v5148_v59 = vpop.f32.mrf.mxu0  ;;  %v4443_v6 = vpop.f32.mrf.mxu1 }
 0x2e8   : > { %v4894_v19 = vadd.f32 %v4443_v6, %v14374_v47  ;;  %v15045_v0 = vadd.f32 %v11101_v2, %v4896_v35  ;;  %v15057_v35 = vpack.c.bf16 %v5015_v60, %v5013_v48  ;;  %v18166_v60 = vld [vmem:[#allocation25_spill] sm:$0xff] }
 0x2e9   : > { %v11105_v9 = vpop.f32.mrf.mxu0  ;;  %11200 = vmatmul.mubr.msk.bf16.gmra.mxu0 %vm172_vm2, %v18164_v8  ;;  %v10972_v13 = vpop.f32.mrf.mxu1 }
 0x2ea   : > { %11203 = vmatprep.mubr.msk.bf16.mxu0 %vm172_vm2, %v15035_v56  ;;  %v4897_v4 = vadd.f32 %v10972_v13, %v14379_v57  ;;  %v15054_v47 = vadd.f32 %v5145_v58, %v4894_v19  ;;  %18165 = vst [vmem:[#allocation264_spill] sm:$0xff] %v15057_v35 }
 0x2eb   : > { %v5161_v14 = vpop.f32.mrf.mxu0  ;;  %v4446_v24 = vpop.f32.mrf.mxu1 }
 0x2ec   : > { %v4895_v6 = vadd.f32 %v4446_v24, %v14386_v18  ;;  %v15059_v8 = vadd.f32 %v11102_v7, %v4897_v4 }
 0x2ed   : > { %v11106_v2 = vpop.f32.mrf.mxu0  ;;  %v10975_v56 = vpop.f32.mrf.mxu1  ;;  %11070 = vmatmul.mubr.msk.bf16.gmra.mxu1 %vm172_vm2, %v14394_v29 }
 0x2ee   : > { %v4900_v53 = vadd.f32 %v10975_v56, %v14391_v43  ;;  %11073 = vmatprep.mubr.msk.bf16.mxu1 %vm172_vm2, %v15052_v12  ;;  %v15066_v58 = vadd.f32 %v5148_v59, %v4895_v6 }
 0x2ef   : > { %v5164_v57 = vpop.f32.mrf.mxu0  ;;  %v4459_v34 = vpop.f32.mrf.mxu1 }
 0x2f0   : > { %v4898_v18 = vadd.f32 %v4459_v34, %v14399_v54  ;;  %v15071_v7 = vadd.f32 %v11105_v9, %v4900_v53 }
 0x2f1   : > { %v11109_v46 = vpop.f32.mrf.mxu0  ;;  %11204 = vmatmul.mubr.msk.bf16.gmra.mxu0 %vm172_vm2, %v15057_v35  ;;  %v10976_v40 = vpop.f32.mrf.mxu1 }
 0x2f2   : > { %11339 = vmatprep.mubr.msk.bf16.mxu0 %vm172_vm2, %v17848_v5  ;;  %v4901_v43 = vadd.f32 %v10976_v40, %v14402_v51  ;;  %v15079_v56 = vadd.f32 %v5161_v14, %v4898_v18  ;;  %v18167_v18 = vld [vmem:[#allocation28_spill] sm:$0xff] }
 0x2f3   : > { %v5177_v59 = vpop.f32.mrf.mxu0  ;;  %v4462_v19 = vpop.f32.mrf.mxu1 }
 0x2f4   : > { %v4899_v54 = vadd.f32 %v4462_v19, %v14409_v38  ;;  %v15082_v48 = vadd.f32 %v11106_v2, %v4901_v43  ;;  %v18169_v43 = vld [vmem:[#allocation8_spill] sm:$0xff] }
 0x2f5   : > { %v11110_v13 = vpop.f32.mrf.mxu0  ;;  %v10979_v9 = vpop.f32.mrf.mxu1  ;;  %11074 = vmatmul.mubr.msk.bf16.gmra.mxu1 %vm172_vm2, %v15074_v42  ;;  %v18170_v19 = vld [vmem:[#allocation104_spill] sm:$0xff] }
 0x2f6   : > { %v4904_v33 = vadd.f32 %v10979_v9, %v14414_v11  ;;  %11209 = vmatprep.mubr.msk.bf16.mxu1 %vm172_vm2, %v18166_v60  ;;  %v15089_v51 = vadd.f32 %v5164_v57, %v4899_v54  ;;  %v18171_v9 = vld [vmem:[#allocation105_spill] sm:$0xff] }
 0x2f7   : > { %v5180_v27 = vpop.f32.mrf.mxu0  ;;  %v4475_v5 = vpop.f32.mrf.mxu1 }
 0x2f8   : > { %v4902_v4 = vadd.f32 %v4475_v5, %v14420_v15  ;;  %v15094_v38 = vadd.f32 %v11109_v46, %v4904_v33  ;;  %v18168_v46 = vld [vmem:[#allocation41_spill] sm:$0xff] }
 0x2f9   : > { %v11113_v14 = vpop.f32.mrf.mxu0  ;;  %11340 = vmatmul.mubr.msk.bf16.vlgmr.msra.gmra.mxu0 %vm172_vm2, %v17856_v20  ;;  %v10980_v24 = vpop.f32.mrf.mxu1  ;;  %v18174_v5 = vld [vmem:[#allocation17_spill] sm:$0xff] }
 0x2fa   : > { %11598 = vmatpush3.bf16.msra.mxu0 %v14772_v32  ;;  %11343 = vmatprep.mubr.msk.bf16.mxu0 %vm172_vm2, %v17858_v26  ;;  %v4905_v11 = vadd.f32 %v10980_v24, %v14423_v55  ;;  %v15100_v2 = vadd.f32 %v5177_v59, %v4902_v4 }
 0x2fb   : > { %v5193_v6 = vpop.f32.mrf.mxu0  ;;  %v4478_v53 = vpop.f32.mrf.mxu1 }
 0x2fc   : > { %v4903_v15 = vadd.f32 %v4478_v53, %v14431_v25  ;;  %v15103_v34 = vadd.f32 %v11110_v13, %v4905_v11 }
 0x2fd   : > { %v11114_v57 = vpop.f32.mrf.mxu0  ;;  %v10983_v20 = vpop.f32.mrf.mxu1  ;;  %11210 = vmatmul.mubr.msk.bf16.vlgmr.msra.gmra.mxu1 %vm172_vm2, %v18167_v18 }
 0x2fe   : > { %v4908_v32 = vadd.f32 %v10983_v20, %v14436_v44  ;;  %11468 = vmatpush3.bf16.msra.mxu1 %v14760_v52  ;;  %11213 = vmatprep.mubr.msk.bf16.mxu1 %vm172_vm2, %v18168_v46  ;;  %v15111_v55 = vadd.f32 %v5180_v27, %v4903_v15  ;;  %v18172_v44 = vld [vmem:[#allocation9_spill] sm:$0xff]  ;;  %v18176_v15 = vld [vmem:[#allocation50_spill] sm:$0xff] }
 0x2ff   : > { %v5196_v26 = vpop.f32.mrf.mxu0  ;;  %v4491_v40 = vpop.f32.mrf.mxu1 }
 0x300   : > { %v4906_v25 = vadd.f32 %v4491_v40, %v18169_v43  ;;  %v15116_v54 = vadd.f32 %v11113_v14, %v4908_v32  ;;  %v18177_v14 = vld [vmem:[#allocation159_spill] sm:$0xff]  ;;  %v18178_v32 = vld [vmem:[#allocation72_spill] sm:$0xff]  ;;  %v18180_v43 = vld [vmem:[#allocation169_spill] sm:$0xff] }
 0x301   : > { %v11117_v59 = vpop.f32.mrf.mxu0  ;;  %11344 = vmatmul.mubr.msk.bf16.gmra.mxu0 %vm172_vm2, %v18170_v19  ;;  %v10984_v13 = vpop.f32.mrf.mxu1 }
 0x302   : > { %11347 = vmatprep.mubr.msk.bf16.mxu0 %vm172_vm2, %v18171_v9  ;;  %v4909_v52 = vadd.f32 %v10984_v13, %v18172_v44  ;;  %v15121_v60 = vadd.f32 %v5193_v6, %v4906_v25  ;;  %v18181_v13 = vld [vmem:[#allocation108_spill] sm:$0xff]  ;;  %v18183_v44 = vld [vmem:[#allocation109_spill] sm:$0xff] }
 0x303   : > { %v5209_v33 = vpop.f32.mrf.mxu0  ;;  %v4494_v27 = vpop.f32.mrf.mxu1 }
 0x304   : > { %18173 = vst [vmem:[#allocation266_spill] sm:$0xff] %v15121_v60  ;;  %v4907_v4 = vadd.f32 %v4494_v27, %v18174_v5  ;;  %v15124_v11 = vadd.f32 %v11114_v57, %v4909_v52  ;;  %v18184_v52 = vld [vmem:[#allocation29_spill] sm:$0xff] }
 0x305   : > { %v11118_v24 = vpop.f32.mrf.mxu0  ;;  %v10987_v53 = vpop.f32.mrf.mxu1  ;;  %11214 = vmatmul.mubr.msk.bf16.gmra.mxu1 %vm172_vm2, %v18176_v15  ;;  %v18346_v60 = vld [vmem:[#allocation157_spill] sm:$0xff] }
 0x306   : > { %18175 = vst [vmem:[#allocation268_spill] sm:$0xff] %v15124_v11  ;;  %v4912_v20 = vadd.f32 %v10987_v53, %v18177_v14  ;;  %11217 = vmatprep.mubr.msk.bf16.mxu1 %vm172_vm2, %v18178_v32  ;;  %v15131_v40 = vadd.f32 %v5196_v26, %v4907_v4  ;;  %v18186_v4 = vld [vmem:[#allocation162_spill] sm:$0xff] }
 0x307   : > { %v5212_v18 = vpop.f32.mrf.mxu0  ;;  %v4507_v6 = vpop.f32.mrf.mxu1 }
 0x308   : > { %18179 = vst [vmem:[#allocation270_spill] sm:$0xff] %v15131_v40  ;;  %v4910_v25 = vadd.f32 %v4507_v6, %v18180_v43  ;;  %v15136_v57 = vadd.f32 %v11117_v59, %v4912_v20  ;;  %v18188_v40 = vld [vmem:[#allocation102_spill] sm:$0xff]  ;;  %v18189_v59 = vld [vmem:[#allocation165_spill] sm:$0xff] }
 0x309   : > { %v11121_v19 = vpop.f32.mrf.mxu0  ;;  %11348 = vmatmul.mubr.msk.bf16.gmra.mxu0 %vm172_vm2, %v18181_v13  ;;  %v10988_v9 = vpop.f32.mrf.mxu1 }
 0x30a   : > { %18182 = vst [vmem:[#allocation272_spill] sm:$0xff] %v15136_v57  ;;  %11351 = vmatprep.mubr.msk.bf16.mxu0 %vm172_vm2, %v18183_v44  ;;  %v4913_v27 = vadd.f32 %v10988_v9, %v18184_v52  ;;  %v15141_v53 = vadd.f32 %v5209_v33, %v4910_v25  ;;  %v18190_v57 = vld [vmem:[#allocation103_spill] sm:$0xff]  ;;  %v18192_v25 = vld [vmem:[#allocation170_spill] sm:$0xff] }
 0x30b   : > { %v5225_v5 = vpop.f32.mrf.mxu0  ;;  %v4510_v26 = vpop.f32.mrf.mxu1 }
 0x30c   : > { %18185 = vst [vmem:[#allocation274_spill] sm:$0xff] %v15141_v53  ;;  %v4911_v14 = vadd.f32 %v4510_v26, %v18186_v4  ;;  %v15144_v6 = vadd.f32 %v11118_v24, %v4913_v27  ;;  %v18193_v26 = vld [vmem:[#allocation112_spill] sm:$0xff]  ;;  %v18195_v4 = vld [vmem:[#allocation113_spill] sm:$0xff] }
 0x30d   : > { %v11122_v35 = vpop.f32.mrf.mxu0  ;;  %v10991_v43 = vpop.f32.mrf.mxu1  ;;  %11218 = vmatmul.mubr.msk.bf16.gmra.mxu1 %vm172_vm2, %v18188_v40 }
 0x30e   : > { %18187 = vst [vmem:[#allocation276_spill] sm:$0xff] %v15144_v6  ;;  %v4916_v20 = vadd.f32 %v10991_v43, %v18189_v59  ;;  %11221 = vmatprep.mubr.msk.bf16.mxu1 %vm172_vm2, %v18190_v57  ;;  %v15151_v9 = vadd.f32 %v5212_v18, %v4911_v14  ;;  %v18196_v43 = vld [vmem:[#allocation30_spill] sm:$0xff]  ;;  %v18198_v14 = vld [vmem:[#allocation172_spill] sm:$0xff] }
 0x30f   : > { %v5228_v13 = vpop.f32.mrf.mxu0  ;;  %v4523_v33 = vpop.f32.mrf.mxu1  ;;  %v18200_v57 = vld [vmem:[#allocation106_spill] sm:$0xff] }
 0x310   : > { %18191 = vst [vmem:[#allocation278_spill] sm:$0xff] %v15151_v9  ;;  %v4914_v44 = vadd.f32 %v4523_v33, %v18192_v25  ;;  %v15156_v24 = vadd.f32 %v11121_v19, %v4916_v20  ;;  %v18201_v19 = vld [vmem:[#allocation101_spill] sm:$0xff] }
 0x311   : > { %v11125_v52 = vpop.f32.mrf.mxu0  ;;  %11352 = vmatmul.mubr.msk.bf16.gmra.mxu0 %vm172_vm2, %v18193_v26  ;;  %v10992_v27 = vpop.f32.mrf.mxu1 }
 0x312   : > { %18194 = vst [vmem:[#allocation25_spill] sm:$0xff] %v15156_v24  ;;  %11355 = vmatprep.mubr.msk.bf16.mxu0 %vm172_vm2, %v18195_v4  ;;  %v4917_v59 = vadd.f32 %v10992_v27, %v18196_v43  ;;  %v15161_v53 = vadd.f32 %v5225_v5, %v4914_v44  ;;  %v18202_v24 = vld [vmem:[#allocation107_spill] sm:$0xff] }
 0x313   : > { %v5241_v6 = vpop.f32.mrf.mxu0  ;;  %v4526_v18 = vpop.f32.mrf.mxu1  ;;  %v18204_v44 = vld [vmem:[#allocation175_spill] sm:$0xff] }
 0x314   : > { %18197 = vst [vmem:[#allocation28_spill] sm:$0xff] %v15161_v53  ;;  %v4915_v9 = vadd.f32 %v4526_v18, %v18198_v14  ;;  %v15164_v33 = vadd.f32 %v11122_v35, %v4917_v59  ;;  %v18205_v18 = vld [vmem:[#allocation116_spill] sm:$0xff]  ;;  %v18207_v14 = vld [vmem:[#allocation117_spill] sm:$0xff] }
 0x315   : > { %v11126_v11 = vpop.f32.mrf.mxu0  ;;  %v10995_v25 = vpop.f32.mrf.mxu1  ;;  %11222 = vmatmul.mubr.msk.bf16.gmra.mxu1 %vm172_vm2, %v18200_v57  ;;  %v18212_v57 = vld [vmem:[#allocation110_spill] sm:$0xff] }
 0x316   : > { %18199 = vst [vmem:[#allocation41_spill] sm:$0xff] %v15164_v33  ;;  %v4920_v20 = vadd.f32 %v10995_v25, %v18201_v19  ;;  %11225 = vmatprep.mubr.msk.bf16.mxu1 %vm172_vm2, %v18202_v24  ;;  %v15171_v27 = vadd.f32 %v5228_v13, %v4915_v9  ;;  %v18208_v25 = vld [vmem:[#allocation178_spill] sm:$0xff] }
 0x317   : > { %v5244_v26 = vpop.f32.mrf.mxu0  ;;  %v4539_v5 = vpop.f32.mrf.mxu1  ;;  %v18210_v9 = vld [vmem:[#allocation182_spill] sm:$0xff] }
 0x318   : > { %18203 = vst [vmem:[#allocation8_spill] sm:$0xff] %v15171_v27  ;;  %v4918_v4 = vadd.f32 %v4539_v5, %v18204_v44  ;;  %v15176_v35 = vadd.f32 %v11125_v52, %v4920_v20  ;;  %v18213_v52 = vld [vmem:[#allocation184_spill] sm:$0xff] }
 0x319   : > { %v11129_v43 = vpop.f32.mrf.mxu0  ;;  %11356 = vmatmul.mubr.msk.bf16.gmra.mxu0 %vm172_vm2, %v18205_v18  ;;  %v10996_v59 = vpop.f32.mrf.mxu1 }
 0x31a   : > { %18206 = vst [vmem:[#allocation104_spill] sm:$0xff] %v15176_v35  ;;  %11359 = vmatprep.mubr.msk.bf16.mxu0 %vm172_vm2, %v18207_v14  ;;  %v4921_v19 = vadd.f32 %v10996_v59, %v18208_v25  ;;  %v15181_v53 = vadd.f32 %v5241_v6, %v4918_v4  ;;  %v18214_v35 = vld [vmem:[#allocation111_spill] sm:$0xff] }
 0x31b   : > { %v5257_v33 = vpop.f32.mrf.mxu0  ;;  %v4542_v13 = vpop.f32.mrf.mxu1  ;;  %v18216_v4 = vld [vmem:[#allocation187_spill] sm:$0xff] }
 0x31c   : > { %18209 = vst [vmem:[#allocation105_spill] sm:$0xff] %v15181_v53  ;;  %v4919_v27 = vadd.f32 %v4542_v13, %v18210_v9  ;;  %v15184_v5 = vadd.f32 %v11126_v11, %v4921_v19  ;;  %v18217_v13 = vld [vmem:[#allocation120_spill] sm:$0xff]  ;;  %v18219_v9 = vld [vmem:[#allocation121_spill] sm:$0xff] }
 0x31d   : > { %v11130_v24 = vpop.f32.mrf.mxu0  ;;  %v10999_v44 = vpop.f32.mrf.mxu1  ;;  %11226 = vmatmul.mubr.msk.bf16.gmra.mxu1 %vm172_vm2, %v18212_v57  ;;  %v18224_v57 = vld [vmem:[#allocation114_spill] sm:$0xff] }
 0x31e   : > { %18211 = vst [vmem:[#allocation9_spill] sm:$0xff] %v15184_v5  ;;  %v4924_v20 = vadd.f32 %v10999_v44, %v18213_v52  ;;  %11229 = vmatprep.mubr.msk.bf16.mxu1 %vm172_vm2, %v18214_v35  ;;  %v15191_v59 = vadd.f32 %v5244_v26, %v4919_v27  ;;  %v18220_v44 = vld [vmem:[#allocation190_spill] sm:$0xff] }
 0x31f   : > { %v5260_v18 = vpop.f32.mrf.mxu0  ;;  %v4555_v6 = vpop.f32.mrf.mxu1  ;;  %v18222_v27 = vld [vmem:[#allocation194_spill] sm:$0xff] }
 0x320   : > { %18215 = vst [vmem:[#allocation17_spill] sm:$0xff] %v15191_v59  ;;  %v4922_v14 = vadd.f32 %v4555_v6, %v18216_v4  ;;  %v15196_v11 = vadd.f32 %v11129_v43, %v4924_v20  ;;  %v18225_v43 = vld [vmem:[#allocation196_spill] sm:$0xff] }
 0x321   : > { %v11133_v25 = vpop.f32.mrf.mxu0  ;;  %11360 = vmatmul.mubr.msk.bf16.gmra.mxu0 %vm172_vm2, %v18217_v13  ;;  %v11000_v19 = vpop.f32.mrf.mxu1 }
 0x322   : > { %18218 = vst [vmem:[#allocation50_spill] sm:$0xff] %v15196_v11  ;;  %11363 = vmatprep.mubr.msk.bf16.mxu0 %vm172_vm2, %v18219_v9  ;;  %v4925_v52 = vadd.f32 %v11000_v19, %v18220_v44  ;;  %v15201_v53 = vadd.f32 %v5257_v33, %v4922_v14  ;;  %v18226_v11 = vld [vmem:[#allocation115_spill] sm:$0xff] }
 0x323   : > { %v5273_v5 = vpop.f32.mrf.mxu0  ;;  %v4558_v26 = vpop.f32.mrf.mxu1  ;;  %v18228_v14 = vld [vmem:[#allocation199_spill] sm:$0xff] }
 0x324   : > { %18221 = vst [vmem:[#allocation159_spill] sm:$0xff] %v15201_v53  ;;  %v4923_v59 = vadd.f32 %v4558_v26, %v18222_v27  ;;  %v15204_v6 = vadd.f32 %v11130_v24, %v4925_v52  ;;  %v18229_v26 = vld [vmem:[#allocation123_spill] sm:$0xff]  ;;  %v18231_v27 = vld [vmem:[#allocation124_spill] sm:$0xff] }
 0x325   : > { %v11134_v35 = vpop.f32.mrf.mxu0  ;;  %v11003_v4 = vpop.f32.mrf.mxu1  ;;  %11230 = vmatmul.mubr.msk.bf16.gmra.mxu1 %vm172_vm2, %v18224_v57  ;;  %v18236_v57 = vld [vmem:[#allocation118_spill] sm:$0xff] }
 0x326   : > { %18223 = vst [vmem:[#allocation72_spill] sm:$0xff] %v15204_v6  ;;  %v4928_v20 = vadd.f32 %v11003_v4, %v18225_v43  ;;  %11233 = vmatprep.mubr.msk.bf16.mxu1 %vm172_vm2, %v18226_v11  ;;  %v15211_v19 = vadd.f32 %v5260_v18, %v4923_v59  ;;  %v18232_v4 = vld [vmem:[#allocation202_spill] sm:$0xff] }
 0x327   : > { %v5276_v13 = vpop.f32.mrf.mxu0  ;;  %v4571_v33 = vpop.f32.mrf.mxu1  ;;  %v18234_v59 = vld [vmem:[#allocation206_spill] sm:$0xff] }
 0x328   : > { %18227 = vst [vmem:[#allocation169_spill] sm:$0xff] %v15211_v19  ;;  %v4926_v9 = vadd.f32 %v4571_v33, %v18228_v14  ;;  %v15216_v24 = vadd.f32 %v11133_v25, %v4928_v20  ;;  %v18237_v25 = vld [vmem:[#allocation208_spill] sm:$0xff] }
 0x329   : > { %v11137_v44 = vpop.f32.mrf.mxu0  ;;  %11364 = vmatmul.mubr.msk.bf16.gmra.mxu0 %vm172_vm2, %v18229_v26  ;;  %v11004_v52 = vpop.f32.mrf.mxu1 }
 0x32a   : > { %18230 = vst [vmem:[#allocation108_spill] sm:$0xff] %v15216_v24  ;;  %11367 = vmatprep.mubr.msk.bf16.mxu0 %vm172_vm2, %v18231_v27  ;;  %v4929_v43 = vadd.f32 %v11004_v52, %v18232_v4  ;;  %v15221_v53 = vadd.f32 %v5273_v5, %v4926_v9  ;;  %v18238_v24 = vld [vmem:[#allocation119_spill] sm:$0xff] }
 0x32b   : > { %v5289_v6 = vpop.f32.mrf.mxu0  ;;  %v4574_v18 = vpop.f32.mrf.mxu1  ;;  %v18240_v9 = vld [vmem:[#allocation211_spill] sm:$0xff] }
 0x32c   : > { %18233 = vst [vmem:[#allocation109_spill] sm:$0xff] %v15221_v53  ;;  %v4927_v19 = vadd.f32 %v4574_v18, %v18234_v59  ;;  %v15224_v33 = vadd.f32 %v11134_v35, %v4929_v43  ;;  %v18241_v18 = vld [vmem:[#allocation83_spill] sm:$0xff]  ;;  %v18243_v59 = vld [vmem:[#allocation86_spill] sm:$0xff] }
 0x32d   : > { %v11138_v11 = vpop.f32.mrf.mxu0  ;;  %v11007_v14 = vpop.f32.mrf.mxu1  ;;  %11234 = vmatmul.mubr.msk.bf16.gmra.mxu1 %vm172_vm2, %v18236_v57  ;;  %v18248_v57 = vld [vmem:[#allocation122_spill] sm:$0xff] }
 0x32e   : > { %18235 = vst [vmem:[#allocation29_spill] sm:$0xff] %v15224_v33  ;;  %v4932_v20 = vadd.f32 %v11007_v14, %v18237_v25  ;;  %11237 = vmatprep.mubr.msk.bf16.mxu1 %vm172_vm2, %v18238_v24  ;;  %v15231_v52 = vadd.f32 %v5276_v13, %v4927_v19  ;;  %v18244_v14 = vld [vmem:[#allocation214_spill] sm:$0xff] }
 0x32f   : > { %v5292_v26 = vpop.f32.mrf.mxu0  ;;  %v4587_v5 = vpop.f32.mrf.mxu1  ;;  %v18246_v19 = vld [vmem:[#allocation218_spill] sm:$0xff] }
 0x330   : > { %18239 = vst [vmem:[#allocation162_spill] sm:$0xff] %v15231_v52  ;;  %v4930_v27 = vadd.f32 %v4587_v5, %v18240_v9  ;;  %v15236_v35 = vadd.f32 %v11137_v44, %v4932_v20  ;;  %v18249_v44 = vld [vmem:[#allocation220_spill] sm:$0xff] }
 0x331   : > { %v11141_v4 = vpop.f32.mrf.mxu0  ;;  %11368 = vmatmul.mubr.msk.bf16.gmra.mxu0 %vm172_vm2, %v18241_v18  ;;  %v11008_v43 = vpop.f32.mrf.mxu1 }
 0x332   : > { %18242 = vst [vmem:[#allocation165_spill] sm:$0xff] %v15236_v35  ;;  %11371 = vmatprep.mubr.msk.bf16.mxu0 %vm172_vm2, %v18243_v59  ;;  %v4933_v25 = vadd.f32 %v11008_v43, %v18244_v14  ;;  %v15241_v53 = vadd.f32 %v5289_v6, %v4930_v27  ;;  %v18250_v35 = vld [vmem:[#allocation84_spill] sm:$0xff]  ;;  %v18252_v27 = vld [vmem:[#allocation223_spill] sm:$0xff] }
 0x333   : > { %v5305_v33 = vpop.f32.mrf.mxu0  ;;  %v4590_v13 = vpop.f32.mrf.mxu1 }
 0x334   : > { %18245 = vst [vmem:[#allocation170_spill] sm:$0xff] %v15241_v53  ;;  %v4931_v52 = vadd.f32 %v4590_v13, %v18246_v19  ;;  %v15244_v5 = vadd.f32 %v11138_v11, %v4933_v25  ;;  %v18253_v13 = vld [vmem:[#allocation87_spill] sm:$0xff]  ;;  %v18255_v19 = vld [vmem:[#allocation90_spill] sm:$0xff] }
 0x335   : > { %v11142_v24 = vpop.f32.mrf.mxu0  ;;  %v11011_v9 = vpop.f32.mrf.mxu1  ;;  %11238 = vmatmul.mubr.msk.bf16.gmra.mxu1 %vm172_vm2, %v18248_v57  ;;  %v18260_v57 = vld [vmem:[#allocation85_spill] sm:$0xff] }
 0x336   : > { %18247 = vst [vmem:[#allocation112_spill] sm:$0xff] %v15244_v5  ;;  %v4936_v20 = vadd.f32 %v11011_v9, %v18249_v44  ;;  %11241 = vmatprep.mubr.msk.bf16.mxu1 %vm172_vm2, %v18250_v35  ;;  %v15251_v43 = vadd.f32 %v5292_v26, %v4931_v52  ;;  %v18256_v9 = vld [vmem:[#allocation226_spill] sm:$0xff] }
 0x337   : > { %v5308_v18 = vpop.f32.mrf.mxu0  ;;  %v4603_v6 = vpop.f32.mrf.mxu1  ;;  %v18258_v52 = vld [vmem:[#allocation230_spill] sm:$0xff] }
 0x338   : > { %18251 = vst [vmem:[#allocation113_spill] sm:$0xff] %v15251_v43  ;;  %v4934_v59 = vadd.f32 %v4603_v6, %v18252_v27  ;;  %v15256_v11 = vadd.f32 %v11141_v4, %v4936_v20  ;;  %v18261_v4 = vld [vmem:[#allocation232_spill] sm:$0xff] }
 0x339   : > { %v11145_v14 = vpop.f32.mrf.mxu0  ;;  %11372 = vmatmul.mubr.msk.bf16.gmra.mxu0 %vm172_vm2, %v18253_v13  ;;  %v11012_v25 = vpop.f32.mrf.mxu1 }
 0x33a   : > { %18254 = vst [vmem:[#allocation30_spill] sm:$0xff] %v15256_v11  ;;  %11375 = vmatprep.mubr.msk.bf16.mxu0 %vm172_vm2, %v18255_v19  ;;  %v4937_v44 = vadd.f32 %v11012_v25, %v18256_v9  ;;  %v15261_v53 = vadd.f32 %v5305_v33, %v4934_v59  ;;  %v18262_v11 = vld [vmem:[#allocation88_spill] sm:$0xff]  ;;  %v18264_v59 = vld [vmem:[#allocation235_spill] sm:$0xff] }
 0x33b   : > { %v5321_v5 = vpop.f32.mrf.mxu0  ;;  %v4606_v26 = vpop.f32.mrf.mxu1 }
 0x33c   : > { %18257 = vst [vmem:[#allocation172_spill] sm:$0xff] %v15261_v53  ;;  %v4935_v43 = vadd.f32 %v4606_v26, %v18258_v52  ;;  %v15264_v6 = vadd.f32 %v11142_v24, %v4937_v44  ;;  %v18265_v26 = vld [vmem:[#allocation91_spill] sm:$0xff]  ;;  %v18267_v52 = vld [vmem:[#allocation94_spill] sm:$0xff] }
 0x33d   : > { %v11146_v35 = vpop.f32.mrf.mxu0  ;;  %v11015_v27 = vpop.f32.mrf.mxu1  ;;  %11242 = vmatmul.mubr.msk.bf16.gmra.mxu1 %vm172_vm2, %v18260_v57  ;;  %v18272_v57 = vld [vmem:[#allocation89_spill] sm:$0xff] }
 0x33e   : > { %18259 = vst [vmem:[#allocation101_spill] sm:$0xff] %v15264_v6  ;;  %v4940_v20 = vadd.f32 %v11015_v27, %v18261_v4  ;;  %11245 = vmatprep.mubr.msk.bf16.mxu1 %vm172_vm2, %v18262_v11  ;;  %v15271_v25 = vadd.f32 %v5308_v18, %v4935_v43  ;;  %v18268_v27 = vld [vmem:[#allocation238_spill] sm:$0xff] }
 0x33f   : > { %v5324_v13 = vpop.f32.mrf.mxu0  ;;  %v4619_v33 = vpop.f32.mrf.mxu1  ;;  %v18270_v43 = vld [vmem:[#allocation242_spill] sm:$0xff] }
 0x340   : > { %18263 = vst [vmem:[#allocation175_spill] sm:$0xff] %v15271_v25  ;;  %v4938_v19 = vadd.f32 %v4619_v33, %v18264_v59  ;;  %v15276_v24 = vadd.f32 %v11145_v14, %v4940_v20  ;;  %v18273_v14 = vld [vmem:[#allocation244_spill] sm:$0xff] }
 0x341   : > { %v11149_v9 = vpop.f32.mrf.mxu0  ;;  %11376 = vmatmul.mubr.msk.bf16.gmra.mxu0 %vm172_vm2, %v18265_v26  ;;  %v11016_v44 = vpop.f32.mrf.mxu1 }
 0x342   : > { %18266 = vst [vmem:[#allocation116_spill] sm:$0xff] %v15276_v24  ;;  %11379 = vmatprep.mubr.msk.bf16.mxu0 %vm172_vm2, %v18267_v52  ;;  %v4941_v4 = vadd.f32 %v11016_v44, %v18268_v27  ;;  %v15281_v53 = vadd.f32 %v5321_v5, %v4938_v19  ;;  %v18274_v24 = vld [vmem:[#allocation92_spill] sm:$0xff]  ;;  %v18276_v19 = vld [vmem:[#allocation247_spill] sm:$0xff] }
 0x343   : > { %v5337_v6 = vpop.f32.mrf.mxu0  ;;  %v4622_v18 = vpop.f32.mrf.mxu1 }
 0x344   : > { %18269 = vst [vmem:[#allocation117_spill] sm:$0xff] %v15281_v53  ;;  %v4939_v25 = vadd.f32 %v4622_v18, %v18270_v43  ;;  %v15284_v33 = vadd.f32 %v11146_v35, %v4941_v4  ;;  %v18277_v18 = vld [vmem:[#allocation95_spill] sm:$0xff]  ;;  %v18279_v43 = vld [vmem:[#allocation98_spill] sm:$0xff] }
 0x345   : > { %v11150_v11 = vpop.f32.mrf.mxu0  ;;  %v11019_v59 = vpop.f32.mrf.mxu1  ;;  %11246 = vmatmul.mubr.msk.bf16.gmra.mxu1 %vm172_vm2, %v18272_v57  ;;  %v18284_v57 = vld [vmem:[#allocation93_spill] sm:$0xff] }
 0x346   : > { %18271 = vst [vmem:[#allocation178_spill] sm:$0xff] %v15284_v33  ;;  %v4944_v20 = vadd.f32 %v11019_v59, %v18273_v14  ;;  %11249 = vmatprep.mubr.msk.bf16.mxu1 %vm172_vm2, %v18274_v24  ;;  %v15291_v44 = vadd.f32 %v5324_v13, %v4939_v25  ;;  %v18280_v59 = vld [vmem:[#allocation250_spill] sm:$0xff] }
 0x347   : > { %v5340_v26 = vpop.f32.mrf.mxu0  ;;  %v4635_v5 = vpop.f32.mrf.mxu1  ;;  %v18282_v25 = vld [vmem:[#allocation254_spill] sm:$0xff] }
 0x348   : > { %18275 = vst [vmem:[#allocation182_spill] sm:$0xff] %v15291_v44  ;;  %v4942_v52 = vadd.f32 %v4635_v5, %v18276_v19  ;;  %v15296_v35 = vadd.f32 %v11149_v9, %v4944_v20  ;;  %v18285_v9 = vld [vmem:[#allocation125_spill] sm:$0xff] }
 0x349   : > { %v11153_v27 = vpop.f32.mrf.mxu0  ;;  %11380 = vmatmul.mubr.msk.bf16.gmra.mxu0 %vm172_vm2, %v18277_v18  ;;  %v11020_v4 = vpop.f32.mrf.mxu1 }
 0x34a   : > { %18278 = vst [vmem:[#allocation184_spill] sm:$0xff] %v15296_v35  ;;  %11383 = vmatprep.mubr.msk.bf16.mxu0 %vm172_vm2, %v18279_v43  ;;  %v4945_v14 = vadd.f32 %v11020_v4, %v18280_v59  ;;  %v15301_v53 = vadd.f32 %v5337_v6, %v4942_v52  ;;  %v18286_v35 = vld [vmem:[#allocation96_spill] sm:$0xff]  ;;  %v18288_v52 = vld [vmem:[#allocation126_spill] sm:$0xff] }
 0x34b   : > { %v5353_v33 = vpop.f32.mrf.mxu0  ;;  %v4638_v13 = vpop.f32.mrf.mxu1 }
 0x34c   : > { %18281 = vst [vmem:[#allocation187_spill] sm:$0xff] %v15301_v53  ;;  %v4943_v44 = vadd.f32 %v4638_v13, %v18282_v25  ;;  %v15304_v5 = vadd.f32 %v11150_v11, %v4945_v14  ;;  %v18289_v13 = vld [vmem:[#allocation99_spill] sm:$0xff]  ;;  %v18291_v25 = vld [vmem:[#allocation64_spill] sm:$0xff] }
 0x34d   : > { %v11154_v24 = vpop.f32.mrf.mxu0  ;;  %v11023_v19 = vpop.f32.mrf.mxu1  ;;  %11250 = vmatmul.mubr.msk.bf16.gmra.mxu1 %vm172_vm2, %v18284_v57  ;;  %v18296_v57 = vld [vmem:[#allocation97_spill] sm:$0xff] }
 0x34e   : > { %18283 = vst [vmem:[#allocation120_spill] sm:$0xff] %v15304_v5  ;;  %v4948_v20 = vadd.f32 %v11023_v19, %v18285_v9  ;;  %11253 = vmatprep.mubr.msk.bf16.mxu1 %vm172_vm2, %v18286_v35  ;;  %v15311_v4 = vadd.f32 %v5340_v26, %v4943_v44  ;;  %v18292_v19 = vld [vmem:[#allocation127_spill] sm:$0xff]  ;;  %v18294_v44 = vld [vmem:[#allocation128_spill] sm:$0xff] }
 0x34f   : > { %v5356_v18 = vpop.f32.mrf.mxu0  ;;  %v4651_v6 = vpop.f32.mrf.mxu1 }
 0x350   : > { %18287 = vst [vmem:[#allocation121_spill] sm:$0xff] %v15311_v4  ;;  %v4946_v43 = vadd.f32 %v4651_v6, %v18288_v52  ;;  %v15316_v11 = vadd.f32 %v11153_v27, %v4948_v20  ;;  %v18297_v27 = vld [vmem:[#allocation129_spill] sm:$0xff] }
 0x351   : > { %v11157_v59 = vpop.f32.mrf.mxu0  ;;  %11384 = vmatmul.mubr.msk.bf16.gmra.mxu0 %vm172_vm2, %v18289_v13  ;;  %v11024_v14 = vpop.f32.mrf.mxu1 }
 0x352   : > { %18290 = vst [vmem:[#allocation190_spill] sm:$0xff] %v15316_v11  ;;  %11387 = vmatprep.mubr.msk.bf16.mxu0 %vm172_vm2, %v18291_v25  ;;  %v4949_v9 = vadd.f32 %v11024_v14, %v18292_v19  ;;  %v15321_v53 = vadd.f32 %v5353_v33, %v4946_v43  ;;  %v18298_v11 = vld [vmem:[#allocation63_spill] sm:$0xff]  ;;  %v18300_v43 = vld [vmem:[#allocation130_spill] sm:$0xff] }
 0x353   : > { %v5369_v5 = vpop.f32.mrf.mxu0  ;;  %v4654_v26 = vpop.f32.mrf.mxu1 }
 0x354   : > { %18293 = vst [vmem:[#allocation194_spill] sm:$0xff] %v15321_v53  ;;  %v4947_v4 = vadd.f32 %v4654_v26, %v18294_v44  ;;  %v15324_v6 = vadd.f32 %v11154_v24, %v4949_v9  ;;  %v18301_v26 = vld [vmem:[#allocation69_spill] sm:$0xff]  ;;  %v18303_v44 = vld [vmem:[#allocation70_spill] sm:$0xff] }
 0x355   : > { %v11158_v35 = vpop.f32.mrf.mxu0  ;;  %v11027_v52 = vpop.f32.mrf.mxu1  ;;  %11254 = vmatmul.mubr.msk.bf16.gmra.mxu1 %vm172_vm2, %v18296_v57  ;;  %v18308_v57 = vld [vmem:[#allocation100_spill] sm:$0xff] }
 0x356   : > { %18295 = vst [vmem:[#allocation196_spill] sm:$0xff] %v15324_v6  ;;  %v4952_v20 = vadd.f32 %v11027_v52, %v18297_v27  ;;  %11257 = vmatprep.mubr.msk.bf16.mxu1 %vm172_vm2, %v18298_v11  ;;  %v15331_v14 = vadd.f32 %v5356_v18, %v4947_v4  ;;  %v18304_v52 = vld [vmem:[#allocation131_spill] sm:$0xff]  ;;  %v18306_v4 = vld [vmem:[#allocation132_spill] sm:$0xff] }
 0x357   : > { %v5372_v13 = vpop.f32.mrf.mxu0  ;;  %v4667_v33 = vpop.f32.mrf.mxu1 }
 0x358   : > { %18299 = vst [vmem:[#allocation199_spill] sm:$0xff] %v15331_v14  ;;  %v4950_v25 = vadd.f32 %v4667_v33, %v18300_v43  ;;  %v15336_v24 = vadd.f32 %v11157_v59, %v4952_v20  ;;  %v18309_v59 = vld [vmem:[#allocation133_spill] sm:$0xff] }
 0x359   : > { %v11161_v19 = vpop.f32.mrf.mxu0  ;;  %11388 = vmatmul.mubr.msk.bf16.gmra.mxu0 %vm172_vm2, %v18301_v26  ;;  %v11028_v9 = vpop.f32.mrf.mxu1 }
 0x35a   : > { %18302 = vst [vmem:[#allocation123_spill] sm:$0xff] %v15336_v24  ;;  %11391 = vmatprep.mubr.msk.bf16.mxu0 %vm172_vm2, %v18303_v44  ;;  %v4953_v27 = vadd.f32 %v11028_v9, %v18304_v52  ;;  %v15341_v53 = vadd.f32 %v5369_v5, %v4950_v25  ;;  %v18310_v24 = vld [vmem:[#allocation5_spill] sm:$0xff]  ;;  %v18312_v25 = vld [vmem:[#allocation134_spill] sm:$0xff] }
 0x35b   : > { %v5385_v6 = vpop.f32.mrf.mxu0  ;;  %v4670_v18 = vpop.f32.mrf.mxu1 }
 0x35c   : > { %18305 = vst [vmem:[#allocation124_spill] sm:$0xff] %v15341_v53  ;;  %v4951_v14 = vadd.f32 %v4670_v18, %v18306_v4  ;;  %v15344_v33 = vadd.f32 %v11158_v35, %v4953_v27  ;;  %v18313_v18 = vld [vmem:[#allocation59_spill] sm:$0xff]  ;;  %v18315_v4 = vld [vmem:[#allocation153_spill] sm:$0xff] }
 0x35d   : > { %v11162_v11 = vpop.f32.mrf.mxu0  ;;  %v11031_v43 = vpop.f32.mrf.mxu1  ;;  %11258 = vmatmul.mubr.msk.bf16.gmra.mxu1 %vm172_vm2, %v18308_v57  ;;  %v18320_v57 = vld [vmem:[#allocation4_spill] sm:$0xff] }
 0x35e   : > { %18307 = vst [vmem:[#allocation202_spill] sm:$0xff] %v15344_v33  ;;  %v4956_v20 = vadd.f32 %v11031_v43, %v18309_v59  ;;  %11261 = vmatprep.mubr.msk.bf16.mxu1 %vm172_vm2, %v18310_v24  ;;  %v15351_v9 = vadd.f32 %v5372_v13, %v4951_v14  ;;  %v18316_v43 = vld [vmem:[#allocation135_spill] sm:$0xff]  ;;  %v18318_v14 = vld [vmem:[#allocation136_spill] sm:$0xff] }
 0x35f   : > { %v5388_v26 = vpop.f32.mrf.mxu0  ;;  %v4683_v5 = vpop.f32.mrf.mxu1 }
 0x360   : > { %18311 = vst [vmem:[#allocation206_spill] sm:$0xff] %v15351_v9  ;;  %v4954_v44 = vadd.f32 %v4683_v5, %v18312_v25  ;;  %v15356_v35 = vadd.f32 %v11161_v19, %v4956_v20  ;;  %v18321_v19 = vld [vmem:[#allocation137_spill] sm:$0xff] }
 0x361   : > { %v11165_v52 = vpop.f32.mrf.mxu0  ;;  %11392 = vmatmul.mubr.msk.bf16.gmra.mxu0 %vm172_vm2, %v18313_v18  ;;  %v11032_v27 = vpop.f32.mrf.mxu1 }
 0x362   : > { %18314 = vst [vmem:[#allocation208_spill] sm:$0xff] %v15356_v35  ;;  %11395 = vmatprep.mubr.msk.bf16.mxu0 %vm172_vm2, %v18315_v4  ;;  %v4957_v59 = vadd.f32 %v11032_v27, %v18316_v43  ;;  %v15361_v53 = vadd.f32 %v5385_v6, %v4954_v44  ;;  %v18322_v35 = vld [vmem:[#allocation16_spill] sm:$0xff]  ;;  %v18324_v44 = vld [vmem:[#allocation138_spill] sm:$0xff] }
 0x363   : > { %v5401_v33 = vpop.f32.mrf.mxu0  ;;  %v4686_v13 = vpop.f32.mrf.mxu1 }
 0x364   : > { %18317 = vst [vmem:[#allocation211_spill] sm:$0xff] %v15361_v53  ;;  %v4955_v9 = vadd.f32 %v4686_v13, %v18318_v14  ;;  %v15364_v5 = vadd.f32 %v11162_v11, %v4957_v59  ;;  %v18325_v13 = vld [vmem:[#allocation161_spill] sm:$0xff]  ;;  %v18327_v14 = vld [vmem:[#allocation163_spill] sm:$0xff] }
 0x365   : > { %v11166_v24 = vpop.f32.mrf.mxu0  ;;  %v11035_v25 = vpop.f32.mrf.mxu1  ;;  %11262 = vmatmul.mubr.msk.bf16.gmra.mxu1 %vm172_vm2, %v18320_v57  ;;  %v18332_v57 = vld [vmem:[#allocation71_spill] sm:$0xff] }
 0x366   : > { %18319 = vst [vmem:[#allocation83_spill] sm:$0xff] %v15364_v5  ;;  %v4960_v20 = vadd.f32 %v11035_v25, %v18321_v19  ;;  %11265 = vmatprep.mubr.msk.bf16.mxu1 %vm172_vm2, %v18322_v35  ;;  %v15371_v27 = vadd.f32 %v5388_v26, %v4955_v9  ;;  %v18328_v25 = vld [vmem:[#allocation139_spill] sm:$0xff]  ;;  %v18330_v9 = vld [vmem:[#allocation140_spill] sm:$0xff] }
 0x367   : > { %v5404_v18 = vpop.f32.mrf.mxu0  ;;  %v4699_v6 = vpop.f32.mrf.mxu1 }
 0x368   : > { %18323 = vst [vmem:[#allocation86_spill] sm:$0xff] %v15371_v27  ;;  %v4958_v4 = vadd.f32 %v4699_v6, %v18324_v44  ;;  %v15376_v11 = vadd.f32 %v11165_v52, %v4960_v20  ;;  %v18333_v52 = vld [vmem:[#allocation141_spill] sm:$0xff] }
 0x369   : > { %v11169_v43 = vpop.f32.mrf.mxu0  ;;  %11396 = vmatmul.mubr.msk.bf16.gmra.mxu0 %vm172_vm2, %v18325_v13  ;;  %v11036_v59 = vpop.f32.mrf.mxu1 }
 0x36a   : > { %18326 = vst [vmem:[#allocation214_spill] sm:$0xff] %v15376_v11  ;;  %11399 = vmatprep.mubr.msk.bf16.mxu0 %vm172_vm2, %v18327_v14  ;;  %v4961_v19 = vadd.f32 %v11036_v59, %v18328_v25  ;;  %v15381_v53 = vadd.f32 %v5401_v33, %v4958_v4  ;;  %v18334_v11 = vld [vmem:[#allocation150_spill] sm:$0xff] }
 0x36b   : > { %v5417_v5 = vpop.f32.mrf.mxu0  ;;  %v4702_v26 = vpop.f32.mrf.mxu1  ;;  %v18336_v4 = vld [vmem:[#allocation142_spill] sm:$0xff] }
 0x36c   : > { %18329 = vst [vmem:[#allocation218_spill] sm:$0xff] %v15381_v53  ;;  %v4959_v27 = vadd.f32 %v4702_v26, %v18330_v9  ;;  %v15384_v6 = vadd.f32 %v11166_v24, %v4961_v19  ;;  %v18337_v26 = vld [vmem:[#allocation174_spill] sm:$0xff]  ;;  %v18338_v19 = vld [vmem:[#allocation176_spill] sm:$0xff]  ;;  %v18339_v9 = vld [vmem:[#allocation143_spill] sm:$0xff] }
 0x36d   : > { %v11170_v35 = vpop.f32.mrf.mxu0  ;;  %v11039_v44 = vpop.f32.mrf.mxu1  ;;  %11266 = vmatmul.mubr.msk.bf16.gmra.mxu1 %vm172_vm2, %v18332_v57  ;;  %v18344_v57 = vld [vmem:[#allocation155_spill] sm:$0xff] }
 0x36e   : > { %18331 = vst [vmem:[#allocation220_spill] sm:$0xff] %v15384_v6  ;;  %v4964_v20 = vadd.f32 %v11039_v44, %v18333_v52  ;;  %11269 = vmatprep.mubr.msk.bf16.mxu1 %vm172_vm2, %v18334_v11  ;;  %v15391_v59 = vadd.f32 %v5404_v18, %v4959_v27  ;;  %v18341_v11 = vld [vmem:[#allocation144_spill] sm:$0xff] }
 0x36f   : > { %v5420_v13 = vpop.f32.mrf.mxu0  ;;  %v4715_v33 = vpop.f32.mrf.mxu1 }
 0x370   : > { %18335 = vst [vmem:[#allocation223_spill] sm:$0xff] %v15391_v59  ;;  %v4962_v14 = vadd.f32 %v4715_v33, %v18336_v4  ;;  %v15399_v53 = vadd.f32 %v11169_v43, %v4964_v20  ;;  %v18348_v20 = vld [vmem:[#allocation146_spill] sm:$0xff] }
 0x371   : > { %v11173_v25 = vpop.f32.mrf.mxu0  ;;  %11400 = vmatmul.mubr.msk.bf16.gmra.mxu0 %vm172_vm2, %v18337_v26  ;;  %v11040_v24 = vpop.f32.mrf.mxu1  ;;  %v18345_v26 = vld [vmem:[#allocation145_spill] sm:$0xff] }
 0x372   : > { %11403 = vmatprep.mubr.msk.bf16.mxu0 %vm172_vm2, %v18338_v19  ;;  %v4965_v6 = vadd.f32 %v11040_v24, %v18339_v9  ;;  %18340 = vst [vmem:[#allocation87_spill] sm:$0xff] %v15399_v53  ;;  %v15402_v59 = vadd.f32 %v5417_v5, %v4962_v14  ;;  %v18349_v5 = vld [vmem:[#allocation186_spill] sm:$0xff]  ;;  %v18351_v14 = vld [vmem:[#allocation188_spill] sm:$0xff] }
 0x373   : > { %v5433_v44 = vpop.f32.mrf.mxu0  ;;  %v4718_v52 = vpop.f32.mrf.mxu1  ;;  %v18356_v53 = vld [vmem:[#allocation166_spill] sm:$0xff] }
 0x374   : > { %v4963_v18 = vadd.f32 %v4718_v52, %v18341_v11  ;;  %18342 = vst [vmem:[#allocation90_spill] sm:$0xff] %v15402_v59  ;;  %v15404_v33 = vadd.f32 %v11170_v35, %v4965_v6  ;;  %v18352_v52 = vld [vmem:[#allocation147_spill] sm:$0xff] }
 0x375   : > { %v11174_v27 = vpop.f32.mrf.mxu0  ;;  %v11043_v4 = vpop.f32.mrf.mxu1  ;;  %11270 = vmatmul.mubr.msk.bf16.gmra.mxu1 %vm172_vm2, %v18344_v57 }
 0x376   : > { %18343 = vst [vmem:[#allocation226_spill] sm:$0xff] %v15404_v33  ;;  %v4968_v40 = vadd.f32 %v11043_v4, %v18345_v26  ;;  %11273 = vmatprep.mubr.msk.bf16.mxu1 %vm172_vm2, %v18346_v60  ;;  %v15411_v24 = vadd.f32 %v5420_v13, %v4963_v18  ;;  %v18354_v18 = vld [vmem:[#allocation148_spill] sm:$0xff] }
 0x377   : > { %v5436_v19 = vpop.f32.mrf.mxu0  ;;  %v4731_v43 = vpop.f32.mrf.mxu1 }
 0x378   : > { %18347 = vst [vmem:[#allocation230_spill] sm:$0xff] %v15411_v24  ;;  %v4966_v11 = vadd.f32 %v4731_v43, %v18348_v20  ;;  %v15416_v35 = vadd.f32 %v11173_v25, %v4968_v40  ;;  %v18357_v40 = vld [vmem:[#allocation149_spill] sm:$0xff] }
 0x379   : > { %v11177_v9 = vpop.f32.mrf.mxu0  ;;  %11404 = vmatmul.mubr.msk.bf16.gmra.mxu0 %vm172_vm2, %v18349_v5  ;;  %v11044_v6 = vpop.f32.mrf.mxu1 }
 0x37a   : > { %18350 = vst [vmem:[#allocation232_spill] sm:$0xff] %v15416_v35  ;;  %11407 = vmatprep.mubr.msk.bf16.mxu0 %vm172_vm2, %v18351_v14  ;;  %v4969_v4 = vadd.f32 %v11044_v6, %v18352_v52  ;;  %v15421_v33 = vadd.f32 %v5433_v44, %v4966_v11  ;;  %v18358_v35 = vld [vmem:[#allocation168_spill] sm:$0xff]  ;;  %v18360_v11 = vld [vmem:[#allocation151_spill] sm:$0xff] }
 0x37b   : > { %v5449_v26 = vpop.f32.mrf.mxu0  ;;  %v4734_v13 = vpop.f32.mrf.mxu1 }
 0x37c   : > { %18353 = vst [vmem:[#allocation235_spill] sm:$0xff] %v15421_v33  ;;  %v4967_v24 = vadd.f32 %v4734_v13, %v18354_v18  ;;  %v15424_v43 = vadd.f32 %v11174_v27, %v4969_v4  ;;  %v18361_v13 = vld [vmem:[#allocation198_spill] sm:$0xff]  ;;  %v18363_v18 = vld [vmem:[#allocation200_spill] sm:$0xff] }
 0x37d   : > { %v11178_v59 = vpop.f32.mrf.mxu0  ;;  %v11047_v20 = vpop.f32.mrf.mxu1  ;;  %11274 = vmatmul.mubr.msk.bf16.gmra.mxu1 %vm172_vm2, %v18356_v53  ;;  %v18368_v53 = vld [vmem:[#allocation179_spill] sm:$0xff] }
 0x37e   : > { %18355 = vst [vmem:[#allocation91_spill] sm:$0xff] %v15424_v43  ;;  %v4972_v25 = vadd.f32 %v11047_v20, %v18357_v40  ;;  %11277 = vmatprep.mubr.msk.bf16.mxu1 %vm172_vm2, %v18358_v35  ;;  %v15431_v6 = vadd.f32 %v5436_v19, %v4967_v24  ;;  %v18364_v20 = vld [vmem:[#allocation152_spill] sm:$0xff]  ;;  %v18366_v24 = vld [vmem:[#allocation154_spill] sm:$0xff] }
 0x37f   : > { %v5452_v5 = vpop.f32.mrf.mxu0  ;;  %v4747_v44 = vpop.f32.mrf.mxu1 }
 0x380   : > { %18359 = vst [vmem:[#allocation94_spill] sm:$0xff] %v15431_v6  ;;  %v4970_v14 = vadd.f32 %v4747_v44, %v18360_v11  ;;  %v15436_v27 = vadd.f32 %v11177_v9, %v4972_v25  ;;  %v18369_v9 = vld [vmem:[#allocation156_spill] sm:$0xff] }
 0x381   : > { %v11181_v52 = vpop.f32.mrf.mxu0  ;;  %11408 = vmatmul.mubr.msk.bf16.gmra.mxu0 %vm172_vm2, %v18361_v13  ;;  %v11048_v4 = vpop.f32.mrf.mxu1 }
 0x382   : > { %18362 = vst [vmem:[#allocation238_spill] sm:$0xff] %v15436_v27  ;;  %11411 = vmatprep.mubr.msk.bf16.mxu0 %vm172_vm2, %v18363_v18  ;;  %v4973_v40 = vadd.f32 %v11048_v4, %v18364_v20  ;;  %v15441_v33 = vadd.f32 %v5449_v26, %v4970_v14  ;;  %v18370_v27 = vld [vmem:[#allocation181_spill] sm:$0xff]  ;;  %v18372_v14 = vld [vmem:[#allocation158_spill] sm:$0xff] }
 0x383   : > { %v5465_v43 = vpop.f32.mrf.mxu0  ;;  %v4750_v19 = vpop.f32.mrf.mxu1 }
 0x384   : > { %18365 = vst [vmem:[#allocation242_spill] sm:$0xff] %v15441_v33  ;;  %v4971_v6 = vadd.f32 %v4750_v19, %v18366_v24  ;;  %v15444_v44 = vadd.f32 %v11178_v59, %v4973_v40  ;;  %v18373_v19 = vld [vmem:[#allocation210_spill] sm:$0xff]  ;;  %v18375_v24 = vld [vmem:[#allocation212_spill] sm:$0xff] }
 0x385   : > { %v11182_v35 = vpop.f32.mrf.mxu0  ;;  %v11051_v11 = vpop.f32.mrf.mxu1  ;;  %11278 = vmatmul.mubr.msk.bf16.gmra.mxu1 %vm172_vm2, %v18368_v53  ;;  %v18380_v53 = vld [vmem:[#allocation191_spill] sm:$0xff] }
 0x386   : > { %18367 = vst [vmem:[#allocation244_spill] sm:$0xff] %v15444_v44  ;;  %v4976_v25 = vadd.f32 %v11051_v11, %v18369_v9  ;;  %11281 = vmatprep.mubr.msk.bf16.mxu1 %vm172_vm2, %v18370_v27  ;;  %v15451_v4 = vadd.f32 %v5452_v5, %v4971_v6  ;;  %v18376_v11 = vld [vmem:[#allocation160_spill] sm:$0xff] }
 0x387   : > { %v5468_v13 = vpop.f32.mrf.mxu0  ;;  %v4763_v26 = vpop.f32.mrf.mxu1  ;;  %v18378_v6 = vld [vmem:[#allocation164_spill] sm:$0xff] }
 0x388   : > { %18371 = vst [vmem:[#allocation247_spill] sm:$0xff] %v15451_v4  ;;  %v4974_v18 = vadd.f32 %v4763_v26, %v18372_v14  ;;  %v15456_v59 = vadd.f32 %v11181_v52, %v4976_v25  ;;  %v18381_v52 = vld [vmem:[#allocation3_spill] sm:$0xff] }
 0x389   : > { %v11185_v20 = vpop.f32.mrf.mxu0  ;;  %11412 = vmatmul.mubr.msk.bf16.gmra.mxu0 %vm172_vm2, %v18373_v19  ;;  %v11052_v40 = vpop.f32.mrf.mxu1 }
 0x38a   : > { %18374 = vst [vmem:[#allocation95_spill] sm:$0xff] %v15456_v59  ;;  %11415 = vmatprep.mubr.msk.bf16.mxu0 %vm172_vm2, %v18375_v24  ;;  %v4977_v9 = vadd.f32 %v11052_v40, %v18376_v11  ;;  %v15461_v33 = vadd.f32 %v5465_v43, %v4974_v18  ;;  %v18382_v59 = vld [vmem:[#allocation193_spill] sm:$0xff]  ;;  %v18384_v18 = vld [vmem:[#allocation167_spill] sm:$0xff] }
 0x38b   : > { %v5481_v44 = vpop.f32.mrf.mxu0  ;;  %v4766_v5 = vpop.f32.mrf.mxu1 }
 0x38c   : > { %18377 = vst [vmem:[#allocation98_spill] sm:$0xff] %v15461_v33  ;;  %v4975_v4 = vadd.f32 %v4766_v5, %v18378_v6  ;;  %v15464_v26 = vadd.f32 %v11182_v35, %v4977_v9  ;;  %v18385_v5 = vld [vmem:[#allocation222_spill] sm:$0xff]  ;;  %v18387_v6 = vld [vmem:[#allocation224_spill] sm:$0xff] }
 0x38d   : > { %v11186_v27 = vpop.f32.mrf.mxu0  ;;  %v11055_v14 = vpop.f32.mrf.mxu1  ;;  %11282 = vmatmul.mubr.msk.bf16.gmra.mxu1 %vm172_vm2, %v18380_v53  ;;  %v18392_v53 = vld [vmem:[#allocation203_spill] sm:$0xff] }
 0x38e   : > { %18379 = vst [vmem:[#allocation250_spill] sm:$0xff] %v15464_v26  ;;  %v4980_v25 = vadd.f32 %v11055_v14, %v18381_v52  ;;  %11285 = vmatprep.mubr.msk.bf16.mxu1 %vm172_vm2, %v18382_v59  ;;  %v15471_v40 = vadd.f32 %v5468_v13, %v4975_v4  ;;  %v18388_v14 = vld [vmem:[#allocation171_spill] sm:$0xff]  ;;  %v18390_v4 = vld [vmem:[#allocation173_spill] sm:$0xff] }
 0x38f   : > { %v5484_v19 = vpop.f32.mrf.mxu0  ;;  %v4779_v43 = vpop.f32.mrf.mxu1 }
 0x390   : > { %18383 = vst [vmem:[#allocation254_spill] sm:$0xff] %v15471_v40  ;;  %v4978_v24 = vadd.f32 %v4779_v43, %v18384_v18  ;;  %v15476_v35 = vadd.f32 %v11185_v20, %v4980_v25  ;;  %v18393_v20 = vld [vmem:[#allocation177_spill] sm:$0xff] }
 0x391   : > { %v11189_v11 = vpop.f32.mrf.mxu0  ;;  %11416 = vmatmul.mubr.msk.bf16.gmra.mxu0 %vm172_vm2, %v18385_v5  ;;  %v11056_v9 = vpop.f32.mrf.mxu1 }
 0x392   : > { %18386 = vst [vmem:[#allocation125_spill] sm:$0xff] %v15476_v35  ;;  %11419 = vmatprep.mubr.msk.bf16.mxu0 %vm172_vm2, %v18387_v6  ;;  %v4981_v52 = vadd.f32 %v11056_v9, %v18388_v14  ;;  %v15481_v33 = vadd.f32 %v5481_v44, %v4978_v24  ;;  %v18394_v35 = vld [vmem:[#allocation205_spill] sm:$0xff]  ;;  %v18396_v24 = vld [vmem:[#allocation180_spill] sm:$0xff] }
 0x393   : > { %v5497_v26 = vpop.f32.mrf.mxu0  ;;  %v4782_v13 = vpop.f32.mrf.mxu1 }
 0x394   : > { %18389 = vst [vmem:[#allocation126_spill] sm:$0xff] %v15481_v33  ;;  %v4979_v40 = vadd.f32 %v4782_v13, %v18390_v4  ;;  %v15484_v43 = vadd.f32 %v11186_v27, %v4981_v52  ;;  %v18397_v13 = vld [vmem:[#allocation234_spill] sm:$0xff]  ;;  %v18399_v4 = vld [vmem:[#allocation236_spill] sm:$0xff] }
 0x395   : > { %v11190_v59 = vpop.f32.mrf.mxu0  ;;  %v11059_v18 = vpop.f32.mrf.mxu1  ;;  %11286 = vmatmul.mubr.msk.bf16.gmra.mxu1 %vm172_vm2, %v18392_v53  ;;  %v18404_v53 = vld [vmem:[#allocation215_spill] sm:$0xff] }
 0x396   : > { %18391 = vst [vmem:[#allocation99_spill] sm:$0xff] %v15484_v43  ;;  %v4984_v25 = vadd.f32 %v11059_v18, %v18393_v20  ;;  %11289 = vmatprep.mubr.msk.bf16.mxu1 %vm172_vm2, %v18394_v35  ;;  %v15491_v9 = vadd.f32 %v5484_v19, %v4979_v40  ;;  %v18400_v18 = vld [vmem:[#allocation183_spill] sm:$0xff]  ;;  %v18402_v40 = vld [vmem:[#allocation185_spill] sm:$0xff] }
 0x397   : > { %v5500_v5 = vpop.f32.mrf.mxu0  ;;  %v4795_v44 = vpop.f32.mrf.mxu1 }
 0x398   : > { %18395 = vst [vmem:[#allocation64_spill] sm:$0xff] %v15491_v9  ;;  %v4982_v6 = vadd.f32 %v4795_v44, %v18396_v24  ;;  %v15496_v27 = vadd.f32 %v11189_v11, %v4984_v25  ;;  %v18405_v11 = vld [vmem:[#allocation189_spill] sm:$0xff] }
 0x399   : > { %v11193_v14 = vpop.f32.mrf.mxu0  ;;  %11420 = vmatmul.mubr.msk.bf16.gmra.mxu0 %vm172_vm2, %v18397_v13  ;;  %v11060_v52 = vpop.f32.mrf.mxu1 }
 0x39a   : > { %18398 = vst [vmem:[#allocation127_spill] sm:$0xff] %v15496_v27  ;;  %11423 = vmatprep.mubr.msk.bf16.mxu0 %vm172_vm2, %v18399_v4  ;;  %v4985_v20 = vadd.f32 %v11060_v52, %v18400_v18  ;;  %v15501_v33 = vadd.f32 %v5497_v26, %v4982_v6  ;;  %v18406_v27 = vld [vmem:[#allocation217_spill] sm:$0xff]  ;;  %v18408_v6 = vld [vmem:[#allocation192_spill] sm:$0xff] }
 0x39b   : > { %v5513_v43 = vpop.f32.mrf.mxu0  ;;  %v4798_v19 = vpop.f32.mrf.mxu1 }
 0x39c   : > { %18401 = vst [vmem:[#allocation128_spill] sm:$0xff] %v15501_v33  ;;  %v4983_v9 = vadd.f32 %v4798_v19, %v18402_v40  ;;  %v15504_v44 = vadd.f32 %v11190_v59, %v4985_v20  ;;  %v18409_v19 = vld [vmem:[#allocation246_spill] sm:$0xff]  ;;  %v18411_v40 = vld [vmem:[#allocation248_spill] sm:$0xff] }
 0x39d   : > { %v11194_v35 = vpop.f32.mrf.mxu0  ;;  %v11063_v24 = vpop.f32.mrf.mxu1  ;;  %11290 = vmatmul.mubr.msk.bf16.gmra.mxu1 %vm172_vm2, %v18404_v53  ;;  %v18416_v53 = vld [vmem:[#allocation227_spill] sm:$0xff] }
 0x39e   : > { %18403 = vst [vmem:[#allocation129_spill] sm:$0xff] %v15504_v44  ;;  %v4988_v25 = vadd.f32 %v11063_v24, %v18405_v11  ;;  %11293 = vmatprep.mubr.msk.bf16.mxu1 %vm172_vm2, %v18406_v27  ;;  %v15511_v52 = vadd.f32 %v5500_v5, %v4983_v9  ;;  %v18412_v24 = vld [vmem:[#allocation195_spill] sm:$0xff]  ;;  %v18414_v9 = vld [vmem:[#allocation197_spill] sm:$0xff] }
 0x39f   : > { %v5516_v13 = vpop.f32.mrf.mxu0  ;;  %v4811_v26 = vpop.f32.mrf.mxu1 }
 0x3a0   : > { %18407 = vst [vmem:[#allocation130_spill] sm:$0xff] %v15511_v52  ;;  %v4986_v4 = vadd.f32 %v4811_v26, %v18408_v6  ;;  %v15516_v59 = vadd.f32 %v11193_v14, %v4988_v25  ;;  %v18417_v14 = vld [vmem:[#allocation201_spill] sm:$0xff] }
 0x3a1   : > { %v11197_v18 = vpop.f32.mrf.mxu0  ;;  %11424 = vmatmul.mubr.msk.bf16.gmra.mxu0 %vm172_vm2, %v18409_v19  ;;  %v11064_v20 = vpop.f32.mrf.mxu1 }
 0x3a2   : > { %18410 = vst [vmem:[#allocation69_spill] sm:$0xff] %v15516_v59  ;;  %11427 = vmatprep.mubr.msk.bf16.mxu0 %vm172_vm2, %v18411_v40  ;;  %v4989_v11 = vadd.f32 %v11064_v20, %v18412_v24  ;;  %v15521_v33 = vadd.f32 %v5513_v43, %v4986_v4  ;;  %v18418_v59 = vld [vmem:[#allocation229_spill] sm:$0xff]  ;;  %v18420_v4 = vld [vmem:[#allocation204_spill] sm:$0xff] }
 0x3a3   : > { %v5529_v44 = vpop.f32.mrf.mxu0  ;;  %v4814_v5 = vpop.f32.mrf.mxu1 }
 0x3a4   : > { %18413 = vst [vmem:[#allocation70_spill] sm:$0xff] %v15521_v33  ;;  %v4987_v52 = vadd.f32 %v4814_v5, %v18414_v9  ;;  %v15524_v26 = vadd.f32 %v11194_v35, %v4989_v11  ;;  %v18422_v5 = vld [vmem:[#allocation258_spill] sm:$0xff]  ;;  %v18423_v9 = vld [vmem:[#allocation207_spill] sm:$0xff] }
 0x3a5   : > { %v11198_v27 = vpop.f32.mrf.mxu0  ;;  %v11067_v6 = vpop.f32.mrf.mxu1  ;;  %11294 = vmatmul.mubr.msk.bf16.gmra.mxu1 %vm172_vm2, %v18416_v53 }
 0x3a6   : > { %18415 = vst [vmem:[#allocation131_spill] sm:$0xff] %v15524_v26  ;;  %v4992_v25 = vadd.f32 %v11067_v6, %v18417_v14  ;;  %11297 = vmatprep.mubr.msk.bf16.mxu1 %vm172_vm2, %v18418_v59  ;;  %v15531_v20 = vadd.f32 %v5516_v13, %v4987_v52  ;;  %v18425_v52 = vld [vmem:[#allocation209_spill] sm:$0xff]  ;;  %v18427_v59 = vld [vmem:[#allocation239_spill] sm:$0xff] }
 0x3a7   : > { %v5532_v19 = vpop.f32.mrf.mxu0  ;;  %v4827_v43 = vpop.f32.mrf.mxu1 }
 0x3a8   : > { %18419 = vst [vmem:[#allocation132_spill] sm:$0xff] %v15531_v20  ;;  %v4990_v40 = vadd.f32 %v4827_v43, %v18420_v4  ;;  %v15536_v35 = vadd.f32 %v11197_v18, %v4992_v25 }
 0x3a9   : > { %v11201_v24 = vpop.f32.mrf.mxu0  ;;  %11428 = vmatmul.mubr.msk.bf16.gmra.mxu0 %vm172_vm2, %v18121_v45  ;;  %v11068_v11 = vpop.f32.mrf.mxu1  ;;  %v18428_v45 = vld [vmem:[#allocation213_spill] sm:$0xff] }
 0x3aa   : > { %18421 = vst [vmem:[#allocation133_spill] sm:$0xff] %v15536_v35  ;;  %11431 = vmatprep.mubr.msk.bf16.mxu0 %vm172_vm2, %v18422_v5  ;;  %v4993_v6 = vadd.f32 %v11068_v11, %v18423_v9  ;;  %v15541_v26 = vadd.f32 %v5529_v44, %v4990_v40  ;;  %v18429_v35 = vld [vmem:[#allocation241_spill] sm:$0xff]  ;;  %v18431_v40 = vld [vmem:[#allocation216_spill] sm:$0xff] }
 0x3ab   : > { %v5545_v14 = vpop.f32.mrf.mxu0  ;;  %v4830_v13 = vpop.f32.mrf.mxu1 }
 0x3ac   : > { %18424 = vst [vmem:[#allocation134_spill] sm:$0xff] %v15541_v26  ;;  %v4991_v20 = vadd.f32 %v4830_v13, %v18425_v52  ;;  %v15544_v43 = vadd.f32 %v11198_v27, %v4993_v6  ;;  %v18432_v13 = vld [vmem:[#allocation219_spill] sm:$0xff] }
 0x3ad   : > { %v11202_v33 = vpop.f32.mrf.mxu0  ;;  %v11071_v4 = vpop.f32.mrf.mxu1  ;;  %11298 = vmatmul.mubr.msk.bf16.gmra.mxu1 %vm172_vm2, %v18427_v59  ;;  %v18435_v26 = vld [vmem:[#allocation251_spill] sm:$0xff] }
 0x3ae   : > { %18426 = vst [vmem:[#allocation59_spill] sm:$0xff] %v15544_v43  ;;  %v4996_v18 = vadd.f32 %v11071_v4, %v18428_v45  ;;  %11301 = vmatprep.mubr.msk.bf16.mxu1 %vm172_vm2, %v18429_v35  ;;  %v15551_v11 = vadd.f32 %v5532_v19, %v4991_v20  ;;  %v18433_v20 = vld [vmem:[#allocation221_spill] sm:$0xff] }
 0x3af   : > { %v5548_v25 = vpop.f32.mrf.mxu0  ;;  %v4843_v44 = vpop.f32.mrf.mxu1 }
 0x3b0   : > { %18430 = vst [vmem:[#allocation153_spill] sm:$0xff] %v15551_v11  ;;  %v4994_v5 = vadd.f32 %v4843_v44, %v18431_v40  ;;  %v15556_v27 = vadd.f32 %v11201_v24, %v4996_v18  ;;  %v18436_v18 = vld [vmem:[#allocation253_spill] sm:$0xff] }
 0x3b1   : > { %v11205_v9 = vpop.f32.mrf.mxu0  ;;  %11432 = vmatmul.mubr.msk.bf16.gmra.mxu0 %vm172_vm2, %v14188_v30  ;;  %v11072_v6 = vpop.f32.mrf.mxu1 }
 0x3b2   : > { %11435 = vmatprep.mubr.msk.bf16.mxu0 %vm172_vm2, %v14194_v16  ;;  %v4997_v52 = vadd.f32 %v11072_v6, %v18432_v13  ;;  %v15561_v45 = vadd.f32 %v5545_v14, %v4994_v5 }
 0x3b3   : > { %v5561_v4 = vpop.f32.mrf.mxu0  ;;  %v4846_v19 = vpop.f32.mrf.mxu1 }
 0x3b4   : > { %v4995_v11 = vadd.f32 %v4846_v19, %v18433_v20  ;;  %v15564_v44 = vadd.f32 %v11202_v33, %v4997_v52 }
 0x3b5   : > { %v11206_v43 = vpop.f32.mrf.mxu0  ;;  %v11075_v40 = vpop.f32.mrf.mxu1  ;;  %11302 = vmatmul.mubr.msk.bf16.gmra.mxu1 %vm172_vm2, %v18435_v26 }
 0x3b6   : > { %18434 = vst [vmem:[#allocation135_spill] sm:$0xff] %v15564_v44  ;;  %v5000_v30 = vadd.f32 %v11075_v40, %v14918_v3  ;;  %11305 = vmatprep.mubr.msk.bf16.mxu1 %vm172_vm2, %v18436_v18  ;;  %v15571_v16 = vadd.f32 %v5548_v25, %v4995_v11  ;;  %v18438_v3 = vld [vmem:[#allocation225_spill] sm:$0xff]  ;;  %v18439_v11 = vld [vmem:[#allocation228_spill] sm:$0xff] }
 0x3b7   : > { %v5564_v24 = vpop.f32.mrf.mxu0  ;;  %v4859_v14 = vpop.f32.mrf.mxu1  ;;  %v18441_v44 = vld [vmem:[#allocation260_spill] sm:$0xff] }
 0x3b8   : > { %18437 = vst [vmem:[#allocation136_spill] sm:$0xff] %v15571_v16  ;;  %v4998_v5 = vadd.f32 %v4859_v14, %v14923_v62  ;;  %v15576_v33 = vadd.f32 %v11205_v9, %v5000_v30  ;;  %v18442_v30 = vld [vmem:[#allocation261_spill] sm:$0xff] }
 0x3b9   : > { %v11341_v6 = vpop.f32.mrf.mxu0  ;;  %11436 = vmatmul.mubr.msk.bf16.gmra.mxu0 %vm172_vm2, %v14224_v61  ;;  %v11076_v13 = vpop.f32.mrf.mxu1 }
 0x3ba   : > { %11439 = vmatprep.mubr.msk.bf16.mxu0 %vm172_vm2, %v14230_v22  ;;  %v5001_v52 = vadd.f32 %v11076_v13, %v18438_v3  ;;  %v15581_v20 = vadd.f32 %v5561_v4, %v4998_v5 }
 0x3bb   : > { %v6446_v19 = vpop.f32.mrf.mxu0  ;;  %v4862_v25 = vpop.f32.mrf.mxu1 }
 0x3bc   : > { %v4999_v40 = vadd.f32 %v4862_v25, %v18439_v11  ;;  %v15584_v62 = vadd.f32 %v11206_v43, %v5001_v52 }
 0x3bd   : > { %v11342_v16 = vpop.f32.mrf.mxu0  ;;  %v11211_v14 = vpop.f32.mrf.mxu1  ;;  %11306 = vmatmul.mubr.msk.bf16.gmra.mxu1 %vm172_vm2, %v18441_v44 }
 0x3be   : > { %18440 = vst [vmem:[#allocation137_spill] sm:$0xff] %v15584_v62  ;;  %v6275_v61 = vadd.f32 %v11211_v14, %v14938_v1  ;;  %11309 = vmatprep.mubr.msk.bf16.mxu1 %vm172_vm2, %v18442_v30  ;;  %v15591_v22 = vadd.f32 %v5564_v24, %v4999_v40  ;;  %v18444_v1 = vld [vmem:[#allocation231_spill] sm:$0xff]  ;;  %v18445_v40 = vld [vmem:[#allocation233_spill] sm:$0xff] }
 0x3bf   : > { %v6449_v9 = vpop.f32.mrf.mxu0  ;;  %v5762_v4 = vpop.f32.mrf.mxu1  ;;  %v18447_v62 = vld [vmem:[#allocation263_spill] sm:$0xff] }
 0x3c0   : > { %18443 = vst [vmem:[#allocation138_spill] sm:$0xff] %v15591_v22  ;;  %v6273_v5 = vadd.f32 %v5762_v4, %v14943_v39  ;;  %v15596_v43 = vadd.f32 %v11341_v6, %v6275_v61  ;;  %v18448_v61 = vld [vmem:[#allocation265_spill] sm:$0xff] }
 0x3c1   : > { %v11345_v13 = vpop.f32.mrf.mxu0  ;;  %11440 = vmatmul.mubr.msk.bf16.gmra.mxu0 %vm172_vm2, %v14260_v28  ;;  %v11212_v3 = vpop.f32.mrf.mxu1 }
 0x3c2   : > { %11443 = vmatprep.mubr.msk.bf16.mxu0 %vm172_vm2, %v14266_v21  ;;  %v6276_v52 = vadd.f32 %v11212_v3, %v18444_v1  ;;  %v15601_v11 = vadd.f32 %v6446_v19, %v6273_v5 }
 0x3c3   : > { %v6462_v25 = vpop.f32.mrf.mxu0  ;;  %v5765_v24 = vpop.f32.mrf.mxu1 }
 0x3c4   : > { %v6274_v14 = vadd.f32 %v5765_v24, %v18445_v40  ;;  %v15604_v39 = vadd.f32 %v11342_v16, %v6276_v52 }
 0x3c5   : > { %v11346_v22 = vpop.f32.mrf.mxu0  ;;  %v11215_v4 = vpop.f32.mrf.mxu1  ;;  %11310 = vmatmul.mubr.msk.bf16.gmra.mxu1 %vm172_vm2, %v18447_v62 }
 0x3c6   : > { %18446 = vst [vmem:[#allocation161_spill] sm:$0xff] %v15604_v39  ;;  %v6279_v28 = vadd.f32 %v11215_v4, %v14958_v50  ;;  %11313 = vmatprep.mubr.msk.bf16.mxu1 %vm172_vm2, %v18448_v61  ;;  %v15611_v21 = vadd.f32 %v6449_v9, %v6274_v14  ;;  %v18451_v50 = vld [vmem:[#allocation237_spill] sm:$0xff]  ;;  %v18453_v14 = vld [vmem:[#allocation240_spill] sm:$0xff]  ;;  %v18455_v39 = vld [vmem:[#allocation267_spill] sm:$0xff] }
 0x3c7   : > { %v6465_v6 = vpop.f32.mrf.mxu0  ;;  %v5778_v19 = vpop.f32.mrf.mxu1 }
 0x3c8   : > { %18449 = vst [vmem:[#allocation163_spill] sm:$0xff] %v15611_v21  ;;  %v6277_v5 = vadd.f32 %v5778_v19, %v14963_v49  ;;  %v15616_v16 = vadd.f32 %v11345_v13, %v6279_v28  ;;  %v18456_v28 = vld [vmem:[#allocation269_spill] sm:$0xff] }
 0x3c9   : > { %v11349_v3 = vpop.f32.mrf.mxu0  ;;  %11444 = vmatmul.mubr.msk.bf16.gmra.mxu0 %vm172_vm2, %v14296_v17  ;;  %v11216_v1 = vpop.f32.mrf.mxu1 }
 0x3ca   : > { %18450 = vst [vmem:[#allocation139_spill] sm:$0xff] %v15616_v16  ;;  %11447 = vmatprep.mubr.msk.bf16.mxu0 %vm172_vm2, %v14302_v37  ;;  %v6280_v52 = vadd.f32 %v11216_v1, %v18451_v50  ;;  %v15621_v40 = vadd.f32 %v6462_v25, %v6277_v5  ;;  %v18458_v5 = vld [vmem:[#allocation243_spill] sm:$0xff] }
 0x3cb   : > { %v6478_v24 = vpop.f32.mrf.mxu0  ;;  %v5781_v9 = vpop.f32.mrf.mxu1 }
 0x3cc   : > { %18452 = vst [vmem:[#allocation140_spill] sm:$0xff] %v15621_v40  ;;  %v6278_v4 = vadd.f32 %v5781_v9, %v18453_v14  ;;  %v15624_v49 = vadd.f32 %v11346_v22, %v6280_v52  ;;  %v18459_v9 = vld [vmem:[#allocation279_spill] sm:$0xff]  ;;  %v18461_v14 = vld [vmem:[#allocation280_spill] sm:$0xff] }
 0x3cd   : > { %v11350_v21 = vpop.f32.mrf.mxu0  ;;  %v11219_v19 = vpop.f32.mrf.mxu1  ;;  %11314 = vmatmul.mubr.msk.bf16.gmra.mxu1 %vm172_vm2, %v18455_v39 }
 0x3ce   : > { %18454 = vst [vmem:[#allocation141_spill] sm:$0xff] %v15624_v49  ;;  %v6283_v17 = vadd.f32 %v11219_v19, %v14978_v36  ;;  %11317 = vmatprep.mubr.msk.bf16.mxu1 %vm172_vm2, %v18456_v28  ;;  %v15631_v37 = vadd.f32 %v6465_v6, %v6278_v4  ;;  %v18462_v36 = vld [vmem:[#allocation245_spill] sm:$0xff]  ;;  %v18466_v28 = vld [vmem:[#allocation271_spill] sm:$0xff] }
 0x3cf   : > { %v6481_v13 = vpop.f32.mrf.mxu0  ;;  %v5794_v25 = vpop.f32.mrf.mxu1  ;;  %v18464_v4 = vld [vmem:[#allocation249_spill] sm:$0xff] }
 0x3d0   : > { %18457 = vst [vmem:[#allocation142_spill] sm:$0xff] %v15631_v37  ;;  %v6281_v1 = vadd.f32 %v5794_v25, %v18458_v5  ;;  %v15636_v22 = vadd.f32 %v11349_v3, %v6283_v17  ;;  %v18467_v3 = vld [vmem:[#allocation257_spill] sm:$0xff] }
 0x3d1   : > { %v11353_v50 = vpop.f32.mrf.mxu0  ;;  %11448 = vmatmul.mubr.msk.bf16.gmra.mxu0 %vm172_vm2, %v18459_v9  ;;  %v11220_v52 = vpop.f32.mrf.mxu1 }
 0x3d2   : > { %18460 = vst [vmem:[#allocation174_spill] sm:$0xff] %v15636_v22  ;;  %11451 = vmatprep.mubr.msk.bf16.mxu0 %vm172_vm2, %v18461_v14  ;;  %v6284_v19 = vadd.f32 %v11220_v52, %v18462_v36  ;;  %v15641_v40 = vadd.f32 %v6478_v24, %v6281_v1  ;;  %v18468_v22 = vld [vmem:[#allocation273_spill] sm:$0xff]  ;;  %v18470_v1 = vld [vmem:[#allocation252_spill] sm:$0xff] }
 0x3d3   : > { %v6494_v49 = vpop.f32.mrf.mxu0  ;;  %v5797_v6 = vpop.f32.mrf.mxu1 }
 0x3d4   : > { %18463 = vst [vmem:[#allocation176_spill] sm:$0xff] %v15641_v40  ;;  %v6282_v37 = vadd.f32 %v5797_v6, %v18464_v4  ;;  %v15644_v25 = vadd.f32 %v11350_v21, %v6284_v19  ;;  %v18472_v6 = vld [vmem:[#allocation255_spill] sm:$0xff] }
 0x3d5   : > { %v11354_v16 = vpop.f32.mrf.mxu0  ;;  %v11223_v5 = vpop.f32.mrf.mxu1  ;;  %11318 = vmatmul.mubr.msk.bf16.gmra.mxu1 %vm172_vm2, %v18466_v28  ;;  %v18476_v40 = vld [vmem:[#allocation275_spill] sm:$0xff] }
 0x3d6   : > { %18465 = vst [vmem:[#allocation143_spill] sm:$0xff] %v15644_v25  ;;  %v6287_v17 = vadd.f32 %v11223_v5, %v18467_v3  ;;  %11321 = vmatprep.mubr.msk.bf16.mxu1 %vm172_vm2, %v18468_v22  ;;  %v15651_v52 = vadd.f32 %v6481_v13, %v6282_v37  ;;  %v18474_v37 = vld [vmem:[#allocation256_spill] sm:$0xff] }
 0x3d7   : > { %v6497_v9 = vpop.f32.mrf.mxu0  ;;  %v5810_v24 = vpop.f32.mrf.mxu1 }
 0x3d8   : > { %18469 = vst [vmem:[#allocation144_spill] sm:$0xff] %v15651_v52  ;;  %v6285_v14 = vadd.f32 %v5810_v24, %v18470_v1  ;;  %v15656_v21 = vadd.f32 %v11353_v50, %v6287_v17 }
 0x3d9   : > { %v11357_v36 = vpop.f32.mrf.mxu0  ;;  %11452 = vmatmul.mubr.msk.bf16.gmra.mxu0 %vm172_vm2, %v14365_v31  ;;  %v11224_v19 = vpop.f32.mrf.mxu1  ;;  %v18477_v31 = vld [vmem:[#allocation259_spill] sm:$0xff] }
 0x3da   : > { %18471 = vst [vmem:[#allocation155_spill] sm:$0xff] %v15656_v21  ;;  %11455 = vmatprep.mubr.msk.bf16.mxu0 %vm172_vm2, %v14372_v10  ;;  %v6288_v4 = vadd.f32 %v11224_v19, %v18472_v6  ;;  %v15661_v3 = vadd.f32 %v6494_v49, %v6285_v14  ;;  %v18478_v21 = vld [vmem:[#allocation277_spill] sm:$0xff] }
 0x3db   : > { %v6510_v5 = vpop.f32.mrf.mxu0  ;;  %v5813_v13 = vpop.f32.mrf.mxu1 }
 0x3dc   : > { %18473 = vst [vmem:[#allocation145_spill] sm:$0xff] %v15661_v3  ;;  %v6286_v52 = vadd.f32 %v5813_v13, %v18474_v37  ;;  %v15664_v24 = vadd.f32 %v11354_v16, %v6288_v4  ;;  %v15681_v37 = vld [vmem:[#allocation2 + $0x528] sm:$0xff]  ;;  %v18487_v3 = vld [vmem:[#allocation283_spill] sm:$0xff] }
 0x3dd   : > { %v11358_v25 = vpop.f32.mrf.mxu0  ;;  %v11227_v1 = vpop.f32.mrf.mxu1  ;;  %11322 = vmatmul.mubr.msk.bf16.gmra.mxu1 %vm172_vm2, %v18476_v40 }
 0x3de   : > { %18475 = vst [vmem:[#allocation157_spill] sm:$0xff] %v15664_v24  ;;  %v6291_v50 = vadd.f32 %v11227_v1, %v18477_v31  ;;  %11325 = vmatprep.mubr.msk.bf16.mxu1 %vm172_vm2, %v18478_v21  ;;  %v15671_v10 = vadd.f32 %v6497_v9, %v6286_v52  ;;  %v15683_v9 = vld [vmem:[#allocation2 + $0x530] sm:$0xff]  ;;  %v11851_v1 = vld [vmem:[#allocation2 + $0x500] sm:$0xff] }
 0x3df   : > { %v6513_v17 = vpop.f32.mrf.mxu0  ;;  %v5826_v49 = vpop.f32.mrf.mxu1  ;;  %v5704_v31 = vrot.slane %v11851_v1, 2  ;;  %v18484_v1 = vld [vmem:[#allocation282_spill] sm:$0xff] }
 0x3e0   : > { %18479 = vst [vmem:[#allocation146_spill] sm:$0xff] %v15671_v10  ;;  %v6289_v14 = vadd.f32 %v5826_v49, %v15028_v41  ;;  %v15676_v16 = vadd.f32 %v11357_v36, %v6291_v50  ;;  %v11852_v49 = vld [vmem:[#allocation2 + $0x508] sm:$0xff]  ;;  %v11853_v36 = vld [vmem:[#allocation2 + $0x510] sm:$0xff] }
 0x3e1   : > { %v11361_v19 = vpop.f32.mrf.mxu0  ;;  %11456 = vmatmul.mubr.msk.bf16.gmra.mxu0 %vm172_vm2, %v14394_v29  ;;  %v11228_v6 = vpop.f32.mrf.mxu1  ;;  %v5705_v29 = vrot.slane %v11852_v49, 2  ;;  %v5707_v50 = vrot.slane %v11853_v36, 2 }
 0x3e2   : > { %18480 = vst [vmem:[#allocation186_spill] sm:$0xff] %v15676_v16  ;;  %11459 = vmatprep.mubr.msk.bf16.mxu0 %vm172_vm2, %v15052_v12  ;;  %v6292_v4 = vadd.f32 %v11228_v6, %v15031_v23  ;;  %v15685_v52 = vadd.f32 %v6510_v5, %v6289_v14  ;;  %v18483_v6 = vld [vmem:[#allocation281_spill] sm:$0xff]  ;;  %v6401_v5 = vpack.c.bf16 %v15683_v9, %v15681_v37 }
 0x3e3   : > { %v6526_v13 = vpop.f32.mrf.mxu0  ;;  %v5829_v41 = vpop.f32.mrf.mxu1 }
 0x3e4   : > { %18481 = vst [vmem:[#allocation188_spill] sm:$0xff] %v15685_v52  ;;  %v6290_v16 = vadd.f32 %v5829_v41, %v15040_v63  ;;  %v15688_v12 = vadd.f32 %v11358_v25, %v6292_v4  ;;  %v5706_v63 = vsel %vm2969_vm5, %v5704_v31, %v5705_v29  ;;  %v5708_v25 = vsel %vm2969_vm5, %v5705_v29, %v5707_v50 }
 0x3e5   : > { %v11362_v10 = vpop.f32.mrf.mxu0  ;;  %v11231_v23 = vpop.f32.mrf.mxu1  ;;  %11326 = vmatmul.mubr.msk.bf16.gmra.mxu1 %vm172_vm2, %v18483_v6  ;;  %v15710_v29 = vpack.c.bf16 %v5708_v25, %v5706_v63 }
 0x3e6   : > { %18482 = vst [vmem:[#allocation147_spill] sm:$0xff] %v15688_v12  ;;  %v6295_v14 = vadd.f32 %v11231_v23, %v15045_v0  ;;  %11329 = vmatprep.mubr.msk.bf16.mxu1 %vm172_vm2, %v18484_v1  ;;  %v15697_v49 = vadd.f32 %v6513_v17, %v6290_v16  ;;  %v15707_v23 = vld [vmem:[#allocation2 + $0x538] sm:$0xff]  ;;  %v769_v17 = vld [vmem:[#allocation2 + $0x540] sm:$0xff] }
 0x3e7   : > { %v6529_v52 = vpop.f32.mrf.mxu0  ;;  %v5842_v36 = vpop.f32.mrf.mxu1  ;;  %v11854_v16 = vld [vmem:[#allocation2 + $0x518] sm:$0xff] }
 0x3e8   : > { %18485 = vst [vmem:[#allocation148_spill] sm:$0xff] %v15697_v49  ;;  %v6293_v4 = vadd.f32 %v5842_v36, %v15054_v47  ;;  %v15704_v12 = vadd.f32 %v11361_v19, %v6295_v14  ;;  %v5709_v49 = vrot.slane %v11854_v16, 2  ;;  %v11855_v47 = vld [vmem:[#allocation2 + $0x520] sm:$0x3] }
 0x3e9   : > { %v11365_v41 = vpop.f32.mrf.mxu0  ;;  %11460 = vmatmul.mubr.msk.bf16.gmra.mxu0 %vm172_vm2, %v15074_v42  ;;  %v11232_v0 = vpop.f32.mrf.mxu1  ;;  %v5711_v36 = vrot.slane %v11855_v47, 2 }
 0x3ea   : > { %18486 = vst [vmem:[#allocation149_spill] sm:$0xff] %v15704_v12  ;;  %11463 = vmatprep.mubr.msk.bf16.mxu0 %vm172_vm2, %v6401_v5  ;;  %v6296_v31 = vadd.f32 %v11232_v0, %v15059_v8  ;;  %v15712_v1 = vadd.f32 %v6526_v13, %v6293_v4  ;;  %v6402_v5 = vpack.c.bf16 %v769_v17, %v15707_v23 }
 0x3eb   : > { %v6542_v24 = vpop.f32.mrf.mxu0  ;;  %v5845_v42 = vpop.f32.mrf.mxu1  ;;  %v5710_v13 = vsel %vm2969_vm5, %v5707_v50, %v5709_v49  ;;  %v5712_v25 = vsel %vm2969_vm5, %v5709_v49, %v5711_v36 }
 0x3ec   : > { %v6294_v19 = vadd.f32 %v5845_v42, %v15066_v58  ;;  %v15716_v12 = vadd.f32 %v11362_v10, %v6296_v31 }
 0x3ed   : > { %v11366_v14 = vpop.f32.mrf.mxu0  ;;  %v11235_v6 = vpop.f32.mrf.mxu1  ;;  %11330 = vmatmul.mubr.msk.bf16.gmra.mxu1 %vm172_vm2, %v18487_v3 }
 0x3ee   : > { %v6299_v8 = vadd.f32 %v11235_v6, %v15071_v7  ;;  %11333 = vmatprep.mubr.msk.bf16.mxu1 %vm172_vm2, %v15710_v29  ;;  %v15725_v58 = vadd.f32 %v6529_v52, %v6294_v19  ;;  %v15731_v7 = vpack.c.bf16 %v5712_v25, %v5710_v13  ;;  %v18488_v19 = vld [vmem:[#allocation12_spill] sm:$0xff] }
 0x3ef   : > { %v6545_v63 = vpop.f32.mrf.mxu0  ;;  %v5858_v4 = vpop.f32.mrf.mxu1 }
 0x3f0   : > { %v6297_v10 = vadd.f32 %v5858_v4, %v15079_v56  ;;  %v15729_v17 = vadd.f32 %v11365_v41, %v6299_v8 }
 0x3f1   : > { %v11369_v0 = vpop.f32.mrf.mxu0  ;;  %11464 = vmatmul.mubr.msk.bf16.gmra.mxu0 %vm172_vm2, %v6402_v5  ;;  %v11236_v16 = vpop.f32.mrf.mxu1 }
 0x3f2   : > { %11599 = vmatprep.mubr.msk.bf16.mxu0 %vm172_vm2, %v18168_v46  ;;  %v6300_v50 = vadd.f32 %v11236_v16, %v15082_v48  ;;  %v15736_v49 = vadd.f32 %v6542_v24, %v6297_v10  ;;  %v18489_v16 = vld [vmem:[#allocation13_spill] sm:$0xff] }
 0x3f3   : > { %v6558_v6 = vpop.f32.mrf.mxu0  ;;  %v5861_v52 = vpop.f32.mrf.mxu1 }
 0x3f4   : > { %v6298_v31 = vadd.f32 %v5861_v52, %v15089_v51  ;;  %v15739_v47 = vadd.f32 %v11366_v14, %v6300_v50  ;;  %v18490_v50 = vld [vmem:[#allocation18_spill] sm:$0xff] }
 0x3f5   : > { %v11370_v56 = vpop.f32.mrf.mxu0  ;;  %v11239_v36 = vpop.f32.mrf.mxu1  ;;  %11334 = vmatmul.mubr.msk.bf16.gmra.mxu1 %vm172_vm2, %v15731_v7 }
 0x3f6   : > { %v6303_v41 = vadd.f32 %v11239_v36, %v15094_v38  ;;  %11469 = vmatprep.mubr.msk.bf16.mxu1 %vm172_vm2, %v18488_v19  ;;  %v15746_v48 = vadd.f32 %v6545_v63, %v6298_v31 }
 0x3f7   : > { %v6561_v42 = vpop.f32.mrf.mxu0  ;;  %v5874_v46 = vpop.f32.mrf.mxu1 }
 0x3f8   : > { %v6301_v24 = vadd.f32 %v5874_v46, %v15100_v2  ;;  %v15751_v51 = vadd.f32 %v11369_v0, %v6303_v41  ;;  %v18493_v41 = vld [vmem:[#allocation103_spill] sm:$0xff] }
 0x3f9   : > { %v11373_v5 = vpop.f32.mrf.mxu0  ;;  %11600 = vmatmul.mubr.msk.bf16.vlgmr.msra.gmra.mxu0 %vm172_vm2, %v18176_v15  ;;  %v11240_v14 = vpop.f32.mrf.mxu1 }
 0x3fa   : > { %11603 = vmatprep.mubr.msk.bf16.mxu0 %vm172_vm2, %v18178_v32  ;;  %v6304_v38 = vadd.f32 %v11240_v14, %v15103_v34  ;;  %v15756_v13 = vadd.f32 %v6558_v6, %v6301_v24  ;;  %v18491_v6 = vld [vmem:[#allocation266_spill] sm:$0xff] }
 0x3fb   : > { %v6574_v8 = vpop.f32.mrf.mxu0  ;;  %v5877_v63 = vpop.f32.mrf.mxu1  ;;  %v18495_v14 = vld [vmem:[#allocation270_spill] sm:$0xff] }
 0x3fc   : > { %v6302_v25 = vadd.f32 %v5877_v63, %v15111_v55  ;;  %v15759_v2 = vadd.f32 %v11370_v56, %v6304_v38  ;;  %v18492_v55 = vld [vmem:[#allocation102_spill] sm:$0xff] }
 0x3fd   : > { %v11374_v4 = vpop.f32.mrf.mxu0  ;;  %v11243_v10 = vpop.f32.mrf.mxu1  ;;  %11470 = vmatmul.mubr.msk.bf16.vlgmr.msra.gmra.mxu1 %vm172_vm2, %v18489_v16  ;;  %v18496_v16 = vld [vmem:[#allocation19_spill] sm:$0xff] }
 0x3fe   : > { %v6307_v15 = vadd.f32 %v11243_v10, %v15116_v54  ;;  %11473 = vmatprep.mubr.msk.bf16.mxu1 %vm172_vm2, %v18490_v50  ;;  %v15766_v34 = vadd.f32 %v6561_v42, %v6302_v25  ;;  %v18494_v54 = vld [vmem:[#allocation268_spill] sm:$0xff] }
 0x3ff   : > { %v6577_v0 = vpop.f32.mrf.mxu0  ;;  %v5890_v32 = vpop.f32.mrf.mxu1 }
 0x400   : > { %v6305_v52 = vadd.f32 %v5890_v32, %v18491_v6  ;;  %v15771_v56 = vadd.f32 %v11373_v5, %v6307_v15  ;;  %v18497_v5 = vld [vmem:[#allocation272_spill] sm:$0xff]  ;;  %v18498_v32 = vld [vmem:[#allocation22_spill] sm:$0xff] }
 0x401   : > { %v11377_v31 = vpop.f32.mrf.mxu0  ;;  %11604 = vmatmul.mubr.msk.bf16.gmra.mxu0 %vm172_vm2, %v18492_v55  ;;  %v11244_v36 = vpop.f32.mrf.mxu1 }
 0x402   : > { %11607 = vmatprep.mubr.msk.bf16.mxu0 %vm172_vm2, %v18493_v41  ;;  %v6308_v19 = vadd.f32 %v11244_v36, %v18494_v54  ;;  %v15776_v24 = vadd.f32 %v6574_v8, %v6305_v52  ;;  %v18500_v52 = vld [vmem:[#allocation274_spill] sm:$0xff] }
 0x403   : > { %v6590_v46 = vpop.f32.mrf.mxu0  ;;  %v5893_v42 = vpop.f32.mrf.mxu1  ;;  %v18501_v41 = vld [vmem:[#allocation106_spill] sm:$0xff] }
 0x404   : > { %v6306_v38 = vadd.f32 %v5893_v42, %v18495_v14  ;;  %v15779_v25 = vadd.f32 %v11374_v4, %v6308_v19  ;;  %v18503_v19 = vld [vmem:[#allocation107_spill] sm:$0xff]  ;;  %v18504_v42 = vld [vmem:[#allocation276_spill] sm:$0xff] }
 0x405   : > { %v11378_v63 = vpop.f32.mrf.mxu0  ;;  %v11247_v10 = vpop.f32.mrf.mxu1  ;;  %11474 = vmatmul.mubr.msk.bf16.gmra.mxu1 %vm172_vm2, %v18496_v16 }
 0x406   : > { %v6311_v15 = vadd.f32 %v11247_v10, %v18497_v5  ;;  %11477 = vmatprep.mubr.msk.bf16.mxu1 %vm172_vm2, %v18498_v32  ;;  %v15786_v6 = vadd.f32 %v6577_v0, %v6306_v38  ;;  %v18506_v38 = vld [vmem:[#allocation278_spill] sm:$0xff] }
 0x407   : > { %v6593_v50 = vpop.f32.mrf.mxu0  ;;  %v5906_v8 = vpop.f32.mrf.mxu1 }
 0x408   : > { %18499 = vst [vmem:[#allocation151_spill] sm:$0xff] %v15786_v6  ;;  %v6309_v55 = vadd.f32 %v5906_v8, %v18500_v52  ;;  %v15791_v4 = vadd.f32 %v11377_v31, %v6311_v15  ;;  %v18508_v6 = vld [vmem:[#allocation23_spill] sm:$0xff]  ;;  %v18509_v31 = vld [vmem:[#allocation25_spill] sm:$0xff] }
 0x409   : > { %v11381_v36 = vpop.f32.mrf.mxu0  ;;  %11608 = vmatmul.mubr.msk.bf16.gmra.mxu0 %vm172_vm2, %v18501_v41  ;;  %v11248_v54 = vpop.f32.mrf.mxu1 }
 0x40a   : > { %18502 = vst [vmem:[#allocation198_spill] sm:$0xff] %v15791_v4  ;;  %11611 = vmatprep.mubr.msk.bf16.mxu0 %vm172_vm2, %v18503_v19  ;;  %v6312_v14 = vadd.f32 %v11248_v54, %v18504_v42  ;;  %v15796_v16 = vadd.f32 %v6590_v46, %v6309_v55  ;;  %v18510_v4 = vld [vmem:[#allocation27_spill] sm:$0xff]  ;;  %v18512_v55 = vld [vmem:[#allocation28_spill] sm:$0xff] }
 0x40b   : > { %v6606_v10 = vpop.f32.mrf.mxu0  ;;  %v5909_v0 = vpop.f32.mrf.mxu1 }
 0x40c   : > { %18505 = vst [vmem:[#allocation200_spill] sm:$0xff] %v15796_v16  ;;  %v6310_v5 = vadd.f32 %v5909_v0, %v18506_v38  ;;  %v15799_v8 = vadd.f32 %v11378_v63, %v6312_v14  ;;  %v18513_v0 = vld [vmem:[#allocation110_spill] sm:$0xff]  ;;  %v18515_v38 = vld [vmem:[#allocation111_spill] sm:$0xff] }
 0x40d   : > { %v11382_v32 = vpop.f32.mrf.mxu0  ;;  %v11251_v52 = vpop.f32.mrf.mxu1  ;;  %11478 = vmatmul.mubr.msk.bf16.gmra.mxu1 %vm172_vm2, %v18508_v6  ;;  %v18516_v6 = vld [vmem:[#allocation41_spill] sm:$0xff]  ;;  %v18520_v16 = vld [vmem:[#allocation31_spill] sm:$0xff] }
 0x40e   : > { %18507 = vst [vmem:[#allocation152_spill] sm:$0xff] %v15799_v8  ;;  %v6315_v15 = vadd.f32 %v11251_v52, %v18509_v31  ;;  %11481 = vmatprep.mubr.msk.bf16.mxu1 %vm172_vm2, %v18510_v4  ;;  %v15806_v54 = vadd.f32 %v6593_v50, %v6310_v5  ;;  %v18518_v4 = vld [vmem:[#allocation8_spill] sm:$0xff] }
 0x40f   : > { %v6609_v41 = vpop.f32.mrf.mxu0  ;;  %v5922_v46 = vpop.f32.mrf.mxu1 }
 0x410   : > { %18511 = vst [vmem:[#allocation154_spill] sm:$0xff] %v15806_v54  ;;  %v6313_v19 = vadd.f32 %v5922_v46, %v18512_v55  ;;  %v15811_v63 = vadd.f32 %v11381_v36, %v6315_v15  ;;  %v18521_v36 = vld [vmem:[#allocation104_spill] sm:$0xff] }
 0x411   : > { %v11385_v42 = vpop.f32.mrf.mxu0  ;;  %11612 = vmatmul.mubr.msk.bf16.gmra.mxu0 %vm172_vm2, %v18513_v0  ;;  %v11252_v14 = vpop.f32.mrf.mxu1 }
 0x412   : > { %18514 = vst [vmem:[#allocation156_spill] sm:$0xff] %v15811_v63  ;;  %11615 = vmatprep.mubr.msk.bf16.mxu0 %vm172_vm2, %v18515_v38  ;;  %v6316_v52 = vadd.f32 %v11252_v14, %v18516_v6  ;;  %v15816_v8 = vadd.f32 %v6606_v10, %v6313_v19  ;;  %v18522_v63 = vld [vmem:[#allocation33_spill] sm:$0xff] }
 0x413   : > { %v6622_v31 = vpop.f32.mrf.mxu0  ;;  %v5925_v50 = vpop.f32.mrf.mxu1  ;;  %v18524_v19 = vld [vmem:[#allocation105_spill] sm:$0xff] }
 0x414   : > { %18517 = vst [vmem:[#allocation158_spill] sm:$0xff] %v15816_v8  ;;  %v6314_v5 = vadd.f32 %v5925_v50, %v18518_v4  ;;  %v15819_v46 = vadd.f32 %v11382_v32, %v6316_v52  ;;  %v18525_v50 = vld [vmem:[#allocation114_spill] sm:$0xff]  ;;  %v18527_v4 = vld [vmem:[#allocation115_spill] sm:$0xff]  ;;  %v18532_v8 = vld [vmem:[#allocation36_spill] sm:$0xff] }
 0x415   : > { %v11386_v54 = vpop.f32.mrf.mxu0  ;;  %v11255_v55 = vpop.f32.mrf.mxu1  ;;  %11482 = vmatmul.mubr.msk.bf16.gmra.mxu1 %vm172_vm2, %v18520_v16  ;;  %v18528_v16 = vld [vmem:[#allocation9_spill] sm:$0xff] }
 0x416   : > { %18519 = vst [vmem:[#allocation210_spill] sm:$0xff] %v15819_v46  ;;  %v6319_v15 = vadd.f32 %v11255_v55, %v18521_v36  ;;  %11485 = vmatprep.mubr.msk.bf16.mxu1 %vm172_vm2, %v18522_v63  ;;  %v15826_v14 = vadd.f32 %v6609_v41, %v6314_v5  ;;  %v18530_v63 = vld [vmem:[#allocation17_spill] sm:$0xff] }
 0x417   : > { %v6625_v0 = vpop.f32.mrf.mxu0  ;;  %v5938_v10 = vpop.f32.mrf.mxu1 }
 0x418   : > { %18523 = vst [vmem:[#allocation212_spill] sm:$0xff] %v15826_v14  ;;  %v6317_v38 = vadd.f32 %v5938_v10, %v18524_v19  ;;  %v15831_v32 = vadd.f32 %v11385_v42, %v6319_v15  ;;  %v18533_v42 = vld [vmem:[#allocation50_spill] sm:$0xff] }
 0x419   : > { %v11389_v6 = vpop.f32.mrf.mxu0  ;;  %11616 = vmatmul.mubr.msk.bf16.gmra.mxu0 %vm172_vm2, %v18525_v50  ;;  %v11256_v52 = vpop.f32.mrf.mxu1 }
 0x41a   : > { %18526 = vst [vmem:[#allocation160_spill] sm:$0xff] %v15831_v32  ;;  %11619 = vmatprep.mubr.msk.bf16.mxu0 %vm172_vm2, %v18527_v4  ;;  %v6320_v55 = vadd.f32 %v11256_v52, %v18528_v16  ;;  %v15836_v46 = vadd.f32 %v6622_v31, %v6317_v38  ;;  %v18534_v32 = vld [vmem:[#allocation37_spill] sm:$0xff]  ;;  %v18536_v38 = vld [vmem:[#allocation159_spill] sm:$0xff] }
 0x41b   : > { %v6638_v36 = vpop.f32.mrf.mxu0  ;;  %v5941_v41 = vpop.f32.mrf.mxu1 }
 0x41c   : > { %18529 = vst [vmem:[#allocation164_spill] sm:$0xff] %v15836_v46  ;;  %v6318_v5 = vadd.f32 %v5941_v41, %v18530_v63  ;;  %v15839_v10 = vadd.f32 %v11386_v54, %v6320_v55  ;;  %v18537_v41 = vld [vmem:[#allocation118_spill] sm:$0xff]  ;;  %v18539_v63 = vld [vmem:[#allocation119_spill] sm:$0xff]  ;;  %v18544_v46 = vld [vmem:[#allocation40_spill] sm:$0xff] }
 0x41d   : > { %v11390_v14 = vpop.f32.mrf.mxu0  ;;  %v11259_v19 = vpop.f32.mrf.mxu1  ;;  %11486 = vmatmul.mubr.msk.bf16.gmra.mxu1 %vm172_vm2, %v18532_v8  ;;  %v18540_v8 = vld [vmem:[#allocation72_spill] sm:$0xff] }
 0x41e   : > { %18531 = vst [vmem:[#allocation3_spill] sm:$0xff] %v15839_v10  ;;  %v6323_v15 = vadd.f32 %v11259_v19, %v18533_v42  ;;  %11489 = vmatprep.mubr.msk.bf16.mxu1 %vm172_vm2, %v18534_v32  ;;  %v15846_v52 = vadd.f32 %v6625_v0, %v6318_v5  ;;  %v18542_v32 = vld [vmem:[#allocation169_spill] sm:$0xff] }
 0x41f   : > { %v6641_v50 = vpop.f32.mrf.mxu0  ;;  %v5954_v31 = vpop.f32.mrf.mxu1 }
 0x420   : > { %18535 = vst [vmem:[#allocation167_spill] sm:$0xff] %v15846_v52  ;;  %v6321_v4 = vadd.f32 %v5954_v31, %v18536_v38  ;;  %v15851_v54 = vadd.f32 %v11389_v6, %v6323_v15  ;;  %v18545_v6 = vld [vmem:[#allocation108_spill] sm:$0xff] }
 0x421   : > { %v11393_v16 = vpop.f32.mrf.mxu0  ;;  %11620 = vmatmul.mubr.msk.bf16.gmra.mxu0 %vm172_vm2, %v18537_v41  ;;  %v11260_v55 = vpop.f32.mrf.mxu1 }
 0x422   : > { %18538 = vst [vmem:[#allocation222_spill] sm:$0xff] %v15851_v54  ;;  %11623 = vmatprep.mubr.msk.bf16.mxu0 %vm172_vm2, %v18539_v63  ;;  %v6324_v19 = vadd.f32 %v11260_v55, %v18540_v8  ;;  %v15856_v10 = vadd.f32 %v6638_v36, %v6321_v4  ;;  %v18546_v54 = vld [vmem:[#allocation42_spill] sm:$0xff]  ;;  %v18548_v4 = vld [vmem:[#allocation109_spill] sm:$0xff] }
 0x423   : > { %v6654_v42 = vpop.f32.mrf.mxu0  ;;  %v5957_v0 = vpop.f32.mrf.mxu1 }
 0x424   : > { %18541 = vst [vmem:[#allocation224_spill] sm:$0xff] %v15856_v10  ;;  %v6322_v5 = vadd.f32 %v5957_v0, %v18542_v32  ;;  %v15859_v31 = vadd.f32 %v11390_v14, %v6324_v19  ;;  %v18549_v0 = vld [vmem:[#allocation122_spill] sm:$0xff]  ;;  %v18551_v32 = vld [vmem:[#allocation84_spill] sm:$0xff]  ;;  %v18556_v10 = vld [vmem:[#allocation45_spill] sm:$0xff] }
 0x425   : > { %v11394_v52 = vpop.f32.mrf.mxu0  ;;  %v11263_v38 = vpop.f32.mrf.mxu1  ;;  %11490 = vmatmul.mubr.msk.bf16.gmra.mxu1 %vm172_vm2, %v18544_v46  ;;  %v18552_v46 = vld [vmem:[#allocation29_spill] sm:$0xff] }
 0x426   : > { %18543 = vst [vmem:[#allocation171_spill] sm:$0xff] %v15859_v31  ;;  %v6327_v15 = vadd.f32 %v11263_v38, %v18545_v6  ;;  %11493 = vmatprep.mubr.msk.bf16.mxu1 %vm172_vm2, %v18546_v54  ;;  %v15866_v55 = vadd.f32 %v6641_v50, %v6322_v5  ;;  %v18554_v54 = vld [vmem:[#allocation162_spill] sm:$0xff] }
 0x427   : > { %v6657_v41 = vpop.f32.mrf.mxu0  ;;  %v5970_v36 = vpop.f32.mrf.mxu1 }
 0x428   : > { %18547 = vst [vmem:[#allocation173_spill] sm:$0xff] %v15866_v55  ;;  %v6325_v63 = vadd.f32 %v5970_v36, %v18548_v4  ;;  %v15871_v14 = vadd.f32 %v11393_v16, %v6327_v15  ;;  %v18557_v16 = vld [vmem:[#allocation165_spill] sm:$0xff] }
 0x429   : > { %v11397_v8 = vpop.f32.mrf.mxu0  ;;  %11624 = vmatmul.mubr.msk.bf16.gmra.mxu0 %vm172_vm2, %v18549_v0  ;;  %v11264_v19 = vpop.f32.mrf.mxu1 }
 0x42a   : > { %18550 = vst [vmem:[#allocation177_spill] sm:$0xff] %v15871_v14  ;;  %11627 = vmatprep.mubr.msk.bf16.mxu0 %vm172_vm2, %v18551_v32  ;;  %v6328_v38 = vadd.f32 %v11264_v19, %v18552_v46  ;;  %v15876_v31 = vadd.f32 %v6654_v42, %v6325_v63  ;;  %v18558_v14 = vld [vmem:[#allocation46_spill] sm:$0xff] }
 0x42b   : > { %v6670_v6 = vpop.f32.mrf.mxu0  ;;  %v5973_v50 = vpop.f32.mrf.mxu1  ;;  %v18560_v63 = vld [vmem:[#allocation170_spill] sm:$0xff] }
 0x42c   : > { %18553 = vst [vmem:[#allocation180_spill] sm:$0xff] %v15876_v31  ;;  %v6326_v5 = vadd.f32 %v5973_v50, %v18554_v54  ;;  %v15879_v36 = vadd.f32 %v11394_v52, %v6328_v38  ;;  %v18561_v50 = vld [vmem:[#allocation85_spill] sm:$0xff]  ;;  %v18563_v54 = vld [vmem:[#allocation88_spill] sm:$0xff] }
 0x42d   : > { %v11398_v55 = vpop.f32.mrf.mxu0  ;;  %v11267_v4 = vpop.f32.mrf.mxu1  ;;  %11494 = vmatmul.mubr.msk.bf16.gmra.mxu1 %vm172_vm2, %v18556_v10  ;;  %v18564_v10 = vld [vmem:[#allocation112_spill] sm:$0xff]  ;;  %v18568_v31 = vld [vmem:[#allocation49_spill] sm:$0xff] }
 0x42e   : > { %18555 = vst [vmem:[#allocation234_spill] sm:$0xff] %v15879_v36  ;;  %v6331_v15 = vadd.f32 %v11267_v4, %v18557_v16  ;;  %11497 = vmatprep.mubr.msk.bf16.mxu1 %vm172_vm2, %v18558_v14  ;;  %v15886_v19 = vadd.f32 %v6657_v41, %v6326_v5  ;;  %v18566_v14 = vld [vmem:[#allocation113_spill] sm:$0xff] }
 0x42f   : > { %v6673_v0 = vpop.f32.mrf.mxu0  ;;  %v5986_v42 = vpop.f32.mrf.mxu1 }
 0x430   : > { %18559 = vst [vmem:[#allocation236_spill] sm:$0xff] %v15886_v19  ;;  %v6329_v32 = vadd.f32 %v5986_v42, %v18560_v63  ;;  %v15891_v52 = vadd.f32 %v11397_v8, %v6331_v15  ;;  %v18569_v8 = vld [vmem:[#allocation30_spill] sm:$0xff] }
 0x431   : > { %v11401_v46 = vpop.f32.mrf.mxu0  ;;  %11628 = vmatmul.mubr.msk.bf16.gmra.mxu0 %vm172_vm2, %v18561_v50  ;;  %v11268_v38 = vpop.f32.mrf.mxu1 }
 0x432   : > { %18562 = vst [vmem:[#allocation183_spill] sm:$0xff] %v15891_v52  ;;  %11631 = vmatprep.mubr.msk.bf16.mxu0 %vm172_vm2, %v18563_v54  ;;  %v6332_v4 = vadd.f32 %v11268_v38, %v18564_v10  ;;  %v15896_v36 = vadd.f32 %v6670_v6, %v6329_v32  ;;  %v18570_v52 = vld [vmem:[#allocation51_spill] sm:$0xff]  ;;  %v18572_v32 = vld [vmem:[#allocation172_spill] sm:$0xff] }
 0x433   : > { %v6686_v16 = vpop.f32.mrf.mxu0  ;;  %v5989_v41 = vpop.f32.mrf.mxu1 }
 0x434   : > { %18565 = vst [vmem:[#allocation185_spill] sm:$0xff] %v15896_v36  ;;  %v6330_v5 = vadd.f32 %v5989_v41, %v18566_v14  ;;  %v15899_v42 = vadd.f32 %v11398_v55, %v6332_v4  ;;  %v18573_v41 = vld [vmem:[#allocation89_spill] sm:$0xff]  ;;  %v18575_v14 = vld [vmem:[#allocation92_spill] sm:$0xff]  ;;  %v18580_v36 = vld [vmem:[#allocation54_spill] sm:$0xff] }
 0x435   : > { %v11402_v19 = vpop.f32.mrf.mxu0  ;;  %v11271_v63 = vpop.f32.mrf.mxu1  ;;  %11498 = vmatmul.mubr.msk.bf16.gmra.mxu1 %vm172_vm2, %v18568_v31  ;;  %v18576_v31 = vld [vmem:[#allocation101_spill] sm:$0xff] }
 0x436   : > { %18567 = vst [vmem:[#allocation189_spill] sm:$0xff] %v15899_v42  ;;  %v6335_v15 = vadd.f32 %v11271_v63, %v18569_v8  ;;  %11501 = vmatprep.mubr.msk.bf16.mxu1 %vm172_vm2, %v18570_v52  ;;  %v15906_v38 = vadd.f32 %v6673_v0, %v6330_v5  ;;  %v18578_v52 = vld [vmem:[#allocation175_spill] sm:$0xff] }
 0x437   : > { %v6689_v50 = vpop.f32.mrf.mxu0  ;;  %v6002_v6 = vpop.f32.mrf.mxu1 }
 0x438   : > { %18571 = vst [vmem:[#allocation192_spill] sm:$0xff] %v15906_v38  ;;  %v6333_v54 = vadd.f32 %v6002_v6, %v18572_v32  ;;  %v15911_v55 = vadd.f32 %v11401_v46, %v6335_v15  ;;  %v18581_v46 = vld [vmem:[#allocation116_spill] sm:$0xff] }
 0x439   : > { %v11405_v10 = vpop.f32.mrf.mxu0  ;;  %11632 = vmatmul.mubr.msk.bf16.gmra.mxu0 %vm172_vm2, %v18573_v41  ;;  %v11272_v4 = vpop.f32.mrf.mxu1 }
 0x43a   : > { %18574 = vst [vmem:[#allocation246_spill] sm:$0xff] %v15911_v55  ;;  %11635 = vmatprep.mubr.msk.bf16.mxu0 %vm172_vm2, %v18575_v14  ;;  %v6336_v63 = vadd.f32 %v11272_v4, %v18576_v31  ;;  %v15916_v42 = vadd.f32 %v6686_v16, %v6333_v54  ;;  %v18582_v55 = vld [vmem:[#allocation55_spill] sm:$0xff]  ;;  %v18584_v54 = vld [vmem:[#allocation117_spill] sm:$0xff] }
 0x43b   : > { %v6702_v8 = vpop.f32.mrf.mxu0  ;;  %v6005_v0 = vpop.f32.mrf.mxu1 }
 0x43c   : > { %18577 = vst [vmem:[#allocation248_spill] sm:$0xff] %v15916_v42  ;;  %v6334_v5 = vadd.f32 %v6005_v0, %v18578_v52  ;;  %v15919_v6 = vadd.f32 %v11402_v19, %v6336_v63  ;;  %v18585_v0 = vld [vmem:[#allocation93_spill] sm:$0xff]  ;;  %v18587_v52 = vld [vmem:[#allocation96_spill] sm:$0xff]  ;;  %v18592_v42 = vld [vmem:[#allocation58_spill] sm:$0xff] }
 0x43d   : > { %v11406_v38 = vpop.f32.mrf.mxu0  ;;  %v11275_v32 = vpop.f32.mrf.mxu1  ;;  %11502 = vmatmul.mubr.msk.bf16.gmra.mxu1 %vm172_vm2, %v18580_v36  ;;  %v18588_v36 = vld [vmem:[#allocation178_spill] sm:$0xff] }
 0x43e   : > { %18579 = vst [vmem:[#allocation195_spill] sm:$0xff] %v15919_v6  ;;  %v6339_v15 = vadd.f32 %v11275_v32, %v18581_v46  ;;  %11505 = vmatprep.mubr.msk.bf16.mxu1 %vm172_vm2, %v18582_v55  ;;  %v15926_v4 = vadd.f32 %v6689_v50, %v6334_v5  ;;  %v18590_v55 = vld [vmem:[#allocation182_spill] sm:$0xff] }
 0x43f   : > { %v6705_v41 = vpop.f32.mrf.mxu0  ;;  %v6018_v16 = vpop.f32.mrf.mxu1 }
 0x440   : > { %18583 = vst [vmem:[#allocation197_spill] sm:$0xff] %v15926_v4  ;;  %v6337_v14 = vadd.f32 %v6018_v16, %v18584_v54  ;;  %v15931_v19 = vadd.f32 %v11405_v10, %v6339_v15  ;;  %v18593_v10 = vld [vmem:[#allocation184_spill] sm:$0xff] }
 0x441   : > { %v11409_v31 = vpop.f32.mrf.mxu0  ;;  %11636 = vmatmul.mubr.msk.bf16.gmra.mxu0 %vm172_vm2, %v18585_v0  ;;  %v11276_v63 = vpop.f32.mrf.mxu1 }
 0x442   : > { %18586 = vst [vmem:[#allocation227_spill] sm:$0xff] %v15931_v19  ;;  %11639 = vmatprep.mubr.msk.bf16.mxu0 %vm172_vm2, %v18587_v52  ;;  %v6340_v32 = vadd.f32 %v11276_v63, %v18588_v36  ;;  %v15936_v6 = vadd.f32 %v6702_v8, %v6337_v14  ;;  %v18594_v19 = vld [vmem:[#allocation60_spill] sm:$0xff]  ;;  %v18596_v14 = vld [vmem:[#allocation187_spill] sm:$0xff] }
 0x443   : > { %v6718_v46 = vpop.f32.mrf.mxu0  ;;  %v6021_v50 = vpop.f32.mrf.mxu1 }
 0x444   : > { %18589 = vst [vmem:[#allocation201_spill] sm:$0xff] %v15936_v6  ;;  %v6338_v5 = vadd.f32 %v6021_v50, %v18590_v55  ;;  %v15939_v16 = vadd.f32 %v11406_v38, %v6340_v32  ;;  %v18597_v50 = vld [vmem:[#allocation97_spill] sm:$0xff]  ;;  %v18599_v55 = vld [vmem:[#allocation63_spill] sm:$0xff] }
 0x445   : > { %v11410_v4 = vpop.f32.mrf.mxu0  ;;  %v11279_v54 = vpop.f32.mrf.mxu1  ;;  %11506 = vmatmul.mubr.msk.bf16.gmra.mxu1 %vm172_vm2, %v18592_v42  ;;  %v18600_v42 = vld [vmem:[#allocation120_spill] sm:$0xff]  ;;  %v18604_v6 = vld [vmem:[#allocation65_spill] sm:$0xff] }
 0x446   : > { %18591 = vst [vmem:[#allocation204_spill] sm:$0xff] %v15939_v16  ;;  %v6343_v15 = vadd.f32 %v11279_v54, %v18593_v10  ;;  %11509 = vmatprep.mubr.msk.bf16.mxu1 %vm172_vm2, %v18594_v19  ;;  %v15946_v63 = vadd.f32 %v6705_v41, %v6338_v5  ;;  %v18602_v19 = vld [vmem:[#allocation121_spill] sm:$0xff] }
 0x447   : > { %v6721_v0 = vpop.f32.mrf.mxu0  ;;  %v6034_v8 = vpop.f32.mrf.mxu1 }
 0x448   : > { %18595 = vst [vmem:[#allocation258_spill] sm:$0xff] %v15946_v63  ;;  %v6341_v52 = vadd.f32 %v6034_v8, %v18596_v14  ;;  %v15951_v38 = vadd.f32 %v11409_v31, %v6343_v15  ;;  %v18605_v31 = vld [vmem:[#allocation190_spill] sm:$0xff] }
 0x449   : > { %v11413_v36 = vpop.f32.mrf.mxu0  ;;  %11640 = vmatmul.mubr.msk.bf16.gmra.mxu0 %vm172_vm2, %v18597_v50  ;;  %v11280_v32 = vpop.f32.mrf.mxu1 }
 0x44a   : > { %18598 = vst [vmem:[#allocation207_spill] sm:$0xff] %v15951_v38  ;;  %11643 = vmatprep.mubr.msk.bf16.mxu0 %vm172_vm2, %v18599_v55  ;;  %v6344_v54 = vadd.f32 %v11280_v32, %v18600_v42  ;;  %v15956_v16 = vadd.f32 %v6718_v46, %v6341_v52  ;;  %v18606_v38 = vld [vmem:[#allocation66_spill] sm:$0xff] }
 0x44b   : > { %v6734_v10 = vpop.f32.mrf.mxu0  ;;  %v6037_v41 = vpop.f32.mrf.mxu1  ;;  %v18608_v46 = vld [vmem:[#allocation194_spill] sm:$0xff] }
 0x44c   : > { %18601 = vst [vmem:[#allocation209_spill] sm:$0xff] %v15956_v16  ;;  %v6342_v5 = vadd.f32 %v6037_v41, %v18602_v19  ;;  %v15959_v8 = vadd.f32 %v11410_v4, %v6344_v54  ;;  %v18609_v41 = vld [vmem:[#allocation100_spill] sm:$0xff]  ;;  %v18611_v19 = vld [vmem:[#allocation5_spill] sm:$0xff] }
 0x44d   : > { %v11414_v63 = vpop.f32.mrf.mxu0  ;;  %v11283_v14 = vpop.f32.mrf.mxu1  ;;  %11510 = vmatmul.mubr.msk.bf16.gmra.mxu1 %vm172_vm2, %v18604_v6  ;;  %v18612_v6 = vld [vmem:[#allocation196_spill] sm:$0xff]  ;;  %v18616_v16 = vld [vmem:[#allocation73_spill] sm:$0xff] }
 0x44e   : > { %18603 = vst [vmem:[#allocation239_spill] sm:$0xff] %v15959_v8  ;;  %v6347_v15 = vadd.f32 %v11283_v14, %v18605_v31  ;;  %11513 = vmatprep.mubr.msk.bf16.mxu1 %vm172_vm2, %v18606_v38  ;;  %v15966_v55 = vadd.f32 %v6721_v0, %v6342_v5  ;;  %v18614_v0 = vld [vmem:[#allocation199_spill] sm:$0xff] }
 0x44f   : > { %v6737_v50 = vpop.f32.mrf.mxu0  ;;  %v6050_v32 = vpop.f32.mrf.mxu1 }
 0x450   : > { %18607 = vst [vmem:[#allocation213_spill] sm:$0xff] %v15966_v55  ;;  %v6345_v52 = vadd.f32 %v6050_v32, %v18608_v46  ;;  %v15971_v4 = vadd.f32 %v11413_v36, %v6347_v15  ;;  %v18617_v36 = vld [vmem:[#allocation123_spill] sm:$0xff] }
 0x451   : > { %v11417_v42 = vpop.f32.mrf.mxu0  ;;  %11644 = vmatmul.mubr.msk.bf16.gmra.mxu0 %vm172_vm2, %v18609_v41  ;;  %v11284_v54 = vpop.f32.mrf.mxu1 }
 0x452   : > { %18610 = vst [vmem:[#allocation241_spill] sm:$0xff] %v15971_v4  ;;  %11647 = vmatprep.mubr.msk.bf16.mxu0 %vm172_vm2, %v18611_v19  ;;  %v6348_v14 = vadd.f32 %v11284_v54, %v18612_v6  ;;  %v15976_v8 = vadd.f32 %v6734_v10, %v6345_v52  ;;  %v18618_v4 = vld [vmem:[#allocation74_spill] sm:$0xff]  ;;  %v18620_v52 = vld [vmem:[#allocation124_spill] sm:$0xff] }
 0x453   : > { %v6750_v31 = vpop.f32.mrf.mxu0  ;;  %v6053_v38 = vpop.f32.mrf.mxu1 }
 0x454   : > { %18613 = vst [vmem:[#allocation216_spill] sm:$0xff] %v15976_v8  ;;  %v6346_v5 = vadd.f32 %v6053_v38, %v18614_v0  ;;  %v15979_v32 = vadd.f32 %v11414_v63, %v6348_v14  ;;  %v18621_v38 = vld [vmem:[#allocation4_spill] sm:$0xff]  ;;  %v18628_v8 = vld [vmem:[#allocation77_spill] sm:$0xff] }
 0x455   : > { %v11418_v55 = vpop.f32.mrf.mxu0  ;;  %v11287_v46 = vpop.f32.mrf.mxu1  ;;  %11514 = vmatmul.mubr.msk.bf16.gmra.mxu1 %vm172_vm2, %v18616_v16  ;;  %v18623_v0 = vld [vmem:[#allocation16_spill] sm:$0xff]  ;;  %v18624_v16 = vld [vmem:[#allocation202_spill] sm:$0xff] }
 0x456   : > { %18615 = vst [vmem:[#allocation219_spill] sm:$0xff] %v15979_v32  ;;  %v6351_v15 = vadd.f32 %v11287_v46, %v18617_v36  ;;  %11517 = vmatprep.mubr.msk.bf16.mxu1 %vm172_vm2, %v18618_v4  ;;  %v15986_v54 = vadd.f32 %v6737_v50, %v6346_v5  ;;  %v18626_v4 = vld [vmem:[#allocation206_spill] sm:$0xff] }
 0x457   : > { %v6753_v41 = vpop.f32.mrf.mxu0  ;;  %v6066_v10 = vpop.f32.mrf.mxu1 }
 0x458   : > { %18619 = vst [vmem:[#allocation221_spill] sm:$0xff] %v15986_v54  ;;  %v6349_v19 = vadd.f32 %v6066_v10, %v18620_v52  ;;  %v15991_v63 = vadd.f32 %v11417_v42, %v6351_v15  ;;  %v18629_v42 = vld [vmem:[#allocation208_spill] sm:$0xff] }
 0x459   : > { %v11421_v6 = vpop.f32.mrf.mxu0  ;;  %11648 = vmatmul.mubr.msk.bf16.gmra.mxu0 %vm172_vm2, %v18621_v38  ;;  %v11288_v14 = vpop.f32.mrf.mxu1 }
 0x45a   : > { %18622 = vst [vmem:[#allocation251_spill] sm:$0xff] %v15991_v63  ;;  %11651 = vmatprep.mubr.msk.bf16.mxu0 %vm172_vm2, %v18623_v0  ;;  %v6352_v46 = vadd.f32 %v11288_v14, %v18624_v16  ;;  %v15996_v32 = vadd.f32 %v6750_v31, %v6349_v19  ;;  %v18630_v63 = vld [vmem:[#allocation78_spill] sm:$0xff]  ;;  %v18632_v19 = vld [vmem:[#allocation211_spill] sm:$0xff] }
 0x45b   : > { %v6766_v36 = vpop.f32.mrf.mxu0  ;;  %v6069_v50 = vpop.f32.mrf.mxu1 }
 0x45c   : > { %18625 = vst [vmem:[#allocation253_spill] sm:$0xff] %v15996_v32  ;;  %v6350_v5 = vadd.f32 %v6069_v50, %v18626_v4  ;;  %v15999_v10 = vadd.f32 %v11418_v55, %v6352_v46  ;;  %v18633_v50 = vld [vmem:[#allocation71_spill] sm:$0xff]  ;;  %v18635_v4 = vld [vmem:[#allocation150_spill] sm:$0xff]  ;;  %v18640_v32 = vld [vmem:[#allocation81_spill] sm:$0xff] }
 0x45d   : > { %v11422_v54 = vpop.f32.mrf.mxu0  ;;  %v11291_v52 = vpop.f32.mrf.mxu1  ;;  %11518 = vmatmul.mubr.msk.bf16.gmra.mxu1 %vm172_vm2, %v18628_v8  ;;  %v18636_v8 = vld [vmem:[#allocation83_spill] sm:$0xff] }
 0x45e   : > { %18627 = vst [vmem:[#allocation225_spill] sm:$0xff] %v15999_v10  ;;  %v6355_v15 = vadd.f32 %v11291_v52, %v18629_v42  ;;  %11521 = vmatprep.mubr.msk.bf16.mxu1 %vm172_vm2, %v18630_v63  ;;  %v16006_v14 = vadd.f32 %v6753_v41, %v6350_v5  ;;  %v18638_v63 = vld [vmem:[#allocation86_spill] sm:$0xff] }
 0x45f   : > { %v6769_v38 = vpop.f32.mrf.mxu0  ;;  %v6082_v31 = vpop.f32.mrf.mxu1 }
 0x460   : > { %18631 = vst [vmem:[#allocation228_spill] sm:$0xff] %v16006_v14  ;;  %v6353_v0 = vadd.f32 %v6082_v31, %v18632_v19  ;;  %v16011_v55 = vadd.f32 %v11421_v6, %v6355_v15  ;;  %v18641_v6 = vld [vmem:[#allocation214_spill] sm:$0xff] }
 0x461   : > { %v11425_v16 = vpop.f32.mrf.mxu0  ;;  %11652 = vmatmul.mubr.msk.bf16.gmra.mxu0 %vm172_vm2, %v18633_v50  ;;  %v11292_v46 = vpop.f32.mrf.mxu1 }
 0x462   : > { %18634 = vst [vmem:[#allocation260_spill] sm:$0xff] %v16011_v55  ;;  %11655 = vmatprep.mubr.msk.bf16.mxu0 %vm172_vm2, %v18635_v4  ;;  %v6356_v52 = vadd.f32 %v11292_v46, %v18636_v8  ;;  %v16016_v10 = vadd.f32 %v6766_v36, %v6353_v0  ;;  %v18642_v55 = vld [vmem:[#allocation6_spill] sm:$0xff] }
 0x463   : > { %v6782_v42 = vpop.f32.mrf.mxu0  ;;  %v6085_v41 = vpop.f32.mrf.mxu1  ;;  %v18644_v0 = vld [vmem:[#allocation218_spill] sm:$0xff] }
 0x464   : > { %18637 = vst [vmem:[#allocation261_spill] sm:$0xff] %v16016_v10  ;;  %v6354_v5 = vadd.f32 %v6085_v41, %v18638_v63  ;;  %v16019_v31 = vadd.f32 %v11422_v54, %v6356_v52  ;;  %v18674_v10 = vld [vmem:[#allocation15_spill] sm:$0xff] }
 0x465   : > { %v11426_v14 = vpop.f32.mrf.mxu0  ;;  %v11295_v19 = vpop.f32.mrf.mxu1  ;;  %11522 = vmatmul.mubr.msk.bf16.gmra.mxu1 %vm172_vm2, %v18640_v32  ;;  %v18646_v32 = vld [vmem:[#allocation220_spill] sm:$0xff] }
 0x466   : > { %18639 = vst [vmem:[#allocation231_spill] sm:$0xff] %v16019_v31  ;;  %v6359_v15 = vadd.f32 %v11295_v19, %v18641_v6  ;;  %11525 = vmatprep.mubr.msk.bf16.mxu1 %vm172_vm2, %v18642_v55  ;;  %v16026_v46 = vadd.f32 %v6769_v38, %v6354_v5  ;;  %v7787_v55 = vrot.slane %v15681_v37, 2  ;;  %v7788_v5 = vrot.slane %v15683_v9, 2  ;;  %v18648_v6 = vld [vmem:[#allocation223_spill] sm:$0xff] }
 0x467   : > { %v6785_v50 = vpop.f32.mrf.mxu0  ;;  %v6098_v36 = vpop.f32.mrf.mxu1 }
 0x468   : > { %18643 = vst [vmem:[#allocation233_spill] sm:$0xff] %v16026_v46  ;;  %v6357_v4 = vadd.f32 %v6098_v36, %v18644_v0  ;;  %v16031_v54 = vadd.f32 %v11425_v16, %v6359_v15  ;;  %v18650_v15 = vld [vmem:[#allocation7_spill] sm:$0xff]  ;;  %v18655_v46 = vld [vmem:[#allocation166_spill] sm:$0xff] }
 0x469   : > { %v11429_v8 = vpop.f32.mrf.mxu0  ;;  %11656 = vmatmul.mubr.msk.bf16.gmra.mxu0 %vm172_vm2, %v18344_v57  ;;  %v11296_v52 = vpop.f32.mrf.mxu1 }
 0x46a   : > { %18645 = vst [vmem:[#allocation263_spill] sm:$0xff] %v16031_v54  ;;  %11659 = vmatprep.mubr.msk.bf16.mxu0 %vm172_vm2, %v18346_v60  ;;  %v6360_v41 = vadd.f32 %v11296_v52, %v18646_v32  ;;  %v16036_v19 = vadd.f32 %v6782_v42, %v6357_v4  ;;  %v18651_v60 = vld [vmem:[#allocation87_spill] sm:$0xff]  ;;  %v18652_v32 = vld [vmem:[#allocation10_spill] sm:$0xff]  ;;  %v17504_v42 = vrot.slane %v15707_v23, 2 }
 0x46b   : > { %v6798_v63 = vpop.f32.mrf.mxu0  ;;  %v6101_v38 = vpop.f32.mrf.mxu1 }
 0x46c   : > { %18647 = vst [vmem:[#allocation265_spill] sm:$0xff] %v16036_v19  ;;  %v6358_v36 = vadd.f32 %v6101_v38, %v18648_v6  ;;  %v16041_v57 = vadd.f32 %v11426_v14, %v6360_v41  ;;  %v7090_v19 = vrot.slane %v15681_v37, 1  ;;  %v7091_v38 = vrot.slane %v15683_v9, 1  ;;  %v18654_v41 = vld [vmem:[#allocation90_spill] sm:$0xff] }
 0x46d   : > { %v11430_v0 = vpop.f32.mrf.mxu0  ;;  %v11299_v16 = vpop.f32.mrf.mxu1  ;;  %11526 = vmatmul.mubr.msk.bf16.gmra.mxu1 %vm172_vm2, %v18650_v15  ;;  %v16062_v15 = vsel %vm2969_vm5, %v7788_v5, %v17504_v42  ;;  %v18664_v9 = vld [vmem:[#allocation14_spill] sm:$0xff] }
 0x46e   : > { %18649 = vst [vmem:[#allocation237_spill] sm:$0xff] %v16041_v57  ;;  %v6363_v54 = vadd.f32 %v11299_v16, %v18651_v60  ;;  %11529 = vmatprep.mubr.msk.bf16.mxu1 %vm172_vm2, %v18652_v32  ;;  %v16049_v4 = vadd.f32 %v6785_v50, %v6358_v36  ;;  %v16057_v16 = vsel %vm2969_vm5, %v7787_v55, %v7788_v5  ;;  %v18657_v36 = vld [vmem:[#allocation168_spill] sm:$0xff]  ;;  %v18658_v60 = vld [vmem:[#allocation226_spill] sm:$0xff]  ;;  %v17505_v55 = vrot.slane %v15707_v23, 1 }
 0x46f   : > { %v6801_v52 = vpop.f32.mrf.mxu0  ;;  %v6114_v14 = vpop.f32.mrf.mxu1 }
 0x470   : > { %18653 = vst [vmem:[#allocation240_spill] sm:$0xff] %v16049_v4  ;;  %v6361_v6 = vadd.f32 %v6114_v14, %v18654_v41  ;;  %v16064_v50 = vadd.f32 %v11429_v8, %v6363_v54  ;;  %v18660_v4 = vld [vmem:[#allocation230_spill] sm:$0xff]  ;;  %v16076_v8 = vsel %vm1004_vm4, %v7090_v19, %v7091_v38  ;;  %v16081_v54 = vsel %vm1004_vm4, %v7091_v38, %v17505_v55  ;;  %v18666_v38 = vld [vmem:[#allocation235_spill] sm:$0xff] }
 0x471   : > { %v11433_v57 = vpop.f32.mrf.mxu0  ;;  %11660 = vmatmul.mubr.msk.bf16.gmra.mxu0 %vm172_vm2, %v18655_v46  ;;  %v11300_v37 = vpop.f32.mrf.mxu1 }
 0x472   : > { %18656 = vst [vmem:[#allocation267_spill] sm:$0xff] %v16064_v50  ;;  %11663 = vmatprep.mubr.msk.bf16.mxu0 %vm172_vm2, %v18657_v36  ;;  %v6364_v32 = vadd.f32 %v11300_v37, %v18658_v60  ;;  %v16072_v14 = vadd.f32 %v6798_v63, %v6361_v6  ;;  %v18662_v60 = vld [vmem:[#allocation11_spill] sm:$0xff]  ;;  %v18663_v6 = vld [vmem:[#allocation232_spill] sm:$0xff]  ;;  %v18669_v50 = vld [vmem:[#allocation181_spill] sm:$0xff] }
 0x473   : > { %v6814_v46 = vpop.f32.mrf.mxu0  ;;  %v6117_v41 = vpop.f32.mrf.mxu1 }
 0x474   : > { %18659 = vst [vmem:[#allocation243_spill] sm:$0xff] %v16072_v14  ;;  %v6362_v5 = vadd.f32 %v6117_v41, %v18660_v4  ;;  %v16083_v36 = vadd.f32 %v11430_v0, %v6364_v32  ;;  %v18667_v32 = vld [vmem:[#allocation179_spill] sm:$0xff] }
 0x475   : > { %v11434_v42 = vpop.f32.mrf.mxu0  ;;  %v11303_v37 = vpop.f32.mrf.mxu1  ;;  %11530 = vmatmul.mubr.msk.bf16.gmra.mxu1 %vm172_vm2, %v18662_v60 }
 0x476   : > { %18661 = vst [vmem:[#allocation279_spill] sm:$0xff] %v16083_v36  ;;  %v6367_v4 = vadd.f32 %v11303_v37, %v18663_v6  ;;  %11533 = vmatprep.mubr.msk.bf16.mxu1 %vm172_vm2, %v18664_v9  ;;  %v16092_v19 = vadd.f32 %v6801_v52, %v6362_v5  ;;  %v18670_v37 = vld [vmem:[#allocation91_spill] sm:$0xff]  ;;  %v18672_v9 = vld [vmem:[#allocation94_spill] sm:$0xff] }
 0x477   : > { %v6817_v41 = vpop.f32.mrf.mxu0  ;;  %v6130_v14 = vpop.f32.mrf.mxu1 }
 0x478   : > { %18665 = vst [vmem:[#allocation280_spill] sm:$0xff] %v16092_v19  ;;  %v6365_v55 = vadd.f32 %v6130_v14, %v18666_v38  ;;  %v16097_v36 = vadd.f32 %v11433_v57, %v6367_v4  ;;  %v18675_v57 = vld [vmem:[#allocation238_spill] sm:$0xff] }
 0x479   : > { %v11437_v0 = vpop.f32.mrf.mxu0  ;;  %11664 = vmatmul.mubr.msk.bf16.gmra.mxu0 %vm172_vm2, %v18667_v32  ;;  %v11304_v60 = vpop.f32.mrf.mxu1 }
 0x47a   : > { %18668 = vst [vmem:[#allocation245_spill] sm:$0xff] %v16097_v36  ;;  %11667 = vmatprep.mubr.msk.bf16.mxu0 %vm172_vm2, %v18669_v50  ;;  %v6368_v6 = vadd.f32 %v11304_v60, %v18670_v37  ;;  %v16102_v31 = vadd.f32 %v6814_v46, %v6365_v55  ;;  %v18676_v36 = vld [vmem:[#allocation20_spill] sm:$0xff]  ;;  %v18678_v55 = vld [vmem:[#allocation242_spill] sm:$0xff] }
 0x47b   : > { %v6830_v63 = vpop.f32.mrf.mxu0  ;;  %v6133_v52 = vpop.f32.mrf.mxu1 }
 0x47c   : > { %18671 = vst [vmem:[#allocation249_spill] sm:$0xff] %v16102_v31  ;;  %v6366_v5 = vadd.f32 %v6133_v52, %v18672_v9  ;;  %v16105_v14 = vadd.f32 %v11434_v42, %v6368_v6  ;;  %v18679_v52 = vld [vmem:[#allocation191_spill] sm:$0xff]  ;;  %v18681_v9 = vld [vmem:[#allocation193_spill] sm:$0xff] }
 0x47d   : > { %v11438_v19 = vpop.f32.mrf.mxu0  ;;  %v11307_v38 = vpop.f32.mrf.mxu1  ;;  %11534 = vmatmul.mubr.msk.bf16.gmra.mxu1 %vm172_vm2, %v18674_v10  ;;  %v18682_v10 = vld [vmem:[#allocation244_spill] sm:$0xff]  ;;  %v18686_v31 = vld [vmem:[#allocation21_spill] sm:$0xff] }
 0x47e   : > { %18673 = vst [vmem:[#allocation271_spill] sm:$0xff] %v16105_v14  ;;  %v6371_v4 = vadd.f32 %v11307_v38, %v18675_v57  ;;  %11537 = vmatprep.mubr.msk.bf16.mxu1 %vm172_vm2, %v18676_v36  ;;  %v16112_v50 = vadd.f32 %v6817_v41, %v6366_v5  ;;  %v18684_v41 = vld [vmem:[#allocation247_spill] sm:$0xff] }
 0x47f   : > { %v6833_v32 = vpop.f32.mrf.mxu0  ;;  %v6146_v46 = vpop.f32.mrf.mxu1 }
 0x480   : > { %18677 = vst [vmem:[#allocation257_spill] sm:$0xff] %v16112_v50  ;;  %v6369_v60 = vadd.f32 %v6146_v46, %v18678_v55  ;;  %v16117_v42 = vadd.f32 %v11437_v0, %v6371_v4  ;;  %v18687_v0 = vld [vmem:[#allocation95_spill] sm:$0xff] }
 0x481   : > { %v11441_v37 = vpop.f32.mrf.mxu0  ;;  %11668 = vmatmul.mubr.msk.bf16.gmra.mxu0 %vm172_vm2, %v18679_v52  ;;  %v11308_v6 = vpop.f32.mrf.mxu1 }
 0x482   : > { %18680 = vst [vmem:[#allocation273_spill] sm:$0xff] %v16117_v42  ;;  %11671 = vmatprep.mubr.msk.bf16.mxu0 %vm172_vm2, %v18681_v9  ;;  %v6372_v38 = vadd.f32 %v11308_v6, %v18682_v10  ;;  %v16122_v14 = vadd.f32 %v6830_v63, %v6369_v60  ;;  %v18688_v42 = vld [vmem:[#allocation24_spill] sm:$0xff]  ;;  %v18690_v60 = vld [vmem:[#allocation98_spill] sm:$0xff] }
 0x483   : > { %v6846_v57 = vpop.f32.mrf.mxu0  ;;  %v6149_v36 = vpop.f32.mrf.mxu1 }
 0x484   : > { %18683 = vst [vmem:[#allocation252_spill] sm:$0xff] %v16122_v14  ;;  %v6370_v5 = vadd.f32 %v6149_v36, %v18684_v41  ;;  %v16125_v46 = vadd.f32 %v11438_v19, %v6372_v38  ;;  %v18691_v36 = vld [vmem:[#allocation203_spill] sm:$0xff]  ;;  %v18693_v41 = vld [vmem:[#allocation205_spill] sm:$0xff]  ;;  %v18698_v14 = vld [vmem:[#allocation26_spill] sm:$0xff] }
 0x485   : > { %v11442_v50 = vpop.f32.mrf.mxu0  ;;  %v11311_v55 = vpop.f32.mrf.mxu1  ;;  %11538 = vmatmul.mubr.msk.bf16.gmra.mxu1 %vm172_vm2, %v18686_v31  ;;  %v18694_v31 = vld [vmem:[#allocation250_spill] sm:$0xff] }
 0x486   : > { %18685 = vst [vmem:[#allocation255_spill] sm:$0xff] %v16125_v46  ;;  %v6375_v4 = vadd.f32 %v11311_v55, %v18687_v0  ;;  %11541 = vmatprep.mubr.msk.bf16.mxu1 %vm172_vm2, %v18688_v42  ;;  %v16132_v6 = vadd.f32 %v6833_v32, %v6370_v5  ;;  %v18696_v42 = vld [vmem:[#allocation254_spill] sm:$0xff] }
 0x487   : > { %v6849_v52 = vpop.f32.mrf.mxu0  ;;  %v6162_v63 = vpop.f32.mrf.mxu1 }
 0x488   : > { %18689 = vst [vmem:[#allocation256_spill] sm:$0xff] %v16132_v6  ;;  %v6373_v9 = vadd.f32 %v6162_v63, %v18690_v60  ;;  %v16137_v19 = vadd.f32 %v11441_v37, %v6375_v4  ;;  %v18699_v37 = vld [vmem:[#allocation125_spill] sm:$0xff] }
 0x489   : > { %v11445_v10 = vpop.f32.mrf.mxu0  ;;  %11672 = vmatmul.mubr.msk.bf16.gmra.mxu0 %vm172_vm2, %v18691_v36  ;;  %v11312_v38 = vpop.f32.mrf.mxu1 }
 0x48a   : > { %18692 = vst [vmem:[#allocation275_spill] sm:$0xff] %v16137_v19  ;;  %11675 = vmatprep.mubr.msk.bf16.mxu0 %vm172_vm2, %v18693_v41  ;;  %v6376_v55 = vadd.f32 %v11312_v38, %v18694_v31  ;;  %v16142_v46 = vadd.f32 %v6846_v57, %v6373_v9  ;;  %v18700_v19 = vld [vmem:[#allocation32_spill] sm:$0xff]  ;;  %v18702_v9 = vld [vmem:[#allocation126_spill] sm:$0xff] }
 0x48b   : > { %v6862_v0 = vpop.f32.mrf.mxu0  ;;  %v6165_v32 = vpop.f32.mrf.mxu1 }
 0x48c   : > { %18695 = vst [vmem:[#allocation259_spill] sm:$0xff] %v16142_v46  ;;  %v6374_v5 = vadd.f32 %v6165_v32, %v18696_v42  ;;  %v16145_v63 = vadd.f32 %v11442_v50, %v6376_v55  ;;  %v18703_v32 = vld [vmem:[#allocation215_spill] sm:$0xff]  ;;  %v18705_v42 = vld [vmem:[#allocation217_spill] sm:$0xff]  ;;  %v18709_v46 = vld [vmem:[#allocation34_spill] sm:$0xff] }
 0x48d   : > { %v11446_v6 = vpop.f32.mrf.mxu0  ;;  %v11315_v60 = vpop.f32.mrf.mxu1  ;;  %11542 = vmatmul.mubr.msk.bf16.gmra.mxu1 %vm172_vm2, %v18698_v14  ;;  %v18706_v14 = vld [vmem:[#allocation99_spill] sm:$0xff] }
 0x48e   : > { %18697 = vst [vmem:[#allocation277_spill] sm:$0xff] %v16145_v63  ;;  %v6379_v4 = vadd.f32 %v11315_v60, %v18699_v37  ;;  %11545 = vmatprep.mubr.msk.bf16.mxu1 %vm172_vm2, %v18700_v19  ;;  %v16152_v38 = vadd.f32 %v6849_v52, %v6374_v5  ;;  %v18707_v19 = vld [vmem:[#allocation64_spill] sm:$0xff] }
 0x48f   : > { %v6865_v36 = vpop.f32.mrf.mxu0  ;;  %v6178_v57 = vpop.f32.mrf.mxu1 }
 0x490   : > { %18701 = vst [vmem:[#allocation283_spill] sm:$0xff] %v16152_v38  ;;  %v6377_v41 = vadd.f32 %v6178_v57, %v18702_v9  ;;  %v16157_v50 = vadd.f32 %v11445_v10, %v6379_v4  ;;  %v18710_v10 = vld [vmem:[#allocation127_spill] sm:$0xff] }
 0x491   : > { %v11449_v31 = vpop.f32.mrf.mxu0  ;;  %11676 = vmatmul.mubr.msk.bf16.gmra.mxu0 %vm172_vm2, %v18703_v32  ;;  %v11316_v55 = vpop.f32.mrf.mxu1 }
 0x492   : > { %18704 = vst [vmem:[#allocation12_spill] sm:$0xff] %v16157_v50  ;;  %11679 = vmatprep.mubr.msk.bf16.mxu0 %vm172_vm2, %v18705_v42  ;;  %v6380_v60 = vadd.f32 %v11316_v55, %v18706_v14  ;;  %v16162_v63 = vadd.f32 %v6862_v0, %v6377_v41  ;;  %v18711_v50 = vld [vmem:[#allocation35_spill] sm:$0xff]  ;;  %v18713_v41 = vld [vmem:[#allocation128_spill] sm:$0xff] }
 0x493   : > { %v6878_v37 = vpop.f32.mrf.mxu0  ;;  %v6181_v52 = vpop.f32.mrf.mxu1 }
 0x494   : > { %v6378_v5 = vadd.f32 %v6181_v52, %v18707_v19  ;;  %v16165_v57 = vadd.f32 %v11446_v6, %v6380_v60  ;;  %v18715_v52 = vld [vmem:[#allocation229_spill] sm:$0xff] }
 0x495   : > { %v11450_v38 = vpop.f32.mrf.mxu0  ;;  %v11319_v9 = vpop.f32.mrf.mxu1  ;;  %11546 = vmatmul.mubr.msk.bf16.gmra.mxu1 %vm172_vm2, %v18709_v46  ;;  %v18716_v46 = vld [vmem:[#allocation129_spill] sm:$0xff] }
 0x496   : > { %18708 = vst [vmem:[#allocation13_spill] sm:$0xff] %v16165_v57  ;;  %v6383_v4 = vadd.f32 %v11319_v9, %v18710_v10  ;;  %11549 = vmatprep.mubr.msk.bf16.mxu1 %vm172_vm2, %v18711_v50  ;;  %v16172_v55 = vadd.f32 %v6865_v36, %v6378_v5  ;;  %v18717_v50 = vld [vmem:[#allocation130_spill] sm:$0xff] }
 0x497   : > { %v6881_v32 = vpop.f32.mrf.mxu0  ;;  %v6194_v0 = vpop.f32.mrf.mxu1  ;;  %v18718_v57 = vld [vmem:[#allocation38_spill] sm:$0xff] }
 0x498   : > { %18712 = vst [vmem:[#allocation18_spill] sm:$0xff] %v16172_v55  ;;  %v6381_v42 = vadd.f32 %v6194_v0, %v18713_v41  ;;  %v16177_v6 = vadd.f32 %v11449_v31, %v6383_v4 }
 0x499   : > { %v11453_v14 = vpop.f32.mrf.mxu0  ;;  %11680 = vmatmul.mubr.msk.bf16.gmra.mxu0 %vm172_vm2, %v18416_v53  ;;  %v11320_v60 = vpop.f32.mrf.mxu1  ;;  %v18719_v53 = vld [vmem:[#allocation69_spill] sm:$0xff] }
 0x49a   : > { %18714 = vst [vmem:[#allocation266_spill] sm:$0xff] %v16177_v6  ;;  %11683 = vmatprep.mubr.msk.bf16.mxu0 %vm172_vm2, %v18715_v52  ;;  %v6384_v19 = vadd.f32 %v11320_v60, %v18716_v46  ;;  %v16182_v10 = vadd.f32 %v6878_v37, %v6381_v42  ;;  %v18720_v6 = vld [vmem:[#allocation39_spill] sm:$0xff]  ;;  %v18722_v42 = vld [vmem:[#allocation70_spill] sm:$0xff] }
 0x49b   : > { %v6894_v9 = vpop.f32.mrf.mxu0  ;;  %v6197_v36 = vpop.f32.mrf.mxu1 }
 0x49c   : > { %v6382_v5 = vadd.f32 %v6197_v36, %v18717_v50  ;;  %v16185_v0 = vadd.f32 %v11450_v38, %v6384_v19 }
 0x49d   : > { %v11454_v55 = vpop.f32.mrf.mxu0  ;;  %v11323_v41 = vpop.f32.mrf.mxu1  ;;  %11550 = vmatmul.mubr.msk.bf16.gmra.mxu1 %vm172_vm2, %v18718_v57  ;;  %v18724_v57 = vld [vmem:[#allocation131_spill] sm:$0xff] }
 0x49e   : > { %v6387_v31 = vadd.f32 %v11323_v41, %v18719_v53  ;;  %11553 = vmatprep.mubr.msk.bf16.mxu1 %vm172_vm2, %v18720_v6  ;;  %v16192_v60 = vadd.f32 %v6881_v32, %v6382_v5  ;;  %v18725_v6 = vld [vmem:[#allocation132_spill] sm:$0xff] }
 0x49f   : > { %v6897_v4 = vpop.f32.mrf.mxu0  ;;  %v6210_v37 = vpop.f32.mrf.mxu1 }
 0x4a0   : > { %18721 = vst [vmem:[#allocation102_spill] sm:$0xff] %v16192_v60  ;;  %v6385_v52 = vadd.f32 %v6210_v37, %v18722_v42  ;;  %v16197_v38 = vadd.f32 %v11453_v14, %v6387_v31  ;;  %v18726_v60 = vld [vmem:[#allocation43_spill] sm:$0xff] }
 0x4a1   : > { %v11457_v46 = vpop.f32.mrf.mxu0  ;;  %11684 = vmatmul.mubr.msk.bf16.gmra.mxu0 %vm172_vm2, %v18427_v59  ;;  %v11324_v19 = vpop.f32.mrf.mxu1  ;;  %v18727_v59 = vld [vmem:[#allocation133_spill] sm:$0xff] }
 0x4a2   : > { %18723 = vst [vmem:[#allocation103_spill] sm:$0xff] %v16197_v38  ;;  %11687 = vmatprep.mubr.msk.bf16.mxu0 %vm172_vm2, %v18429_v35  ;;  %v6388_v36 = vadd.f32 %v11324_v19, %v18724_v57  ;;  %v16202_v41 = vadd.f32 %v6894_v9, %v6385_v52  ;;  %v18728_v38 = vld [vmem:[#allocation44_spill] sm:$0xff]  ;;  %v18730_v52 = vld [vmem:[#allocation134_spill] sm:$0xff] }
 0x4a3   : > { %v6910_v50 = vpop.f32.mrf.mxu0  ;;  %v6213_v32 = vpop.f32.mrf.mxu1 }
 0x4a4   : > { %v6386_v5 = vadd.f32 %v6213_v32, %v18725_v6  ;;  %v16205_v37 = vadd.f32 %v11454_v55, %v6388_v36 }
 0x4a5   : > { %v11458_v53 = vpop.f32.mrf.mxu0  ;;  %v11327_v42 = vpop.f32.mrf.mxu1  ;;  %11554 = vmatmul.mubr.msk.bf16.gmra.mxu1 %vm172_vm2, %v18726_v60  ;;  %v18731_v60 = vld [vmem:[#allocation59_spill] sm:$0xff] }
 0x4a6   : > { %v6391_v14 = vadd.f32 %v11327_v42, %v18727_v59  ;;  %11557 = vmatprep.mubr.msk.bf16.mxu1 %vm172_vm2, %v18728_v38  ;;  %v16212_v35 = vadd.f32 %v6897_v4, %v6386_v5  ;;  %v18732_v38 = vld [vmem:[#allocation153_spill] sm:$0xff] }
 0x4a7   : > { %v6913_v31 = vpop.f32.mrf.mxu0  ;;  %v6226_v9 = vpop.f32.mrf.mxu1 }
 0x4a8   : > { %18729 = vst [vmem:[#allocation268_spill] sm:$0xff] %v16212_v35  ;;  %v6389_v19 = vadd.f32 %v6226_v9, %v18730_v52  ;;  %v16217_v55 = vadd.f32 %v11457_v46, %v6391_v14  ;;  %v18733_v35 = vld [vmem:[#allocation47_spill] sm:$0xff]  ;;  %v18734_v14 = vld [vmem:[#allocation48_spill] sm:$0xff] }
 0x4a9   : > { %v11461_v57 = vpop.f32.mrf.mxu0  ;;  %11688 = vmatmul.mubr.msk.bf16.gmra.mxu0 %vm172_vm2, %v18435_v26  ;;  %v11328_v36 = vpop.f32.mrf.mxu1 }
 0x4aa   : > { %11691 = vmatprep.mubr.msk.bf16.mxu0 %vm172_vm2, %v18436_v18  ;;  %v6392_v32 = vadd.f32 %v11328_v36, %v18731_v60  ;;  %v16222_v42 = vadd.f32 %v6910_v50, %v6389_v19 }
 0x4ab   : > { %v6926_v6 = vpop.f32.mrf.mxu0  ;;  %v6229_v4 = vpop.f32.mrf.mxu1 }
 0x4ac   : > { %v6390_v5 = vadd.f32 %v6229_v4, %v18732_v38  ;;  %v16225_v9 = vadd.f32 %v11458_v53, %v6392_v32  ;;  %v18736_v38 = vld [vmem:[#allocation136_spill] sm:$0xff] }
 0x4ad   : > { %v11462_v59 = vpop.f32.mrf.mxu0  ;;  %v11331_v52 = vpop.f32.mrf.mxu1  ;;  %11558 = vmatmul.mubr.msk.bf16.gmra.mxu1 %vm172_vm2, %v18733_v35 }
 0x4ae   : > { %v6395_v26 = vadd.f32 %v11331_v52, %v15556_v27  ;;  %11561 = vmatprep.mubr.msk.bf16.mxu1 %vm172_vm2, %v18734_v14  ;;  %v16232_v18 = vadd.f32 %v6913_v31, %v6390_v5  ;;  %v18735_v27 = vld [vmem:[#allocation135_spill] sm:$0xff] }
 0x4af   : > { %v6929_v46 = vpop.f32.mrf.mxu0  ;;  %v6242_v50 = vpop.f32.mrf.mxu1 }
 0x4b0   : > { %v6393_v19 = vadd.f32 %v6242_v50, %v15561_v45  ;;  %v16237_v53 = vadd.f32 %v11461_v57, %v6395_v26  ;;  %v18738_v50 = vld [vmem:[#allocation52_spill] sm:$0xff]  ;;  %v18739_v26 = vld [vmem:[#allocation53_spill] sm:$0xff] }
 0x4b1   : > { %v11465_v36 = vpop.f32.mrf.mxu0  ;;  %11692 = vmatmul.mubr.msk.bf16.gmra.mxu0 %vm172_vm2, %v18441_v44  ;;  %v11332_v60 = vpop.f32.mrf.mxu1 }
 0x4b2   : > { %11695 = vmatprep.mubr.msk.bf16.mxu0 %vm172_vm2, %v18442_v30  ;;  %v6396_v35 = vadd.f32 %v11332_v60, %v18735_v27  ;;  %v16242_v4 = vadd.f32 %v6926_v6, %v6393_v19 }
 0x4b3   : > { %v6942_v32 = vpop.f32.mrf.mxu0  ;;  %v6245_v31 = vpop.f32.mrf.mxu1 }
 0x4b4   : > { %v6394_v5 = vadd.f32 %v6245_v31, %v18736_v38  ;;  %v16245_v45 = vadd.f32 %v11462_v59, %v6396_v35 }
 0x4b5   : > { %v11466_v52 = vpop.f32.mrf.mxu0  ;;  %v11335_v14 = vpop.f32.mrf.mxu1  ;;  %11562 = vmatmul.mubr.msk.bf16.gmra.mxu1 %vm172_vm2, %v18738_v50 }
 0x4b6   : > { %18737 = vst [vmem:[#allocation270_spill] sm:$0xff] %v16245_v45  ;;  %v6399_v44 = vadd.f32 %v11335_v14, %v15576_v33  ;;  %11565 = vmatprep.mubr.msk.bf16.mxu1 %vm172_vm2, %v18739_v26  ;;  %v16252_v30 = vadd.f32 %v6929_v46, %v6394_v5  ;;  %v18742_v33 = vld [vmem:[#allocation137_spill] sm:$0xff]  ;;  %v18744_v5 = vld [vmem:[#allocation138_spill] sm:$0xff]  ;;  %v18758_v45 = vld [vmem:[#allocation67_spill] sm:$0xff] }
 0x4b7   : > { %v6945_v57 = vpop.f32.mrf.mxu0  ;;  %v6258_v6 = vpop.f32.mrf.mxu1 }
 0x4b8   : > { %18740 = vst [vmem:[#allocation19_spill] sm:$0xff] %v16252_v30  ;;  %v6397_v19 = vadd.f32 %v6258_v6, %v15581_v20  ;;  %v16257_v59 = vadd.f32 %v11465_v36, %v6399_v44  ;;  %v18746_v6 = vld [vmem:[#allocation56_spill] sm:$0xff]  ;;  %v18747_v36 = vld [vmem:[#allocation57_spill] sm:$0xff] }
 0x4b9   : > { %v11601_v60 = vpop.f32.mrf.mxu0  ;;  %11696 = vmatmul.mubr.msk.bf16.gmra.mxu0 %vm172_vm2, %v18447_v62  ;;  %v11336_v27 = vpop.f32.mrf.mxu1 }
 0x4ba   : > { %18741 = vst [vmem:[#allocation272_spill] sm:$0xff] %v16257_v59  ;;  %11699 = vmatprep.mubr.msk.bf16.mxu0 %vm172_vm2, %v18448_v61  ;;  %v6400_v35 = vadd.f32 %v11336_v27, %v18742_v33  ;;  %v16262_v38 = vadd.f32 %v6942_v32, %v6397_v19  ;;  %v18749_v33 = vld [vmem:[#allocation269_spill] sm:$0xff]  ;;  %v18755_v59 = vld [vmem:[#allocation140_spill] sm:$0xff] }
 0x4bb   : > { %v7845_v31 = vpop.f32.mrf.mxu0  ;;  %v6261_v46 = vpop.f32.mrf.mxu1 }
 0x4bc   : > { %18743 = vst [vmem:[#allocation22_spill] sm:$0xff] %v16262_v38  ;;  %v6398_v14 = vadd.f32 %v6261_v46, %v18744_v5  ;;  %v16265_v20 = vadd.f32 %v11466_v52, %v6400_v35  ;;  %v18750_v5 = vld [vmem:[#allocation161_spill] sm:$0xff] }
 0x4bd   : > { %v11602_v50 = vpop.f32.mrf.mxu0  ;;  %v11471_v26 = vpop.f32.mrf.mxu1  ;;  %11566 = vmatmul.mubr.msk.bf16.gmra.mxu1 %vm172_vm2, %v18746_v6 }
 0x4be   : > { %18745 = vst [vmem:[#allocation274_spill] sm:$0xff] %v16265_v20  ;;  %11569 = vmatprep.mubr.msk.bf16.mxu1 %vm172_vm2, %v18747_v36  ;;  %v16271_v61 = vadd.f32 %v6945_v57, %v6398_v14  ;;  %v7661_v44 = vadd.f32 %v11471_v26, %v15596_v43  ;;  %v16283_v43 = vld [vmem:[%s17140_s2] ss:$0 sm:$0xff]  ;;  %v18751_v26 = vld [vmem:[#allocation163_spill] sm:$0xff] }
 0x4bf   : > { %v7848_v62 = vpop.f32.mrf.mxu0  ;;  %v7148_v32 = vpop.f32.mrf.mxu1 }
 0x4c0   : > { %18748 = vst [vmem:[#allocation106_spill] sm:$0xff] %v16271_v61  ;;  %v7659_v52 = vadd.f32 %v7148_v32, %v15601_v11  ;;  %v8358_v46 = vadd.f32 %v11601_v60, %v7661_v44  ;;  %v18752_v11 = vld [vmem:[#allocation61_spill] sm:$0xff]  ;;  %v18753_v32 = vld [vmem:[#allocation139_spill] sm:$0xff]  ;;  %v18754_v60 = vld [vmem:[#allocation62_spill] sm:$0xff] }
 0x4c1   : > { %v11605_v19 = vpop.f32.mrf.mxu0  ;;  %11700 = vmatmul.mubr.msk.bf16.gmra.mxu0 %vm172_vm2, %v18455_v39  ;;  %v11472_v27 = vpop.f32.mrf.mxu1 }
 0x4c2   : > { %11703 = vmatprep.mubr.msk.bf16.mxu0 %vm172_vm2, %v18749_v33  ;;  %v7662_v6 = vadd.f32 %v11472_v27, %v18750_v5  ;;  %v8356_v14 = vadd.f32 %v7845_v31, %v7659_v52  ;;  %v8493_v44 = vadd.f32 %v16283_v43, %v8358_v46 }
 0x4c3   : > { %v7861_v35 = vpop.f32.mrf.mxu0  ;;  %v7151_v36 = vpop.f32.mrf.mxu1 }
 0x4c4   : > { %v7660_v39 = vadd.f32 %v7151_v36, %v18751_v26  ;;  %v8359_v27 = vadd.f32 %v11602_v50, %v7662_v6  ;;  %v8491_v52 = vadd.f32 %v16283_v43, %v8356_v14  ;;  %v18756_v50 = vld [vmem:[#allocation141_spill] sm:$0xff] }
 0x4c5   : > { %v11606_v57 = vpop.f32.mrf.mxu0  ;;  %v11475_v61 = vpop.f32.mrf.mxu1  ;;  %11570 = vmatmul.mubr.msk.bf16.gmra.mxu1 %vm172_vm2, %v18752_v11  ;;  %v8621_v11 = vmax.f32 %v8493_v44, 0.0 }
 0x4c6   : > { %v7665_v33 = vadd.f32 %v11475_v61, %v18753_v32  ;;  %11573 = vmatprep.mubr.msk.bf16.mxu1 %vm172_vm2, %v18754_v60  ;;  %v8357_v36 = vadd.f32 %v7848_v62, %v7660_v39  ;;  %v18757_v62 = vld [vmem:[#allocation142_spill] sm:$0xff] }
 0x4c7   : > { %v7864_v20 = vpop.f32.mrf.mxu0  ;;  %v7164_v5 = vpop.f32.mrf.mxu1 }
 0x4c8   : > { %v8362_v38 = vadd.f32 %v11605_v19, %v7665_v33  ;;  %v7663_v30 = vadd.f32 %v7164_v5, %v18755_v59  ;;  %v8494_v59 = vadd.f32 %v16283_v43, %v8359_v27  ;;  %v8619_v5 = vmax.f32 %v8491_v52, 0.0  ;;  %v18760_v52 = vld [vmem:[#allocation174_spill] sm:$0xff] }
 0x4c9   : > { %v11609_v31 = vpop.f32.mrf.mxu0  ;;  %11704 = vmatmul.mubr.msk.bf16.gmra.mxu0 %vm172_vm2, %v18466_v28  ;;  %v11476_v26 = vpop.f32.mrf.mxu1 }
 0x4ca   : > { %11707 = vmatprep.mubr.msk.bf16.mxu0 %vm172_vm2, %v18468_v22  ;;  %v8497_v61 = vadd.f32 %v16283_v43, %v8362_v38  ;;  %v8360_v46 = vadd.f32 %v7861_v35, %v7663_v30  ;;  %v7666_v6 = vadd.f32 %v11476_v26, %v18756_v50  ;;  %v8492_v22 = vadd.f32 %v16283_v43, %v8357_v36 }
 0x4cb   : > { %v7877_v19 = vpop.f32.mrf.mxu0  ;;  %v7167_v32 = vpop.f32.mrf.mxu1 }
 0x4cc   : > { %v8625_v33 = vmax.f32 %v8497_v61, 0.0  ;;  %v8495_v28 = vadd.f32 %v16283_v43, %v8360_v46  ;;  %v8363_v14 = vadd.f32 %v11606_v57, %v7666_v6  ;;  %v7664_v39 = vadd.f32 %v7167_v32, %v18757_v62  ;;  %v18759_v61 = vld [vmem:[#allocation68_spill] sm:$0xff] }
 0x4cd   : > { %v11610_v60 = vpop.f32.mrf.mxu0  ;;  %v11479_v38 = vpop.f32.mrf.mxu1  ;;  %11574 = vmatmul.mubr.msk.bf16.gmra.mxu1 %vm172_vm2, %v18758_v45  ;;  %v8622_v57 = vmax.f32 %v8494_v59, 0.0  ;;  %v18761_v59 = vld [vmem:[#allocation176_spill] sm:$0xff] }
 0x4ce   : > { %v8749_v30 = vmax.f32 %v8621_v11, %v8625_v33  ;;  %v8623_v35 = vmax.f32 %v8495_v28, 0.0  ;;  %v8498_v44 = vadd.f32 %v16283_v43, %v8363_v14  ;;  %v8361_v27 = vadd.f32 %v7864_v20, %v7664_v39  ;;  %11577 = vmatprep.mubr.msk.bf16.mxu1 %vm172_vm2, %v18759_v61 }
 0x4cf   : > { %v7880_v26 = vpop.f32.mrf.mxu0  ;;  %v7669_v46 = vadd.f32 %v11479_v38, %v18760_v52  ;;  %v7180_v36 = vpop.f32.mrf.mxu1  ;;  %v8620_v20 = vmax.f32 %v8492_v22, 0.0 }
 0x4d0   : > { %v9087_v50 = vrot.slane %v8749_v30, 1  ;;  %v8747_v6 = vmax.f32 %v8619_v5, %v8623_v35  ;;  %v8626_v32 = vmax.f32 %v8498_v44, 0.0  ;;  %v8496_v45 = vadd.f32 %v16283_v43, %v8361_v27  ;;  %v18762_v35 = vld [vmem:[#allocation143_spill] sm:$0xff] }
 0x4d1   : > { %v11613_v11 = vpop.f32.mrf.mxu0  ;;  %11708 = vmatmul.mubr.msk.bf16.gmra.mxu0 %vm172_vm2, %v18476_v40  ;;  %v7667_v33 = vadd.f32 %v7180_v36, %v18761_v59  ;;  %v11480_v28 = vpop.f32.mrf.mxu1  ;;  %v8366_v38 = vadd.f32 %v11609_v31, %v7669_v46  ;;  %v18763_v31 = vld [vmem:[#allocation144_spill] sm:$0xff]  ;;  %v18764_v36 = vld [vmem:[#allocation75_spill] sm:$0xff] }
 0x4d2   : > { %11711 = vmatprep.mubr.msk.bf16.mxu0 %vm172_vm2, %v18478_v21  ;;  %v9119_v14 = vmax.f32 %v8749_v30, %v9087_v50  ;;  %v8827_v40 = vrot.slane %v8747_v6, 1  ;;  %v8750_v62 = vmax.f32 %v8622_v57, %v8626_v32  ;;  %v8624_v39 = vmax.f32 %v8496_v45, 0.0 }
 0x4d3   : > { %v7893_v5 = vpop.f32.mrf.mxu0  ;;  %v7670_v22 = vadd.f32 %v11480_v28, %v18762_v35  ;;  %v7183_v44 = vpop.f32.mrf.mxu1  ;;  %v8364_v57 = vadd.f32 %v7877_v19, %v7667_v33  ;;  %v8501_v59 = vadd.f32 %v16283_v43, %v8366_v38  ;;  %v18768_v38 = vld [vmem:[#allocation281_spill] sm:$0xff] }
 0x4d4   : > { %9135 = vst.msk [vmem:[%s16317_s16 + $0x8] sm:$0x1] %vm8875_vm6, %v9119_v14  ;;  %v8859_v21 = vmax.f32 %v8747_v6, %v8827_v40  ;;  %v9215_v30 = vrot.slane %v8750_v62, 1  ;;  %v8748_v27 = vmax.f32 %v8620_v20, %v8624_v39  ;;  %v7668_v52 = vadd.f32 %v7183_v44, %v18763_v31  ;;  %v18765_v6 = vld [vmem:[#allocation155_spill] sm:$0xff]  ;;  %v18766_v20 = vld [vmem:[#allocation76_spill] sm:$0xff] }
 0x4d5   : > { %9151 = vst.msk [vmem:[%s16317_s16 + $0x7] sm:$0x4] %vm8892_vm7, %v9119_v14  ;;  %v11614_v61 = vpop.f32.mrf.mxu0  ;;  %v11483_v46 = vpop.f32.mrf.mxu1  ;;  %11578 = vmatmul.mubr.msk.bf16.gmra.mxu1 %vm172_vm2, %v18764_v36  ;;  %v8367_v33 = vadd.f32 %v11610_v60, %v7670_v22  ;;  %v8499_v60 = vadd.f32 %v16283_v43, %v8364_v57  ;;  %v8629_v57 = vmax.f32 %v8501_v59, 0.0 }
 0x4d6   : > { %9167 = vst.msk [vmem:[%s16317_s16 + $0x6] sm:$0x10] %vm8909_vm8, %v9119_v14  ;;  %8910 = vst.msk [vmem:[%s16317_s16 - $0x2] sm:$0x10] %vm8909_vm8, %v8859_v21  ;;  %v9247_v50 = vmax.f32 %v8750_v62, %v9215_v30  ;;  %v8959_v19 = vrot.slane %v8748_v27, 1  ;;  %v7673_v32 = vadd.f32 %v11483_v46, %v18765_v6  ;;  %11581 = vmatprep.mubr.msk.bf16.mxu1 %vm172_vm2, %v18766_v20  ;;  %v18767_v62 = vld [vmem:[#allocation145_spill] sm:$0xff] }
 0x4d7   : > { %9183 = vst.msk [vmem:[%s16317_s16 + $0x5] sm:$0x40] %vm8926_vm9, %v9119_v14  ;;  %8927 = vst.msk [vmem:[%s16317_s16 - $0x3] sm:$0x40] %vm8926_vm9, %v8859_v21  ;;  %v7896_v45 = vpop.f32.mrf.mxu0  ;;  %v7196_v28 = vpop.f32.mrf.mxu1  ;;  %v8365_v22 = vadd.f32 %v7880_v26, %v7668_v52  ;;  %v8502_v26 = vadd.f32 %v16283_v43, %v8367_v33  ;;  %v18771_v6 = vld [vmem:[#allocation146_spill] sm:$0xff] }
 0x4d8   : > { %8876 = vst.msk [vmem:[%s16317_s16] sm:$0x1] %vm8875_vm6, %v8859_v21  ;;  %9263 = vst.msk [vmem:[%s16317_s16 + $0xc] sm:$0x1] %vm8875_vm6, %v9247_v50  ;;  %v8991_v14 = vmax.f32 %v8748_v27, %v8959_v19  ;;  %v8370_v40 = vadd.f32 %v11613_v11, %v7673_v32  ;;  %v7671_v39 = vadd.f32 %v7196_v28, %v18767_v62  ;;  %v18770_v27 = vld [vmem:[#allocation157_spill] sm:$0xff]  ;;  %v8627_v28 = vmax.f32 %v8499_v60, 0.0 }
 0x4d9   : > { %8893 = vst.msk [vmem:[%s16317_s16 - $0x1] sm:$0x4] %vm8892_vm7, %v8859_v21  ;;  %9279 = vst.msk [vmem:[%s16317_s16 + $0xb] sm:$0x4] %vm8892_vm7, %v9247_v50  ;;  %v11617_v35 = vpop.f32.mrf.mxu0  ;;  %11712 = vmatmul.mubr.msk.bf16.gmra.mxu0 %vm172_vm2, %v18768_v38  ;;  %v11484_v44 = vpop.f32.mrf.mxu1  ;;  %v18769_v21 = vld [vmem:[#allocation282_spill] sm:$0xff] }
 0x4da   : > { %9295 = vst.msk [vmem:[%s16317_s16 + $0xa] sm:$0x10] %vm8909_vm8, %v9247_v50  ;;  %11715 = vmatprep.mubr.msk.bf16.mxu0 %vm172_vm2, %v18769_v21  ;;  %9039 = vst.msk [vmem:[%s16317_s16 + $0x2] sm:$0x10] %vm8909_vm8, %v8991_v14  ;;  %v8505_v11 = vadd.f32 %v16283_v43, %v8370_v40  ;;  %v8368_v30 = vadd.f32 %v7893_v5, %v7671_v39  ;;  %v7674_v31 = vadd.f32 %v11484_v44, %v18770_v27  ;;  %v18772_v40 = vld [vmem:[#allocation79_spill] sm:$0xff]  ;;  %v18773_v44 = vld [vmem:[#allocation80_spill] sm:$0xff] }
 0x4db   : > { %9311 = vst.msk [vmem:[%s16317_s16 + $0x9] sm:$0x40] %vm8926_vm9, %v9247_v50  ;;  %9055 = vst.msk [vmem:[%s16317_s16 + $0x1] sm:$0x40] %vm8926_vm9, %v8991_v14  ;;  %v7909_v46 = vpop.f32.mrf.mxu0  ;;  %v7199_v52 = vpop.f32.mrf.mxu1  ;;  %v18774_v21 = vld [vmem:[#allocation186_spill] sm:$0xff] }
 0x4dc   : > { %9007 = vst.msk [vmem:[%s16317_s16 + $0x4] sm:$0x1] %vm8875_vm6, %v8991_v14  ;;  %v8633_v36 = vmax.f32 %v8505_v11, 0.0  ;;  %v8503_v50 = vadd.f32 %v16283_v43, %v8368_v30  ;;  %v8371_v19 = vadd.f32 %v11614_v61, %v7674_v31  ;;  %v7672_v32 = vadd.f32 %v7199_v52, %v18771_v6 }
 0x4dd   : > { %9023 = vst.msk [vmem:[%s16317_s16 + $0x3] sm:$0x4] %vm8892_vm7, %v8991_v14  ;;  %v11618_v20 = vpop.f32.mrf.mxu0  ;;  %v8500_v14 = vadd.f32 %v16283_v43, %v8365_v22  ;;  %v11487_v62 = vpop.f32.mrf.mxu1  ;;  %11582 = vmatmul.mubr.msk.bf16.gmra.mxu1 %vm172_vm2, %v18772_v40  ;;  %v8630_v61 = vmax.f32 %v8502_v26, 0.0  ;;  %v16388_v26 = vld [vmem:[#allocation2 + $0x548] sm:$0x3]  ;;  %v16390_v40 = vld [vmem:[#allocation2 + $0x540] sm:$0xff] }
 0x4de   : > { %v8753_v5 = vmax.f32 %v8629_v57, %v8633_v36  ;;  %v8631_v39 = vmax.f32 %v8503_v50, 0.0  ;;  %v8506_v59 = vadd.f32 %v16283_v43, %v8371_v19  ;;  %v8369_v33 = vadd.f32 %v7896_v45, %v7672_v32  ;;  %11585 = vmatprep.mubr.msk.bf16.mxu1 %vm172_vm2, %v18773_v44  ;;  %v18775_v57 = vld [vmem:[#allocation188_spill] sm:$0xff] }
 0x4df   : > { %v16377_v38 = vpop.f32.mrf.mxu0  ;;  %v7677_v11 = vadd.f32 %v11487_v62, %v18774_v21  ;;  %v7212_v60 = vpop.f32.mrf.mxu1  ;;  %v8628_v45 = vmax.f32 %v8500_v14, 0.0 }
 0x4e0   : > { %v9088_v30 = vrot.slane %v8753_v5, 1  ;;  %v8751_v22 = vmax.f32 %v8627_v28, %v8631_v39  ;;  %v8634_v27 = vmax.f32 %v8506_v59, 0.0  ;;  %v8504_v31 = vadd.f32 %v16283_v43, %v8369_v33  ;;  %v18776_v39 = vld [vmem:[#allocation147_spill] sm:$0xff] }
 0x4e1   : > { %v11621_v52 = vpop.f32.mrf.mxu0  ;;  %11716 = vmatmul.mubr.msk.bf16.gmra.mxu0 %vm172_vm2, %v18487_v3  ;;  %v7675_v36 = vadd.f32 %v7212_v60, %v18775_v57  ;;  %v11488_v50 = vpop.f32.mrf.mxu1  ;;  %v7792_v3 = vrot.slane %v16390_v40, 2  ;;  %v8374_v14 = vadd.f32 %v11617_v35, %v7677_v11  ;;  %v7794_v35 = vrot.slane %v16388_v26, 2  ;;  %v18777_v11 = vld [vmem:[#allocation148_spill] sm:$0xff] }
 0x4e2   : > { %11719 = vmatprep.mubr.msk.bf16.mxu0 %vm172_vm2, %v15710_v29  ;;  %v9120_v19 = vmax.f32 %v8753_v5, %v9088_v30  ;;  %v8828_v6 = vrot.slane %v8751_v22, 1  ;;  %v8754_v32 = vmax.f32 %v8630_v61, %v8634_v27  ;;  %v8632_v28 = vmax.f32 %v8504_v31, 0.0  ;;  %v18778_v27 = vld [vmem:[#allocation82_spill] sm:$0xff]  ;;  %v18779_v31 = vld [vmem:[#allocation149_spill] sm:$0xff] }
 0x4e3   : > { %v7925_v62 = vpop.f32.mrf.mxu0  ;;  %v7678_v59 = vadd.f32 %v11488_v50, %v18776_v39  ;;  %v7215_v33 = vpop.f32.mrf.mxu1  ;;  %v8372_v21 = vadd.f32 %v7909_v46, %v7675_v36  ;;  %v18780_v36 = vld [vmem:[#allocation262_spill] sm:$0xff]  ;;  %v8509_v50 = vadd.f32 %v16283_v43, %v8374_v14 }
 0x4e4   : > { %9136 = vst.msk [vmem:[%s16317_s16 + $0x18] sm:$0x1] %vm8875_vm6, %v9120_v19  ;;  %v8860_v29 = vmax.f32 %v8751_v22, %v8828_v6  ;;  %v9216_v5 = vrot.slane %v8754_v32, 1  ;;  %v8752_v44 = vmax.f32 %v8628_v45, %v8632_v28  ;;  %v7676_v60 = vadd.f32 %v7215_v33, %v18777_v11 }
 0x4e5   : > { %9152 = vst.msk [vmem:[%s16317_s16 + $0x17] sm:$0x4] %vm8892_vm7, %v9120_v19  ;;  %v11622_v61 = vpop.f32.mrf.mxu0  ;;  %v11491_v30 = vpop.f32.mrf.mxu1  ;;  %11586 = vmatmul.mubr.msk.bf16.gmra.mxu1 %vm172_vm2, %v18778_v27  ;;  %v18781_v28 = vrot.slane %v15707_v23, 2  ;;  %v7795_v33 = vsel %vm2969_vm5, %v7792_v3, %v7794_v35  ;;  %v18782_v27 = vpack.c.bf16 %v16062_v15, %v16057_v16 }
 0x4e6   : > { %9168 = vst.msk [vmem:[%s16317_s16 + $0x16] sm:$0x10] %vm8909_vm8, %v9120_v19  ;;  %8911 = vst.msk [vmem:[%s16317_s16 + $0xe] sm:$0x10] %vm8909_vm8, %v8860_v29  ;;  %v9248_v22 = vmax.f32 %v8754_v32, %v9216_v5  ;;  %v8960_v46 = vrot.slane %v8752_v44, 1  ;;  %v7681_v45 = vadd.f32 %v11491_v30, %v18779_v31  ;;  %11589 = vmatprep.mubr.msk.bf16.mxu1 %vm172_vm2, %v18780_v36 }
 0x4e7   : > { %9184 = vst.msk [vmem:[%s16317_s16 + $0x15] sm:$0x40] %vm8926_vm9, %v9120_v19  ;;  %8928 = vst.msk [vmem:[%s16317_s16 + $0xd] sm:$0x40] %vm8926_vm9, %v8860_v29  ;;  %v7928_v57 = vpop.f32.mrf.mxu0  ;;  %v8375_v19 = vadd.f32 %v11618_v20, %v7678_v59  ;;  %v7228_v6 = vpop.f32.mrf.mxu1  ;;  %v7793_v39 = vsel %vm2969_vm5, %v18781_v28, %v7792_v3  ;;  %v8507_v5 = vadd.f32 %v16283_v43, %v8372_v21  ;;  %v8637_v3 = vmax.f32 %v8509_v50, 0.0 }
 0x4e8   : > { %8877 = vst.msk [vmem:[%s16317_s16 + $0x10] sm:$0x1] %vm8875_vm6, %v8860_v29  ;;  %9264 = vst.msk [vmem:[%s16317_s16 + $0x1c] sm:$0x1] %vm8875_vm6, %v9248_v22  ;;  %v8992_v32 = vmax.f32 %v8752_v44, %v8960_v46  ;;  %v8378_v14 = vadd.f32 %v11621_v52, %v7681_v45  ;;  %v7679_v20 = vadd.f32 %v7228_v6, %v15712_v1  ;;  %v7097_v1 = vrot.slane %v16388_v26, 1 }
 0x4e9   : > { %8894 = vst.msk [vmem:[%s16317_s16 + $0xf] sm:$0x4] %vm8892_vm7, %v8860_v29  ;;  %9280 = vst.msk [vmem:[%s16317_s16 + $0x1b] sm:$0x4] %vm8892_vm7, %v9248_v22  ;;  %v11625_v59 = vpop.f32.mrf.mxu0  ;;  %11720 = vmatmul.mubr.msk.bf16.gmra.mxu0 %vm172_vm2, %v15731_v7  ;;  %v7095_v29 = vrot.slane %v16390_v40, 1  ;;  %v8373_v11 = vadd.f32 %v16377_v38, %v7676_v60  ;;  %v11492_v30 = vpop.f32.mrf.mxu1  ;;  %v8510_v16 = vadd.f32 %v16283_v43, %v8375_v19  ;;  %v8635_v46 = vmax.f32 %v8507_v5, 0.0 }
 0x4ea   : > { %9296 = vst.msk [vmem:[%s16317_s16 + $0x1a] sm:$0x10] %vm8909_vm8, %v9248_v22  ;;  %11723 = vmatprep.mubr.msk.bf16.mxu0 %vm172_vm2, %v18782_v27  ;;  %9040 = vst.msk [vmem:[%s16317_s16 + $0x12] sm:$0x10] %vm8909_vm8, %v8992_v32  ;;  %v8513_v7 = vadd.f32 %v16283_v43, %v8378_v14  ;;  %v8376_v52 = vadd.f32 %v7925_v62, %v7679_v20  ;;  %v7682_v38 = vadd.f32 %v11492_v30, %v15716_v12  ;;  %v18783_v62 = vld [vmem:[#allocation264_spill] sm:$0xff] }
 0x4eb   : > { %9312 = vst.msk [vmem:[%s16317_s16 + $0x19] sm:$0x40] %vm8926_vm9, %v9248_v22  ;;  %9056 = vst.msk [vmem:[%s16317_s16 + $0x11] sm:$0x40] %vm8926_vm9, %v8992_v32  ;;  %v7941_v40 = vpop.f32.mrf.mxu0  ;;  %v7231_v15 = vpop.f32.mrf.mxu1  ;;  %v7801_v44 = vpack.c.bf16 %v7795_v33, %v7793_v39  ;;  %v8508_v31 = vadd.f32 %v16283_v43, %v8373_v11  ;;  %v18784_v12 = vrot.slane %v15707_v23, 1  ;;  %v7098_v50 = vsel %vm1004_vm4, %v7095_v29, %v7097_v1 }
 0x4ec   : > { %9008 = vst.msk [vmem:[%s16317_s16 + $0x14] sm:$0x1] %vm8875_vm6, %v8992_v32  ;;  %v8641_v26 = vmax.f32 %v8513_v7, 0.0  ;;  %v8511_v35 = vadd.f32 %v16283_v43, %v8376_v52  ;;  %v8379_v21 = vadd.f32 %v11622_v61, %v7682_v38  ;;  %v7680_v60 = vadd.f32 %v7231_v15, %v15725_v58 }
 0x4ed   : > { %9024 = vst.msk [vmem:[%s16317_s16 + $0x13] sm:$0x4] %vm8892_vm7, %v8992_v32  ;;  %v11626_v22 = vpop.f32.mrf.mxu0  ;;  %v11495_v45 = vpop.f32.mrf.mxu1  ;;  %11590 = vmatmul.mubr.msk.bf16.gmra.mxu1 %vm172_vm2, %v18783_v62  ;;  %v7096_v36 = vsel %vm1004_vm4, %v18784_v12, %v7095_v29  ;;  %v18785_v39 = vpack.c.bf16 %v16081_v54, %v16076_v8  ;;  %v8638_v32 = vmax.f32 %v8510_v16, 0.0 }
 0x4ee   : > { %v8757_v19 = vmax.f32 %v8637_v3, %v8641_v26  ;;  %v8639_v6 = vmax.f32 %v8511_v35, 0.0  ;;  %v8514_v61 = vadd.f32 %v16283_v43, %v8379_v21  ;;  %v8377_v28 = vadd.f32 %v7928_v57, %v7680_v60 }
 0x4ef   : > { %v7944_v58 = vpop.f32.mrf.mxu0  ;;  %11593 = vmatprep.mubr.msk.bf16.mxu1 %vm172_vm2, %v18785_v39  ;;  %v7685_v14 = vadd.f32 %v11495_v45, %v15729_v17  ;;  %v7244_v20 = vpop.f32.mrf.mxu1  ;;  %v8636_v57 = vmax.f32 %v8508_v31, 0.0  ;;  %v7104_v30 = vpack.c.bf16 %v7098_v50, %v7096_v36 }
 0x4f0   : > { %v9089_v23 = vrot.slane %v8757_v19, 1  ;;  %v8755_v33 = vmax.f32 %v8635_v46, %v8639_v6  ;;  %v8642_v5 = vmax.f32 %v8514_v61, 0.0  ;;  %v8512_v29 = vadd.f32 %v16283_v43, %v8377_v28 }
 0x4f1   : > { %v11629_v11 = vpop.f32.mrf.mxu0  ;;  %11724 = vmatmul.mubr.msk.bf16.gmra.mxu0 %vm172_vm2, %v7801_v44  ;;  %v7683_v8 = vadd.f32 %v7244_v20, %v15736_v49  ;;  %v11496_v54 = vpop.f32.mrf.mxu1  ;;  %v8382_v38 = vadd.f32 %v11625_v59, %v7685_v14 }
 0x4f2   : > { %v9121_v27 = vmax.f32 %v8757_v19, %v9089_v23  ;;  %v8829_v17 = vrot.slane %v8755_v33, 1  ;;  %v8758_v1 = vmax.f32 %v8638_v32, %v8642_v5  ;;  %v8640_v7 = vmax.f32 %v8512_v29, 0.0 }
 0x4f3   : > { %v7957_v52 = vpop.f32.mrf.mxu0  ;;  %v7686_v3 = vadd.f32 %v11496_v54, %v15739_v47  ;;  %v7247_v16 = vpop.f32.mrf.mxu1  ;;  %v8380_v59 = vadd.f32 %v7941_v40, %v7683_v8 }
 0x4f4   : > { %9137 = vst.msk [vmem:[%s16317_s16 + $0x28] sm:$0x1] %vm8875_vm6, %v9121_v27  ;;  %v8861_v49 = vmax.f32 %v8755_v33, %v8829_v17  ;;  %v9217_v15 = vrot.slane %v8758_v1, 1  ;;  %v8756_v44 = vmax.f32 %v8636_v57, %v8640_v7  ;;  %v7684_v47 = vadd.f32 %v7247_v16, %v15746_v48 }
 0x4f5   : > { %9153 = vst.msk [vmem:[%s16317_s16 + $0x27] sm:$0x4] %vm8892_vm7, %v9121_v27  ;;  %v11630_v26 = vpop.f32.mrf.mxu0  ;;  %v11499_v35 = vpop.f32.mrf.mxu1  ;;  %11594 = vmatmul.mubr.msk.bf16.gmra.mxu1 %vm172_vm2, %v7104_v30  ;;  %v8517_v48 = vadd.f32 %v16283_v43, %v8382_v38  ;;  %v8383_v31 = vadd.f32 %v11626_v22, %v7686_v3  ;;  %v8515_v50 = vadd.f32 %v16283_v43, %v8380_v59 }
 0x4f6   : > { %9169 = vst.msk [vmem:[%s16317_s16 + $0x26] sm:$0x10] %vm8909_vm8, %v9121_v27  ;;  %8912 = vst.msk [vmem:[%s16317_s16 + $0x1e] sm:$0x10] %vm8909_vm8, %v8861_v49  ;;  %v9249_v21 = vmax.f32 %v8758_v1, %v9217_v15  ;;  %v8961_v60 = vrot.slane %v8756_v44, 1  ;;  %v7689_v40 = vadd.f32 %v11499_v35, %v15751_v51  ;;  %v8381_v19 = vadd.f32 %v7944_v58, %v7684_v47 }
 0x4f7   : > { %9185 = vst.msk [vmem:[%s16317_s16 + $0x25] sm:$0x40] %vm8926_vm9, %v9121_v27  ;;  %8929 = vst.msk [vmem:[%s16317_s16 + $0x1d] sm:$0x40] %vm8926_vm9, %v8861_v49  ;;  %v7960_v46 = vpop.f32.mrf.mxu0  ;;  %v7260_v45 = vpop.f32.mrf.mxu1  ;;  %v8518_v32 = vadd.f32 %v16283_v43, %v8383_v31  ;;  %v8643_v29 = vmax.f32 %v8515_v50, 0.0  ;;  %v18787_v50 = vld [vmem:[#allocation198_spill] sm:$0xff] }
 0x4f8   : > { %8878 = vst.msk [vmem:[%s16317_s16 + $0x20] sm:$0x1] %vm8875_vm6, %v8861_v49  ;;  %9265 = vst.msk [vmem:[%s16317_s16 + $0x2c] sm:$0x1] %vm8875_vm6, %v9249_v21  ;;  %v8993_v62 = vmax.f32 %v8756_v44, %v8961_v60  ;;  %v8386_v12 = vadd.f32 %v11629_v11, %v7689_v40  ;;  %v7687_v51 = vadd.f32 %v7260_v45, %v15756_v13  ;;  %v8645_v13 = vmax.f32 %v8517_v48, 0.0 }
 0x4f9   : > { %8895 = vst.msk [vmem:[%s16317_s16 + $0x1f] sm:$0x4] %vm8892_vm7, %v8861_v49  ;;  %9281 = vst.msk [vmem:[%s16317_s16 + $0x2b] sm:$0x4] %vm8892_vm7, %v9249_v21  ;;  %v11633_v36 = vpop.f32.mrf.mxu0  ;;  %v11500_v6 = vpop.f32.mrf.mxu1  ;;  %v8516_v11 = vadd.f32 %v16283_v43, %v8381_v19  ;;  %v8646_v17 = vmax.f32 %v8518_v32, 0.0  ;;  %v18788_v32 = vld [vmem:[#allocation200_spill] sm:$0xff] }
 0x4fa   : > { %9297 = vst.msk [vmem:[%s16317_s16 + $0x2a] sm:$0x10] %vm8909_vm8, %v9249_v21  ;;  %9041 = vst.msk [vmem:[%s16317_s16 + $0x22] sm:$0x10] %vm8909_vm8, %v8993_v62  ;;  %v8521_v22 = vadd.f32 %v16283_v43, %v8386_v12  ;;  %v8384_v61 = vadd.f32 %v7957_v52, %v7687_v51  ;;  %v7690_v28 = vadd.f32 %v11500_v6, %v15759_v2 }
 0x4fb   : > { %9313 = vst.msk [vmem:[%s16317_s16 + $0x29] sm:$0x40] %vm8926_vm9, %v9249_v21  ;;  %9057 = vst.msk [vmem:[%s16317_s16 + $0x21] sm:$0x40] %vm8926_vm9, %v8993_v62  ;;  %v7973_v39 = vpop.f32.mrf.mxu0  ;;  %v7263_v14 = vpop.f32.mrf.mxu1  ;;  %v8644_v49 = vmax.f32 %v8516_v11, 0.0  ;;  %v18789_v11 = vld [vmem:[#allocation152_spill] sm:$0xff] }
 0x4fc   : > { %9009 = vst.msk [vmem:[%s16317_s16 + $0x24] sm:$0x1] %vm8875_vm6, %v8993_v62  ;;  %v8649_v58 = vmax.f32 %v8521_v22, 0.0  ;;  %v8519_v20 = vadd.f32 %v16283_v43, %v8384_v61  ;;  %v8387_v23 = vadd.f32 %v11630_v26, %v7690_v28  ;;  %v7688_v33 = vadd.f32 %v7263_v14, %v15766_v34 }
 0x4fd   : > { %9025 = vst.msk [vmem:[%s16317_s16 + $0x23] sm:$0x4] %vm8892_vm7, %v8993_v62  ;;  %v11634_v5 = vpop.f32.mrf.mxu0  ;;  %v11503_v57 = vpop.f32.mrf.mxu1  ;;  %v18786_v62 = vld [vmem:[#allocation151_spill] sm:$0xff] }
 0x4fe   : > { %v8761_v8 = vmax.f32 %v8645_v13, %v8649_v58  ;;  %v8647_v54 = vmax.f32 %v8519_v20, 0.0  ;;  %v8522_v2 = vadd.f32 %v16283_v43, %v8387_v23  ;;  %v8385_v30 = vadd.f32 %v7960_v46, %v7688_v33 }
 0x4ff   : > { %v7976_v27 = vpop.f32.mrf.mxu0  ;;  %v7693_v1 = vadd.f32 %v11503_v57, %v15771_v56  ;;  %v7276_v7 = vpop.f32.mrf.mxu1 }
 0x500   : > { %v9090_v52 = vrot.slane %v8761_v8, 1  ;;  %v8759_v38 = vmax.f32 %v8643_v29, %v8647_v54  ;;  %v8650_v34 = vmax.f32 %v8522_v2, 0.0  ;;  %v8520_v3 = vadd.f32 %v16283_v43, %v8385_v30 }
 0x501   : > { %v11637_v16 = vpop.f32.mrf.mxu0  ;;  %v7691_v15 = vadd.f32 %v7276_v7, %v15776_v24  ;;  %v11504_v44 = vpop.f32.mrf.mxu1  ;;  %v8390_v21 = vadd.f32 %v11633_v36, %v7693_v1  ;;  %v18790_v7 = vld [vmem:[#allocation154_spill] sm:$0xff] }
 0x502   : > { %v9122_v26 = vmax.f32 %v8761_v8, %v9090_v52  ;;  %v8830_v59 = vrot.slane %v8759_v38, 1  ;;  %v8762_v47 = vmax.f32 %v8646_v17, %v8650_v34  ;;  %v8648_v35 = vmax.f32 %v8520_v3, 0.0 }
 0x503   : > { %v7989_v56 = vpop.f32.mrf.mxu0  ;;  %v7694_v60 = vadd.f32 %v11504_v44, %v15779_v25  ;;  %v7279_v40 = vpop.f32.mrf.mxu1  ;;  %v8388_v45 = vadd.f32 %v7973_v39, %v7691_v15  ;;  %v8525_v22 = vadd.f32 %v16283_v43, %v8390_v21 }
 0x504   : > { %9138 = vst.msk [vmem:[%s16317_s16 + $0x38] sm:$0x1] %vm8875_vm6, %v9122_v26  ;;  %v8862_v24 = vmax.f32 %v8759_v38, %v8830_v59  ;;  %v9218_v46 = vrot.slane %v8762_v47, 1  ;;  %v8760_v48 = vmax.f32 %v8644_v49, %v8648_v35  ;;  %v7692_v25 = vadd.f32 %v7279_v40, %v18786_v62  ;;  %v18791_v35 = vld [vmem:[#allocation156_spill] sm:$0xff] }
 0x505   : > { %9154 = vst.msk [vmem:[%s16317_s16 + $0x37] sm:$0x4] %vm8892_vm7, %v9122_v26  ;;  %v11638_v31 = vpop.f32.mrf.mxu0  ;;  %v11507_v12 = vpop.f32.mrf.mxu1  ;;  %v8391_v61 = vadd.f32 %v11634_v5, %v7694_v60  ;;  %v8523_v20 = vadd.f32 %v16283_v43, %v8388_v45  ;;  %v8653_v54 = vmax.f32 %v8525_v22, 0.0  ;;  %v18792_v45 = vld [vmem:[#allocation158_spill] sm:$0xff] }
 0x506   : > { %9170 = vst.msk [vmem:[%s16317_s16 + $0x36] sm:$0x10] %vm8909_vm8, %v9122_v26  ;;  %8913 = vst.msk [vmem:[%s16317_s16 + $0x2e] sm:$0x10] %vm8909_vm8, %v8862_v24  ;;  %v9250_v51 = vmax.f32 %v8762_v47, %v9218_v46  ;;  %v8962_v36 = vrot.slane %v8760_v48, 1  ;;  %v7697_v19 = vadd.f32 %v11507_v12, %v18787_v50  ;;  %v8389_v23 = vadd.f32 %v7976_v27, %v7692_v25  ;;  %v18793_v22 = vld [vmem:[#allocation210_spill] sm:$0xff] }
 0x507   : > { %9186 = vst.msk [vmem:[%s16317_s16 + $0x35] sm:$0x40] %vm8926_vm9, %v9122_v26  ;;  %8930 = vst.msk [vmem:[%s16317_s16 + $0x2d] sm:$0x40] %vm8926_vm9, %v8862_v24  ;;  %v7992_v6 = vpop.f32.mrf.mxu0  ;;  %v7292_v28 = vpop.f32.mrf.mxu1  ;;  %v8526_v2 = vadd.f32 %v16283_v43, %v8391_v61  ;;  %v8651_v34 = vmax.f32 %v8523_v20, 0.0  ;;  %v18794_v20 = vld [vmem:[#allocation212_spill] sm:$0xff] }
 0x508   : > { %8879 = vst.msk [vmem:[%s16317_s16 + $0x30] sm:$0x1] %vm8875_vm6, %v8862_v24  ;;  %9266 = vst.msk [vmem:[%s16317_s16 + $0x3c] sm:$0x1] %vm8875_vm6, %v9250_v51  ;;  %v8994_v39 = vmax.f32 %v8760_v48, %v8962_v36  ;;  %v8394_v13 = vadd.f32 %v11637_v16, %v7697_v19  ;;  %v7695_v14 = vadd.f32 %v7292_v28, %v18788_v32 }
 0x509   : > { %8896 = vst.msk [vmem:[%s16317_s16 + $0x2f] sm:$0x4] %vm8892_vm7, %v8862_v24  ;;  %9282 = vst.msk [vmem:[%s16317_s16 + $0x3b] sm:$0x4] %vm8892_vm7, %v9250_v51  ;;  %v11641_v58 = vpop.f32.mrf.mxu0  ;;  %v11508_v33 = vpop.f32.mrf.mxu1  ;;  %v8524_v3 = vadd.f32 %v16283_v43, %v8389_v23  ;;  %v8654_v47 = vmax.f32 %v8526_v2, 0.0 }
 0x50a   : > { %9298 = vst.msk [vmem:[%s16317_s16 + $0x3a] sm:$0x10] %vm8909_vm8, %v9250_v51  ;;  %9042 = vst.msk [vmem:[%s16317_s16 + $0x32] sm:$0x10] %vm8909_vm8, %v8994_v39  ;;  %v8529_v5 = vadd.f32 %v16283_v43, %v8394_v13  ;;  %v8392_v29 = vadd.f32 %v7989_v56, %v7695_v14  ;;  %v7698_v57 = vadd.f32 %v11508_v33, %v18789_v11  ;;  %v18795_v11 = vld [vmem:[#allocation160_spill] sm:$0xff] }
 0x50b   : > { %9314 = vst.msk [vmem:[%s16317_s16 + $0x39] sm:$0x40] %vm8926_vm9, %v9250_v51  ;;  %9058 = vst.msk [vmem:[%s16317_s16 + $0x31] sm:$0x40] %vm8926_vm9, %v8994_v39  ;;  %v8005_v8 = vpop.f32.mrf.mxu0  ;;  %v7295_v30 = vpop.f32.mrf.mxu1 }
 0x50c   : > { %9010 = vst.msk [vmem:[%s16317_s16 + $0x34] sm:$0x1] %vm8875_vm6, %v8994_v39  ;;  %v8657_v27 = vmax.f32 %v8529_v5, 0.0  ;;  %v8527_v17 = vadd.f32 %v16283_v43, %v8392_v29  ;;  %v8395_v1 = vadd.f32 %v11638_v31, %v7698_v57  ;;  %v7696_v52 = vadd.f32 %v7295_v30, %v18790_v7 }
 0x50d   : > { %9026 = vst.msk [vmem:[%s16317_s16 + $0x33] sm:$0x4] %vm8892_vm7, %v8994_v39  ;;  %v11642_v38 = vpop.f32.mrf.mxu0  ;;  %v11511_v16 = vpop.f32.mrf.mxu1  ;;  %v8652_v31 = vmax.f32 %v8524_v3, 0.0 }
 0x50e   : > { %v8765_v49 = vmax.f32 %v8653_v54, %v8657_v27  ;;  %v8655_v15 = vmax.f32 %v8527_v17, 0.0  ;;  %v8530_v44 = vadd.f32 %v16283_v43, %v8395_v1  ;;  %v8393_v26 = vadd.f32 %v7992_v6, %v7696_v52  ;;  %v18796_v1 = vld [vmem:[#allocation164_spill] sm:$0xff] }
 0x50f   : > { %v8008_v59 = vpop.f32.mrf.mxu0  ;;  %v7701_v56 = vadd.f32 %v11511_v16, %v18791_v35  ;;  %v7308_v21 = vpop.f32.mrf.mxu1 }
 0x510   : > { %v9091_v60 = vrot.slane %v8765_v49, 1  ;;  %v8763_v40 = vmax.f32 %v8651_v34, %v8655_v15  ;;  %v8658_v24 = vmax.f32 %v8530_v44, 0.0  ;;  %v8528_v46 = vadd.f32 %v16283_v43, %v8393_v26  ;;  %v18797_v15 = vld [vmem:[#allocation3_spill] sm:$0xff] }
 0x511   : > { %v11645_v48 = vpop.f32.mrf.mxu0  ;;  %v7699_v62 = vadd.f32 %v7308_v21, %v18792_v45  ;;  %v11512_v25 = vpop.f32.mrf.mxu1  ;;  %v8398_v6 = vadd.f32 %v11641_v58, %v7701_v56 }
 0x512   : > { %v9123_v12 = vmax.f32 %v8765_v49, %v9091_v60  ;;  %v8831_v51 = vrot.slane %v8763_v40, 1  ;;  %v8766_v36 = vmax.f32 %v8654_v47, %v8658_v24  ;;  %v8656_v50 = vmax.f32 %v8528_v46, 0.0 }
 0x513   : > { %v8021_v19 = vpop.f32.mrf.mxu0  ;;  %v7702_v61 = vadd.f32 %v11512_v25, %v18793_v22  ;;  %v7311_v28 = vpop.f32.mrf.mxu1  ;;  %v8396_v58 = vadd.f32 %v8005_v8, %v7699_v62  ;;  %v8533_v8 = vadd.f32 %v16283_v43, %v8398_v6 }
 0x514   : > { %9139 = vst.msk [vmem:[%s16317_s16 + $0x48] sm:$0x1] %vm8875_vm6, %v9123_v12  ;;  %v8863_v39 = vmax.f32 %v8763_v40, %v8831_v51  ;;  %v9219_v13 = vrot.slane %v8766_v36, 1  ;;  %v8764_v32 = vmax.f32 %v8652_v31, %v8656_v50  ;;  %v7700_v23 = vadd.f32 %v7311_v28, %v18794_v20  ;;  %v18798_v40 = vld [vmem:[#allocation167_spill] sm:$0xff] }
 0x515   : > { %9155 = vst.msk [vmem:[%s16317_s16 + $0x47] sm:$0x4] %vm8892_vm7, %v9123_v12  ;;  %v11646_v14 = vpop.f32.mrf.mxu0  ;;  %v11515_v33 = vpop.f32.mrf.mxu1  ;;  %v8399_v2 = vadd.f32 %v11642_v38, %v7702_v61  ;;  %v8531_v34 = vadd.f32 %v16283_v43, %v8396_v58  ;;  %v8661_v47 = vmax.f32 %v8533_v8, 0.0  ;;  %v18800_v58 = vld [vmem:[#allocation224_spill] sm:$0xff]  ;;  %v18801_v8 = vld [vmem:[#allocation171_spill] sm:$0xff] }
 0x516   : > { %9171 = vst.msk [vmem:[%s16317_s16 + $0x46] sm:$0x10] %vm8909_vm8, %v9123_v12  ;;  %8914 = vst.msk [vmem:[%s16317_s16 + $0x3e] sm:$0x10] %vm8909_vm8, %v8863_v39  ;;  %v9251_v5 = vmax.f32 %v8766_v36, %v9219_v13  ;;  %v8963_v29 = vrot.slane %v8764_v32, 1  ;;  %v7705_v57 = vadd.f32 %v11515_v33, %v18795_v11  ;;  %v8397_v3 = vadd.f32 %v8008_v59, %v7700_v23 }
 0x517   : > { %9187 = vst.msk [vmem:[%s16317_s16 + $0x45] sm:$0x40] %vm8926_vm9, %v9123_v12  ;;  %8931 = vst.msk [vmem:[%s16317_s16 + $0x3d] sm:$0x40] %vm8926_vm9, %v8863_v39  ;;  %v8024_v54 = vpop.f32.mrf.mxu0  ;;  %v7324_v30 = vpop.f32.mrf.mxu1  ;;  %v8534_v35 = vadd.f32 %v16283_v43, %v8399_v2 }
 0x518   : > { %8880 = vst.msk [vmem:[%s16317_s16 + $0x40] sm:$0x1] %vm8875_vm6, %v8863_v39  ;;  %9267 = vst.msk [vmem:[%s16317_s16 + $0x4c] sm:$0x1] %vm8875_vm6, %v9251_v5  ;;  %v8995_v27 = vmax.f32 %v8764_v32, %v8963_v29  ;;  %v8402_v17 = vadd.f32 %v11645_v48, %v7705_v57  ;;  %v7703_v7 = vadd.f32 %v7324_v30, %v18796_v1  ;;  %v8659_v48 = vmax.f32 %v8531_v34, 0.0  ;;  %v18802_v34 = vld [vmem:[#allocation173_spill] sm:$0xff] }
 0x519   : > { %8897 = vst.msk [vmem:[%s16317_s16 + $0x3f] sm:$0x4] %vm8892_vm7, %v8863_v39  ;;  %9283 = vst.msk [vmem:[%s16317_s16 + $0x4b] sm:$0x4] %vm8892_vm7, %v9251_v5  ;;  %v11649_v52 = vpop.f32.mrf.mxu0  ;;  %v11516_v16 = vpop.f32.mrf.mxu1  ;;  %v8532_v31 = vadd.f32 %v16283_v43, %v8397_v3  ;;  %v8662_v50 = vmax.f32 %v8534_v35, 0.0 }
 0x51a   : > { %9299 = vst.msk [vmem:[%s16317_s16 + $0x4a] sm:$0x10] %vm8909_vm8, %v9251_v5  ;;  %9043 = vst.msk [vmem:[%s16317_s16 + $0x42] sm:$0x10] %vm8909_vm8, %v8995_v27  ;;  %v8537_v38 = vadd.f32 %v16283_v43, %v8402_v17  ;;  %v8400_v49 = vadd.f32 %v8021_v19, %v7703_v7  ;;  %v7706_v44 = vadd.f32 %v11516_v16, %v18797_v15  ;;  %v18799_v19 = vld [vmem:[#allocation222_spill] sm:$0xff]  ;;  %v18803_v15 = vld [vmem:[#allocation177_spill] sm:$0xff] }
 0x51b   : > { %9315 = vst.msk [vmem:[%s16317_s16 + $0x49] sm:$0x40] %vm8926_vm9, %v9251_v5  ;;  %9059 = vst.msk [vmem:[%s16317_s16 + $0x41] sm:$0x40] %vm8926_vm9, %v8995_v27  ;;  %v8037_v26 = vpop.f32.mrf.mxu0  ;;  %v7327_v56 = vpop.f32.mrf.mxu1 }
 0x51c   : > { %9011 = vst.msk [vmem:[%s16317_s16 + $0x44] sm:$0x1] %vm8875_vm6, %v8995_v27  ;;  %v8665_v59 = vmax.f32 %v8537_v38, 0.0  ;;  %v8535_v21 = vadd.f32 %v16283_v43, %v8400_v49  ;;  %v8403_v60 = vadd.f32 %v11646_v14, %v7706_v44  ;;  %v7704_v24 = vadd.f32 %v7327_v56, %v18798_v40 }
 0x51d   : > { %9027 = vst.msk [vmem:[%s16317_s16 + $0x43] sm:$0x4] %vm8892_vm7, %v8995_v27  ;;  %v11650_v46 = vpop.f32.mrf.mxu0  ;;  %v11519_v45 = vpop.f32.mrf.mxu1  ;;  %v8660_v14 = vmax.f32 %v8532_v31, 0.0 }
 0x51e   : > { %v8769_v62 = vmax.f32 %v8661_v47, %v8665_v59  ;;  %v8663_v25 = vmax.f32 %v8535_v21, 0.0  ;;  %v8538_v12 = vadd.f32 %v16283_v43, %v8403_v60  ;;  %v8401_v51 = vadd.f32 %v8024_v54, %v7704_v24  ;;  %v18804_v60 = vld [vmem:[#allocation180_spill] sm:$0xff] }
 0x51f   : > { %v8040_v36 = vpop.f32.mrf.mxu0  ;;  %v7709_v6 = vadd.f32 %v11519_v45, %v18799_v19  ;;  %v7340_v22 = vpop.f32.mrf.mxu1 }
 0x520   : > { %v9092_v61 = vrot.slane %v8769_v62, 1  ;;  %v8767_v28 = vmax.f32 %v8659_v48, %v8663_v25  ;;  %v8666_v39 = vmax.f32 %v8538_v12, 0.0  ;;  %v8536_v13 = vadd.f32 %v16283_v43, %v8401_v51  ;;  %v18805_v12 = vld [vmem:[#allocation234_spill] sm:$0xff] }
 0x521   : > { %v11653_v32 = vpop.f32.mrf.mxu0  ;;  %v7707_v20 = vadd.f32 %v7340_v22, %v18800_v58  ;;  %v11520_v23 = vpop.f32.mrf.mxu1  ;;  %v8406_v54 = vadd.f32 %v11649_v52, %v7709_v6 }
 0x522   : > { %v9124_v33 = vmax.f32 %v8769_v62, %v9092_v61  ;;  %v8832_v5 = vrot.slane %v8767_v28, 1  ;;  %v8770_v29 = vmax.f32 %v8662_v50, %v8666_v39  ;;  %v8664_v11 = vmax.f32 %v8536_v13, 0.0 }
 0x523   : > { %v8053_v57 = vpop.f32.mrf.mxu0  ;;  %v7710_v2 = vadd.f32 %v11520_v23, %v18801_v8  ;;  %v7343_v30 = vpop.f32.mrf.mxu1  ;;  %v8404_v52 = vadd.f32 %v8037_v26, %v7707_v20  ;;  %v8541_v26 = vadd.f32 %v16283_v43, %v8406_v54 }
 0x524   : > { %9140 = vst.msk [vmem:[%s16317_s16 + $0x58] sm:$0x1] %vm8875_vm6, %v9124_v33  ;;  %v8864_v27 = vmax.f32 %v8767_v28, %v8832_v5  ;;  %v9220_v17 = vrot.slane %v8770_v29, 1  ;;  %v8768_v1 = vmax.f32 %v8660_v14, %v8664_v11  ;;  %v7708_v3 = vadd.f32 %v7343_v30, %v18802_v34  ;;  %v18806_v28 = vld [vmem:[#allocation236_spill] sm:$0xff] }
 0x525   : > { %9156 = vst.msk [vmem:[%s16317_s16 + $0x57] sm:$0x4] %vm8892_vm7, %v9124_v33  ;;  %v11654_v7 = vpop.f32.mrf.mxu0  ;;  %v11523_v16 = vpop.f32.mrf.mxu1  ;;  %v8407_v35 = vadd.f32 %v11650_v46, %v7710_v2  ;;  %v8539_v48 = vadd.f32 %v16283_v43, %v8404_v52  ;;  %v16656_v46 = vld [vmem:[%s17140_s2] ss:$0 sm:$0xff] }
 0x526   : > { %9172 = vst.msk [vmem:[%s16317_s16 + $0x56] sm:$0x10] %vm8909_vm8, %v9124_v33  ;;  %8915 = vst.msk [vmem:[%s16317_s16 + $0x4e] sm:$0x10] %vm8909_vm8, %v8864_v27  ;;  %v9252_v38 = vmax.f32 %v8770_v29, %v9220_v17  ;;  %v8964_v49 = vrot.slane %v8768_v1, 1  ;;  %v7713_v44 = vadd.f32 %v11523_v16, %v18803_v15  ;;  %v8405_v31 = vadd.f32 %v8040_v36, %v7708_v3  ;;  %v18808_v52 = vld [vmem:[#allocation185_spill] sm:$0xff] }
 0x527   : > { %9188 = vst.msk [vmem:[%s16317_s16 + $0x55] sm:$0x40] %vm8926_vm9, %v9124_v33  ;;  %8932 = vst.msk [vmem:[%s16317_s16 + $0x4d] sm:$0x40] %vm8926_vm9, %v8864_v27  ;;  %v8056_v47 = vpop.f32.mrf.mxu0  ;;  %v7356_v56 = vpop.f32.mrf.mxu1  ;;  %v8669_v36 = vmax.f32 %v8541_v26, 0.0  ;;  %v8542_v50 = vadd.f32 %v16656_v46, %v8407_v35  ;;  %v18809_v26 = vld [vmem:[#allocation189_spill] sm:$0xff] }
 0x528   : > { %8881 = vst.msk [vmem:[%s16317_s16 + $0x50] sm:$0x1] %vm8875_vm6, %v8864_v27  ;;  %9268 = vst.msk [vmem:[%s16317_s16 + $0x5c] sm:$0x1] %vm8875_vm6, %v9252_v38  ;;  %v8996_v59 = vmax.f32 %v8768_v1, %v8964_v49  ;;  %v8410_v21 = vadd.f32 %v11653_v32, %v7713_v44  ;;  %v7711_v40 = vadd.f32 %v7356_v56, %v18804_v60  ;;  %v8667_v32 = vmax.f32 %v8539_v48, 0.0  ;;  %v18810_v48 = vld [vmem:[#allocation192_spill] sm:$0xff] }
 0x529   : > { %8898 = vst.msk [vmem:[%s16317_s16 + $0x4f] sm:$0x4] %vm8892_vm7, %v8864_v27  ;;  %9284 = vst.msk [vmem:[%s16317_s16 + $0x5b] sm:$0x4] %vm8892_vm7, %v9252_v38  ;;  %v11657_v24 = vpop.f32.mrf.mxu0  ;;  %v11524_v45 = vpop.f32.mrf.mxu1  ;;  %v8540_v14 = vadd.f32 %v16656_v46, %v8405_v31  ;;  %v8670_v11 = vmax.f32 %v8542_v50, 0.0 }
 0x52a   : > { %9300 = vst.msk [vmem:[%s16317_s16 + $0x5a] sm:$0x10] %vm8909_vm8, %v9252_v38  ;;  %9044 = vst.msk [vmem:[%s16317_s16 + $0x52] sm:$0x10] %vm8909_vm8, %v8996_v59  ;;  %v8545_v62 = vadd.f32 %v16656_v46, %v8410_v21  ;;  %v8408_v25 = vadd.f32 %v8053_v57, %v7711_v40  ;;  %v7714_v43 = vadd.f32 %v11524_v45, %v18805_v12  ;;  %v18807_v57 = vld [vmem:[#allocation183_spill] sm:$0xff]  ;;  %v18811_v12 = vld [vmem:[#allocation246_spill] sm:$0xff] }
 0x52b   : > { %9316 = vst.msk [vmem:[%s16317_s16 + $0x59] sm:$0x40] %vm8926_vm9, %v9252_v38  ;;  %9060 = vst.msk [vmem:[%s16317_s16 + $0x51] sm:$0x40] %vm8926_vm9, %v8996_v59  ;;  %v8069_v51 = vpop.f32.mrf.mxu0  ;;  %v7359_v19 = vpop.f32.mrf.mxu1 }
 0x52c   : > { %9012 = vst.msk [vmem:[%s16317_s16 + $0x54] sm:$0x1] %vm8875_vm6, %v8996_v59  ;;  %v8673_v6 = vmax.f32 %v8545_v62, 0.0  ;;  %v8543_v22 = vadd.f32 %v16656_v46, %v8408_v25  ;;  %v8411_v61 = vadd.f32 %v11654_v7, %v7714_v43  ;;  %v7712_v39 = vadd.f32 %v7359_v19, %v18806_v28 }
 0x52d   : > { %9028 = vst.msk [vmem:[%s16317_s16 + $0x53] sm:$0x4] %vm8892_vm7, %v8996_v59  ;;  %v11658_v13 = vpop.f32.mrf.mxu0  ;;  %v11527_v58 = vpop.f32.mrf.mxu1  ;;  %v8668_v7 = vmax.f32 %v8540_v14, 0.0 }
 0x52e   : > { %v8773_v20 = vmax.f32 %v8669_v36, %v8673_v6  ;;  %v8671_v23 = vmax.f32 %v8543_v22, 0.0  ;;  %v8546_v33 = vadd.f32 %v16656_v46, %v8411_v61  ;;  %v8409_v5 = vadd.f32 %v8056_v47, %v7712_v39  ;;  %v18812_v61 = vld [vmem:[#allocation248_spill] sm:$0xff] }
 0x52f   : > { %v8072_v29 = vpop.f32.mrf.mxu0  ;;  %v7717_v54 = vadd.f32 %v11527_v58, %v18807_v57  ;;  %v7372_v8 = vpop.f32.mrf.mxu1 }
 0x530   : > { %v9093_v2 = vrot.slane %v8773_v20, 1  ;;  %v8771_v30 = vmax.f32 %v8667_v32, %v8671_v23  ;;  %v8674_v27 = vmax.f32 %v8546_v33, 0.0  ;;  %v8544_v17 = vadd.f32 %v16656_v46, %v8409_v5  ;;  %v18813_v23 = vld [vmem:[#allocation195_spill] sm:$0xff] }
 0x531   : > { %v11661_v1 = vpop.f32.mrf.mxu0  ;;  %v7715_v34 = vadd.f32 %v7372_v8, %v18808_v52  ;;  %v11528_v3 = vpop.f32.mrf.mxu1  ;;  %v8414_v47 = vadd.f32 %v11657_v24, %v7717_v54 }
 0x532   : > { %v9125_v16 = vmax.f32 %v8773_v20, %v9093_v2  ;;  %v8833_v38 = vrot.slane %v8771_v30, 1  ;;  %v8774_v49 = vmax.f32 %v8670_v11, %v8674_v27  ;;  %v8672_v15 = vmax.f32 %v8544_v17, 0.0 }
 0x533   : > { %v8085_v44 = vpop.f32.mrf.mxu0  ;;  %v7718_v35 = vadd.f32 %v11528_v3, %v18809_v26  ;;  %v7375_v56 = vpop.f32.mrf.mxu1  ;;  %v8412_v24 = vadd.f32 %v8069_v51, %v7715_v34  ;;  %v8549_v51 = vadd.f32 %v16656_v46, %v8414_v47 }
 0x534   : > { %9141 = vst.msk [vmem:[%s16317_s16 + $0x68] sm:$0x1] %vm8875_vm6, %v9125_v16  ;;  %v8865_v59 = vmax.f32 %v8771_v30, %v8833_v38  ;;  %v9221_v21 = vrot.slane %v8774_v49, 1  ;;  %v8772_v60 = vmax.f32 %v8668_v7, %v8672_v15  ;;  %v7716_v31 = vadd.f32 %v7375_v56, %v18810_v48  ;;  %v18814_v30 = vld [vmem:[#allocation197_spill] sm:$0xff] }
 0x535   : > { %9157 = vst.msk [vmem:[%s16317_s16 + $0x67] sm:$0x4] %vm8892_vm7, %v9125_v16  ;;  %v11662_v40 = vpop.f32.mrf.mxu0  ;;  %v11531_v45 = vpop.f32.mrf.mxu1  ;;  %v8415_v50 = vadd.f32 %v11658_v13, %v7718_v35  ;;  %v8547_v32 = vadd.f32 %v16656_v46, %v8412_v24  ;;  %v8677_v11 = vmax.f32 %v8549_v51, 0.0  ;;  %v18816_v24 = vld [vmem:[#allocation201_spill] sm:$0xff]  ;;  %v18817_v51 = vld [vmem:[#allocation204_spill] sm:$0xff] }
 0x536   : > { %9173 = vst.msk [vmem:[%s16317_s16 + $0x66] sm:$0x10] %vm8909_vm8, %v9125_v16  ;;  %8916 = vst.msk [vmem:[%s16317_s16 + $0x5e] sm:$0x10] %vm8909_vm8, %v8865_v59  ;;  %v9253_v62 = vmax.f32 %v8774_v49, %v9221_v21  ;;  %v8965_v25 = vrot.slane %v8772_v60, 1  ;;  %v7721_v43 = vadd.f32 %v11531_v45, %v18811_v12  ;;  %v8413_v14 = vadd.f32 %v8072_v29, %v7716_v31 }
 0x537   : > { %9189 = vst.msk [vmem:[%s16317_s16 + $0x65] sm:$0x40] %vm8926_vm9, %v9125_v16  ;;  %8933 = vst.msk [vmem:[%s16317_s16 + $0x5d] sm:$0x40] %vm8926_vm9, %v8865_v59  ;;  %v8088_v36 = vpop.f32.mrf.mxu0  ;;  %v7388_v19 = vpop.f32.mrf.mxu1  ;;  %v8550_v57 = vadd.f32 %v16656_v46, %v8415_v50 }
 0x538   : > { %8882 = vst.msk [vmem:[%s16317_s16 + $0x60] sm:$0x1] %vm8875_vm6, %v8865_v59  ;;  %9269 = vst.msk [vmem:[%s16317_s16 + $0x6c] sm:$0x1] %vm8875_vm6, %v9253_v62  ;;  %v8997_v6 = vmax.f32 %v8772_v60, %v8965_v25  ;;  %v8418_v22 = vadd.f32 %v11661_v1, %v7721_v43  ;;  %v7719_v28 = vadd.f32 %v7388_v19, %v18812_v61  ;;  %v8675_v1 = vmax.f32 %v8547_v32, 0.0  ;;  %v18818_v32 = vld [vmem:[#allocation258_spill] sm:$0xff] }
 0x539   : > { %8899 = vst.msk [vmem:[%s16317_s16 + $0x5f] sm:$0x4] %vm8892_vm7, %v8865_v59  ;;  %9285 = vst.msk [vmem:[%s16317_s16 + $0x6b] sm:$0x4] %vm8892_vm7, %v9253_v62  ;;  %v11665_v39 = vpop.f32.mrf.mxu0  ;;  %v11532_v58 = vpop.f32.mrf.mxu1  ;;  %v8548_v7 = vadd.f32 %v16656_v46, %v8413_v14  ;;  %v8678_v15 = vmax.f32 %v8550_v57, 0.0 }
 0x53a   : > { %9301 = vst.msk [vmem:[%s16317_s16 + $0x6a] sm:$0x10] %vm8909_vm8, %v9253_v62  ;;  %9045 = vst.msk [vmem:[%s16317_s16 + $0x62] sm:$0x10] %vm8909_vm8, %v8997_v6  ;;  %v8553_v13 = vadd.f32 %v16656_v46, %v8418_v22  ;;  %v8416_v20 = vadd.f32 %v8085_v44, %v7719_v28  ;;  %v7722_v33 = vadd.f32 %v11532_v58, %v18813_v23  ;;  %v18815_v44 = vld [vmem:[#allocation227_spill] sm:$0xff] }
 0x53b   : > { %9317 = vst.msk [vmem:[%s16317_s16 + $0x69] sm:$0x40] %vm8926_vm9, %v9253_v62  ;;  %9061 = vst.msk [vmem:[%s16317_s16 + $0x61] sm:$0x40] %vm8926_vm9, %v8997_v6  ;;  %v8101_v5 = vpop.f32.mrf.mxu0  ;;  %v7391_v54 = vpop.f32.mrf.mxu1  ;;  %v18819_v23 = vld [vmem:[#allocation207_spill] sm:$0xff] }
 0x53c   : > { %9013 = vst.msk [vmem:[%s16317_s16 + $0x64] sm:$0x1] %vm8875_vm6, %v8997_v6  ;;  %v8681_v29 = vmax.f32 %v8553_v13, 0.0  ;;  %v8551_v8 = vadd.f32 %v16656_v46, %v8416_v20  ;;  %v8419_v2 = vadd.f32 %v11662_v40, %v7722_v33  ;;  %v7720_v27 = vadd.f32 %v7391_v54, %v18814_v30 }
 0x53d   : > { %9029 = vst.msk [vmem:[%s16317_s16 + $0x63] sm:$0x4] %vm8892_vm7, %v8997_v6  ;;  %v11666_v17 = vpop.f32.mrf.mxu0  ;;  %v11535_v52 = vpop.f32.mrf.mxu1  ;;  %v8676_v40 = vmax.f32 %v8548_v7, 0.0 }
 0x53e   : > { %v8777_v34 = vmax.f32 %v8677_v11, %v8681_v29  ;;  %v8679_v3 = vmax.f32 %v8551_v8, 0.0  ;;  %v8554_v16 = vadd.f32 %v16656_v46, %v8419_v2  ;;  %v8417_v38 = vadd.f32 %v8088_v36, %v7720_v27  ;;  %v18820_v2 = vld [vmem:[#allocation209_spill] sm:$0xff] }
 0x53f   : > { %v8104_v49 = vpop.f32.mrf.mxu0  ;;  %v7725_v47 = vadd.f32 %v11535_v52, %v18815_v44  ;;  %v7404_v26 = vpop.f32.mrf.mxu1 }
 0x540   : > { %v9094_v35 = vrot.slane %v8777_v34, 1  ;;  %v8775_v56 = vmax.f32 %v8675_v1, %v8679_v3  ;;  %v8682_v59 = vmax.f32 %v8554_v16, 0.0  ;;  %v8552_v21 = vadd.f32 %v16656_v46, %v8417_v38  ;;  %v18821_v3 = vld [vmem:[#allocation239_spill] sm:$0xff] }
 0x541   : > { %v11669_v60 = vpop.f32.mrf.mxu0  ;;  %v7723_v48 = vadd.f32 %v7404_v26, %v18816_v24  ;;  %v11536_v31 = vpop.f32.mrf.mxu1  ;;  %v8422_v36 = vadd.f32 %v11665_v39, %v7725_v47 }
 0x542   : > { %v9126_v45 = vmax.f32 %v8777_v34, %v9094_v35  ;;  %v8834_v62 = vrot.slane %v8775_v56, 1  ;;  %v8778_v25 = vmax.f32 %v8678_v15, %v8682_v59  ;;  %v8680_v12 = vmax.f32 %v8552_v21, 0.0 }
 0x543   : > { %v8117_v43 = vpop.f32.mrf.mxu0  ;;  %v7726_v50 = vadd.f32 %v11536_v31, %v18817_v51  ;;  %v7407_v19 = vpop.f32.mrf.mxu1  ;;  %v8420_v39 = vadd.f32 %v8101_v5, %v7723_v48  ;;  %v8557_v5 = vadd.f32 %v16656_v46, %v8422_v36 }
 0x544   : > { %9142 = vst.msk [vmem:[%s16317_s16 + $0x78] sm:$0x1] %vm8875_vm6, %v9126_v45  ;;  %v8866_v6 = vmax.f32 %v8775_v56, %v8834_v62  ;;  %v9222_v22 = vrot.slane %v8778_v25, 1  ;;  %v8776_v61 = vmax.f32 %v8676_v40, %v8680_v12  ;;  %v7724_v14 = vadd.f32 %v7407_v19, %v18818_v32  ;;  %v18822_v56 = vld [vmem:[#allocation213_spill] sm:$0xff] }
 0x545   : > { %9158 = vst.msk [vmem:[%s16317_s16 + $0x77] sm:$0x4] %vm8892_vm7, %v9126_v45  ;;  %v11670_v28 = vpop.f32.mrf.mxu0  ;;  %v11539_v58 = vpop.f32.mrf.mxu1  ;;  %v8423_v57 = vadd.f32 %v11666_v17, %v7726_v50  ;;  %v8555_v1 = vadd.f32 %v16656_v46, %v8420_v39  ;;  %v8685_v15 = vmax.f32 %v8557_v5, 0.0  ;;  %v18824_v39 = vld [vmem:[#allocation216_spill] sm:$0xff]  ;;  %v18825_v5 = vld [vmem:[#allocation219_spill] sm:$0xff] }
 0x546   : > { %9174 = vst.msk [vmem:[%s16317_s16 + $0x76] sm:$0x10] %vm8909_vm8, %v9126_v45  ;;  %8917 = vst.msk [vmem:[%s16317_s16 + $0x6e] sm:$0x10] %vm8909_vm8, %v8866_v6  ;;  %v9254_v13 = vmax.f32 %v8778_v25, %v9222_v22  ;;  %v8966_v20 = vrot.slane %v8776_v61, 1  ;;  %v7729_v33 = vadd.f32 %v11539_v58, %v18819_v23  ;;  %v8421_v7 = vadd.f32 %v8104_v49, %v7724_v14 }
 0x547   : > { %9190 = vst.msk [vmem:[%s16317_s16 + $0x75] sm:$0x40] %vm8926_vm9, %v9126_v45  ;;  %8934 = vst.msk [vmem:[%s16317_s16 + $0x6d] sm:$0x40] %vm8926_vm9, %v8866_v6  ;;  %v8120_v11 = vpop.f32.mrf.mxu0  ;;  %v7420_v54 = vpop.f32.mrf.mxu1  ;;  %v8558_v44 = vadd.f32 %v16656_v46, %v8423_v57 }
 0x548   : > { %8883 = vst.msk [vmem:[%s16317_s16 + $0x70] sm:$0x1] %vm8875_vm6, %v8866_v6  ;;  %9270 = vst.msk [vmem:[%s16317_s16 + $0x7c] sm:$0x1] %vm8875_vm6, %v9254_v13  ;;  %v8998_v29 = vmax.f32 %v8776_v61, %v8966_v20  ;;  %v8426_v8 = vadd.f32 %v11669_v60, %v7729_v33  ;;  %v7727_v30 = vadd.f32 %v7420_v54, %v18820_v2  ;;  %v8683_v60 = vmax.f32 %v8555_v1, 0.0  ;;  %v18826_v1 = vld [vmem:[#allocation221_spill] sm:$0xff] }
 0x549   : > { %8900 = vst.msk [vmem:[%s16317_s16 + $0x6f] sm:$0x4] %vm8892_vm7, %v8866_v6  ;;  %9286 = vst.msk [vmem:[%s16317_s16 + $0x7b] sm:$0x4] %vm8892_vm7, %v9254_v13  ;;  %v11673_v27 = vpop.f32.mrf.mxu0  ;;  %v11540_v52 = vpop.f32.mrf.mxu1  ;;  %v8556_v40 = vadd.f32 %v16656_v46, %v8421_v7  ;;  %v8686_v12 = vmax.f32 %v8558_v44, 0.0 }
 0x54a   : > { %9302 = vst.msk [vmem:[%s16317_s16 + $0x7a] sm:$0x10] %vm8909_vm8, %v9254_v13  ;;  %9046 = vst.msk [vmem:[%s16317_s16 + $0x72] sm:$0x10] %vm8909_vm8, %v8998_v29  ;;  %v8561_v17 = vadd.f32 %v16656_v46, %v8426_v8  ;;  %v8424_v34 = vadd.f32 %v8117_v43, %v7727_v30  ;;  %v7730_v16 = vadd.f32 %v11540_v52, %v18821_v3  ;;  %v18823_v43 = vld [vmem:[#allocation241_spill] sm:$0xff]  ;;  %v18827_v3 = vld [vmem:[#allocation251_spill] sm:$0xff] }
 0x54b   : > { %9318 = vst.msk [vmem:[%s16317_s16 + $0x79] sm:$0x40] %vm8926_vm9, %v9254_v13  ;;  %9062 = vst.msk [vmem:[%s16317_s16 + $0x71] sm:$0x40] %vm8926_vm9, %v8998_v29  ;;  %v8133_v38 = vpop.f32.mrf.mxu0  ;;  %v7423_v47 = vpop.f32.mrf.mxu1 }
 0x54c   : > { %9014 = vst.msk [vmem:[%s16317_s16 + $0x74] sm:$0x1] %vm8875_vm6, %v8998_v29  ;;  %v8689_v49 = vmax.f32 %v8561_v17, 0.0  ;;  %v8559_v26 = vadd.f32 %v16656_v46, %v8424_v34  ;;  %v8427_v35 = vadd.f32 %v11670_v28, %v7730_v16  ;;  %v7728_v59 = vadd.f32 %v7423_v47, %v18822_v56 }
 0x54d   : > { %9030 = vst.msk [vmem:[%s16317_s16 + $0x73] sm:$0x4] %vm8892_vm7, %v8998_v29  ;;  %v11674_v21 = vpop.f32.mrf.mxu0  ;;  %v11543_v24 = vpop.f32.mrf.mxu1  ;;  %v8684_v28 = vmax.f32 %v8556_v40, 0.0 }
 0x54e   : > { %v8781_v48 = vmax.f32 %v8685_v15, %v8689_v49  ;;  %v8687_v31 = vmax.f32 %v8559_v26, 0.0  ;;  %v8562_v45 = vadd.f32 %v16656_v46, %v8427_v35  ;;  %v8425_v62 = vadd.f32 %v8120_v11, %v7728_v59  ;;  %v18828_v35 = vld [vmem:[#allocation253_spill] sm:$0xff] }
 0x54f   : > { %v8136_v25 = vpop.f32.mrf.mxu0  ;;  %v7733_v36 = vadd.f32 %v11543_v24, %v18823_v43  ;;  %v7436_v51 = vpop.f32.mrf.mxu1 }
 0x550   : > { %v9095_v50 = vrot.slane %v8781_v48, 1  ;;  %v8779_v19 = vmax.f32 %v8683_v60, %v8687_v31  ;;  %v8690_v6 = vmax.f32 %v8562_v45, 0.0  ;;  %v8560_v22 = vadd.f32 %v16656_v46, %v8425_v62  ;;  %v18829_v31 = vld [vmem:[#allocation225_spill] sm:$0xff] }
 0x551   : > { %v11677_v61 = vpop.f32.mrf.mxu0  ;;  %v7731_v32 = vadd.f32 %v7436_v51, %v18824_v39  ;;  %v11544_v14 = vpop.f32.mrf.mxu1  ;;  %v8430_v11 = vadd.f32 %v11673_v27, %v7733_v36 }
 0x552   : > { %v9127_v58 = vmax.f32 %v8781_v48, %v9095_v50  ;;  %v8835_v13 = vrot.slane %v8779_v19, 1  ;;  %v8782_v20 = vmax.f32 %v8686_v12, %v8690_v6  ;;  %v8688_v23 = vmax.f32 %v8560_v22, 0.0 }
 0x553   : > { %v8149_v33 = vpop.f32.mrf.mxu0  ;;  %v7734_v57 = vadd.f32 %v11544_v14, %v18825_v5  ;;  %v7439_v54 = vpop.f32.mrf.mxu1  ;;  %v8428_v27 = vadd.f32 %v8133_v38, %v7731_v32  ;;  %v8565_v38 = vadd.f32 %v16656_v46, %v8430_v11 }
 0x554   : > { %9143 = vst.msk [vmem:[%s16317_s16 + $0x88] sm:$0x1] %vm8875_vm6, %v9127_v58  ;;  %v8867_v29 = vmax.f32 %v8779_v19, %v8835_v13  ;;  %v9223_v8 = vrot.slane %v8782_v20, 1  ;;  %v8780_v2 = vmax.f32 %v8684_v28, %v8688_v23  ;;  %v7732_v7 = vadd.f32 %v7439_v54, %v18826_v1  ;;  %v18830_v19 = vld [vmem:[#allocation228_spill] sm:$0xff] }
 0x555   : > { %9159 = vst.msk [vmem:[%s16317_s16 + $0x87] sm:$0x4] %vm8892_vm7, %v9127_v58  ;;  %v11678_v30 = vpop.f32.mrf.mxu0  ;;  %v11547_v52 = vpop.f32.mrf.mxu1  ;;  %v8431_v44 = vadd.f32 %v11674_v21, %v7734_v57  ;;  %v8563_v60 = vadd.f32 %v16656_v46, %v8428_v27  ;;  %v8693_v12 = vmax.f32 %v8565_v38, 0.0  ;;  %v18832_v27 = vld [vmem:[#allocation261_spill] sm:$0xff]  ;;  %v18833_v38 = vld [vmem:[#allocation231_spill] sm:$0xff] }
 0x556   : > { %9175 = vst.msk [vmem:[%s16317_s16 + $0x86] sm:$0x10] %vm8909_vm8, %v9127_v58  ;;  %8918 = vst.msk [vmem:[%s16317_s16 + $0x7e] sm:$0x10] %vm8909_vm8, %v8867_v29  ;;  %v9255_v17 = vmax.f32 %v8782_v20, %v9223_v8  ;;  %v8967_v34 = vrot.slane %v8780_v2, 1  ;;  %v7737_v16 = vadd.f32 %v11547_v52, %v18827_v3  ;;  %v8429_v40 = vadd.f32 %v8136_v25, %v7732_v7 }
 0x557   : > { %9191 = vst.msk [vmem:[%s16317_s16 + $0x85] sm:$0x40] %vm8926_vm9, %v9127_v58  ;;  %8935 = vst.msk [vmem:[%s16317_s16 + $0x7d] sm:$0x40] %vm8926_vm9, %v8867_v29  ;;  %v8152_v15 = vpop.f32.mrf.mxu0  ;;  %v7452_v47 = vpop.f32.mrf.mxu1  ;;  %v8566_v43 = vadd.f32 %v16656_v46, %v8431_v44 }
 0x558   : > { %8884 = vst.msk [vmem:[%s16317_s16 + $0x80] sm:$0x1] %vm8875_vm6, %v8867_v29  ;;  %9271 = vst.msk [vmem:[%s16317_s16 + $0x8c] sm:$0x1] %vm8875_vm6, %v9255_v17  ;;  %v8999_v49 = vmax.f32 %v8780_v2, %v8967_v34  ;;  %v8434_v26 = vadd.f32 %v11677_v61, %v7737_v16  ;;  %v7735_v56 = vadd.f32 %v7452_v47, %v18828_v35  ;;  %v8691_v61 = vmax.f32 %v8563_v60, 0.0  ;;  %v18834_v60 = vld [vmem:[#allocation233_spill] sm:$0xff] }
 0x559   : > { %8901 = vst.msk [vmem:[%s16317_s16 + $0x7f] sm:$0x4] %vm8892_vm7, %v8867_v29  ;;  %9287 = vst.msk [vmem:[%s16317_s16 + $0x8b] sm:$0x4] %vm8892_vm7, %v9255_v17  ;;  %v11681_v59 = vpop.f32.mrf.mxu0  ;;  %v11548_v24 = vpop.f32.mrf.mxu1  ;;  %v8564_v28 = vadd.f32 %v16656_v46, %v8429_v40  ;;  %v8694_v23 = vmax.f32 %v8566_v43, 0.0 }
 0x55a   : > { %9303 = vst.msk [vmem:[%s16317_s16 + $0x8a] sm:$0x10] %vm8909_vm8, %v9255_v17  ;;  %9047 = vst.msk [vmem:[%s16317_s16 + $0x82] sm:$0x10] %vm8909_vm8, %v8999_v49  ;;  %v8569_v21 = vadd.f32 %v16656_v46, %v8434_v26  ;;  %v8432_v48 = vadd.f32 %v8149_v33, %v7735_v56  ;;  %v7738_v45 = vadd.f32 %v11548_v24, %v18829_v31  ;;  %v18831_v33 = vld [vmem:[#allocation260_spill] sm:$0xff]  ;;  %v18835_v31 = vld [vmem:[#allocation263_spill] sm:$0xff] }
 0x55b   : > { %9319 = vst.msk [vmem:[%s16317_s16 + $0x89] sm:$0x40] %vm8926_vm9, %v9255_v17  ;;  %9063 = vst.msk [vmem:[%s16317_s16 + $0x81] sm:$0x40] %vm8926_vm9, %v8999_v49  ;;  %v8165_v62 = vpop.f32.mrf.mxu0  ;;  %v7455_v36 = vpop.f32.mrf.mxu1 }
 0x55c   : > { %9015 = vst.msk [vmem:[%s16317_s16 + $0x84] sm:$0x1] %vm8875_vm6, %v8999_v49  ;;  %v8697_v25 = vmax.f32 %v8569_v21, 0.0  ;;  %v8567_v51 = vadd.f32 %v16656_v46, %v8432_v48  ;;  %v8435_v50 = vadd.f32 %v11678_v30, %v7738_v45  ;;  %v7736_v6 = vadd.f32 %v7455_v36, %v18830_v19 }
 0x55d   : > { %9031 = vst.msk [vmem:[%s16317_s16 + $0x83] sm:$0x4] %vm8892_vm7, %v8999_v49  ;;  %v11682_v22 = vpop.f32.mrf.mxu0  ;;  %v11551_v39 = vpop.f32.mrf.mxu1  ;;  %v8692_v30 = vmax.f32 %v8564_v28, 0.0 }
 0x55e   : > { %v8785_v32 = vmax.f32 %v8693_v12, %v8697_v25  ;;  %v8695_v14 = vmax.f32 %v8567_v51, 0.0  ;;  %v8570_v58 = vadd.f32 %v16656_v46, %v8435_v50  ;;  %v8433_v13 = vadd.f32 %v8152_v15, %v7736_v6  ;;  %v18836_v50 = vld [vmem:[#allocation265_spill] sm:$0xff] }
 0x55f   : > { %v8168_v20 = vpop.f32.mrf.mxu0  ;;  %v7741_v11 = vadd.f32 %v11551_v39, %v18831_v33  ;;  %v7468_v5 = vpop.f32.mrf.mxu1 }
 0x560   : > { %v9096_v57 = vrot.slane %v8785_v32, 1  ;;  %v8783_v54 = vmax.f32 %v8691_v61, %v8695_v14  ;;  %v8698_v29 = vmax.f32 %v8570_v58, 0.0  ;;  %v8568_v8 = vadd.f32 %v16656_v46, %v8433_v13  ;;  %v18837_v14 = vld [vmem:[#allocation237_spill] sm:$0xff] }
 0x561   : > { %v11685_v2 = vpop.f32.mrf.mxu0  ;;  %v7739_v1 = vadd.f32 %v7468_v5, %v18832_v27  ;;  %v11552_v7 = vpop.f32.mrf.mxu1  ;;  %v8438_v15 = vadd.f32 %v11681_v59, %v7741_v11 }
 0x562   : > { %v9128_v52 = vmax.f32 %v8785_v32, %v9096_v57  ;;  %v8836_v17 = vrot.slane %v8783_v54, 1  ;;  %v8786_v34 = vmax.f32 %v8694_v23, %v8698_v29  ;;  %v8696_v3 = vmax.f32 %v8568_v8, 0.0 }
 0x563   : > { %v8181_v16 = vpop.f32.mrf.mxu0  ;;  %v7742_v44 = vadd.f32 %v11552_v7, %v18833_v38  ;;  %v7471_v47 = vpop.f32.mrf.mxu1  ;;  %v8436_v59 = vadd.f32 %v8165_v62, %v7739_v1  ;;  %v8573_v62 = vadd.f32 %v16656_v46, %v8438_v15 }
 0x564   : > { %9144 = vst.msk [vmem:[%s16317_s16 + $0x98] sm:$0x1] %vm8875_vm6, %v9128_v52  ;;  %v8868_v49 = vmax.f32 %v8783_v54, %v8836_v17  ;;  %v9224_v26 = vrot.slane %v8786_v34, 1  ;;  %v8784_v35 = vmax.f32 %v8692_v30, %v8696_v3  ;;  %v7740_v40 = vadd.f32 %v7471_v47, %v18834_v60  ;;  %v18838_v54 = vld [vmem:[#allocation240_spill] sm:$0xff] }
 0x565   : > { %9160 = vst.msk [vmem:[%s16317_s16 + $0x97] sm:$0x4] %vm8892_vm7, %v9128_v52  ;;  %v11686_v56 = vpop.f32.mrf.mxu0  ;;  %v11555_v24 = vpop.f32.mrf.mxu1  ;;  %v8439_v43 = vadd.f32 %v11682_v22, %v7742_v44  ;;  %v8571_v61 = vadd.f32 %v16656_v46, %v8436_v59  ;;  %v8701_v23 = vmax.f32 %v8573_v62, 0.0  ;;  %v18840_v59 = vld [vmem:[#allocation243_spill] sm:$0xff] }
 0x566   : > { %9176 = vst.msk [vmem:[%s16317_s16 + $0x96] sm:$0x10] %vm8909_vm8, %v9128_v52  ;;  %8919 = vst.msk [vmem:[%s16317_s16 + $0x8e] sm:$0x10] %vm8909_vm8, %v8868_v49  ;;  %v9256_v21 = vmax.f32 %v8786_v34, %v9224_v26  ;;  %v8968_v48 = vrot.slane %v8784_v35, 1  ;;  %v7745_v45 = vadd.f32 %v11555_v24, %v18835_v31  ;;  %v8437_v28 = vadd.f32 %v8168_v20, %v7740_v40  ;;  %v18841_v62 = vld [vmem:[#allocation279_spill] sm:$0xff] }
 0x567   : > { %9192 = vst.msk [vmem:[%s16317_s16 + $0x95] sm:$0x40] %vm8926_vm9, %v9128_v52  ;;  %8936 = vst.msk [vmem:[%s16317_s16 + $0x8d] sm:$0x40] %vm8926_vm9, %v8868_v49  ;;  %v8184_v12 = vpop.f32.mrf.mxu0  ;;  %v7484_v36 = vpop.f32.mrf.mxu1  ;;  %v8574_v33 = vadd.f32 %v16656_v46, %v8439_v43 }
 0x568   : > { %8885 = vst.msk [vmem:[%s16317_s16 + $0x90] sm:$0x1] %vm8875_vm6, %v8868_v49  ;;  %9272 = vst.msk [vmem:[%s16317_s16 + $0x9c] sm:$0x1] %vm8875_vm6, %v9256_v21  ;;  %v9000_v25 = vmax.f32 %v8784_v35, %v8968_v48  ;;  %v8442_v51 = vadd.f32 %v11685_v2, %v7745_v45  ;;  %v7743_v19 = vadd.f32 %v7484_v36, %v18836_v50  ;;  %v8699_v2 = vmax.f32 %v8571_v61, 0.0  ;;  %v18842_v61 = vld [vmem:[#allocation280_spill] sm:$0xff] }
 0x569   : > { %8902 = vst.msk [vmem:[%s16317_s16 + $0x8f] sm:$0x4] %vm8892_vm7, %v8868_v49  ;;  %9288 = vst.msk [vmem:[%s16317_s16 + $0x9b] sm:$0x4] %vm8892_vm7, %v9256_v21  ;;  %v11689_v6 = vpop.f32.mrf.mxu0  ;;  %v11556_v39 = vpop.f32.mrf.mxu1  ;;  %v8572_v30 = vadd.f32 %v16656_v46, %v8437_v28  ;;  %v8702_v3 = vmax.f32 %v8574_v33, 0.0 }
 0x56a   : > { %9304 = vst.msk [vmem:[%s16317_s16 + $0x9a] sm:$0x10] %vm8909_vm8, %v9256_v21  ;;  %9048 = vst.msk [vmem:[%s16317_s16 + $0x92] sm:$0x10] %vm8909_vm8, %v9000_v25  ;;  %v8577_v22 = vadd.f32 %v16656_v46, %v8442_v51  ;;  %v8440_v32 = vadd.f32 %v8181_v16, %v7743_v19  ;;  %v7746_v58 = vadd.f32 %v11556_v39, %v18837_v14  ;;  %v18839_v16 = vld [vmem:[#allocation267_spill] sm:$0xff]  ;;  %v18843_v14 = vld [vmem:[#allocation245_spill] sm:$0xff] }
 0x56b   : > { %9320 = vst.msk [vmem:[%s16317_s16 + $0x99] sm:$0x40] %vm8926_vm9, %v9256_v21  ;;  %9064 = vst.msk [vmem:[%s16317_s16 + $0x91] sm:$0x40] %vm8926_vm9, %v9000_v25  ;;  %v8197_v13 = vpop.f32.mrf.mxu0  ;;  %v7487_v11 = vpop.f32.mrf.mxu1 }
 0x56c   : > { %9016 = vst.msk [vmem:[%s16317_s16 + $0x94] sm:$0x1] %vm8875_vm6, %v9000_v25  ;;  %v8705_v20 = vmax.f32 %v8577_v22, 0.0  ;;  %v8575_v5 = vadd.f32 %v16656_v46, %v8440_v32  ;;  %v8443_v57 = vadd.f32 %v11686_v56, %v7746_v58  ;;  %v7744_v29 = vadd.f32 %v7487_v11, %v18838_v54 }
 0x56d   : > { %9032 = vst.msk [vmem:[%s16317_s16 + $0x93] sm:$0x4] %vm8892_vm7, %v9000_v25  ;;  %v11690_v8 = vpop.f32.mrf.mxu0  ;;  %v11559_v27 = vpop.f32.mrf.mxu1  ;;  %v8700_v56 = vmax.f32 %v8572_v30, 0.0 }
 0x56e   : > { %v8789_v1 = vmax.f32 %v8701_v23, %v8705_v20  ;;  %v8703_v7 = vmax.f32 %v8575_v5, 0.0  ;;  %v8578_v52 = vadd.f32 %v16656_v46, %v8443_v57  ;;  %v8441_v17 = vadd.f32 %v8184_v12, %v7744_v29  ;;  %v18844_v57 = vld [vmem:[#allocation249_spill] sm:$0xff] }
 0x56f   : > { %v8200_v34 = vpop.f32.mrf.mxu0  ;;  %v7749_v15 = vadd.f32 %v11559_v27, %v18839_v16  ;;  %v7500_v38 = vpop.f32.mrf.mxu1 }
 0x570   : > { %v9097_v44 = vrot.slane %v8789_v1, 1  ;;  %v8787_v47 = vmax.f32 %v8699_v2, %v8703_v7  ;;  %v8706_v49 = vmax.f32 %v8578_v52, 0.0  ;;  %v8576_v26 = vadd.f32 %v16656_v46, %v8441_v17  ;;  %v18845_v7 = vld [vmem:[#allocation271_spill] sm:$0xff] }
 0x571   : > { %v11693_v35 = vpop.f32.mrf.mxu0  ;;  %v7747_v60 = vadd.f32 %v7500_v38, %v18840_v59  ;;  %v11560_v40 = vpop.f32.mrf.mxu1  ;;  %v8446_v12 = vadd.f32 %v11689_v6, %v7749_v15 }
 0x572   : > { %v9129_v24 = vmax.f32 %v8789_v1, %v9097_v44  ;;  %v8837_v21 = vrot.slane %v8787_v47, 1  ;;  %v8790_v48 = vmax.f32 %v8702_v3, %v8706_v49  ;;  %v8704_v31 = vmax.f32 %v8576_v26, 0.0 }
 0x573   : > { %v8213_v45 = vpop.f32.mrf.mxu0  ;;  %v7750_v43 = vadd.f32 %v11560_v40, %v18841_v62  ;;  %v7503_v36 = vpop.f32.mrf.mxu1  ;;  %v8444_v6 = vadd.f32 %v8197_v13, %v7747_v60  ;;  %v8581_v13 = vadd.f32 %v16656_v46, %v8446_v12 }
 0x574   : > { %9145 = vst.msk [vmem:[%s16317_s16 + $0xa8] sm:$0x1] %vm8875_vm6, %v9129_v24  ;;  %v8869_v25 = vmax.f32 %v8787_v47, %v8837_v21  ;;  %v9225_v51 = vrot.slane %v8790_v48, 1  ;;  %v8788_v50 = vmax.f32 %v8700_v56, %v8704_v31  ;;  %v7748_v28 = vadd.f32 %v7503_v36, %v18842_v61  ;;  %v18846_v47 = vld [vmem:[#allocation257_spill] sm:$0xff] }
 0x575   : > { %9161 = vst.msk [vmem:[%s16317_s16 + $0xa7] sm:$0x4] %vm8892_vm7, %v9129_v24  ;;  %v11694_v19 = vpop.f32.mrf.mxu0  ;;  %v11563_v39 = vpop.f32.mrf.mxu1  ;;  %v8447_v33 = vadd.f32 %v11690_v8, %v7750_v43  ;;  %v8579_v2 = vadd.f32 %v16656_v46, %v8444_v6  ;;  %v8709_v3 = vmax.f32 %v8581_v13, 0.0  ;;  %v18848_v6 = vld [vmem:[#allocation252_spill] sm:$0xff]  ;;  %v18849_v13 = vld [vmem:[#allocation255_spill] sm:$0xff] }
 0x576   : > { %9177 = vst.msk [vmem:[%s16317_s16 + $0xa6] sm:$0x10] %vm8909_vm8, %v9129_v24  ;;  %8920 = vst.msk [vmem:[%s16317_s16 + $0x9e] sm:$0x10] %vm8909_vm8, %v8869_v25  ;;  %v9257_v22 = vmax.f32 %v8790_v48, %v9225_v51  ;;  %v8969_v32 = vrot.slane %v8788_v50, 1  ;;  %v7753_v58 = vadd.f32 %v11563_v39, %v18843_v14  ;;  %v8445_v30 = vadd.f32 %v8200_v34, %v7748_v28 }
 0x577   : > { %9193 = vst.msk [vmem:[%s16317_s16 + $0xa5] sm:$0x40] %vm8926_vm9, %v9129_v24  ;;  %8937 = vst.msk [vmem:[%s16317_s16 + $0x9d] sm:$0x40] %vm8926_vm9, %v8869_v25  ;;  %v8216_v23 = vpop.f32.mrf.mxu0  ;;  %v7516_v11 = vpop.f32.mrf.mxu1  ;;  %v8582_v16 = vadd.f32 %v16656_v46, %v8447_v33 }
 0x578   : > { %8886 = vst.msk [vmem:[%s16317_s16 + $0xa0] sm:$0x1] %vm8875_vm6, %v8869_v25  ;;  %9273 = vst.msk [vmem:[%s16317_s16 + $0xac] sm:$0x1] %vm8875_vm6, %v9257_v22  ;;  %v9001_v20 = vmax.f32 %v8788_v50, %v8969_v32  ;;  %v8450_v5 = vadd.f32 %v11693_v35, %v7753_v58  ;;  %v7751_v54 = vadd.f32 %v7516_v11, %v18844_v57  ;;  %v8707_v35 = vmax.f32 %v8579_v2, 0.0  ;;  %v18850_v2 = vld [vmem:[#allocation256_spill] sm:$0xff] }
 0x579   : > { %8903 = vst.msk [vmem:[%s16317_s16 + $0x9f] sm:$0x4] %vm8892_vm7, %v8869_v25  ;;  %9289 = vst.msk [vmem:[%s16317_s16 + $0xab] sm:$0x4] %vm8892_vm7, %v9257_v22  ;;  %v11697_v29 = vpop.f32.mrf.mxu0  ;;  %v11564_v27 = vpop.f32.mrf.mxu1  ;;  %v8580_v56 = vadd.f32 %v16656_v46, %v8445_v30  ;;  %v8710_v31 = vmax.f32 %v8582_v16, 0.0 }
 0x57a   : > { %9305 = vst.msk [vmem:[%s16317_s16 + $0xaa] sm:$0x10] %vm8909_vm8, %v9257_v22  ;;  %9049 = vst.msk [vmem:[%s16317_s16 + $0xa2] sm:$0x10] %vm8909_vm8, %v9001_v20  ;;  %v8585_v8 = vadd.f32 %v16656_v46, %v8450_v5  ;;  %v8448_v1 = vadd.f32 %v8213_v45, %v7751_v54  ;;  %v7754_v52 = vadd.f32 %v11564_v27, %v18845_v7  ;;  %v18847_v45 = vld [vmem:[#allocation273_spill] sm:$0xff]  ;;  %v18851_v7 = vld [vmem:[#allocation275_spill] sm:$0xff] }
 0x57b   : > { %9321 = vst.msk [vmem:[%s16317_s16 + $0xa9] sm:$0x40] %vm8926_vm9, %v9257_v22  ;;  %9065 = vst.msk [vmem:[%s16317_s16 + $0xa1] sm:$0x40] %vm8926_vm9, %v9001_v20  ;;  %v8229_v17 = vpop.f32.mrf.mxu0  ;;  %v7519_v15 = vpop.f32.mrf.mxu1 }
 0x57c   : > { %9017 = vst.msk [vmem:[%s16317_s16 + $0xa4] sm:$0x1] %vm8875_vm6, %v9001_v20  ;;  %v8713_v34 = vmax.f32 %v8585_v8, 0.0  ;;  %v8583_v38 = vadd.f32 %v16656_v46, %v8448_v1  ;;  %v8451_v44 = vadd.f32 %v11694_v19, %v7754_v52  ;;  %v7752_v49 = vadd.f32 %v7519_v15, %v18846_v47 }
 0x57d   : > { %9033 = vst.msk [vmem:[%s16317_s16 + $0xa3] sm:$0x4] %vm8892_vm7, %v9001_v20  ;;  %v11698_v26 = vpop.f32.mrf.mxu0  ;;  %v11567_v59 = vpop.f32.mrf.mxu1  ;;  %v8708_v19 = vmax.f32 %v8580_v56, 0.0 }
 0x57e   : > { %v8793_v60 = vmax.f32 %v8709_v3, %v8713_v34  ;;  %v8711_v40 = vmax.f32 %v8583_v38, 0.0  ;;  %v8586_v24 = vadd.f32 %v16656_v46, %v8451_v44  ;;  %v8449_v21 = vadd.f32 %v8216_v23, %v7752_v49  ;;  %v18852_v44 = vld [vmem:[#allocation259_spill] sm:$0xff] }
 0x57f   : > { %v8232_v48 = vpop.f32.mrf.mxu0  ;;  %v7757_v12 = vadd.f32 %v11567_v59, %v18847_v45  ;;  %v7532_v62 = vpop.f32.mrf.mxu1 }
 0x580   : > { %v9098_v43 = vrot.slane %v8793_v60, 1  ;;  %v8791_v36 = vmax.f32 %v8707_v35, %v8711_v40  ;;  %v8714_v25 = vmax.f32 %v8586_v24, 0.0  ;;  %v8584_v51 = vadd.f32 %v16656_v46, %v8449_v21  ;;  %v18853_v40 = vld [vmem:[#allocation277_spill] sm:$0xff] }
 0x581   : > { %v11701_v50 = vpop.f32.mrf.mxu0  ;;  %v7755_v61 = vadd.f32 %v7532_v62, %v18848_v6  ;;  %v11568_v28 = vpop.f32.mrf.mxu1  ;;  %v8454_v23 = vadd.f32 %v11697_v29, %v7757_v12 }
 0x582   : > { %v9130_v39 = vmax.f32 %v8793_v60, %v9098_v43  ;;  %v8838_v22 = vrot.slane %v8791_v36, 1  ;;  %v8794_v32 = vmax.f32 %v8710_v31, %v8714_v25  ;;  %v8712_v14 = vmax.f32 %v8584_v51, 0.0 }
 0x583   : > { %v8245_v58 = vpop.f32.mrf.mxu0  ;;  %v7758_v33 = vadd.f32 %v11568_v28, %v18849_v13  ;;  %v7535_v11 = vpop.f32.mrf.mxu1  ;;  %v8452_v29 = vadd.f32 %v8229_v17, %v7755_v61  ;;  %v8589_v17 = vadd.f32 %v16656_v46, %v8454_v23 }
 0x584   : > { %9146 = vst.msk [vmem:[%s16317_s16 + $0xb8] sm:$0x1] %vm8875_vm6, %v9130_v39  ;;  %v8870_v20 = vmax.f32 %v8791_v36, %v8838_v22  ;;  %v9226_v5 = vrot.slane %v8794_v32, 1  ;;  %v8792_v57 = vmax.f32 %v8708_v19, %v8712_v14  ;;  %v7756_v30 = vadd.f32 %v7535_v11, %v18850_v2  ;;  %v18854_v36 = vld [vmem:[#allocation283_spill] sm:$0xff] }
 0x585   : > { %9162 = vst.msk [vmem:[%s16317_s16 + $0xb7] sm:$0x4] %vm8892_vm7, %v9130_v39  ;;  %v11702_v54 = vpop.f32.mrf.mxu0  ;;  %v11571_v27 = vpop.f32.mrf.mxu1  ;;  %v8455_v16 = vadd.f32 %v11698_v26, %v7758_v33  ;;  %v8587_v35 = vadd.f32 %v16656_v46, %v8452_v29  ;;  %v8717_v31 = vmax.f32 %v8589_v17, 0.0 }
 0x586   : > { %9178 = vst.msk [vmem:[%s16317_s16 + $0xb6] sm:$0x10] %vm8909_vm8, %v9130_v39  ;;  %8921 = vst.msk [vmem:[%s16317_s16 + $0xae] sm:$0x10] %vm8909_vm8, %v8870_v20  ;;  %v9258_v8 = vmax.f32 %v8794_v32, %v9226_v5  ;;  %v8970_v1 = vrot.slane %v8792_v57, 1  ;;  %v7761_v52 = vadd.f32 %v11571_v27, %v18851_v7  ;;  %v8453_v56 = vadd.f32 %v8232_v48, %v7756_v30 }
 0x587   : > { %9194 = vst.msk [vmem:[%s16317_s16 + $0xb5] sm:$0x40] %vm8926_vm9, %v9130_v39  ;;  %8938 = vst.msk [vmem:[%s16317_s16 + $0xad] sm:$0x40] %vm8926_vm9, %v8870_v20  ;;  %v8248_v3 = vpop.f32.mrf.mxu0  ;;  %v7548_v15 = vpop.f32.mrf.mxu1  ;;  %v8590_v45 = vadd.f32 %v16656_v46, %v8455_v16 }
 0x588   : > { %8887 = vst.msk [vmem:[%s16317_s16 + $0xb0] sm:$0x1] %vm8875_vm6, %v8870_v20  ;;  %9274 = vst.msk [vmem:[%s16317_s16 + $0xbc] sm:$0x1] %vm8875_vm6, %v9258_v8  ;;  %v9002_v34 = vmax.f32 %v8792_v57, %v8970_v1  ;;  %v8458_v38 = vadd.f32 %v11701_v50, %v7761_v52  ;;  %v7759_v47 = vadd.f32 %v7548_v15, %v18852_v44  ;;  %v8715_v50 = vmax.f32 %v8587_v35, 0.0  ;;  %v18857_v44 = vld [vmem:[#allocation18_spill] sm:$0xff] }
 0x589   : > { %8904 = vst.msk [vmem:[%s16317_s16 + $0xaf] sm:$0x4] %vm8892_vm7, %v8870_v20  ;;  %9290 = vst.msk [vmem:[%s16317_s16 + $0xbb] sm:$0x4] %vm8892_vm7, %v9258_v8  ;;  %v11705_v49 = vpop.f32.mrf.mxu0  ;;  %v11572_v59 = vpop.f32.mrf.mxu1  ;;  %v8588_v19 = vadd.f32 %v16656_v46, %v8453_v56  ;;  %v8718_v14 = vmax.f32 %v8590_v45, 0.0 }
 0x58a   : > { %9306 = vst.msk [vmem:[%s16317_s16 + $0xba] sm:$0x10] %vm8909_vm8, %v9258_v8  ;;  %9050 = vst.msk [vmem:[%s16317_s16 + $0xb2] sm:$0x10] %vm8909_vm8, %v9002_v34  ;;  %v8593_v26 = vadd.f32 %v16656_v46, %v8458_v38  ;;  %v8456_v60 = vadd.f32 %v8245_v58, %v7759_v47  ;;  %v7762_v24 = vadd.f32 %v11572_v59, %v18853_v40  ;;  %v18855_v58 = vld [vmem:[#allocation12_spill] sm:$0xff]  ;;  %v18858_v59 = vld [vmem:[#allocation266_spill] sm:$0xff] }
 0x58b   : > { %9322 = vst.msk [vmem:[%s16317_s16 + $0xb9] sm:$0x40] %vm8926_vm9, %v9258_v8  ;;  %9066 = vst.msk [vmem:[%s16317_s16 + $0xb1] sm:$0x40] %vm8926_vm9, %v9002_v34  ;;  %v8261_v21 = vpop.f32.mrf.mxu0  ;;  %v7551_v12 = vpop.f32.mrf.mxu1  ;;  %v16978_v40 = vld [vmem:[%s17140_s2] ss:$0 sm:$0xff] }
 0x58c   : > { %9018 = vst.msk [vmem:[%s16317_s16 + $0xb4] sm:$0x1] %vm8875_vm6, %v9002_v34  ;;  %v8721_v48 = vmax.f32 %v8593_v26, 0.0  ;;  %v8591_v62 = vadd.f32 %v16656_v46, %v8456_v60  ;;  %v8459_v43 = vadd.f32 %v11702_v54, %v7762_v24  ;;  %v7760_v25 = vadd.f32 %v7551_v12, %v18854_v36 }
 0x58d   : > { %9034 = vst.msk [vmem:[%s16317_s16 + $0xb3] sm:$0x4] %vm8892_vm7, %v9002_v34  ;;  %v11706_v51 = vpop.f32.mrf.mxu0  ;;  %v11575_v6 = vpop.f32.mrf.mxu1  ;;  %v8716_v54 = vmax.f32 %v8588_v19, 0.0 }
 0x58e   : > { %v8797_v61 = vmax.f32 %v8717_v31, %v8721_v48  ;;  %v8719_v28 = vmax.f32 %v8591_v62, 0.0  ;;  %v8594_v39 = vadd.f32 %v16656_v46, %v8459_v43  ;;  %v8457_v22 = vadd.f32 %v8248_v3, %v7760_v25  ;;  %v18856_v3 = vld [vmem:[#allocation13_spill] sm:$0xff] }
 0x58f   : > { %v8264_v32 = vpop.f32.mrf.mxu0  ;;  %v7765_v23 = vadd.f32 %v11575_v6, %v18855_v58  ;;  %v7564_v13 = vpop.f32.mrf.mxu1 }
 0x590   : > { %v9099_v33 = vrot.slane %v8797_v61, 1  ;;  %v8795_v11 = vmax.f32 %v8715_v50, %v8719_v28  ;;  %v8722_v20 = vmax.f32 %v8594_v39, 0.0  ;;  %v8592_v5 = vadd.f32 %v16656_v46, %v8457_v22 }
 0x591   : > { %v11709_v57 = vpop.f32.mrf.mxu0  ;;  %v7763_v29 = vadd.f32 %v7564_v13, %v16162_v63  ;;  %v11576_v2 = vpop.f32.mrf.mxu1  ;;  %v8462_v52 = vadd.f32 %v11705_v49, %v7765_v23 }
 0x592   : > { %v9131_v30 = vmax.f32 %v8797_v61, %v9099_v33  ;;  %v8839_v27 = vrot.slane %v8795_v11, 1  ;;  %v8798_v8 = vmax.f32 %v8718_v14, %v8722_v20  ;;  %v8720_v1 = vmax.f32 %v8592_v5, 0.0  ;;  %v18859_v14 = vld [vmem:[#allocation102_spill] sm:$0xff] }
 0x593   : > { %v8277_v7 = vpop.f32.mrf.mxu0  ;;  %v7766_v17 = vadd.f32 %v11576_v2, %v18856_v3  ;;  %v7567_v16 = vpop.f32.mrf.mxu1  ;;  %v8460_v38 = vadd.f32 %v8261_v21, %v7763_v29  ;;  %v8597_v24 = vadd.f32 %v16978_v40, %v8462_v52  ;;  %v18860_v2 = vld [vmem:[#allocation103_spill] sm:$0xff] }
 0x594   : > { %9147 = vst.msk [vmem:[%s16317_s16 + $0xc8] sm:$0x1] %vm8875_vm6, %v9131_v30  ;;  %v8871_v63 = vmax.f32 %v8795_v11, %v8839_v27  ;;  %v9227_v46 = vrot.slane %v8798_v8, 1  ;;  %v8796_v15 = vmax.f32 %v8716_v54, %v8720_v1  ;;  %v7764_v47 = vadd.f32 %v7567_v16, %v18857_v44 }
 0x595   : > { %9163 = vst.msk [vmem:[%s16317_s16 + $0xc7] sm:$0x4] %vm8892_vm7, %v9131_v30  ;;  %v11710_v34 = vpop.f32.mrf.mxu0  ;;  %v11579_v49 = vpop.f32.mrf.mxu1  ;;  %v8463_v21 = vadd.f32 %v11706_v51, %v7766_v17  ;;  %v8595_v43 = vadd.f32 %v16978_v40, %v8460_v38 }
 0x596   : > { %9179 = vst.msk [vmem:[%s16317_s16 + $0xc6] sm:$0x10] %vm8909_vm8, %v9131_v30  ;;  %8922 = vst.msk [vmem:[%s16317_s16 + $0xbe] sm:$0x10] %vm8909_vm8, %v8871_v63  ;;  %v9259_v35 = vmax.f32 %v8798_v8, %v9227_v46  ;;  %v8971_v56 = vrot.slane %v8796_v15, 1  ;;  %v7769_v26 = vadd.f32 %v11579_v49, %v18858_v59  ;;  %v8461_v36 = vadd.f32 %v8264_v32, %v7764_v47 }
 0x597   : > { %9195 = vst.msk [vmem:[%s16317_s16 + $0xc5] sm:$0x40] %vm8926_vm9, %v9131_v30  ;;  %8939 = vst.msk [vmem:[%s16317_s16 + $0xbd] sm:$0x40] %vm8926_vm9, %v8871_v63  ;;  %v8280_v60 = vpop.f32.mrf.mxu0  ;;  %v7580_v31 = vpop.f32.mrf.mxu1  ;;  %v8598_v61 = vadd.f32 %v16978_v40, %v8463_v21  ;;  %v8723_v13 = vmax.f32 %v8595_v43, 0.0 }
 0x598   : > { %8888 = vst.msk [vmem:[%s16317_s16 + $0xc0] sm:$0x1] %vm8875_vm6, %v8871_v63  ;;  %9275 = vst.msk [vmem:[%s16317_s16 + $0xcc] sm:$0x1] %vm8875_vm6, %v9259_v35  ;;  %v9003_v45 = vmax.f32 %v8796_v15, %v8971_v56  ;;  %v8466_v12 = vadd.f32 %v11709_v57, %v7769_v26  ;;  %v7767_v48 = vadd.f32 %v7580_v31, %v16182_v10  ;;  %v8725_v10 = vmax.f32 %v8597_v24, 0.0  ;;  %v18861_v24 = vld [vmem:[#allocation268_spill] sm:$0xff] }
 0x599   : > { %8905 = vst.msk [vmem:[%s16317_s16 + $0xbf] sm:$0x4] %vm8892_vm7, %v8871_v63  ;;  %9291 = vst.msk [vmem:[%s16317_s16 + $0xcb] sm:$0x4] %vm8892_vm7, %v9259_v35  ;;  %v11713_v62 = vpop.f32.mrf.mxu0  ;;  %v11580_v25 = vpop.f32.mrf.mxu1  ;;  %v8596_v33 = vadd.f32 %v16978_v40, %v8461_v36  ;;  %v8726_v29 = vmax.f32 %v8598_v61, 0.0 }
 0x59a   : > { %9307 = vst.msk [vmem:[%s16317_s16 + $0xca] sm:$0x10] %vm8909_vm8, %v9259_v35  ;;  %9051 = vst.msk [vmem:[%s16317_s16 + $0xc2] sm:$0x10] %vm8909_vm8, %v9003_v45  ;;  %v8601_v51 = vadd.f32 %v16978_v40, %v8466_v12  ;;  %v8464_v50 = vadd.f32 %v8277_v7, %v7767_v48  ;;  %v7770_v19 = vadd.f32 %v11580_v25, %v16185_v0 }
 0x59b   : > { %9323 = vst.msk [vmem:[%s16317_s16 + $0xc9] sm:$0x40] %vm8926_vm9, %v9259_v35  ;;  %9067 = vst.msk [vmem:[%s16317_s16 + $0xc1] sm:$0x40] %vm8926_vm9, %v9003_v45  ;;  %v8293_v6 = vpop.f32.mrf.mxu0  ;;  %v7583_v28 = vpop.f32.mrf.mxu1  ;;  %v8724_v17 = vmax.f32 %v8596_v33, 0.0 }
 0x59c   : > { %9019 = vst.msk [vmem:[%s16317_s16 + $0xc4] sm:$0x1] %vm8875_vm6, %v9003_v45  ;;  %v8729_v39 = vmax.f32 %v8601_v51, 0.0  ;;  %v8599_v22 = vadd.f32 %v16978_v40, %v8464_v50  ;;  %v8467_v32 = vadd.f32 %v11710_v34, %v7770_v19  ;;  %v7768_v58 = vadd.f32 %v7583_v28, %v18859_v14 }
 0x59d   : > { %9035 = vst.msk [vmem:[%s16317_s16 + $0xc3] sm:$0x4] %vm8892_vm7, %v9003_v45  ;;  %v11714_v23 = vpop.f32.mrf.mxu0  ;;  %v11583_v11 = vpop.f32.mrf.mxu1 }
 0x59e   : > { %v8801_v20 = vmax.f32 %v8725_v10, %v8729_v39  ;;  %v8727_v5 = vmax.f32 %v8599_v22, 0.0  ;;  %v8602_v0 = vadd.f32 %v16978_v40, %v8467_v32  ;;  %v8465_v57 = vadd.f32 %v8280_v60, %v7768_v58 }
 0x59f   : > { %v8296_v54 = vpop.f32.mrf.mxu0  ;;  %v7773_v30 = vadd.f32 %v11583_v11, %v18860_v2  ;;  %v7596_v27 = vpop.f32.mrf.mxu1 }
 0x5a0   : > { %v9100_v8 = vrot.slane %v8801_v20, 1  ;;  %v8799_v1 = vmax.f32 %v8723_v13, %v8727_v5  ;;  %v8730_v7 = vmax.f32 %v8602_v0, 0.0  ;;  %v8600_v52 = vadd.f32 %v16978_v40, %v8465_v57 }
 0x5a1   : > { %v11717_v3 = vpop.f32.mrf.mxu0  ;;  %v7771_v16 = vadd.f32 %v7596_v27, %v16202_v41  ;;  %v11584_v63 = vpop.f32.mrf.mxu1  ;;  %v8470_v47 = vadd.f32 %v11713_v62, %v7773_v30 }
 0x5a2   : > { %v9132_v46 = vmax.f32 %v8801_v20, %v9100_v8  ;;  %v8840_v15 = vrot.slane %v8799_v1, 1  ;;  %v8802_v34 = vmax.f32 %v8726_v29, %v8730_v7  ;;  %v8728_v38 = vmax.f32 %v8600_v52, 0.0 }
 0x5a3   : > { %v8309_v44 = vpop.f32.mrf.mxu0  ;;  %v7774_v49 = vadd.f32 %v11584_v63, %v16205_v37  ;;  %v7599_v35 = vpop.f32.mrf.mxu1  ;;  %v8468_v60 = vadd.f32 %v8293_v6, %v7771_v16  ;;  %v8605_v62 = vadd.f32 %v16978_v40, %v8470_v47 }
 0x5a4   : > { %9148 = vst.msk [vmem:[%s16317_s16 + $0xd8] sm:$0x1] %vm8875_vm6, %v9132_v46  ;;  %v8872_v41 = vmax.f32 %v8799_v1, %v8840_v15  ;;  %v9228_v56 = vrot.slane %v8802_v34, 1  ;;  %v8800_v59 = vmax.f32 %v8724_v17, %v8728_v38  ;;  %v7772_v37 = vadd.f32 %v7599_v35, %v18861_v24 }
 0x5a5   : > { %9164 = vst.msk [vmem:[%s16317_s16 + $0xd7] sm:$0x4] %vm8892_vm7, %v9132_v46  ;;  %v11718_v26 = vpop.f32.mrf.mxu0  ;;  %v11587_v21 = vpop.f32.mrf.mxu1  ;;  %v8471_v43 = vadd.f32 %v11714_v23, %v7774_v49  ;;  %v8603_v19 = vadd.f32 %v16978_v40, %v8468_v60 }
 0x5a6   : > { %9180 = vst.msk [vmem:[%s16317_s16 + $0xd6] sm:$0x10] %vm8909_vm8, %v9132_v46  ;;  %8923 = vst.msk [vmem:[%s16317_s16 + $0xce] sm:$0x10] %vm8909_vm8, %v8872_v41  ;;  %v9260_v31 = vmax.f32 %v8802_v34, %v9228_v56  ;;  %v8972_v45 = vrot.slane %v8800_v59, 1  ;;  %v7777_v12 = vadd.f32 %v11587_v21, %v16217_v55  ;;  %v8469_v6 = vadd.f32 %v8296_v54, %v7772_v37 }
 0x5a7   : > { %9196 = vst.msk [vmem:[%s16317_s16 + $0xd5] sm:$0x40] %vm8926_vm9, %v9132_v46  ;;  %8940 = vst.msk [vmem:[%s16317_s16 + $0xcd] sm:$0x40] %vm8926_vm9, %v8872_v41  ;;  %v8312_v48 = vpop.f32.mrf.mxu0  ;;  %v7612_v36 = vpop.f32.mrf.mxu1  ;;  %v8606_v32 = vadd.f32 %v16978_v40, %v8471_v43  ;;  %v8731_v20 = vmax.f32 %v8603_v19, 0.0 }
 0x5a8   : > { %8889 = vst.msk [vmem:[%s16317_s16 + $0xd0] sm:$0x1] %vm8875_vm6, %v8872_v41  ;;  %9276 = vst.msk [vmem:[%s16317_s16 + $0xdc] sm:$0x1] %vm8875_vm6, %v9260_v31  ;;  %v9004_v25 = vmax.f32 %v8800_v59, %v8972_v45  ;;  %v8474_v51 = vadd.f32 %v11717_v3, %v7777_v12  ;;  %v7775_v55 = vadd.f32 %v7612_v36, %v16222_v42  ;;  %v8733_v42 = vmax.f32 %v8605_v62, 0.0  ;;  %v18863_v59 = vld [vmem:[#allocation19_spill] sm:$0xff] }
 0x5a9   : > { %8906 = vst.msk [vmem:[%s16317_s16 + $0xcf] sm:$0x4] %vm8892_vm7, %v8872_v41  ;;  %9292 = vst.msk [vmem:[%s16317_s16 + $0xdb] sm:$0x4] %vm8892_vm7, %v9260_v31  ;;  %v11721_v50 = vpop.f32.mrf.mxu0  ;;  %v11588_v10 = vpop.f32.mrf.mxu1  ;;  %v8604_v5 = vadd.f32 %v16978_v40, %v8469_v6  ;;  %v8734_v30 = vmax.f32 %v8606_v32, 0.0 }
 0x5aa   : > { %9308 = vst.msk [vmem:[%s16317_s16 + $0xda] sm:$0x10] %vm8909_vm8, %v9260_v31  ;;  %9052 = vst.msk [vmem:[%s16317_s16 + $0xd2] sm:$0x10] %vm8909_vm8, %v9004_v25  ;;  %v8609_v61 = vadd.f32 %v16978_v40, %v8474_v51  ;;  %v8472_v28 = vadd.f32 %v8309_v44, %v7775_v55  ;;  %v7778_v39 = vadd.f32 %v11588_v10, %v16225_v9  ;;  %v18862_v44 = vld [vmem:[#allocation270_spill] sm:$0xff] }
 0x5ab   : > { %9324 = vst.msk [vmem:[%s16317_s16 + $0xd9] sm:$0x40] %vm8926_vm9, %v9260_v31  ;;  %9068 = vst.msk [vmem:[%s16317_s16 + $0xd1] sm:$0x40] %vm8926_vm9, %v9004_v25  ;;  %v8325_v22 = vpop.f32.mrf.mxu0  ;;  %v7615_v14 = vpop.f32.mrf.mxu1  ;;  %v8732_v3 = vmax.f32 %v8604_v5, 0.0  ;;  %v18864_v31 = vld [vmem:[#allocation272_spill] sm:$0xff] }
 0x5ac   : > { %9020 = vst.msk [vmem:[%s16317_s16 + $0xd4] sm:$0x1] %vm8875_vm6, %v9004_v25  ;;  %v8737_v58 = vmax.f32 %v8609_v61, 0.0  ;;  %v8607_v23 = vadd.f32 %v16978_v40, %v8472_v28  ;;  %v8475_v13 = vadd.f32 %v11718_v26, %v7778_v39  ;;  %v7776_v33 = vadd.f32 %v7615_v14, %v16232_v18  ;;  %v18866_v28 = vld [vmem:[#allocation274_spill] sm:$0xff] }
 0x5ad   : > { %9036 = vst.msk [vmem:[%s16317_s16 + $0xd3] sm:$0x4] %vm8892_vm7, %v9004_v25  ;;  %v11722_v11 = vpop.f32.mrf.mxu0  ;;  %v11591_v0 = vpop.f32.mrf.mxu1  ;;  %v18865_v25 = vld [vmem:[#allocation22_spill] sm:$0xff] }
 0x5ae   : > { %v8805_v57 = vmax.f32 %v8733_v42, %v8737_v58  ;;  %v8735_v54 = vmax.f32 %v8607_v23, 0.0  ;;  %v8610_v9 = vadd.f32 %v16978_v40, %v8475_v13  ;;  %v8473_v29 = vadd.f32 %v8312_v48, %v7776_v33  ;;  %v18867_v13 = vld [vmem:[#allocation106_spill] sm:$0xff] }
 0x5af   : > { %v8328_v2 = vpop.f32.mrf.mxu0  ;;  %v7781_v27 = vadd.f32 %v11591_v0, %v16237_v53  ;;  %v7628_v8 = vpop.f32.mrf.mxu1 }
 0x5b0   : > { %v9101_v1 = vrot.slane %v8805_v57, 1  ;;  %v8803_v7 = vmax.f32 %v8731_v20, %v8735_v54  ;;  %v8738_v18 = vmax.f32 %v8610_v9, 0.0  ;;  %v8608_v52 = vadd.f32 %v16978_v40, %v8473_v29 }
 0x5b1   : > { %v7779_v17 = vadd.f32 %v7628_v8, %v16242_v4  ;;  %v11592_v16 = vpop.f32.mrf.mxu1  ;;  %v11725_v63 = vpop.f32.mrf.mxu0  ;;  %v8478_v38 = vadd.f32 %v11721_v50, %v7781_v27 }
 0x5b2   : > { %v9133_v46 = vmax.f32 %v8805_v57, %v9101_v1  ;;  %v8841_v15 = vrot.slane %v8803_v7, 1  ;;  %v8806_v34 = vmax.f32 %v8734_v30, %v8738_v18  ;;  %v8736_v53 = vmax.f32 %v8608_v52, 0.0 }
 0x5b3   : > { %v7782_v47 = vadd.f32 %v11592_v16, %v18862_v44  ;;  %v7631_v49 = vpop.f32.mrf.mxu1  ;;  %v8476_v56 = vadd.f32 %v8325_v22, %v7779_v17  ;;  %v8341_v60 = vpop.f32.mrf.mxu0  ;;  %v8613_v12 = vadd.f32 %v16978_v40, %v8478_v38 }
 0x5b4   : > { %9149 = vst.msk [vmem:[%s16317_s16 + $0xe8] sm:$0x1] %vm8875_vm6, %v9133_v46  ;;  %v8873_v4 = vmax.f32 %v8803_v7, %v8841_v15  ;;  %v9229_v35 = vrot.slane %v8806_v34, 1  ;;  %v8804_v41 = vmax.f32 %v8732_v3, %v8736_v53  ;;  %v7780_v26 = vadd.f32 %v7631_v49, %v18863_v59 }
 0x5b5   : > { %9165 = vst.msk [vmem:[%s16317_s16 + $0xe7] sm:$0x4] %vm8892_vm7, %v9133_v46  ;;  %v11595_v24 = vpop.f32.mrf.mxu1  ;;  %v8479_v48 = vadd.f32 %v11722_v11, %v7782_v47  ;;  %v8611_v55 = vadd.f32 %v16978_v40, %v8476_v56  ;;  %v11726_v19 = vpop.f32.mrf.mxu0  ;;  %v8741_v22 = vmax.f32 %v8613_v12, 0.0 }
 0x5b6   : > { %9181 = vst.msk [vmem:[%s16317_s16 + $0xe6] sm:$0x10] %vm8909_vm8, %v9133_v46  ;;  %8924 = vst.msk [vmem:[%s16317_s16 + $0xde] sm:$0x10] %vm8909_vm8, %v8873_v4  ;;  %v9261_v37 = vmax.f32 %v8806_v34, %v9229_v35  ;;  %v8973_v21 = vrot.slane %v8804_v41, 1  ;;  %v7785_v45 = vadd.f32 %v11595_v24, %v18864_v31  ;;  %v8477_v50 = vadd.f32 %v8328_v2, %v7780_v26 }
 0x5b7   : > { %9197 = vst.msk [vmem:[%s16317_s16 + $0xe5] sm:$0x40] %vm8926_vm9, %v9133_v46  ;;  %8941 = vst.msk [vmem:[%s16317_s16 + $0xdd] sm:$0x40] %vm8926_vm9, %v8873_v4  ;;  %v7644_v62 = vpop.f32.mrf.mxu1  ;;  %v8614_v42 = vadd.f32 %v16978_v40, %v8479_v48  ;;  %v8739_v11 = vmax.f32 %v8611_v55, 0.0  ;;  %v8344_v5 = vpop.f32.mrf.mxu0 }
 0x5b8   : > { %8890 = vst.msk [vmem:[%s16317_s16 + $0xe0] sm:$0x1] %vm8875_vm6, %v8873_v4  ;;  %9277 = vst.msk [vmem:[%s16317_s16 + $0xec] sm:$0x1] %vm8875_vm6, %v9261_v37  ;;  %v9005_v43 = vmax.f32 %v8804_v41, %v8973_v21  ;;  %v8482_v36 = vadd.f32 %v11725_v63, %v7785_v45  ;;  %v7783_v51 = vadd.f32 %v7644_v62, %v18865_v25 }
 0x5b9   : > { %8907 = vst.msk [vmem:[%s16317_s16 + $0xdf] sm:$0x4] %vm8892_vm7, %v8873_v4  ;;  %9293 = vst.msk [vmem:[%s16317_s16 + $0xeb] sm:$0x4] %vm8892_vm7, %v9261_v37  ;;  %v11596_v6 = vpop.f32.mrf.mxu1  ;;  %v8612_v20 = vadd.f32 %v16978_v40, %v8477_v50  ;;  %v8742_v29 = vmax.f32 %v8614_v42, 0.0 }
 0x5ba   : > { %9309 = vst.msk [vmem:[%s16317_s16 + $0xea] sm:$0x10] %vm8909_vm8, %v9261_v37  ;;  %9053 = vst.msk [vmem:[%s16317_s16 + $0xe2] sm:$0x10] %vm8909_vm8, %v9005_v43  ;;  %v8617_v10 = vadd.f32 %v16978_v40, %v8482_v36  ;;  %v8480_v61 = vadd.f32 %v8341_v60, %v7783_v51  ;;  %v7786_v39 = vadd.f32 %v11596_v6, %v18866_v28 }
 0x5bb   : > { %9325 = vst.msk [vmem:[%s16317_s16 + $0xe9] sm:$0x40] %vm8926_vm9, %v9261_v37  ;;  %9069 = vst.msk [vmem:[%s16317_s16 + $0xe1] sm:$0x40] %vm8926_vm9, %v9005_v43  ;;  %v7647_v32 = vpop.f32.mrf.mxu1  ;;  %v8740_v1 = vmax.f32 %v8612_v20, 0.0 }
 0x5bc   : > { %9021 = vst.msk [vmem:[%s16317_s16 + $0xe4] sm:$0x1] %vm8875_vm6, %v9005_v43  ;;  %v8745_v14 = vmax.f32 %v8617_v10, 0.0  ;;  %v8615_v58 = vadd.f32 %v16978_v40, %v8480_v61  ;;  %v8483_v23 = vadd.f32 %v11726_v19, %v7786_v39  ;;  %v7784_v33 = vadd.f32 %v7647_v32, %v18867_v13 }
 0x5bd   : > { %9037 = vst.msk [vmem:[%s16317_s16 + $0xe3] sm:$0x4] %vm8892_vm7, %v9005_v43 }
 0x5be   : > { %v8809_v0 = vmax.f32 %v8741_v22, %v8745_v14  ;;  %v8743_v57 = vmax.f32 %v8615_v58, 0.0  ;;  %v8618_v54 = vadd.f32 %v16978_v40, %v8483_v23  ;;  %v8481_v9 = vadd.f32 %v8344_v5, %v7784_v33 }
 0x5c0   : > { %v9102_v2 = vrot.slane %v8809_v0, 1  ;;  %v8807_v30 = vmax.f32 %v8739_v11, %v8743_v57  ;;  %v8746_v27 = vmax.f32 %v8618_v54, 0.0  ;;  %v8616_v8 = vadd.f32 %v16978_v40, %v8481_v9 }
 0x5c2   : > { %v9134_v7 = vmax.f32 %v8809_v0, %v9102_v2  ;;  %v8842_v18 = vrot.slane %v8807_v30, 1  ;;  %v8810_v52 = vmax.f32 %v8742_v29, %v8746_v27  ;;  %v8744_v3 = vmax.f32 %v8616_v8, 0.0 }
 0x5c4   : > { %9150 = vst.msk [vmem:[%s16317_s16 + $0xf8] sm:$0x1] %vm8875_vm6, %v9134_v7  ;;  %v8874_v40 = vmax.f32 %v8807_v30, %v8842_v18  ;;  %v9230_v17 = vrot.slane %v8810_v52, 1  ;;  %v8808_v16 = vmax.f32 %v8740_v1, %v8744_v3 }
 0x5c5   : > { %9166 = vst.msk [vmem:[%s16317_s16 + $0xf7] sm:$0x4] %vm8892_vm7, %v9134_v7 }
 0x5c6   : > { %9182 = vst.msk [vmem:[%s16317_s16 + $0xf6] sm:$0x10] %vm8909_vm8, %v9134_v7  ;;  %8925 = vst.msk [vmem:[%s16317_s16 + $0xee] sm:$0x10] %vm8909_vm8, %v8874_v40  ;;  %v9262_v63 = vmax.f32 %v8810_v52, %v9230_v17  ;;  %v8974_v46 = vrot.slane %v8808_v16, 1 }
 0x5c7   : > { %9198 = vst.msk [vmem:[%s16317_s16 + $0xf5] sm:$0x40] %vm8926_vm9, %v9134_v7  ;;  %8942 = vst.msk [vmem:[%s16317_s16 + $0xed] sm:$0x40] %vm8926_vm9, %v8874_v40 }
 0x5c8   : > { %8891 = vst.msk [vmem:[%s16317_s16 + $0xf0] sm:$0x1] %vm8875_vm6, %v8874_v40  ;;  %9278 = vst.msk [vmem:[%s16317_s16 + $0xfc] sm:$0x1] %vm8875_vm6, %v9262_v63  ;;  %v9006_v15 = vmax.f32 %v8808_v16, %v8974_v46 }
 0x5c9   : > { %8908 = vst.msk [vmem:[%s16317_s16 + $0xef] sm:$0x4] %vm8892_vm7, %v8874_v40  ;;  %9294 = vst.msk [vmem:[%s16317_s16 + $0xfb] sm:$0x4] %vm8892_vm7, %v9262_v63 }
 0x5ca   : > { %9310 = vst.msk [vmem:[%s16317_s16 + $0xfa] sm:$0x10] %vm8909_vm8, %v9262_v63  ;;  %9054 = vst.msk [vmem:[%s16317_s16 + $0xf2] sm:$0x10] %vm8909_vm8, %v9006_v15 }
 0x5cb   : > { %9326 = vst.msk [vmem:[%s16317_s16 + $0xf9] sm:$0x40] %vm8926_vm9, %v9262_v63  ;;  %9070 = vst.msk [vmem:[%s16317_s16 + $0xf1] sm:$0x40] %vm8926_vm9, %v9006_v15 }
 0x5cc   : > { %9022 = vst.msk [vmem:[%s16317_s16 + $0xf4] sm:$0x1] %vm8875_vm6, %v9006_v15 }
 0x5cd   : > { %9038 = vst.msk [vmem:[%s16317_s16 + $0xf3] sm:$0x4] %vm8892_vm7, %v9006_v15 }
 0x5ce PF: > { %s13_s12 = sadd.s32 1, %s11865_s12  }
 0x5cf   : > { %p10_p4 = scmp.ge.s32.totalorder %s13_s12, 4  }
 0x5d1   :  { %12 = sbr.rel (!%p10_p4) target bundleno = 1 (0x1), region = 63 }

</bundles_post_ra>
